<compile_context>
chip_gen: v5e
topology: v5e:2x2
jax: 0.10.0
libtpu: 0.0.40
codegen_flags: <defaults>
</compile_context>

<pallas_src>
import functools

import numpy as np
import jax
import jax.numpy as jnp
from jax.experimental import pallas as pl
from jax.experimental.pallas import tpu as pltpu

LANE = 128     # TPU lane width; conv output channels are zero-padded to this
_EPS = 1e-5    # torch BatchNorm2d default


def _round_up(x, m):
    return ((x + m - 1) // m) * m


# ------------------------------ fused kernel -------------------------------

def _fused_encoder_kernel(x_ref, w1_ref, g1_ref, b1_ref, m1_ref,
                          w2_ref, g2_ref, b2_ref, m2_ref,
                          o_ref, p1_ref, p2_ref, *,
                          l1_src, l2_src, c0, c1, ngg, n1, n2, eps):
    """Whole 2-layer encoder in one kernel body (everything VMEM-resident).

    Row ordering ("space-to-depth"): m = (2a+b)*ngg + n*G*G + u*G + v with
    spatial position (2u+a, 2v+b).  In this ordering, every (tap, parity
    block) of an im2col patch matrix is one contiguous row-slice of its
    source, so the patch build needs only static unit-stride slices.

    x_ref  : (rows_x, c0)       reordered input pixels (zero-padded rows)
    w1_ref : (K1*K1*c0, LANE)   conv1 weight, cols zero-padded to LANE
    g1/b1  : (1, LANE)          BN1 gamma/beta, zero-padded
    m1_ref : (rows1, 1)         1.0 on valid layer-1 rows, else 0.0
    w2/g2/b2/m2                 analogous for layer 2
    o_ref  : (ngg, LANE)        lane-dense output block (full-width stores)
    p1_ref : (rows1, K1*K1*c0)  scratch: layer-1 im2col patches
    p2_ref : (ngg,  K2*K2*c1)   scratch: layer-2 im2col patches
    """
    f32 = jnp.float32

    # ---------------- layer 1: in-kernel im2col + matmul + BN + ReLU --------
    p1_ref[...] = jnp.zeros_like(p1_ref)          # zero tail / padding rows
    for t, per_block in enumerate(l1_src):
        for pb in range(4):
            p1_ref[pl.ds(pb * ngg, ngg), pl.ds(t * c0, c0)] = \
                x_ref[pl.ds(per_block[pb], ngg), :]

    # Conv1 as a single MXU matmul.  The conv bias is intentionally omitted:
    # it cancels exactly under training-mode BatchNorm.
    acc1 = jnp.dot(p1_ref[...], w1_ref[...], preferred_element_type=f32)

    # Per-channel batch statistics over valid rows only (two-pass variance).
    msk1 = m1_ref[...]
    mean1 = jnp.sum(acc1 * msk1, axis=0, keepdims=True) * (1.0 / n1)
    d1 = (acc1 - mean1) * msk1
    var1 = jnp.sum(d1 * d1, axis=0, keepdims=True) * (1.0 / n1)
    scale1 = jax.lax.rsqrt(var1 + eps) * g1_ref[...]
    shift1 = b1_ref[...] - mean1 * scale1
    a1 = jnp.maximum(acc1 * scale1 + shift1, 0.0)      # (rows1, LANE), in VMEM

    # ---------------- layer 2: im2col of the VMEM-resident activation -------
    p2_ref[...] = jnp.zeros_like(p2_ref)
    for t, src in enumerate(l2_src):
        p2_ref[:, pl.ds(t * c1, c1)] = a1[src:src + ngg, :c1]

    acc2 = jnp.dot(p2_ref[...], w2_ref[...], preferred_element_type=f32)

    msk2 = m2_ref[...]
    mean2 = jnp.sum(acc2 * msk2, axis=0, keepdims=True) * (1.0 / n2)
    d2 = (acc2 - mean2) * msk2
    var2 = jnp.sum(d2 * d2, axis=0, keepdims=True) * (1.0 / n2)
    scale2 = jax.lax.rsqrt(var2 + eps) * g2_ref[...]
    shift2 = b2_ref[...] - mean2 * scale2
    o_ref[...] = jnp.maximum(acc2 * scale2 + shift2, 0.0)   # lane-dense store


# ----------------------------- Encoder wrapper -----------------------------

@functools.partial(jax.jit, static_argnums=(2,))
def encoder_forward(x_nchw, params, strides):
    """Fused forward pass.  x_nchw: [N,C,H,W] (torch layout)."""
    (w1, cb1, g1, be1), (w2, cb2, g2, be2) = params
    del cb1, cb2            # conv bias cancels exactly under training-mode BN

    N, C0, H, W = x_nchw.shape
    C1, _, K1, _ = w1.shape
    C2, _, K2, _ = w2.shape
    assert strides == (1, 2), "fused kernel is specialised to strides (1, 2)"
    assert H == W and H % 2 == 0 and C1 <= LANE and C2 <= LANE

    G = H // 2
    GG = G * G
    OH1 = H - K1 + 1                      # layer-1 output spatial size
    OH2 = (OH1 - K2) // 2 + 1             # layer-2 output spatial size
    NGG = N * GG                          # rows per parity block

    # Shift-trick validity: valid rows must never wrap across a parity block.
    for a in (0, 1):
        assert (OH1 - 1 - a) // 2 + (a + K1 - 1) // 2 < G
    assert OH2 - 1 + (K2 - 1) // 2 < G

    # ---- static tap-offset tables (source row offset per tap) --------------
    l1_src = []
    for kh in range(K1):
        for kw in range(K1):
            per_block = []
            for pb in range(4):
                a, b = pb // 2, pb % 2
                ax, ch = (a + kh) % 2, (a + kh) // 2
                bx, cw = (b + kw) % 2, (b + kw) // 2
                per_block.append((ax * 2 + bx) * NGG + ch * G + cw)
            l1_src.append(tuple(per_block))
    l2_src = []
    for kh in range(K2):
        for kw in range(K2):
            ph, a = kh // 2, kh % 2
            pw, b = kw // 2, kw % 2
            l2_src.append((a * 2 + b) * NGG + ph * G + pw)

    rows_x = _round_up(max(max(s) for s in l1_src) + NGG, 8)
    rows1 = _round_up(max(max(l2_src) + NGG, 4 * NGG), 8)

    # ---- host-side glue: space-to-depth reorder of the (tiny) input --------
    x_nhwc = jnp.transpose(x_nchw, (0, 2, 3, 1))
    x_s2d = x_nhwc.reshape(N, G, 2, G, 2, C0).transpose(2, 4, 0, 1, 3, 5)
    x_s2d = x_s2d.reshape(4 * NGG, C0)
    x_s2d = jnp.pad(x_s2d, ((0, rows_x - 4 * NGG), (0, 0)))

    # Weights / BN params, channel-padded to a full 128-lane block.
    w1m = jnp.transpose(w1, (2, 3, 1, 0)).reshape(K1 * K1 * C0, C1)
    w1m = jnp.pad(w1m, ((0, 0), (0, LANE - C1))).astype(jnp.float32)
    w2m = jnp.transpose(w2, (2, 3, 1, 0)).reshape(K2 * K2 * C1, C2)
    w2m = jnp.pad(w2m, ((0, 0), (0, LANE - C2))).astype(jnp.float32)
    g1p = jnp.pad(g1.reshape(1, C1), ((0, 0), (0, LANE - C1)))
    b1p = jnp.pad(be1.reshape(1, C1), ((0, 0), (0, LANE - C1)))
    g2p = jnp.pad(g2.reshape(1, C2), ((0, 0), (0, LANE - C2)))
    b2p = jnp.pad(be2.reshape(1, C2), ((0, 0), (0, LANE - C2)))

    # Static validity masks (float; avoids any in-kernel iota/select work).
    idx = np.arange(rows1)
    blk, rem = idx // NGG, idx % NGG
    a_, b_ = blk // 2, blk % 2
    u_, v_ = (rem % GG) // G, rem % G
    valid1 = (idx < 4 * NGG) & (2 * u_ + a_ < OH1) & (2 * v_ + b_ < OH1)
    assert int(valid1.sum()) == N * OH1 * OH1
    mask1 = jnp.asarray(valid1.astype(np.float32).reshape(rows1, 1))

    idx2 = np.arange(NGG)
    valid2 = ((idx2 % GG) // G < OH2) & (idx2 % G < OH2)
    assert int(valid2.sum()) == N * OH2 * OH2
    mask2 = jnp.asarray(valid2.astype(np.float32).reshape(NGG, 1))

    kernel = functools.partial(
        _fused_encoder_kernel,
        l1_src=tuple(l1_src), l2_src=tuple(l2_src),
        c0=C0, c1=C1, ngg=NGG,
        n1=float(N * OH1 * OH1), n2=float(N * OH2 * OH2), eps=_EPS)

    def full(shape):
        return pl.BlockSpec(shape, lambda i: (0,) * len(shape))

    out = pl.pallas_call(
        kernel,
        out_shape=jax.ShapeDtypeStruct((NGG, LANE), jnp.float32),
        grid_spec=pltpu.PrefetchScalarGridSpec(
            num_scalar_prefetch=0,
            grid=(1,),
            in_specs=[full((rows_x, C0)),
                      full((K1 * K1 * C0, LANE)),
                      full((1, LANE)), full((1, LANE)),
                      full((rows1, 1)),
                      full((K2 * K2 * C1, LANE)),
                      full((1, LANE)), full((1, LANE)),
                      full((NGG, 1))],
            out_specs=full((NGG, LANE)),
            scratch_shapes=[pltpu.VMEM((rows1, K1 * K1 * C0), jnp.float32),
                            pltpu.VMEM((NGG, K2 * K2 * C1), jnp.float32)]),
        compiler_params=pltpu.CompilerParams(
            dimension_semantics=("arbitrary",)),
    )(x_s2d, w1m, g1p, b1p, mask1, w2m, g2p, b2p, mask2)

    # Unpack the lane-dense block: drop channel padding / virtual-grid rows.
    out = out.reshape(N, G, G, LANE)[:, :OH2, :OH2, :C2]
    return jnp.transpose(out, (0, 3, 1, 2))          # NHWC -> NCHW


# --------------------------- params & reference ----------------------------

def init_params(key, in_channels, kernel_sizes):
    params = []
    for i, k in enumerate(kernel_sizes):
        cin, cout = in_channels[i], in_channels[i + 1]
        key, k1, k2 = jax.random.split(key, 3)
        fan_in = cin * k * k
        w = jax.random.normal(k1, (cout, cin, k, k), jnp.float32) / jnp.sqrt(fan_in)
        b = 0.01 * jax.random.normal(k2, (cout,), jnp.float32)
        gamma = jnp.ones((cout,), jnp.float32)    # torch BatchNorm2d default
        beta = jnp.zeros((cout,), jnp.float32)    # torch BatchNorm2d default
        params.append((w, b, gamma, beta))
    return params


def reference_forward(x_nchw, params, strides, eps=_EPS):
    x = x_nchw
    for (w, b, gamma, beta), s in zip(params, strides):
        x = jax.lax.conv_general_dilated(
            x, w, (s, s), 'VALID',
            dimension_numbers=('NCHW', 'OIHW', 'NCHW'),
            precision=jax.lax.Precision.HIGHEST)
        x = x + b.reshape(1, -1, 1, 1)             # bias present, as in torch
        mean = jnp.mean(x, axis=(0, 2, 3), keepdims=True)
        var = jnp.var(x, axis=(0, 2, 3), keepdims=True)
        x = (x - mean) / jnp.sqrt(var + eps) * gamma.reshape(1, -1, 1, 1) \
            + beta.reshape(1, -1, 1, 1)
        x = jnp.maximum(x, 0.0)
    return x


if __name__ == "__main__":
    config = {
        "in_channels": [4, 8, 16],
        "kernel_size": [3, 4],
        "kernel_strides": [1, 2],
        "latent_dim": 16,
    }

    key = jax.random.PRNGKey(0)
    key, xk = jax.random.split(key)
    x = jax.random.normal(xk, (2, 4, 16, 16), jnp.float32)   # NCHW, like torch

    params = init_params(key, config["in_channels"], config["kernel_size"])
    strides = tuple(config["kernel_strides"])

    out = jax.block_until_ready(encoder_forward(x, params, strides))
    assert out.shape == (2, 16, 6, 6), out.shape

    ref = jax.block_until_ready(reference_forward(x, params, strides))
    # Tolerance covers the MXU's default f32 matmul precision on all TPU
    # generations while being ~3x tighter than the previous 1e-1 check.
    assert jnp.allclose(out, ref, atol=3e-2, rtol=3e-2), \
        float(jnp.max(jnp.abs(out - ref)))

    print("KERNEL_OK")
</pallas_src>

<mosaic_0001>
module attributes {stable_mosaic.version = 11 : i64} {
  func.func @_fused_encoder_kernel(%arg0: i32, %arg1: memref<528x4xf32, #tpu.memory_space<vmem>>, %arg2: memref<36x128xf32, #tpu.memory_space<vmem>>, %arg3: memref<1x128xf32, #tpu.memory_space<vmem>>, %arg4: memref<1x128xf32, #tpu.memory_space<vmem>>, %arg5: memref<528x1xf32, #tpu.memory_space<vmem>>, %arg6: memref<128x128xf32, #tpu.memory_space<vmem>>, %arg7: memref<1x128xf32, #tpu.memory_space<vmem>>, %arg8: memref<1x128xf32, #tpu.memory_space<vmem>>, %arg9: memref<128x1xf32, #tpu.memory_space<vmem>>, %arg10: memref<128x128xf32, #tpu.memory_space<vmem>>, %arg11: memref<528x36xf32, #tpu.memory_space<vmem>>, %arg12: memref<128x128xf32, #tpu.memory_space<vmem>>) attributes {dimension_semantics = [#tpu.dimension_semantics<arbitrary>], iteration_bounds = array<i64: 1>, scalar_prefetch = 0 : i64, scratch_operands = 2 : i64, tpu.core_type = #tpu.core_type<tc>, window_params = [{pipeline_mode = #tpu.pipeline_mode<synchronous>, transform_indices = @transform_0, window_bounds = array<i64: 528, 4>}, {pipeline_mode = #tpu.pipeline_mode<synchronous>, transform_indices = @transform_1, window_bounds = array<i64: 36, 128>}, {pipeline_mode = #tpu.pipeline_mode<synchronous>, transform_indices = @transform_2, window_bounds = array<i64: 1, 128>}, {pipeline_mode = #tpu.pipeline_mode<synchronous>, transform_indices = @transform_3, window_bounds = array<i64: 1, 128>}, {pipeline_mode = #tpu.pipeline_mode<synchronous>, transform_indices = @transform_4, window_bounds = array<i64: 528, 1>}, {pipeline_mode = #tpu.pipeline_mode<synchronous>, transform_indices = @transform_5, window_bounds = array<i64: 128, 128>}, {pipeline_mode = #tpu.pipeline_mode<synchronous>, transform_indices = @transform_6, window_bounds = array<i64: 1, 128>}, {pipeline_mode = #tpu.pipeline_mode<synchronous>, transform_indices = @transform_7, window_bounds = array<i64: 1, 128>}, {pipeline_mode = #tpu.pipeline_mode<synchronous>, transform_indices = @transform_8, window_bounds = array<i64: 128, 1>}, {pipeline_mode = #tpu.pipeline_mode<synchronous>, transform_indices = @transform_9, window_bounds = array<i64: 128, 128>}]} {
    %cst = arith.constant 0.000000e+00 : f32
    %0 = vector.broadcast %cst : f32 to vector<528x36xf32>
    %c0 = arith.constant 0 : index
    %c0_0 = arith.constant 0 : index
    %1 = vector.load %arg11[%c0, %c0_0] : memref<528x36xf32, #tpu.memory_space<vmem>>, vector<528x36xf32>
    tpu.vector_store %arg11[%c0, %c0_0], %0 {strides = array<i32>} : memref<528x36xf32, #tpu.memory_space<vmem>>, vector<528x36xf32>,
    %c0_1 = arith.constant 0 : index
    %c0_2 = arith.constant 0 : index
    %2 = vector.load %arg1[%c0_1, %c0_2] : memref<528x4xf32, #tpu.memory_space<vmem>>, vector<128x4xf32>
    %c0_3 = arith.constant 0 : index
    %c0_4 = arith.constant 0 : index
    %3 = vector.load %arg11[%c0_3, %c0_4] : memref<528x36xf32, #tpu.memory_space<vmem>>, vector<128x4xf32>
    tpu.vector_store %arg11[%c0_3, %c0_4], %2 {strides = array<i32>} : memref<528x36xf32, #tpu.memory_space<vmem>>, vector<128x4xf32>,
    %c128 = arith.constant 128 : index
    %c0_5 = arith.constant 0 : index
    %4 = vector.load %arg1[%c128, %c0_5] : memref<528x4xf32, #tpu.memory_space<vmem>>, vector<128x4xf32>
    %c128_6 = arith.constant 128 : index
    %c0_7 = arith.constant 0 : index
    %5 = vector.load %arg11[%c128_6, %c0_7] : memref<528x36xf32, #tpu.memory_space<vmem>>, vector<128x4xf32>
    tpu.vector_store %arg11[%c128_6, %c0_7], %4 {strides = array<i32>} : memref<528x36xf32, #tpu.memory_space<vmem>>, vector<128x4xf32>,
    %c256 = arith.constant 256 : index
    %c0_8 = arith.constant 0 : index
    %6 = vector.load %arg1[%c256, %c0_8] : memref<528x4xf32, #tpu.memory_space<vmem>>, vector<128x4xf32>
    %c256_9 = arith.constant 256 : index
    %c0_10 = arith.constant 0 : index
    %7 = vector.load %arg11[%c256_9, %c0_10] : memref<528x36xf32, #tpu.memory_space<vmem>>, vector<128x4xf32>
    tpu.vector_store %arg11[%c256_9, %c0_10], %6 {strides = array<i32>} : memref<528x36xf32, #tpu.memory_space<vmem>>, vector<128x4xf32>,
    %c384 = arith.constant 384 : index
    %c0_11 = arith.constant 0 : index
    %8 = vector.load %arg1[%c384, %c0_11] : memref<528x4xf32, #tpu.memory_space<vmem>>, vector<128x4xf32>
    %c384_12 = arith.constant 384 : index
    %c0_13 = arith.constant 0 : index
    %9 = vector.load %arg11[%c384_12, %c0_13] : memref<528x36xf32, #tpu.memory_space<vmem>>, vector<128x4xf32>
    tpu.vector_store %arg11[%c384_12, %c0_13], %8 {strides = array<i32>} : memref<528x36xf32, #tpu.memory_space<vmem>>, vector<128x4xf32>,
    %c128_14 = arith.constant 128 : index
    %c0_15 = arith.constant 0 : index
    %10 = vector.load %arg1[%c128_14, %c0_15] : memref<528x4xf32, #tpu.memory_space<vmem>>, vector<128x4xf32>
    %c0_16 = arith.constant 0 : index
    %c4 = arith.constant 4 : index
    %11 = vector.load %arg11[%c0_16, %c4] : memref<528x36xf32, #tpu.memory_space<vmem>>, vector<128x4xf32>
    tpu.vector_store %arg11[%c0_16, %c4], %10 {strides = array<i32>} : memref<528x36xf32, #tpu.memory_space<vmem>>, vector<128x4xf32>,
    %c1 = arith.constant 1 : index
    %c0_17 = arith.constant 0 : index
    %12 = vector.load %arg1[%c1, %c0_17] : memref<528x4xf32, #tpu.memory_space<vmem>>, vector<128x4xf32>
    %c128_18 = arith.constant 128 : index
    %c4_19 = arith.constant 4 : index
    %13 = vector.load %arg11[%c128_18, %c4_19] : memref<528x36xf32, #tpu.memory_space<vmem>>, vector<128x4xf32>
    tpu.vector_store %arg11[%c128_18, %c4_19], %12 {strides = array<i32>} : memref<528x36xf32, #tpu.memory_space<vmem>>, vector<128x4xf32>,
    %c384_20 = arith.constant 384 : index
    %c0_21 = arith.constant 0 : index
    %14 = vector.load %arg1[%c384_20, %c0_21] : memref<528x4xf32, #tpu.memory_space<vmem>>, vector<128x4xf32>
    %c256_22 = arith.constant 256 : index
    %c4_23 = arith.constant 4 : index
    %15 = vector.load %arg11[%c256_22, %c4_23] : memref<528x36xf32, #tpu.memory_space<vmem>>, vector<128x4xf32>
    tpu.vector_store %arg11[%c256_22, %c4_23], %14 {strides = array<i32>} : memref<528x36xf32, #tpu.memory_space<vmem>>, vector<128x4xf32>,
    %c257 = arith.constant 257 : index
    %c0_24 = arith.constant 0 : index
    %16 = vector.load %arg1[%c257, %c0_24] : memref<528x4xf32, #tpu.memory_space<vmem>>, vector<128x4xf32>
    %c384_25 = arith.constant 384 : index
    %c4_26 = arith.constant 4 : index
    %17 = vector.load %arg11[%c384_25, %c4_26] : memref<528x36xf32, #tpu.memory_space<vmem>>, vector<128x4xf32>
    tpu.vector_store %arg11[%c384_25, %c4_26], %16 {strides = array<i32>} : memref<528x36xf32, #tpu.memory_space<vmem>>, vector<128x4xf32>,
    %c1_27 = arith.constant 1 : index
    %c0_28 = arith.constant 0 : index
    %18 = vector.load %arg1[%c1_27, %c0_28] : memref<528x4xf32, #tpu.memory_space<vmem>>, vector<128x4xf32>
    %c0_29 = arith.constant 0 : index
    %c8 = arith.constant 8 : index
    %19 = vector.load %arg11[%c0_29, %c8] : memref<528x36xf32, #tpu.memory_space<vmem>>, vector<128x4xf32>
    tpu.vector_store %arg11[%c0_29, %c8], %18 {strides = array<i32>} : memref<528x36xf32, #tpu.memory_space<vmem>>, vector<128x4xf32>,
    %c129 = arith.constant 129 : index
    %c0_30 = arith.constant 0 : index
    %20 = vector.load %arg1[%c129, %c0_30] : memref<528x4xf32, #tpu.memory_space<vmem>>, vector<128x4xf32>
    %c128_31 = arith.constant 128 : index
    %c8_32 = arith.constant 8 : index
    %21 = vector.load %arg11[%c128_31, %c8_32] : memref<528x36xf32, #tpu.memory_space<vmem>>, vector<128x4xf32>
    tpu.vector_store %arg11[%c128_31, %c8_32], %20 {strides = array<i32>} : memref<528x36xf32, #tpu.memory_space<vmem>>, vector<128x4xf32>,
    %c257_33 = arith.constant 257 : index
    %c0_34 = arith.constant 0 : index
    %22 = vector.load %arg1[%c257_33, %c0_34] : memref<528x4xf32, #tpu.memory_space<vmem>>, vector<128x4xf32>
    %c256_35 = arith.constant 256 : index
    %c8_36 = arith.constant 8 : index
    %23 = vector.load %arg11[%c256_35, %c8_36] : memref<528x36xf32, #tpu.memory_space<vmem>>, vector<128x4xf32>
    tpu.vector_store %arg11[%c256_35, %c8_36], %22 {strides = array<i32>} : memref<528x36xf32, #tpu.memory_space<vmem>>, vector<128x4xf32>,
    %c385 = arith.constant 385 : index
    %c0_37 = arith.constant 0 : index
    %24 = vector.load %arg1[%c385, %c0_37] : memref<528x4xf32, #tpu.memory_space<vmem>>, vector<128x4xf32>
    %c384_38 = arith.constant 384 : index
    %c8_39 = arith.constant 8 : index
    %25 = vector.load %arg11[%c384_38, %c8_39] : memref<528x36xf32, #tpu.memory_space<vmem>>, vector<128x4xf32>
    tpu.vector_store %arg11[%c384_38, %c8_39], %24 {strides = array<i32>} : memref<528x36xf32, #tpu.memory_space<vmem>>, vector<128x4xf32>,
    %c256_40 = arith.constant 256 : index
    %c0_41 = arith.constant 0 : index
    %26 = vector.load %arg1[%c256_40, %c0_41] : memref<528x4xf32, #tpu.memory_space<vmem>>, vector<128x4xf32>
    %c0_42 = arith.constant 0 : index
    %c12 = arith.constant 12 : index
    %27 = vector.load %arg11[%c0_42, %c12] : memref<528x36xf32, #tpu.memory_space<vmem>>, vector<128x4xf32>
    tpu.vector_store %arg11[%c0_42, %c12], %26 {strides = array<i32>} : memref<528x36xf32, #tpu.memory_space<vmem>>, vector<128x4xf32>,
    %c384_43 = arith.constant 384 : index
    %c0_44 = arith.constant 0 : index
    %28 = vector.load %arg1[%c384_43, %c0_44] : memref<528x4xf32, #tpu.memory_space<vmem>>, vector<128x4xf32>
    %c128_45 = arith.constant 128 : index
    %c12_46 = arith.constant 12 : index
    %29 = vector.load %arg11[%c128_45, %c12_46] : memref<528x36xf32, #tpu.memory_space<vmem>>, vector<128x4xf32>
    tpu.vector_store %arg11[%c128_45, %c12_46], %28 {strides = array<i32>} : memref<528x36xf32, #tpu.memory_space<vmem>>, vector<128x4xf32>,
    %c8_47 = arith.constant 8 : index
    %c0_48 = arith.constant 0 : index
    %30 = vector.load %arg1[%c8_47, %c0_48] : memref<528x4xf32, #tpu.memory_space<vmem>>, vector<128x4xf32>
    %c256_49 = arith.constant 256 : index
    %c12_50 = arith.constant 12 : index
    %31 = vector.load %arg11[%c256_49, %c12_50] : memref<528x36xf32, #tpu.memory_space<vmem>>, vector<128x4xf32>
    tpu.vector_store %arg11[%c256_49, %c12_50], %30 {strides = array<i32>} : memref<528x36xf32, #tpu.memory_space<vmem>>, vector<128x4xf32>,
    %c136 = arith.constant 136 : index
    %c0_51 = arith.constant 0 : index
    %32 = vector.load %arg1[%c136, %c0_51] : memref<528x4xf32, #tpu.memory_space<vmem>>, vector<128x4xf32>
    %c384_52 = arith.constant 384 : index
    %c12_53 = arith.constant 12 : index
    %33 = vector.load %arg11[%c384_52, %c12_53] : memref<528x36xf32, #tpu.memory_space<vmem>>, vector<128x4xf32>
    tpu.vector_store %arg11[%c384_52, %c12_53], %32 {strides = array<i32>} : memref<528x36xf32, #tpu.memory_space<vmem>>, vector<128x4xf32>,
    %c384_54 = arith.constant 384 : index
    %c0_55 = arith.constant 0 : index
    %34 = vector.load %arg1[%c384_54, %c0_55] : memref<528x4xf32, #tpu.memory_space<vmem>>, vector<128x4xf32>
    %c0_56 = arith.constant 0 : index
    %c16 = arith.constant 16 : index
    %35 = vector.load %arg11[%c0_56, %c16] : memref<528x36xf32, #tpu.memory_space<vmem>>, vector<128x4xf32>
    tpu.vector_store %arg11[%c0_56, %c16], %34 {strides = array<i32>} : memref<528x36xf32, #tpu.memory_space<vmem>>, vector<128x4xf32>,
    %c257_57 = arith.constant 257 : index
    %c0_58 = arith.constant 0 : index
    %36 = vector.load %arg1[%c257_57, %c0_58] : memref<528x4xf32, #tpu.memory_space<vmem>>, vector<128x4xf32>
    %c128_59 = arith.constant 128 : index
    %c16_60 = arith.constant 16 : index
    %37 = vector.load %arg11[%c128_59, %c16_60] : memref<528x36xf32, #tpu.memory_space<vmem>>, vector<128x4xf32>
    tpu.vector_store %arg11[%c128_59, %c16_60], %36 {strides = array<i32>} : memref<528x36xf32, #tpu.memory_space<vmem>>, vector<128x4xf32>,
    %c136_61 = arith.constant 136 : index
    %c0_62 = arith.constant 0 : index
    %38 = vector.load %arg1[%c136_61, %c0_62] : memref<528x4xf32, #tpu.memory_space<vmem>>, vector<128x4xf32>
    %c256_63 = arith.constant 256 : index
    %c16_64 = arith.constant 16 : index
    %39 = vector.load %arg11[%c256_63, %c16_64] : memref<528x36xf32, #tpu.memory_space<vmem>>, vector<128x4xf32>
    tpu.vector_store %arg11[%c256_63, %c16_64], %38 {strides = array<i32>} : memref<528x36xf32, #tpu.memory_space<vmem>>, vector<128x4xf32>,
    %c9 = arith.constant 9 : index
    %c0_65 = arith.constant 0 : index
    %40 = vector.load %arg1[%c9, %c0_65] : memref<528x4xf32, #tpu.memory_space<vmem>>, vector<128x4xf32>
    %c384_66 = arith.constant 384 : index
    %c16_67 = arith.constant 16 : index
    %41 = vector.load %arg11[%c384_66, %c16_67] : memref<528x36xf32, #tpu.memory_space<vmem>>, vector<128x4xf32>
    tpu.vector_store %arg11[%c384_66, %c16_67], %40 {strides = array<i32>} : memref<528x36xf32, #tpu.memory_space<vmem>>, vector<128x4xf32>,
    %c257_68 = arith.constant 257 : index
    %c0_69 = arith.constant 0 : index
    %42 = vector.load %arg1[%c257_68, %c0_69] : memref<528x4xf32, #tpu.memory_space<vmem>>, vector<128x4xf32>
    %c0_70 = arith.constant 0 : index
    %c20 = arith.constant 20 : index
    %43 = vector.load %arg11[%c0_70, %c20] : memref<528x36xf32, #tpu.memory_space<vmem>>, vector<128x4xf32>
    tpu.vector_store %arg11[%c0_70, %c20], %42 {strides = array<i32>} : memref<528x36xf32, #tpu.memory_space<vmem>>, vector<128x4xf32>,
    %c385_71 = arith.constant 385 : index
    %c0_72 = arith.constant 0 : index
    %44 = vector.load %arg1[%c385_71, %c0_72] : memref<528x4xf32, #tpu.memory_space<vmem>>, vector<128x4xf32>
    %c128_73 = arith.constant 128 : index
    %c20_74 = arith.constant 20 : index
    %45 = vector.load %arg11[%c128_73, %c20_74] : memref<528x36xf32, #tpu.memory_space<vmem>>, vector<128x4xf32>
    tpu.vector_store %arg11[%c128_73, %c20_74], %44 {strides = array<i32>} : memref<528x36xf32, #tpu.memory_space<vmem>>, vector<128x4xf32>,
    %c9_75 = arith.constant 9 : index
    %c0_76 = arith.constant 0 : index
    %46 = vector.load %arg1[%c9_75, %c0_76] : memref<528x4xf32, #tpu.memory_space<vmem>>, vector<128x4xf32>
    %c256_77 = arith.constant 256 : index
    %c20_78 = arith.constant 20 : index
    %47 = vector.load %arg11[%c256_77, %c20_78] : memref<528x36xf32, #tpu.memory_space<vmem>>, vector<128x4xf32>
    tpu.vector_store %arg11[%c256_77, %c20_78], %46 {strides = array<i32>} : memref<528x36xf32, #tpu.memory_space<vmem>>, vector<128x4xf32>,
    %c137 = arith.constant 137 : index
    %c0_79 = arith.constant 0 : index
    %48 = vector.load %arg1[%c137, %c0_79] : memref<528x4xf32, #tpu.memory_space<vmem>>, vector<128x4xf32>
    %c384_80 = arith.constant 384 : index
    %c20_81 = arith.constant 20 : index
    %49 = vector.load %arg11[%c384_80, %c20_81] : memref<528x36xf32, #tpu.memory_space<vmem>>, vector<128x4xf32>
    tpu.vector_store %arg11[%c384_80, %c20_81], %48 {strides = array<i32>} : memref<528x36xf32, #tpu.memory_space<vmem>>, vector<128x4xf32>,
    %c8_82 = arith.constant 8 : index
    %c0_83 = arith.constant 0 : index
    %50 = vector.load %arg1[%c8_82, %c0_83] : memref<528x4xf32, #tpu.memory_space<vmem>>, vector<128x4xf32>
    %c0_84 = arith.constant 0 : index
    %c24 = arith.constant 24 : index
    %51 = vector.load %arg11[%c0_84, %c24] : memref<528x36xf32, #tpu.memory_space<vmem>>, vector<128x4xf32>
    tpu.vector_store %arg11[%c0_84, %c24], %50 {strides = array<i32>} : memref<528x36xf32, #tpu.memory_space<vmem>>, vector<128x4xf32>,
    %c136_85 = arith.constant 136 : index
    %c0_86 = arith.constant 0 : index
    %52 = vector.load %arg1[%c136_85, %c0_86] : memref<528x4xf32, #tpu.memory_space<vmem>>, vector<128x4xf32>
    %c128_87 = arith.constant 128 : index
    %c24_88 = arith.constant 24 : index
    %53 = vector.load %arg11[%c128_87, %c24_88] : memref<528x36xf32, #tpu.memory_space<vmem>>, vector<128x4xf32>
    tpu.vector_store %arg11[%c128_87, %c24_88], %52 {strides = array<i32>} : memref<528x36xf32, #tpu.memory_space<vmem>>, vector<128x4xf32>,
    %c264 = arith.constant 264 : index
    %c0_89 = arith.constant 0 : index
    %54 = vector.load %arg1[%c264, %c0_89] : memref<528x4xf32, #tpu.memory_space<vmem>>, vector<128x4xf32>
    %c256_90 = arith.constant 256 : index
    %c24_91 = arith.constant 24 : index
    %55 = vector.load %arg11[%c256_90, %c24_91] : memref<528x36xf32, #tpu.memory_space<vmem>>, vector<128x4xf32>
    tpu.vector_store %arg11[%c256_90, %c24_91], %54 {strides = array<i32>} : memref<528x36xf32, #tpu.memory_space<vmem>>, vector<128x4xf32>,
    %c392 = arith.constant 392 : index
    %c0_92 = arith.constant 0 : index
    %56 = vector.load %arg1[%c392, %c0_92] : memref<528x4xf32, #tpu.memory_space<vmem>>, vector<128x4xf32>
    %c384_93 = arith.constant 384 : index
    %c24_94 = arith.constant 24 : index
    %57 = vector.load %arg11[%c384_93, %c24_94] : memref<528x36xf32, #tpu.memory_space<vmem>>, vector<128x4xf32>
    tpu.vector_store %arg11[%c384_93, %c24_94], %56 {strides = array<i32>} : memref<528x36xf32, #tpu.memory_space<vmem>>, vector<128x4xf32>,
    %c136_95 = arith.constant 136 : index
    %c0_96 = arith.constant 0 : index
    %58 = vector.load %arg1[%c136_95, %c0_96] : memref<528x4xf32, #tpu.memory_space<vmem>>, vector<128x4xf32>
    %c0_97 = arith.constant 0 : index
    %c28 = arith.constant 28 : index
    %59 = vector.load %arg11[%c0_97, %c28] : memref<528x36xf32, #tpu.memory_space<vmem>>, vector<128x4xf32>
    tpu.vector_store %arg11[%c0_97, %c28], %58 {strides = array<i32>} : memref<528x36xf32, #tpu.memory_space<vmem>>, vector<128x4xf32>,
    %c9_98 = arith.constant 9 : index
    %c0_99 = arith.constant 0 : index
    %60 = vector.load %arg1[%c9_98, %c0_99] : memref<528x4xf32, #tpu.memory_space<vmem>>, vector<128x4xf32>
    %c128_100 = arith.constant 128 : index
    %c28_101 = arith.constant 28 : index
    %61 = vector.load %arg11[%c128_100, %c28_101] : memref<528x36xf32, #tpu.memory_space<vmem>>, vector<128x4xf32>
    tpu.vector_store %arg11[%c128_100, %c28_101], %60 {strides = array<i32>} : memref<528x36xf32, #tpu.memory_space<vmem>>, vector<128x4xf32>,
    %c392_102 = arith.constant 392 : index
    %c0_103 = arith.constant 0 : index
    %62 = vector.load %arg1[%c392_102, %c0_103] : memref<528x4xf32, #tpu.memory_space<vmem>>, vector<128x4xf32>
    %c256_104 = arith.constant 256 : index
    %c28_105 = arith.constant 28 : index
    %63 = vector.load %arg11[%c256_104, %c28_105] : memref<528x36xf32, #tpu.memory_space<vmem>>, vector<128x4xf32>
    tpu.vector_store %arg11[%c256_104, %c28_105], %62 {strides = array<i32>} : memref<528x36xf32, #tpu.memory_space<vmem>>, vector<128x4xf32>,
    %c265 = arith.constant 265 : index
    %c0_106 = arith.constant 0 : index
    %64 = vector.load %arg1[%c265, %c0_106] : memref<528x4xf32, #tpu.memory_space<vmem>>, vector<128x4xf32>
    %c384_107 = arith.constant 384 : index
    %c28_108 = arith.constant 28 : index
    %65 = vector.load %arg11[%c384_107, %c28_108] : memref<528x36xf32, #tpu.memory_space<vmem>>, vector<128x4xf32>
    tpu.vector_store %arg11[%c384_107, %c28_108], %64 {strides = array<i32>} : memref<528x36xf32, #tpu.memory_space<vmem>>, vector<128x4xf32>,
    %c9_109 = arith.constant 9 : index
    %c0_110 = arith.constant 0 : index
    %66 = vector.load %arg1[%c9_109, %c0_110] : memref<528x4xf32, #tpu.memory_space<vmem>>, vector<128x4xf32>
    %c0_111 = arith.constant 0 : index
    %c32 = arith.constant 32 : index
    %67 = vector.load %arg11[%c0_111, %c32] : memref<528x36xf32, #tpu.memory_space<vmem>>, vector<128x4xf32>
    tpu.vector_store %arg11[%c0_111, %c32], %66 {strides = array<i32>} : memref<528x36xf32, #tpu.memory_space<vmem>>, vector<128x4xf32>,
    %c137_112 = arith.constant 137 : index
    %c0_113 = arith.constant 0 : index
    %68 = vector.load %arg1[%c137_112, %c0_113] : memref<528x4xf32, #tpu.memory_space<vmem>>, vector<128x4xf32>
    %c128_114 = arith.constant 128 : index
    %c32_115 = arith.constant 32 : index
    %69 = vector.load %arg11[%c128_114, %c32_115] : memref<528x36xf32, #tpu.memory_space<vmem>>, vector<128x4xf32>
    tpu.vector_store %arg11[%c128_114, %c32_115], %68 {strides = array<i32>} : memref<528x36xf32, #tpu.memory_space<vmem>>, vector<128x4xf32>,
    %c265_116 = arith.constant 265 : index
    %c0_117 = arith.constant 0 : index
    %70 = vector.load %arg1[%c265_116, %c0_117] : memref<528x4xf32, #tpu.memory_space<vmem>>, vector<128x4xf32>
    %c256_118 = arith.constant 256 : index
    %c32_119 = arith.constant 32 : index
    %71 = vector.load %arg11[%c256_118, %c32_119] : memref<528x36xf32, #tpu.memory_space<vmem>>, vector<128x4xf32>
    tpu.vector_store %arg11[%c256_118, %c32_119], %70 {strides = array<i32>} : memref<528x36xf32, #tpu.memory_space<vmem>>, vector<128x4xf32>,
    %c393 = arith.constant 393 : index
    %c0_120 = arith.constant 0 : index
    %72 = vector.load %arg1[%c393, %c0_120] : memref<528x4xf32, #tpu.memory_space<vmem>>, vector<128x4xf32>
    %c384_121 = arith.constant 384 : index
    %c32_122 = arith.constant 32 : index
    %73 = vector.load %arg11[%c384_121, %c32_122] : memref<528x36xf32, #tpu.memory_space<vmem>>, vector<128x4xf32>
    tpu.vector_store %arg11[%c384_121, %c32_122], %72 {strides = array<i32>} : memref<528x36xf32, #tpu.memory_space<vmem>>, vector<128x4xf32>,
    %c0_123 = arith.constant 0 : index
    %c0_124 = arith.constant 0 : index
    %74 = vector.load %arg11[%c0_123, %c0_124] : memref<528x36xf32, #tpu.memory_space<vmem>>, vector<528x36xf32>
    %c0_125 = arith.constant 0 : index
    %c0_126 = arith.constant 0 : index
    %75 = vector.load %arg2[%c0_125, %c0_126] : memref<36x128xf32, #tpu.memory_space<vmem>>, vector<36x128xf32>
    %cst_127 = arith.constant dense<0.000000e+00> : vector<528x128xf32>
    %76 = tpu.matmul %74, %75, %cst_127 {dimension_numbers = #tpu.dot_dimension_numbers<[1], [0], [0], [1], [0, 0, 1, 1], [], []>} : vector<528x36xf32>, vector<36x128xf32>, vector<528x128xf32> -> vector<528x128xf32>
    %c0_128 = arith.constant 0 : index
    %c0_129 = arith.constant 0 : index
    %77 = vector.load %arg5[%c0_128, %c0_129] : memref<528x1xf32, #tpu.memory_space<vmem>>, vector<528x1xf32>
    %78 = vector.broadcast %77 : vector<528x1xf32> to vector<528x128xf32>
    %79 = arith.mulf %76, %78 : vector<528x128xf32>
    %cst_130 = arith.constant dense<0.000000e+00> : vector<128xf32>
    %80 = vector.multi_reduction <add>, %79, %cst_130 [0] : vector<528x128xf32> to vector<128xf32>
    %81 = vector.shape_cast %80 : vector<128xf32> to vector<1x128xf32>
    %cst_131 = arith.constant 0.00255102036 : f32
    %82 = vector.broadcast %cst_131 : f32 to vector<1x128xf32>
    %83 = arith.mulf %81, %82 : vector<1x128xf32>
    %84 = vector.broadcast %83 : vector<1x128xf32> to vector<528x128xf32>
    %85 = arith.subf %76, %84 : vector<528x128xf32>
    %86 = vector.broadcast %77 : vector<528x1xf32> to vector<528x128xf32>
    %87 = arith.mulf %85, %86 : vector<528x128xf32>
    %88 = arith.mulf %87, %87 : vector<528x128xf32>
    %cst_132 = arith.constant dense<0.000000e+00> : vector<128xf32>
    %89 = vector.multi_reduction <add>, %88, %cst_132 [0] : vector<528x128xf32> to vector<128xf32>
    %90 = vector.shape_cast %89 : vector<128xf32> to vector<1x128xf32>
    %cst_133 = arith.constant 0.00255102036 : f32
    %91 = vector.broadcast %cst_133 : f32 to vector<1x128xf32>
    %92 = arith.mulf %90, %91 : vector<1x128xf32>
    %cst_134 = arith.constant 9.99999974E-6 : f32
    %93 = vector.broadcast %cst_134 : f32 to vector<1x128xf32>
    %94 = arith.addf %92, %93 : vector<1x128xf32>
    %95 = math.rsqrt %94 : vector<1x128xf32>
    %c0_135 = arith.constant 0 : index
    %c0_136 = arith.constant 0 : index
    %96 = vector.load %arg3[%c0_135, %c0_136] : memref<1x128xf32, #tpu.memory_space<vmem>>, vector<1x128xf32>
    %97 = arith.mulf %95, %96 : vector<1x128xf32>
    %c0_137 = arith.constant 0 : index
    %c0_138 = arith.constant 0 : index
    %98 = vector.load %arg4[%c0_137, %c0_138] : memref<1x128xf32, #tpu.memory_space<vmem>>, vector<1x128xf32>
    %99 = arith.mulf %83, %97 : vector<1x128xf32>
    %100 = arith.subf %98, %99 : vector<1x128xf32>
    %101 = vector.broadcast %97 : vector<1x128xf32> to vector<528x128xf32>
    %102 = arith.mulf %76, %101 : vector<528x128xf32>
    %103 = vector.broadcast %100 : vector<1x128xf32> to vector<528x128xf32>
    %104 = arith.addf %102, %103 : vector<528x128xf32>
    %cst_139 = arith.constant 0.000000e+00 : f32
    %105 = vector.broadcast %cst_139 : f32 to vector<528x128xf32>
    %106 = arith.maximumf %104, %105 : vector<528x128xf32>
    %cst_140 = arith.constant 0.000000e+00 : f32
    %107 = vector.broadcast %cst_140 : f32 to vector<128x128xf32>
    %c0_141 = arith.constant 0 : index
    %c0_142 = arith.constant 0 : index
    %108 = vector.load %arg12[%c0_141, %c0_142] : memref<128x128xf32, #tpu.memory_space<vmem>>, vector<128x128xf32>
    tpu.vector_store %arg12[%c0_141, %c0_142], %107 {strides = array<i32>} : memref<128x128xf32, #tpu.memory_space<vmem>>, vector<128x128xf32>,
    %109 = vector.extract_strided_slice %106 {offsets = [0, 0], sizes = [128, 8], strides = [1, 1]} : vector<528x128xf32> to vector<128x8xf32>
    %c0_143 = arith.constant 0 : index
    %c0_144 = arith.constant 0 : index
    %110 = vector.load %arg12[%c0_143, %c0_144] : memref<128x128xf32, #tpu.memory_space<vmem>>, vector<128x8xf32>
    tpu.vector_store %arg12[%c0_143, %c0_144], %109 {strides = array<i32>} : memref<128x128xf32, #tpu.memory_space<vmem>>, vector<128x8xf32>,
    %111 = vector.extract_strided_slice %106 {offsets = [128, 0], sizes = [128, 8], strides = [1, 1]} : vector<528x128xf32> to vector<128x8xf32>
    %c0_145 = arith.constant 0 : index
    %c8_146 = arith.constant 8 : index
    %112 = vector.load %arg12[%c0_145, %c8_146] : memref<128x128xf32, #tpu.memory_space<vmem>>, vector<128x8xf32>
    tpu.vector_store %arg12[%c0_145, %c8_146], %111 {strides = array<i32>} : memref<128x128xf32, #tpu.memory_space<vmem>>, vector<128x8xf32>,
    %113 = vector.extract_strided_slice %106 {offsets = [1, 0], sizes = [128, 8], strides = [1, 1]} : vector<528x128xf32> to vector<128x8xf32>
    %c0_147 = arith.constant 0 : index
    %c16_148 = arith.constant 16 : index
    %114 = vector.load %arg12[%c0_147, %c16_148] : memref<128x128xf32, #tpu.memory_space<vmem>>, vector<128x8xf32>
    tpu.vector_store %arg12[%c0_147, %c16_148], %113 {strides = array<i32>} : memref<128x128xf32, #tpu.memory_space<vmem>>, vector<128x8xf32>,
    %115 = vector.extract_strided_slice %106 {offsets = [129, 0], sizes = [128, 8], strides = [1, 1]} : vector<528x128xf32> to vector<128x8xf32>
    %c0_149 = arith.constant 0 : index
    %c24_150 = arith.constant 24 : index
    %116 = vector.load %arg12[%c0_149, %c24_150] : memref<128x128xf32, #tpu.memory_space<vmem>>, vector<128x8xf32>
    tpu.vector_store %arg12[%c0_149, %c24_150], %115 {strides = array<i32>} : memref<128x128xf32, #tpu.memory_space<vmem>>, vector<128x8xf32>,
    %117 = vector.extract_strided_slice %106 {offsets = [256, 0], sizes = [128, 8], strides = [1, 1]} : vector<528x128xf32> to vector<128x8xf32>
    %c0_151 = arith.constant 0 : index
    %c32_152 = arith.constant 32 : index
    %118 = vector.load %arg12[%c0_151, %c32_152] : memref<128x128xf32, #tpu.memory_space<vmem>>, vector<128x8xf32>
    tpu.vector_store %arg12[%c0_151, %c32_152], %117 {strides = array<i32>} : memref<128x128xf32, #tpu.memory_space<vmem>>, vector<128x8xf32>,
    %119 = vector.extract_strided_slice %106 {offsets = [384, 0], sizes = [128, 8], strides = [1, 1]} : vector<528x128xf32> to vector<128x8xf32>
    %c0_153 = arith.constant 0 : index
    %c40 = arith.constant 40 : index
    %120 = vector.load %arg12[%c0_153, %c40] : memref<128x128xf32, #tpu.memory_space<vmem>>, vector<128x8xf32>
    tpu.vector_store %arg12[%c0_153, %c40], %119 {strides = array<i32>} : memref<128x128xf32, #tpu.memory_space<vmem>>, vector<128x8xf32>,
    %121 = vector.extract_strided_slice %106 {offsets = [257, 0], sizes = [128, 8], strides = [1, 1]} : vector<528x128xf32> to vector<128x8xf32>
    %c0_154 = arith.constant 0 : index
    %c48 = arith.constant 48 : index
    %122 = vector.load %arg12[%c0_154, %c48] : memref<128x128xf32, #tpu.memory_space<vmem>>, vector<128x8xf32>
    tpu.vector_store %arg12[%c0_154, %c48], %121 {strides = array<i32>} : memref<128x128xf32, #tpu.memory_space<vmem>>, vector<128x8xf32>,
    %123 = vector.extract_strided_slice %106 {offsets = [385, 0], sizes = [128, 8], strides = [1, 1]} : vector<528x128xf32> to vector<128x8xf32>
    %c0_155 = arith.constant 0 : index
    %c56 = arith.constant 56 : index
    %124 = vector.load %arg12[%c0_155, %c56] : memref<128x128xf32, #tpu.memory_space<vmem>>, vector<128x8xf32>
    tpu.vector_store %arg12[%c0_155, %c56], %123 {strides = array<i32>} : memref<128x128xf32, #tpu.memory_space<vmem>>, vector<128x8xf32>,
    %125 = vector.extract_strided_slice %106 {offsets = [8, 0], sizes = [128, 8], strides = [1, 1]} : vector<528x128xf32> to vector<128x8xf32>
    %c0_156 = arith.constant 0 : index
    %c64 = arith.constant 64 : index
    %126 = vector.load %arg12[%c0_156, %c64] : memref<128x128xf32, #tpu.memory_space<vmem>>, vector<128x8xf32>
    tpu.vector_store %arg12[%c0_156, %c64], %125 {strides = array<i32>} : memref<128x128xf32, #tpu.memory_space<vmem>>, vector<128x8xf32>,
    %127 = vector.extract_strided_slice %106 {offsets = [136, 0], sizes = [128, 8], strides = [1, 1]} : vector<528x128xf32> to vector<128x8xf32>
    %c0_157 = arith.constant 0 : index
    %c72 = arith.constant 72 : index
    %128 = vector.load %arg12[%c0_157, %c72] : memref<128x128xf32, #tpu.memory_space<vmem>>, vector<128x8xf32>
    tpu.vector_store %arg12[%c0_157, %c72], %127 {strides = array<i32>} : memref<128x128xf32, #tpu.memory_space<vmem>>, vector<128x8xf32>,
    %129 = vector.extract_strided_slice %106 {offsets = [9, 0], sizes = [128, 8], strides = [1, 1]} : vector<528x128xf32> to vector<128x8xf32>
    %c0_158 = arith.constant 0 : index
    %c80 = arith.constant 80 : index
    %130 = vector.load %arg12[%c0_158, %c80] : memref<128x128xf32, #tpu.memory_space<vmem>>, vector<128x8xf32>
    tpu.vector_store %arg12[%c0_158, %c80], %129 {strides = array<i32>} : memref<128x128xf32, #tpu.memory_space<vmem>>, vector<128x8xf32>,
    %131 = vector.extract_strided_slice %106 {offsets = [137, 0], sizes = [128, 8], strides = [1, 1]} : vector<528x128xf32> to vector<128x8xf32>
    %c0_159 = arith.constant 0 : index
    %c88 = arith.constant 88 : index
    %132 = vector.load %arg12[%c0_159, %c88] : memref<128x128xf32, #tpu.memory_space<vmem>>, vector<128x8xf32>
    tpu.vector_store %arg12[%c0_159, %c88], %131 {strides = array<i32>} : memref<128x128xf32, #tpu.memory_space<vmem>>, vector<128x8xf32>,
    %133 = vector.extract_strided_slice %106 {offsets = [264, 0], sizes = [128, 8], strides = [1, 1]} : vector<528x128xf32> to vector<128x8xf32>
    %c0_160 = arith.constant 0 : index
    %c96 = arith.constant 96 : index
    %134 = vector.load %arg12[%c0_160, %c96] : memref<128x128xf32, #tpu.memory_space<vmem>>, vector<128x8xf32>
    tpu.vector_store %arg12[%c0_160, %c96], %133 {strides = array<i32>} : memref<128x128xf32, #tpu.memory_space<vmem>>, vector<128x8xf32>,
    %135 = vector.extract_strided_slice %106 {offsets = [392, 0], sizes = [128, 8], strides = [1, 1]} : vector<528x128xf32> to vector<128x8xf32>
    %c0_161 = arith.constant 0 : index
    %c104 = arith.constant 104 : index
    %136 = vector.load %arg12[%c0_161, %c104] : memref<128x128xf32, #tpu.memory_space<vmem>>, vector<128x8xf32>
    tpu.vector_store %arg12[%c0_161, %c104], %135 {strides = array<i32>} : memref<128x128xf32, #tpu.memory_space<vmem>>, vector<128x8xf32>,
    %137 = vector.extract_strided_slice %106 {offsets = [265, 0], sizes = [128, 8], strides = [1, 1]} : vector<528x128xf32> to vector<128x8xf32>
    %c0_162 = arith.constant 0 : index
    %c112 = arith.constant 112 : index
    %138 = vector.load %arg12[%c0_162, %c112] : memref<128x128xf32, #tpu.memory_space<vmem>>, vector<128x8xf32>
    tpu.vector_store %arg12[%c0_162, %c112], %137 {strides = array<i32>} : memref<128x128xf32, #tpu.memory_space<vmem>>, vector<128x8xf32>,
    %139 = vector.extract_strided_slice %106 {offsets = [393, 0], sizes = [128, 8], strides = [1, 1]} : vector<528x128xf32> to vector<128x8xf32>
    %c0_163 = arith.constant 0 : index
    %c120 = arith.constant 120 : index
    %140 = vector.load %arg12[%c0_163, %c120] : memref<128x128xf32, #tpu.memory_space<vmem>>, vector<128x8xf32>
    tpu.vector_store %arg12[%c0_163, %c120], %139 {strides = array<i32>} : memref<128x128xf32, #tpu.memory_space<vmem>>, vector<128x8xf32>,
    %c0_164 = arith.constant 0 : index
    %c0_165 = arith.constant 0 : index
    %141 = vector.load %arg12[%c0_164, %c0_165] : memref<128x128xf32, #tpu.memory_space<vmem>>, vector<128x128xf32>
    %c0_166 = arith.constant 0 : index
    %c0_167 = arith.constant 0 : index
    %142 = vector.load %arg6[%c0_166, %c0_167] : memref<128x128xf32, #tpu.memory_space<vmem>>, vector<128x128xf32>
    %cst_168 = arith.constant dense<0.000000e+00> : vector<128x128xf32>
    %143 = tpu.matmul %141, %142, %cst_168 {dimension_numbers = #tpu.dot_dimension_numbers<[1], [0], [0], [1], [0, 0, 1, 1], [], []>} : vector<128x128xf32>, vector<128x128xf32>, vector<128x128xf32> -> vector<128x128xf32>
    %c0_169 = arith.constant 0 : index
    %c0_170 = arith.constant 0 : index
    %144 = vector.load %arg9[%c0_169, %c0_170] : memref<128x1xf32, #tpu.memory_space<vmem>>, vector<128x1xf32>
    %145 = vector.broadcast %144 : vector<128x1xf32> to vector<128x128xf32>
    %146 = arith.mulf %143, %145 : vector<128x128xf32>
    %cst_171 = arith.constant dense<0.000000e+00> : vector<128xf32>
    %147 = vector.multi_reduction <add>, %146, %cst_171 [0] : vector<128x128xf32> to vector<128xf32>
    %148 = vector.shape_cast %147 : vector<128xf32> to vector<1x128xf32>
    %cst_172 = arith.constant 0.013888889 : f32
    %149 = vector.broadcast %cst_172 : f32 to vector<1x128xf32>
    %150 = arith.mulf %148, %149 : vector<1x128xf32>
    %151 = vector.broadcast %150 : vector<1x128xf32> to vector<128x128xf32>
    %152 = arith.subf %143, %151 : vector<128x128xf32>
    %153 = vector.broadcast %144 : vector<128x1xf32> to vector<128x128xf32>
    %154 = arith.mulf %152, %153 : vector<128x128xf32>
    %155 = arith.mulf %154, %154 : vector<128x128xf32>
    %cst_173 = arith.constant dense<0.000000e+00> : vector<128xf32>
    %156 = vector.multi_reduction <add>, %155, %cst_173 [0] : vector<128x128xf32> to vector<128xf32>
    %157 = vector.shape_cast %156 : vector<128xf32> to vector<1x128xf32>
    %cst_174 = arith.constant 0.013888889 : f32
    %158 = vector.broadcast %cst_174 : f32 to vector<1x128xf32>
    %159 = arith.mulf %157, %158 : vector<1x128xf32>
    %cst_175 = arith.constant 9.99999974E-6 : f32
    %160 = vector.broadcast %cst_175 : f32 to vector<1x128xf32>
    %161 = arith.addf %159, %160 : vector<1x128xf32>
    %162 = math.rsqrt %161 : vector<1x128xf32>
    %c0_176 = arith.constant 0 : index
    %c0_177 = arith.constant 0 : index
    %163 = vector.load %arg7[%c0_176, %c0_177] : memref<1x128xf32, #tpu.memory_space<vmem>>, vector<1x128xf32>
    %164 = arith.mulf %162, %163 : vector<1x128xf32>
    %c0_178 = arith.constant 0 : index
    %c0_179 = arith.constant 0 : index
    %165 = vector.load %arg8[%c0_178, %c0_179] : memref<1x128xf32, #tpu.memory_space<vmem>>, vector<1x128xf32>
    %166 = arith.mulf %150, %164 : vector<1x128xf32>
    %167 = arith.subf %165, %166 : vector<1x128xf32>
    %168 = vector.broadcast %164 : vector<1x128xf32> to vector<128x128xf32>
    %169 = arith.mulf %143, %168 : vector<128x128xf32>
    %170 = vector.broadcast %167 : vector<1x128xf32> to vector<128x128xf32>
    %171 = arith.addf %169, %170 : vector<128x128xf32>
    %cst_180 = arith.constant 0.000000e+00 : f32
    %172 = vector.broadcast %cst_180 : f32 to vector<128x128xf32>
    %173 = arith.maximumf %171, %172 : vector<128x128xf32>
    %c0_181 = arith.constant 0 : index
    %c0_182 = arith.constant 0 : index
    %174 = vector.load %arg10[%c0_181, %c0_182] : memref<128x128xf32, #tpu.memory_space<vmem>>, vector<128x128xf32>
    tpu.vector_store %arg10[%c0_181, %c0_182], %173 {strides = array<i32>} : memref<128x128xf32, #tpu.memory_space<vmem>>, vector<128x128xf32>,
    return
  }
  func.func @transform_0(%arg0: i32) -> (i32, i32) {
    %c0_i32 = arith.constant 0 : i32
    %c0_i32_0 = arith.constant 0 : i32
    %c0_i32_1 = arith.constant 0 : i32
    return %c0_i32, %c0_i32_0 : i32, i32
  }
  func.func @transform_1(%arg0: i32) -> (i32, i32) {
    %c0_i32 = arith.constant 0 : i32
    %c0_i32_0 = arith.constant 0 : i32
    %c0_i32_1 = arith.constant 0 : i32
    return %c0_i32, %c0_i32_0 : i32, i32
  }
  func.func @transform_2(%arg0: i32) -> (i32, i32) {
    %c0_i32 = arith.constant 0 : i32
    %c0_i32_0 = arith.constant 0 : i32
    %c0_i32_1 = arith.constant 0 : i32
    return %c0_i32, %c0_i32_0 : i32, i32
  }
  func.func @transform_3(%arg0: i32) -> (i32, i32) {
    %c0_i32 = arith.constant 0 : i32
    %c0_i32_0 = arith.constant 0 : i32
    %c0_i32_1 = arith.constant 0 : i32
    return %c0_i32, %c0_i32_0 : i32, i32
  }
  func.func @transform_4(%arg0: i32) -> (i32, i32) {
    %c0_i32 = arith.constant 0 : i32
    %c0_i32_0 = arith.constant 0 : i32
    %c0_i32_1 = arith.constant 0 : i32
    return %c0_i32, %c0_i32_0 : i32, i32
  }
  func.func @transform_5(%arg0: i32) -> (i32, i32) {
    %c0_i32 = arith.constant 0 : i32
    %c0_i32_0 = arith.constant 0 : i32
    %c0_i32_1 = arith.constant 0 : i32
    return %c0_i32, %c0_i32_0 : i32, i32
  }
  func.func @transform_6(%arg0: i32) -> (i32, i32) {
    %c0_i32 = arith.constant 0 : i32
    %c0_i32_0 = arith.constant 0 : i32
    %c0_i32_1 = arith.constant 0 : i32
    return %c0_i32, %c0_i32_0 : i32, i32
  }
  func.func @transform_7(%arg0: i32) -> (i32, i32) {
    %c0_i32 = arith.constant 0 : i32
    %c0_i32_0 = arith.constant 0 : i32
    %c0_i32_1 = arith.constant 0 : i32
    return %c0_i32, %c0_i32_0 : i32, i32
  }
  func.func @transform_8(%arg0: i32) -> (i32, i32) {
    %c0_i32 = arith.constant 0 : i32
    %c0_i32_0 = arith.constant 0 : i32
    %c0_i32_1 = arith.constant 0 : i32
    return %c0_i32, %c0_i32_0 : i32, i32
  }
  func.func @transform_9(%arg0: i32) -> (i32, i32) {
    %c0_i32 = arith.constant 0 : i32
    %c0_i32_0 = arith.constant 0 : i32
    %c0_i32_1 = arith.constant 0 : i32
    return %c0_i32, %c0_i32_0 : i32, i32
  }
}

</mosaic_0001>

<bundles_post_ra>
// kernel: encoder_forward.1
= control target key start
LH: loop header
LB: loop body
LE: loop exit
PB: predicated region body
PF: predicated region fallthrough
CT: control target
= control target key end

     0   :  { %s6434_s15 = smov 4   ;;  %vm32_vm0 = vcmask 293888   ;;  %vm115_vm1 = vcmask 31744   ;;  %v6435_v24 = vmov 0.0   ;;  %vm308_vm2 = vcmask 64544   ;;  %s6436_s24 = smov 8   ;;  %s12120_s0 = inlined_call_operand.vmem [shape: f32[528,4], index: 0, kind: input, shape index: {}]   ;;  %s12121_s1 = inlined_call_operand.vmem [shape: f32[36,128], index: 1, kind: input, shape index: {}]   ;;  %s12122_s4 = inlined_call_operand.vmem [shape: f32[528,1], index: 4, kind: input, shape index: {}]   ;;  %s12123_s2 = inlined_call_operand.vmem [shape: f32[1,128], index: 2, kind: input, shape index: {}]   ;;  %s12124_s3 = inlined_call_operand.vmem [shape: f32[1,128], index: 3, kind: input, shape index: {}]   ;;  %s12125_s5 = inlined_call_operand.vmem [shape: f32[128,128], index: 5, kind: input, shape index: {}]   ;;  %s12126_s8 = inlined_call_operand.vmem [shape: f32[128,1], index: 8, kind: input, shape index: {}]   ;;  %s12127_s6 = inlined_call_operand.vmem [shape: f32[1,128], index: 6, kind: input, shape index: {}]   ;;  %s12128_s7 = inlined_call_operand.vmem [shape: f32[1,128], index: 7, kind: input, shape index: {}]   ;;  %s12129_s9 = inlined_call_operand.vmem [shape: f32[128,128], index: 9, kind: output, shape index: {}]  }
   0x1   :  { %v6508_v0 = vld [vmem:[%s12120_s0 + $0xa0] sm:$0xff]  ;;  %v6513_v1 = vld [vmem:[%s12120_s0 + $0x90] sm:$0xff]  ;;  %v6529_v3 = vld [vmem:[%s12120_s0 + $0xa8] sm:$0xff]  ;;  %37 = vst.msk [vmem:[#allocation2 + $0x20] sm:$0xff] %vm32_vm0, %v6435_v24  ;;  %vm693_vm3 = vcmask 97344   ;;  %s6437_s27 = smov 12  }
   0x2   :  { %v6518_v2 = vld [vmem:[%s12120_s0 + $0x80] sm:$0xff]  ;;  %268 = vrot.lane.b32.xlu2 %v6508_v0, %s6434_s15  ;;  %264 = vrot.lane.b32.xlu1 %v6513_v1, %s6434_s15  ;;  %v6534_v4 = vld [vmem:[%s12120_s0 + $0x98] sm:$0xff]  ;;  %33 = vst.msk [vmem:[#allocation2] sm:$0xff] %vm32_vm0, %v6435_v24  ;;  %vm1078_vm4 = vcmask 130144   ;;  %vm1463_vm5 = vcmask 162944   ;;  %s6439_s14 = smov 20  }
   0x3   :  { %260 = vrot.lane.b32.xlu0 %v6518_v2, %s6434_s15  ;;  %v6539_v5 = vld [vmem:[%s12120_s0 + $0x88] sm:$0xff]  ;;  %v6550_v6 = vld [vmem:[%s12120_s0 + $0xc0] sm:$0xff]  ;;  %v6555_v7 = vld [vmem:[%s12120_s0 + $0xb8] sm:$0xff]  ;;  %34 = vst.msk [vmem:[#allocation2 + $0x8] sm:$0xff] %vm32_vm0, %v6435_v24  ;;  %vm1848_vm6 = vcmask 195744   ;;  %s6440_s28 = smov 24  }
   0x4   :  { %v6560_v8 = vld [vmem:[%s12120_s0 + $0xb0] sm:$0xff]  ;;  %v6571_v9 = vld [vmem:[%s12120_s0 + $0xd8] sm:$0xff]  ;;  %v6581_v11 = vld [vmem:[%s12120_s0 + $0xc8] sm:$0xff]  ;;  %35 = vst.msk [vmem:[#allocation2 + $0x10] sm:$0xff] %vm32_vm0, %v6435_v24  ;;  %vm2233_vm7 = vcmask 228544   ;;  %vm2618_vm8 = vcmask 261344  }
   0x5   :  { %v6576_v10 = vld [vmem:[%s12120_s0 + $0xd0] sm:$0xff]  ;;  %v6597_v13 = vld [vmem:[%s12120_s0 + $0xe8] sm:$0xff]  ;;  %v6602_v14 = vld [vmem:[%s12120_s0 + $0xe0] sm:$0xff]  ;;  %36 = vst.msk [vmem:[#allocation2 + $0x18] sm:$0xff] %vm32_vm0, %v6435_v24  ;;  %s6442_s22 = smov 32   ;;  %vm3577_vm9 = vcmask 1043456  }
   0x6   :  { %v6592_v12 = vld [vmem:[%s12120_s0 + $0xf0] sm:$0xff]  ;;  %v6618_v16 = vld [vmem:[%s12120_s0 + $0x1] sm:$0xff]  ;;  %v6623_v17 = vld [vmem:[%s12120_s0 + $0xf8] sm:$0xff]  ;;  %38 = vst.msk [vmem:[#allocation2 + $0x28] sm:$0xff] %vm32_vm0, %v6435_v24  ;;  %vm3003_vm10 = vcmask 294144   ;;  %vm4834_vm14 = vcmask 64512  }
   0x7   :  { %v6613_v15 = vld [vmem:[%s12120_s0 + $0x9] sm:$0xff]  ;;  %v6634_v18 = vld [vmem:[%s12120_s0 + $0x21] sm:$0xff]  ;;  %v6639_v19 = vld [vmem:[%s12120_s0 + $0x19] sm:$0xff]  ;;  %39 = vst.msk [vmem:[#allocation2 + $0x30] sm:$0xff] %vm32_vm0, %v6435_v24  ;;  %vm4915_vm15 = vcmask 130112   ;;  %s6450_s10 = smov 88  }
   0x8   :  { %v6644_v20 = vld [vmem:[%s12120_s0 + $0x11] sm:$0xff]  ;;  %v6655_v21 = vld [vmem:[%s12120_s0 + $0x39] sm:$0xff]  ;;  %v6665_v23 = vld [vmem:[%s12120_s0 + $0x29] sm:$0xff]  ;;  %40 = vst.msk [vmem:[#allocation2 + $0x38] sm:$0xff] %vm32_vm0, %v6435_v24  ;;  %s6451_s11 = smov 96   ;;  %s6454_s12 = smov 120  }
   0x9   :  { %v6660_v22 = vld [vmem:[%s12120_s0 + $0x31] sm:$0xff]  ;;  %v103_v25 = vld [vmem:[%s12120_s0 + $0x20] sm:$0xff]  ;;  %v6689_v27 = vld [vmem:[%s12120_s0 + $0x49] sm:$0xff]  ;;  %41 = vst.msk [vmem:[#allocation2 + $0x40] sm:$0xff] %vm32_vm0, %v6435_v24 }
   0xa   :  { %270 = vrot.lane.b32.xlu2 %v6529_v3, %s6434_s15  ;;  %266 = vrot.lane.b32.xlu1 %v6534_v4, %s6434_s15  ;;  %120 = vst.msk [vmem:[#allocation2 + $0x20] sm:$0xff] %vm115_vm1, %v103_v25  ;;  %v6684_v26 = vld [vmem:[%s12120_s0 + $0x51] sm:$0xff]  ;;  %v6696_v28 = vld [vmem:[%s12120_s0 + $0x41] sm:$0xff] }
   0xb   :  { %262 = vrot.lane.b32.xlu0 %v6539_v5, %s6434_s15  ;;  %42 = vst.msk [vmem:[#allocation2 + $0x48] sm:$0xff] %vm32_vm0, %v6435_v24  ;;  %v6721_v29 = vld [vmem:[%s12120_s0 + $0x69] sm:$0xff]  ;;  %v6726_v30 = vld [vmem:[%s12120_s0 + $0x61] sm:$0xff]  ;;  %v6733_v31 = vld [vmem:[%s12120_s0 + $0x59] sm:$0xff] }
   0xc   :  { %43 = vst.msk [vmem:[#allocation2 + $0x50] sm:$0xff] %vm32_vm0, %v6435_v24  ;;  %v6758_v32 = vld [vmem:[%s12120_s0 + $0x180] sm:$0xff]  ;;  %v6770_v34 = vld [vmem:[%s12120_s0 + $0x71] sm:$0xff]  ;;  %v6807_v37 = vld [vmem:[%s12120_s0 + $0x188] sm:$0xff] }
   0xd   :  { %44 = vst.msk [vmem:[#allocation2 + $0x58] sm:$0xff] %vm32_vm0, %v6435_v24  ;;  %v6763_v33 = vld [vmem:[%s12120_s0 + $0x79] sm:$0xff]  ;;  %v6800_v36 = vld [vmem:[%s12120_s0 + $0x190] sm:$0xff]  ;;  %v6838_v40 = vld [vmem:[%s12120_s0 + $0x1a8] sm:$0xff] }
   0xe   :  { %45 = vst.msk [vmem:[#allocation2 + $0x60] sm:$0xff] %vm32_vm0, %v6435_v24  ;;  %v6795_v35 = vld [vmem:[%s12120_s0 + $0x198] sm:$0xff]  ;;  %v6833_v39 = vld [vmem:[%s12120_s0 + $0x1b0] sm:$0xff]  ;;  %v6845_v41 = vld [vmem:[%s12120_s0 + $0x1a0] sm:$0xff] }
   0xf   :  { %46 = vst.msk [vmem:[#allocation2 + $0x68] sm:$0xff] %vm32_vm0, %v6435_v24  ;;  %v6872_v43 = vld [vmem:[%s12120_s0 + $0x1c8] sm:$0xff]  ;;  %v6877_v44 = vld [vmem:[%s12120_s0 + $0x1c0] sm:$0xff]  ;;  %v6884_v45 = vld [vmem:[%s12120_s0 + $0x1b8] sm:$0xff] }
  0x10   :  { %47 = vst.msk [vmem:[#allocation2 + $0x70] sm:$0xff] %vm32_vm0, %v6435_v24  ;;  %v6911_v47 = vld [vmem:[%s12120_s0 + $0x1e0] sm:$0xff]  ;;  %v6916_v48 = vld [vmem:[%s12120_s0 + $0x1d8] sm:$0xff]  ;;  %v6923_v49 = vld [vmem:[%s12120_s0 + $0x1d0] sm:$0xff] }
  0x11   :  { %48 = vst.msk [vmem:[#allocation2 + $0x78] sm:$0xff] %vm32_vm0, %v6435_v24  ;;  %v6958_v53 = vld [vmem:[%s12120_s0 + $0x1f8] sm:$0xff]  ;;  %v6963_v54 = vld [vmem:[%s12120_s0 + $0x1f0] sm:$0xff]  ;;  %v6968_v55 = vld [vmem:[%s12120_s0 + $0x1e8] sm:$0xff] }
  0x12   :  { %276 = vrot.lane.b32.xlu2 %v6550_v6, %s6434_s15  ;;  %274 = vrot.lane.b32.xlu1 %v6555_v7, %s6434_s15  ;;  %49 = vst.msk [vmem:[#allocation2 + $0x80] sm:$0xff] %vm32_vm0, %v6435_v24  ;;  %v6997_v59 = vld [vmem:[%s12120_s0 + $0x111] sm:$0xff]  ;;  %v7002_v60 = vld [vmem:[%s12120_s0 + $0x109] sm:$0xff] }
  0x13   :  { %272 = vrot.lane.b32.xlu0 %v6560_v8, %s6434_s15  ;;  %50 = vst.msk [vmem:[#allocation2 + $0x88] sm:$0xff] %vm32_vm0, %v6435_v24  ;;  %v7008_v61 = vld [vmem:[%s12120_s0 + $0x101] sm:$0xff] }
  0x14   :  { %51 = vst.msk [vmem:[#allocation2 + $0x90] sm:$0xff] %vm32_vm0, %v6435_v24 }
  0x15   :  { %52 = vst.msk [vmem:[#allocation2 + $0x98] sm:$0xff] %vm32_vm0, %v6435_v24 }
  0x16   :  { %53 = vst.msk [vmem:[#allocation2 + $0xa0] sm:$0xff] %vm32_vm0, %v6435_v24 }
  0x17   :  { %54 = vst.msk [vmem:[#allocation2 + $0xa8] sm:$0xff] %vm32_vm0, %v6435_v24 }
  0x18   :  { %55 = vst.msk [vmem:[#allocation2 + $0xb0] sm:$0xff] %vm32_vm0, %v6435_v24 }
  0x19   :  { %56 = vst.msk [vmem:[#allocation2 + $0xb8] sm:$0xff] %vm32_vm0, %v6435_v24 }
  0x1a   :  { %282 = vrot.lane.b32.xlu2 %v6571_v9, %s6434_s15  ;;  %280 = vrot.lane.b32.xlu1 %v6576_v10, %s6434_s15  ;;  %57 = vst.msk [vmem:[#allocation2 + $0xc0] sm:$0xff] %vm32_vm0, %v6435_v24 }
  0x1b   :  { %278 = vrot.lane.b32.xlu0 %v6581_v11, %s6434_s15  ;;  %58 = vst.msk [vmem:[#allocation2 + $0xc8] sm:$0xff] %vm32_vm0, %v6435_v24 }
  0x1c   :  { %59 = vst.msk [vmem:[#allocation2 + $0xd0] sm:$0xff] %vm32_vm0, %v6435_v24 }
  0x1d   :  { %60 = vst.msk [vmem:[#allocation2 + $0xd8] sm:$0xff] %vm32_vm0, %v6435_v24 }
  0x1e   :  { %61 = vst.msk [vmem:[#allocation2 + $0xe0] sm:$0xff] %vm32_vm0, %v6435_v24 }
  0x1f   :  { %62 = vst.msk [vmem:[#allocation2 + $0xe8] sm:$0xff] %vm32_vm0, %v6435_v24 }
  0x20   :  { %63 = vst.msk [vmem:[#allocation2 + $0xf0] sm:$0xff] %vm32_vm0, %v6435_v24 }
  0x21   :  { %64 = vst.msk [vmem:[#allocation2 + $0xf8] sm:$0xff] %vm32_vm0, %v6435_v24 }
  0x22   :  { %288 = vrot.lane.b32.xlu2 %v6592_v12, %s6434_s15  ;;  %286 = vrot.lane.b32.xlu1 %v6597_v13, %s6434_s15  ;;  %65 = vst.msk [vmem:[#allocation2 + $0x100] sm:$0xff] %vm32_vm0, %v6435_v24 }
  0x23   :  { %284 = vrot.lane.b32.xlu0 %v6602_v14, %s6434_s15  ;;  %66 = vst.msk [vmem:[#allocation2 + $0x108] sm:$0xff] %vm32_vm0, %v6435_v24 }
  0x24   :  { %67 = vst.msk [vmem:[#allocation2 + $0x110] sm:$0xff] %vm32_vm0, %v6435_v24 }
  0x25   :  { %68 = vst.msk [vmem:[#allocation2 + $0x118] sm:$0xff] %vm32_vm0, %v6435_v24 }
  0x26   :  { %69 = vst.msk [vmem:[#allocation2 + $0x120] sm:$0xff] %vm32_vm0, %v6435_v24 }
  0x27   :  { %70 = vst.msk [vmem:[#allocation2 + $0x128] sm:$0xff] %vm32_vm0, %v6435_v24 }
  0x28   :  { %71 = vst.msk [vmem:[#allocation2 + $0x130] sm:$0xff] %vm32_vm0, %v6435_v24 }
  0x29   :  { %72 = vst.msk [vmem:[#allocation2 + $0x138] sm:$0xff] %vm32_vm0, %v6435_v24 }
  0x2a   :  { %359 = vrot.lane.b32.xlu2 %v6613_v15, %s6434_s15  ;;  %357 = vrot.lane.b32.xlu1 %v6618_v16, %s6434_s15  ;;  %73 = vst.msk [vmem:[#allocation2 + $0x140] sm:$0xff] %vm32_vm0, %v6435_v24 }
  0x2b   :  { %290 = vrot.lane.b32.xlu0 %v6623_v17, %s6434_s15  ;;  %74 = vst.msk [vmem:[#allocation2 + $0x148] sm:$0xff] %vm32_vm0, %v6435_v24 }
  0x2c   :  { %12293 = vst [vmem:[#allocation4_spill] sm:$0xff] %v6872_v43 }
  0x2d   :  { %75 = vst.msk [vmem:[#allocation2 + $0x150] sm:$0xff] %vm32_vm0, %v6435_v24 }
  0x2e   :  { %76 = vst.msk [vmem:[#allocation2 + $0x158] sm:$0xff] %vm32_vm0, %v6435_v24 }
  0x2f   :  { %77 = vst.msk [vmem:[#allocation2 + $0x160] sm:$0xff] %vm32_vm0, %v6435_v24 }
  0x30   :  { %78 = vst.msk [vmem:[#allocation2 + $0x168] sm:$0xff] %vm32_vm0, %v6435_v24 }
  0x31   :  { %79 = vst.msk [vmem:[#allocation2 + $0x170] sm:$0xff] %vm32_vm0, %v6435_v24 }
  0x32   :  { %365 = vrot.lane.b32.xlu2 %v6634_v18, %s6434_s15  ;;  %363 = vrot.lane.b32.xlu1 %v6639_v19, %s6434_s15  ;;  %80 = vst.msk [vmem:[#allocation2 + $0x178] sm:$0xff] %vm32_vm0, %v6435_v24 }
  0x33   :  { %361 = vrot.lane.b32.xlu0 %v6644_v20, %s6434_s15  ;;  %81 = vst.msk [vmem:[#allocation2 + $0x180] sm:$0xff] %vm32_vm0, %v6435_v24 }
  0x34   :  { %82 = vst.msk [vmem:[#allocation2 + $0x188] sm:$0xff] %vm32_vm0, %v6435_v24 }
  0x35   :  { %12294 = vst [vmem:[#allocation5_spill] sm:$0xff] %v6911_v47 }
  0x36   :  { %83 = vst.msk [vmem:[#allocation2 + $0x190] sm:$0xff] %vm32_vm0, %v6435_v24 }
  0x37   :  { %12295 = vst [vmem:[#allocation6_spill] sm:$0xff] %v6923_v49 }
  0x38   :  { %84 = vst.msk [vmem:[#allocation2 + $0x198] sm:$0xff] %vm32_vm0, %v6435_v24 }
  0x39   :  { %85 = vst.msk [vmem:[#allocation2 + $0x1a0] sm:$0xff] %vm32_vm0, %v6435_v24 }
  0x3a   :  { %371 = vrot.lane.b32.xlu2 %v6655_v21, %s6434_s15  ;;  %369 = vrot.lane.b32.xlu1 %v6660_v22, %s6434_s15  ;;  %86 = vst.msk [vmem:[#allocation2 + $0x1a8] sm:$0xff] %vm32_vm0, %v6435_v24 }
  0x3b   :  { %367 = vrot.lane.b32.xlu0 %v6665_v23, %s6434_s15  ;;  %87 = vst.msk [vmem:[#allocation2 + $0x1b0] sm:$0xff] %vm32_vm0, %v6435_v24 }
  0x3c   :  { %88 = vst.msk [vmem:[#allocation2 + $0x1b8] sm:$0xff] %vm32_vm0, %v6435_v24 }
  0x3d   :  { %89 = vst.msk [vmem:[#allocation2 + $0x1c0] sm:$0xff] %vm32_vm0, %v6435_v24 }
  0x3e   :  { %90 = vst.msk [vmem:[#allocation2 + $0x1c8] sm:$0xff] %vm32_vm0, %v6435_v24 }
  0x3f   :  { %91 = vst.msk [vmem:[#allocation2 + $0x1d0] sm:$0xff] %vm32_vm0, %v6435_v24 }
  0x40   :  { %92 = vst.msk [vmem:[#allocation2 + $0x1d8] sm:$0xff] %vm32_vm0, %v6435_v24 }
  0x41   :  { %12296 = vst [vmem:[#allocation7_spill] sm:$0xff] %v6958_v53 }
  0x42   :  { %377 = vrot.lane.b32.xlu2 %v6684_v26, %s6434_s15  ;;  %375 = vrot.lane.b32.xlu1 %v6689_v27, %s6434_s15  ;;  %12297 = vst [vmem:[#allocation8_spill] sm:$0xff] %v6968_v55 }
  0x43   :  { %373 = vrot.lane.b32.xlu0 %v6696_v28, %s6434_s15  ;;  %93 = vst.msk [vmem:[#allocation2 + $0x1e0] sm:$0xff] %vm32_vm0, %v6435_v24 }
  0x44   :  { %94 = vst.msk [vmem:[#allocation2 + $0x1e8] sm:$0xff] %vm32_vm0, %v6435_v24 }
  0x45   :  { %95 = vst.msk [vmem:[#allocation2 + $0x1f0] sm:$0xff] %vm32_vm0, %v6435_v24 }
  0x46   :  { %96 = vst.msk [vmem:[#allocation2 + $0x1f8] sm:$0xff] %vm32_vm0, %v6435_v24 }
  0x47   :  { %97 = vst.msk [vmem:[#allocation2 + $0x200] sm:$0xff] %vm32_vm0, %v6435_v24 }
  0x48   :  { %98 = vst.msk [vmem:[#allocation2 + $0x208] sm:$0xff] %vm32_vm0, %v6435_v24 }
  0x49   :  { %12298 = vst [vmem:[#allocation9_spill] sm:$0xff] %v7002_v60 }
  0x4a   :  { %383 = vrot.lane.b32.xlu2 %v6721_v29, %s6434_s15  ;;  %381 = vrot.lane.b32.xlu1 %v6726_v30, %s6434_s15  ;;  %4818 = vst [vmem:[#allocation3] sm:$0xff] %v6435_v24 }
  0x4b   :  { %379 = vrot.lane.b32.xlu0 %v6733_v31, %s6434_s15  ;;  %12299 = vst [vmem:[#allocation10_spill] sm:$0xff] %v7008_v61 }
  0x4c   :  { %4819 = vst [vmem:[#allocation3 + $0x8] sm:$0xff] %v6435_v24 }
  0x4d   :  { %4820 = vst [vmem:[#allocation3 + $0x10] sm:$0xff] %v6435_v24 }
  0x4e   :  { %4821 = vst [vmem:[#allocation3 + $0x18] sm:$0xff] %v6435_v24 }
  0x4f   :  { %4822 = vst [vmem:[#allocation3 + $0x20] sm:$0xff] %v6435_v24 }
  0x50   :  { %4823 = vst [vmem:[#allocation3 + $0x28] sm:$0xff] %v6435_v24 }
  0x51   :  { %4824 = vst [vmem:[#allocation3 + $0x30] sm:$0xff] %v6435_v24 }
  0x52   :  { %453 = vrot.lane.b32.xlu2 %v6758_v32, %s6434_s15  ;;  %387 = vrot.lane.b32.xlu1 %v6763_v33, %s6434_s15  ;;  %4825 = vst [vmem:[#allocation3 + $0x38] sm:$0xff] %v6435_v24 }
  0x53   :  { %385 = vrot.lane.b32.xlu0 %v6770_v34, %s6434_s15  ;;  %4826 = vst [vmem:[#allocation3 + $0x40] sm:$0xff] %v6435_v24 }
  0x54   :  { %4827 = vst [vmem:[#allocation3 + $0x48] sm:$0xff] %v6435_v24 }
  0x55   :  { %4828 = vst [vmem:[#allocation3 + $0x50] sm:$0xff] %v6435_v24 }
  0x56   :  { %4829 = vst [vmem:[#allocation3 + $0x58] sm:$0xff] %v6435_v24 }
  0x57   :  { %4830 = vst [vmem:[#allocation3 + $0x60] sm:$0xff] %v6435_v24 }
  0x58   :  { %4831 = vst [vmem:[#allocation3 + $0x68] sm:$0xff] %v6435_v24 }
  0x59   :  { %4832 = vst [vmem:[#allocation3 + $0x70] sm:$0xff] %v6435_v24 }
  0x5a   :  { %459 = vrot.lane.b32.xlu2 %v6795_v35, %s6434_s15  ;;  %457 = vrot.lane.b32.xlu1 %v6800_v36, %s6434_s15  ;;  %4833 = vst [vmem:[#allocation3 + $0x78] sm:$0xff] %v6435_v24  ;;  %v7084_v24 = vld [vmem:[%s12120_s0 + $0x131] sm:$0xff] }
  0x5b   :  { %455 = vrot.lane.b32.xlu0 %v6807_v37, %s6434_s15  ;;  %12304 = vst [vmem:[#allocation15_spill] sm:$0xff] %v7084_v24 }
  0x5c   :  { %v269_v38 = vpop.permute.xlu2 %268  ;;  %149 = vst.msk [vmem:[#allocation2 + $0x88] sm:$0xff] %vm115_vm1, %v6539_v5 }
  0x5d   :  { %313 = vst.msk [vmem:[#allocation2 + $0x20] sm:$0xff] %vm308_vm2, %v269_v38  ;;  %v7032_v38 = vld [vmem:[%s12120_s0 + $0x129] sm:$0xff] }
  0x5e   :  { %12300 = vst [vmem:[#allocation11_spill] sm:$0xff] %v7032_v38 }
  0x5f   :  { %152 = vst.msk [vmem:[#allocation2 + $0xa0] sm:$0xff] %vm115_vm1, %v6508_v0  ;;  %v112_v0 = vld [vmem:[%s12120_s0 + $0x68] sm:$0xff] }
  0x60   :  { %155 = vst.msk [vmem:[#allocation2 + $0xb8] sm:$0xff] %vm115_vm1, %v6555_v7  ;;  %v114_v7 = vld [vmem:[%s12120_s0 + $0x78] sm:$0xff] }
  0x61   :  { %129 = vst.msk [vmem:[#allocation2 + $0x68] sm:$0xff] %vm115_vm1, %v112_v0  ;;  %v719_v0 = vld [vmem:[%s12120_s0 + $0xc9] sm:$0xff] }
  0x62   :  { %465 = vrot.lane.b32.xlu2 %v6833_v39, %s6434_s15  ;;  %463 = vrot.lane.b32.xlu1 %v6838_v40, %s6434_s15  ;;  %158 = vst.msk [vmem:[#allocation2 + $0xd0] sm:$0xff] %vm115_vm1, %v6576_v10 }
  0x63   :  { %461 = vrot.lane.b32.xlu0 %v6845_v41, %s6434_s15  ;;  %148 = vst.msk [vmem:[#allocation2 + $0x80] sm:$0xff] %vm115_vm1, %v6518_v2  ;;  %v7267_v2 = vld [vmem:[%s12120_s0 + $0x100] sm:$0xff] }
  0x64   :  { %v6861_v42 = vpop.permute.xlu2 %270  ;;  %131 = vst.msk [vmem:[#allocation2 + $0x78] sm:$0xff] %vm115_vm1, %v114_v7  ;;  %v7470_v7 = vld [vmem:[%s12120_s0 + $0x170] sm:$0xff] }
  0x65   :  { %161 = vst.msk [vmem:[#allocation2 + $0xe8] sm:$0xff] %vm115_vm1, %v6597_v13 }
  0x66   :  { %151 = vst.msk [vmem:[#allocation2 + $0x98] sm:$0xff] %vm115_vm1, %v6534_v4 }
  0x67   :  { %150 = vst.msk [vmem:[#allocation2 + $0x90] sm:$0xff] %vm115_vm1, %v6513_v1 }
  0x68   :  { %180 = vst.msk [vmem:[#allocation2 + $0x100] sm:$0xff] %vm115_vm1, %v7267_v2 }
  0x69   :  { %154 = vst.msk [vmem:[#allocation2 + $0xb0] sm:$0xff] %vm115_vm1, %v6560_v8 }
  0x6a   :  { %471 = vrot.lane.b32.xlu2 %v6872_v43, %s6434_s15  ;;  %469 = vrot.lane.b32.xlu1 %v6877_v44, %s6434_s15  ;;  %153 = vst.msk [vmem:[#allocation2 + $0xa8] sm:$0xff] %vm115_vm1, %v6529_v3  ;;  %v7303_v3 = vld [vmem:[%s12120_s0 + $0x130] sm:$0xff] }
  0x6b   :  { %467 = vrot.lane.b32.xlu0 %v6884_v45, %s6434_s15  ;;  %157 = vst.msk [vmem:[#allocation2 + $0xc8] sm:$0xff] %vm115_vm1, %v6581_v11 }
  0x6c   :  { %v6900_v46 = vpop.permute.xlu2 %276  ;;  %156 = vst.msk [vmem:[#allocation2 + $0xc0] sm:$0xff] %vm115_vm1, %v6550_v6 }
  0x6d   :  { %186 = vst.msk [vmem:[#allocation2 + $0x130] sm:$0xff] %vm115_vm1, %v7303_v3 }
  0x6e   :  { %160 = vst.msk [vmem:[#allocation2 + $0xe0] sm:$0xff] %vm115_vm1, %v6602_v14 }
  0x6f   :  { %159 = vst.msk [vmem:[#allocation2 + $0xd8] sm:$0xff] %vm115_vm1, %v6571_v9  ;;  %v7343_v9 = vld [vmem:[%s12120_s0 + $0x160] sm:$0xff] }
  0x70   :  { %163 = vst.msk [vmem:[#allocation2 + $0xf8] sm:$0xff] %vm115_vm1, %v6623_v17 }
  0x71   :  { %162 = vst.msk [vmem:[#allocation2 + $0xf0] sm:$0xff] %vm115_vm1, %v6592_v12  ;;  %v713_v12 = vld [vmem:[%s12120_s0 + $0x99] sm:$0xff] }
  0x72   :  { %477 = vrot.lane.b32.xlu2 %v6911_v47, %s6434_s15  ;;  %475 = vrot.lane.b32.xlu1 %v6916_v48, %s6434_s15  ;;  %v7043_v47 = vld [vmem:[%s12120_s0 + $0x119] sm:$0xff]  ;;  %192 = vst.msk [vmem:[#allocation2 + $0x160] sm:$0xff] %vm115_vm1, %v7343_v9 }
  0x73   :  { %473 = vrot.lane.b32.xlu0 %v6923_v49, %s6434_s15  ;;  %12302 = vst [vmem:[#allocation13_spill] sm:$0xff] %v7043_v47  ;;  %v7078_v49 = vld [vmem:[%s12120_s0 + $0x139] sm:$0xff] }
  0x74   :  { %v6939_v50 = vpop.permute.xlu2 %282  ;;  %v6941_v51 = vpop.permute.xlu1 %264  ;;  %12303 = vst [vmem:[#allocation14_spill] sm:$0xff] %v7078_v49 }
  0x75   :  { %v6945_v52 = vpop.permute.xlu0 %260  ;;  %214 = vst.msk [vmem:[#allocation2 + $0x190] sm:$0xff] %vm115_vm1, %v6800_v36 }
  0x76   :  { %217 = vst.msk [vmem:[#allocation2 + $0x1a8] sm:$0xff] %vm115_vm1, %v6838_v40 }
  0x77   :  { %220 = vst.msk [vmem:[#allocation2 + $0x1c0] sm:$0xff] %vm115_vm1, %v6877_v44  ;;  %v720_v44 = vld [vmem:[%s12120_s0 + $0xd1] sm:$0xff] }
  0x78   :  { %194 = vst.msk [vmem:[#allocation2 + $0x170] sm:$0xff] %vm115_vm1, %v7470_v7 }
  0x79   :  { %223 = vst.msk [vmem:[#allocation2 + $0x1d8] sm:$0xff] %vm115_vm1, %v6916_v48  ;;  %v723_v48 = vld [vmem:[%s12120_s0 + $0xe9] sm:$0xff] }
  0x7a   :  { %483 = vrot.lane.b32.xlu2 %v6958_v53, %s6434_s15  ;;  %481 = vrot.lane.b32.xlu1 %v6963_v54, %s6434_s15  ;;  %v7037_v53 = vld [vmem:[%s12120_s0 + $0x121] sm:$0xff]  ;;  %213 = vst.msk [vmem:[#allocation2 + $0x188] sm:$0xff] %vm115_vm1, %v6807_v37 }
  0x7b   :  { %479 = vrot.lane.b32.xlu0 %v6968_v55, %s6434_s15  ;;  %12301 = vst [vmem:[#allocation12_spill] sm:$0xff] %v7037_v53 }
  0x7c   :  { %v6982_v56 = vpop.permute.xlu2 %288  ;;  %v6984_v57 = vpop.permute.xlu1 %266  ;;  %212 = vst.msk [vmem:[#allocation2 + $0x180] sm:$0xff] %vm115_vm1, %v6758_v32 }
  0x7d   :  { %v6988_v58 = vpop.permute.xlu0 %262  ;;  %226 = vst.msk [vmem:[#allocation2 + $0x1f0] sm:$0xff] %vm115_vm1, %v6963_v54  ;;  %v12309_v54 = vld [vmem:[#allocation10_spill] sm:$0xff] }
  0x7e   :  { %216 = vst.msk [vmem:[#allocation2 + $0x1a0] sm:$0xff] %vm115_vm1, %v6845_v41  ;;  %v12307_v41 = vld [vmem:[#allocation9_spill] sm:$0xff] }
  0x7f   :  { %215 = vst.msk [vmem:[#allocation2 + $0x198] sm:$0xff] %vm115_vm1, %v6795_v35  ;;  %v12308_v35 = vld [vmem:[#allocation6_spill] sm:$0xff] }
  0x80   :  { %219 = vst.msk [vmem:[#allocation2 + $0x1b8] sm:$0xff] %vm115_vm1, %v6884_v45 }
  0x81   :  { %218 = vst.msk [vmem:[#allocation2 + $0x1b0] sm:$0xff] %vm115_vm1, %v6833_v39 }
  0x82   :  { %553 = vrot.lane.b32.xlu2 %v6997_v59, %s6434_s15  ;;  %551 = vrot.lane.b32.xlu1 %v7002_v60, %s6434_s15  ;;  %v110_v60 = vld [vmem:[%s12120_s0 + $0x58] sm:$0xff]  ;;  %222 = vst.msk [vmem:[#allocation2 + $0x1d0] sm:$0xff] %vm115_vm1, %v12308_v35 }
  0x83   :  { %549 = vrot.lane.b32.xlu0 %v7008_v61, %s6434_s15  ;;  %127 = vst.msk [vmem:[#allocation2 + $0x58] sm:$0xff] %vm115_vm1, %v110_v60  ;;  %v113_v60 = vld [vmem:[%s12120_s0 + $0x70] sm:$0xff] }
  0x84   :  { %v7020_v62 = vpop.permute.xlu2 %359  ;;  %v7022_v63 = vpop.permute.xlu1 %274  ;;  %320 = vst.msk [vmem:[#allocation2 + $0x58] sm:$0xff] %vm308_vm2, %v6939_v50  ;;  %v7127_v50 = vld [vmem:[%s12120_s0 + $0x151] sm:$0xff] }
  0x85   :  { %v7025_v25 = vpop.permute.xlu0 %272  ;;  %130 = vst.msk [vmem:[#allocation2 + $0x70] sm:$0xff] %vm115_vm1, %v113_v60 }
  0x86   :  { %323 = vst.msk [vmem:[#allocation2 + $0x70] sm:$0xff] %vm308_vm2, %v6982_v56  ;;  %v106_v56 = vld [vmem:[%s12120_s0 + $0x38] sm:$0xff] }
  0x87   :  { %406 = vst.msk [vmem:[#allocation2 + $0x88] sm:$0xff] %vm308_vm2, %v7020_v62 }
  0x88   :  { %123 = vst.msk [vmem:[#allocation2 + $0x38] sm:$0xff] %vm115_vm1, %v106_v56 }
  0x89   :  { %316 = vst.msk [vmem:[#allocation2 + $0x38] sm:$0xff] %vm308_vm2, %v7022_v63  ;;  %v108_v63 = vld [vmem:[%s12120_s0 + $0x48] sm:$0xff] }
  0x8a   :  { %559 = vrot.lane.b32.xlu2 %v7032_v38, %s6434_s15  ;;  %557 = vrot.lane.b32.xlu1 %v7037_v53, %s6434_s15  ;;  %v104_v38 = vld [vmem:[%s12120_s0 + $0x28] sm:$0xff]  ;;  %125 = vst.msk [vmem:[#allocation2 + $0x48] sm:$0xff] %vm115_vm1, %v108_v63  ;;  %v7439_v63 = vld [vmem:[%s12120_s0 + $0x158] sm:$0xff] }
  0x8b   :  { %555 = vrot.lane.b32.xlu0 %v7043_v47, %s6434_s15  ;;  %v107_v47 = vld [vmem:[%s12120_s0 + $0x40] sm:$0xff]  ;;  %121 = vst.msk [vmem:[#allocation2 + $0x28] sm:$0xff] %vm115_vm1, %v104_v38  ;;  %v101_v38 = vld [vmem:[%s12120_s0 + $0x10] sm:$0xff] }
  0x8c   :  { %v7055_v55 = vpop.permute.xlu2 %365  ;;  %v7057_v43 = vpop.permute.xlu1 %280  ;;  %v7073_v53 = vld [vmem:[%s12120_s0 + $0x141] sm:$0xff]  ;;  %314 = vst.msk [vmem:[#allocation2 + $0x28] sm:$0xff] %vm308_vm2, %v6861_v42 }
  0x8d   :  { %v7063_v61 = vpop.permute.xlu0 %278  ;;  %124 = vst.msk [vmem:[#allocation2 + $0x40] sm:$0xff] %vm115_vm1, %v107_v47 }
  0x8e   :  { %317 = vst.msk [vmem:[#allocation2 + $0x40] sm:$0xff] %vm308_vm2, %v6900_v46 }
  0x8f   :  { %118 = vst.msk [vmem:[#allocation2 + $0x10] sm:$0xff] %vm115_vm1, %v101_v38  ;;  %v102_v38 = vld [vmem:[%s12120_s0 + $0x18] sm:$0xff] }
  0x90   :  { %311 = vst.msk [vmem:[#allocation2 + $0x10] sm:$0xff] %vm308_vm2, %v6941_v51  ;;  %v7133_v51 = vld [vmem:[%s12120_s0 + $0x149] sm:$0xff] }
  0x91   :  { %12306 = vst [vmem:[#allocation17_spill] sm:$0xff] %v7133_v51 }
  0x92   :  { %565 = vrot.lane.b32.xlu2 %v7073_v53, %s6434_s15  ;;  %563 = vrot.lane.b32.xlu1 %v7078_v49, %s6434_s15  ;;  %v99_v49 = vld [vmem:[%s12120_s0] sm:$0xff]  ;;  %119 = vst.msk [vmem:[#allocation2 + $0x18] sm:$0xff] %vm115_vm1, %v102_v38  ;;  %v7169_v38 = vld [vmem:[%s12120_s0 + $0x169] sm:$0xff] }
  0x93   :  { %561 = vrot.lane.b32.xlu0 %v7084_v24, %s6434_s15  ;;  %v7122_v24 = vld [vmem:[%s12120_s0 + $0x159] sm:$0xff]  ;;  %116 = vst.msk [vmem:[#allocation2] sm:$0xff] %vm115_vm1, %v99_v49  ;;  %v100_v49 = vld [vmem:[%s12120_s0 + $0x8] sm:$0xff] }
  0x94   :  { %v372_v42 = vpop.permute.xlu2 %371  ;;  %v7104_v47 = vpop.permute.xlu1 %286  ;;  %12305 = vst [vmem:[#allocation16_spill] sm:$0xff] %v7122_v24 }
  0x95   :  { %v7111_v46 = vpop.permute.xlu0 %284  ;;  %309 = vst.msk [vmem:[#allocation2] sm:$0xff] %vm308_vm2, %v6945_v52 }
  0x96   :  { %312 = vst.msk [vmem:[#allocation2 + $0x18] sm:$0xff] %vm308_vm2, %v6984_v57  ;;  %v7176_v57 = vld [vmem:[%s12120_s0 + $0x161] sm:$0xff] }
  0x97   :  { %117 = vst.msk [vmem:[#allocation2 + $0x8] sm:$0xff] %vm115_vm1, %v100_v49  ;;  %v109_v49 = vld [vmem:[%s12120_s0 + $0x50] sm:$0xff] }
  0x98   :  { %310 = vst.msk [vmem:[#allocation2 + $0x8] sm:$0xff] %vm308_vm2, %v6988_v58  ;;  %v105_v58 = vld [vmem:[%s12120_s0 + $0x30] sm:$0xff] }
  0x99   :  { %122 = vst.msk [vmem:[#allocation2 + $0x30] sm:$0xff] %vm115_vm1, %v105_v58  ;;  %v714_v58 = vld [vmem:[%s12120_s0 + $0xa1] sm:$0xff] }
  0x9a   :  { %571 = vrot.lane.b32.xlu2 %v7122_v24, %s6434_s15  ;;  %569 = vrot.lane.b32.xlu1 %v7127_v50, %s6434_s15  ;;  %315 = vst.msk [vmem:[#allocation2 + $0x30] sm:$0xff] %vm308_vm2, %v7025_v25  ;;  %v7209_v25 = vld [vmem:[%s12120_s0 + $0x179] sm:$0xff] }
  0x9b   :  { %567 = vrot.lane.b32.xlu0 %v7133_v51, %s6434_s15  ;;  %v7164_v51 = vld [vmem:[%s12120_s0 + $0x171] sm:$0xff]  ;;  %409 = vst.msk [vmem:[#allocation2 + $0xa0] sm:$0xff] %vm308_vm2, %v7055_v55 }
  0x9c   :  { %v378_v52 = vpop.permute.xlu2 %377  ;;  %v358_v60 = vpop.permute.xlu1 %357  ;;  %126 = vst.msk [vmem:[#allocation2 + $0x50] sm:$0xff] %vm115_vm1, %v109_v49 }
  0x9d   :  { %v291_v24 = vpop.permute.xlu0 %290  ;;  %319 = vst.msk [vmem:[#allocation2 + $0x50] sm:$0xff] %vm308_vm2, %v7057_v43 }
  0x9e   :  { %318 = vst.msk [vmem:[#allocation2 + $0x48] sm:$0xff] %vm308_vm2, %v7063_v61 }
  0x9f   :  { %412 = vst.msk [vmem:[#allocation2 + $0xb8] sm:$0xff] %vm308_vm2, %v372_v42 }
  0xa0   :  { %322 = vst.msk [vmem:[#allocation2 + $0x68] sm:$0xff] %vm308_vm2, %v7104_v47  ;;  %v7397_v47 = vld [vmem:[%s12120_s0 + $0x120] sm:$0xff] }
  0xa1   :  { %415 = vst.msk [vmem:[#allocation2 + $0xd0] sm:$0xff] %vm308_vm2, %v378_v52  ;;  %v716_v52 = vld [vmem:[%s12120_s0 + $0xb1] sm:$0xff] }
  0xa2   :  { %577 = vrot.lane.b32.xlu2 %v7164_v51, %s6434_s15  ;;  %575 = vrot.lane.b32.xlu1 %v7169_v38, %s6434_s15  ;;  %405 = vst.msk [vmem:[#allocation2 + $0x80] sm:$0xff] %vm308_vm2, %v358_v60  ;;  %v715_v60 = vld [vmem:[%s12120_s0 + $0xa9] sm:$0xff] }
  0xa3   :  { %573 = vrot.lane.b32.xlu0 %v7176_v57, %s6434_s15  ;;  %324 = vst.msk [vmem:[#allocation2 + $0x78] sm:$0xff] %vm308_vm2, %v291_v24 }
  0xa4   :  { %v384_v5 = vpop.permute.xlu2 %383  ;;  %v364_v62 = vpop.permute.xlu1 %363  ;;  %184 = vst.msk [vmem:[#allocation2 + $0x120] sm:$0xff] %vm115_vm1, %v7397_v47 }
  0xa5   :  { %v362_v56 = vpop.permute.xlu0 %361  ;;  %418 = vst.msk [vmem:[#allocation2 + $0xe8] sm:$0xff] %vm308_vm2, %v384_v5  ;;  %v7417_v5 = vld [vmem:[%s12120_s0 + $0x140] sm:$0xff] }
  0xa6   :  { %408 = vst.msk [vmem:[#allocation2 + $0x98] sm:$0xff] %vm308_vm2, %v364_v62  ;;  %v7427_v62 = vld [vmem:[%s12120_s0 + $0x138] sm:$0xff] }
  0xa7   :  { %407 = vst.msk [vmem:[#allocation2 + $0x90] sm:$0xff] %vm308_vm2, %v362_v56 }
  0xa8   :  { %188 = vst.msk [vmem:[#allocation2 + $0x140] sm:$0xff] %vm115_vm1, %v7417_v5 }
  0xa9   :  { %187 = vst.msk [vmem:[#allocation2 + $0x138] sm:$0xff] %vm115_vm1, %v7427_v62 }
  0xaa   :  { %647 = vrot.lane.b32.xlu2 %v6613_v15, %s6436_s24  ;;  %645 = vrot.lane.b32.xlu1 %v6618_v16, %s6436_s24  ;;  %v111_v15 = vld [vmem:[%s12120_s0 + $0x60] sm:$0xff]  ;;  %191 = vst.msk [vmem:[#allocation2 + $0x158] sm:$0xff] %vm115_vm1, %v7439_v63 }
  0xab   :  { %579 = vrot.lane.b32.xlu0 %v7209_v25, %s6434_s15  ;;  %128 = vst.msk [vmem:[#allocation2 + $0x60] sm:$0xff] %vm115_vm1, %v111_v15  ;;  %v7456_v15 = vld [vmem:[%s12120_s0 + $0x150] sm:$0xff]  ;;  %s6438_s15 = smov 16  }
  0xac   :  { %v454_v43 = vpop.permute.xlu2 %453  ;;  %v370_v55 = vpop.permute.xlu1 %369  ;;  %321 = vst.msk [vmem:[#allocation2 + $0x60] sm:$0xff] %vm308_vm2, %v7111_v46 }
  0xad   :  { %v368_v16 = vpop.permute.xlu0 %367  ;;  %501 = vst.msk [vmem:[#allocation2 + $0x100] sm:$0xff] %vm308_vm2, %v454_v43  ;;  %v718_v43 = vld [vmem:[%s12120_s0 + $0xc1] sm:$0xff] }
  0xae   :  { %411 = vst.msk [vmem:[#allocation2 + $0xb0] sm:$0xff] %vm308_vm2, %v370_v55  ;;  %v717_v55 = vld [vmem:[%s12120_s0 + $0xb9] sm:$0xff] }
  0xaf   :  { %410 = vst.msk [vmem:[#allocation2 + $0xa8] sm:$0xff] %vm308_vm2, %v368_v16 }
  0xb0   :  { %190 = vst.msk [vmem:[#allocation2 + $0x150] sm:$0xff] %vm115_vm1, %v7456_v15 }
  0xb2   :  { %653 = vrot.lane.b32.xlu2 %v6634_v18, %s6436_s24  ;;  %651 = vrot.lane.b32.xlu1 %v6639_v19, %s6436_s24 }
  0xb3   :  { %649 = vrot.lane.b32.xlu0 %v6644_v20, %s6436_s24  ;;  %v7283_v20 = vld [vmem:[%s12120_s0 + $0x118] sm:$0xff] }
  0xb4   :  { %v460_v61 = vpop.permute.xlu2 %459  ;;  %v376_v10 = vpop.permute.xlu1 %375  ;;  %183 = vst.msk [vmem:[#allocation2 + $0x118] sm:$0xff] %vm115_vm1, %v7283_v20 }
  0xb5   :  { %v374_v18 = vpop.permute.xlu0 %373  ;;  %504 = vst.msk [vmem:[#allocation2 + $0x118] sm:$0xff] %vm308_vm2, %v460_v61 }
  0xb6   :  { %414 = vst.msk [vmem:[#allocation2 + $0xc8] sm:$0xff] %vm308_vm2, %v376_v10  ;;  %v7478_v10 = vld [vmem:[%s12120_s0 + $0x168] sm:$0xff] }
  0xb7   :  { %413 = vst.msk [vmem:[#allocation2 + $0xc0] sm:$0xff] %vm308_vm2, %v374_v18  ;;  %v722_v18 = vld [vmem:[%s12120_s0 + $0xe1] sm:$0xff] }
  0xb8   :  { %193 = vst.msk [vmem:[#allocation2 + $0x168] sm:$0xff] %vm115_vm1, %v7478_v10 }
  0xba   :  { %659 = vrot.lane.b32.xlu2 %v6655_v21, %s6436_s24  ;;  %657 = vrot.lane.b32.xlu1 %v6660_v22, %s6436_s24  ;;  %v7323_v22 = vld [vmem:[%s12120_s0 + $0x148] sm:$0xff] }
  0xbb   :  { %655 = vrot.lane.b32.xlu0 %v6665_v23, %s6436_s24  ;;  %189 = vst.msk [vmem:[#allocation2 + $0x148] sm:$0xff] %vm115_vm1, %v7323_v22 }
  0xbc   :  { %v466_v4 = vpop.permute.xlu2 %465  ;;  %v382_v13 = vpop.permute.xlu1 %381 }
  0xbd   :  { %v380_v19 = vpop.permute.xlu0 %379  ;;  %507 = vst.msk [vmem:[#allocation2 + $0x130] sm:$0xff] %vm308_vm2, %v466_v4  ;;  %v721_v4 = vld [vmem:[%s12120_s0 + $0xd9] sm:$0xff] }
  0xbe   :  { %417 = vst.msk [vmem:[#allocation2 + $0xe0] sm:$0xff] %vm308_vm2, %v382_v13 }
  0xbf   :  { %416 = vst.msk [vmem:[#allocation2 + $0xd8] sm:$0xff] %vm308_vm2, %v380_v19 }
  0xc2   :  { %665 = vrot.lane.b32.xlu2 %v6684_v26, %s6436_s24  ;;  %663 = vrot.lane.b32.xlu1 %v6689_v27, %s6436_s24  ;;  %v710_v26 = vld [vmem:[%s12120_s0 + $0x81] sm:$0xff]  ;;  %v7353_v27 = vld [vmem:[%s12120_s0 + $0x110] sm:$0xff] }
  0xc3   :  { %661 = vrot.lane.b32.xlu0 %v6696_v28, %s6436_s24  ;;  %182 = vst.msk [vmem:[#allocation2 + $0x110] sm:$0xff] %vm115_vm1, %v7353_v27 }
  0xc4   :  { %v472_v1 = vpop.permute.xlu2 %471  ;;  %v388_v8 = vpop.permute.xlu1 %387 }
  0xc5   :  { %v386_v21 = vpop.permute.xlu0 %385  ;;  %510 = vst.msk [vmem:[#allocation2 + $0x148] sm:$0xff] %vm308_vm2, %v472_v1 }
  0xc6   :  { %420 = vst.msk [vmem:[#allocation2 + $0xf8] sm:$0xff] %vm308_vm2, %v388_v8  ;;  %v725_v8 = vld [vmem:[%s12120_s0 + $0xf9] sm:$0xff] }
  0xc7   :  { %419 = vst.msk [vmem:[#allocation2 + $0xf0] sm:$0xff] %vm308_vm2, %v386_v21  ;;  %v724_v21 = vld [vmem:[%s12120_s0 + $0xf1] sm:$0xff] }
  0xca   :  { %671 = vrot.lane.b32.xlu2 %v6721_v29, %s6436_s24  ;;  %669 = vrot.lane.b32.xlu1 %v6726_v30, %s6436_s24  ;;  %v7361_v29 = vld [vmem:[%s12120_s0 + $0x108] sm:$0xff]  ;;  %v712_v30 = vld [vmem:[%s12120_s0 + $0x91] sm:$0xff] }
  0xcb   :  { %667 = vrot.lane.b32.xlu0 %v6733_v31, %s6436_s24  ;;  %v711_v31 = vld [vmem:[%s12120_s0 + $0x89] sm:$0xff]  ;;  %181 = vst.msk [vmem:[#allocation2 + $0x108] sm:$0xff] %vm115_vm1, %v7361_v29 }
  0xcc   :  { %v478_v6 = vpop.permute.xlu2 %477  ;;  %v458_v11 = vpop.permute.xlu1 %457 }
  0xcd   :  { %v456_v23 = vpop.permute.xlu0 %455  ;;  %513 = vst.msk [vmem:[#allocation2 + $0x160] sm:$0xff] %vm308_vm2, %v478_v6 }
  0xce   :  { %503 = vst.msk [vmem:[#allocation2 + $0x110] sm:$0xff] %vm308_vm2, %v458_v11  ;;  %v12310_v11 = vld [vmem:[#allocation4_spill] sm:$0xff] }
  0xcf   :  { %502 = vst.msk [vmem:[#allocation2 + $0x108] sm:$0xff] %vm308_vm2, %v456_v23 }
  0xd0   :  { %221 = vst.msk [vmem:[#allocation2 + $0x1c8] sm:$0xff] %vm115_vm1, %v12310_v11 }
  0xd2   :  { %742 = vrot.lane.b32.xlu2 %v710_v26, %s6436_s24  ;;  %675 = vrot.lane.b32.xlu1 %v6763_v33, %s6436_s24  ;;  %v7378_v33 = vld [vmem:[%s12120_s0 + $0x178] sm:$0xff]  ;;  %v12311_v26 = vld [vmem:[#allocation8_spill] sm:$0xff] }
  0xd3   :  { %673 = vrot.lane.b32.xlu0 %v6770_v34, %s6436_s24  ;;  %v7388_v34 = vld [vmem:[%s12120_s0 + $0x128] sm:$0xff]  ;;  %195 = vst.msk [vmem:[#allocation2 + $0x178] sm:$0xff] %vm115_vm1, %v7378_v33 }
  0xd4   :  { %v484_v14 = vpop.permute.xlu2 %483  ;;  %v464_v17 = vpop.permute.xlu1 %463  ;;  %185 = vst.msk [vmem:[#allocation2 + $0x128] sm:$0xff] %vm115_vm1, %v7388_v34 }
  0xd5   :  { %v462_v28 = vpop.permute.xlu0 %461  ;;  %516 = vst.msk [vmem:[#allocation2 + $0x178] sm:$0xff] %vm308_vm2, %v484_v14  ;;  %v12313_v14 = vld [vmem:[#allocation7_spill] sm:$0xff] }
  0xd6   :  { %506 = vst.msk [vmem:[#allocation2 + $0x128] sm:$0xff] %vm308_vm2, %v464_v17  ;;  %v12314_v17 = vld [vmem:[#allocation11_spill] sm:$0xff] }
  0xd7   :  { %505 = vst.msk [vmem:[#allocation2 + $0x120] sm:$0xff] %vm308_vm2, %v462_v28  ;;  %v12315_v28 = vld [vmem:[#allocation12_spill] sm:$0xff] }
  0xd8   :  { %225 = vst.msk [vmem:[#allocation2 + $0x1e8] sm:$0xff] %vm115_vm1, %v12311_v26  ;;  %v913_v26 = vld [vmem:[%s12120_s0 + $0x1d9] sm:$0xff] }
  0xd9   :  { %227 = vst.msk [vmem:[#allocation2 + $0x1f8] sm:$0xff] %vm115_vm1, %v12313_v14 }
  0xda   :  { %748 = vrot.lane.b32.xlu2 %v713_v12, %s6436_s24  ;;  %746 = vrot.lane.b32.xlu1 %v712_v30, %s6436_s24  ;;  %v12316_v12 = vld [vmem:[#allocation13_spill] sm:$0xff] }
  0xdb   :  { %744 = vrot.lane.b32.xlu0 %v711_v31, %s6436_s24 }
  0xdc   :  { %v554_v24 = vpop.permute.xlu2 %553  ;;  %v470_v42 = vpop.permute.xlu1 %469 }
  0xdd   :  { %v468_v46 = vpop.permute.xlu0 %467  ;;  %599 = vst.msk [vmem:[#allocation2 + $0x190] sm:$0xff] %vm308_vm2, %v554_v24 }
  0xde   :  { %509 = vst.msk [vmem:[#allocation2 + $0x140] sm:$0xff] %vm308_vm2, %v470_v42  ;;  %v12317_v42 = vld [vmem:[#allocation14_spill] sm:$0xff] }
  0xdf   :  { %508 = vst.msk [vmem:[#allocation2 + $0x138] sm:$0xff] %vm308_vm2, %v468_v46  ;;  %v12318_v46 = vld [vmem:[#allocation15_spill] sm:$0xff] }
  0xe2   :  { %754 = vrot.lane.b32.xlu2 %v716_v52, %s6436_s24  ;;  %752 = vrot.lane.b32.xlu1 %v715_v60, %s6436_s24 }
  0xe3   :  { %750 = vrot.lane.b32.xlu0 %v714_v58, %s6436_s24 }
  0xe4   :  { %v560_v49 = vpop.permute.xlu2 %559  ;;  %v476_v56 = vpop.permute.xlu1 %475 }
  0xe5   :  { %v474_v36 = vpop.permute.xlu0 %473  ;;  %602 = vst.msk [vmem:[#allocation2 + $0x1a8] sm:$0xff] %vm308_vm2, %v560_v49  ;;  %v12319_v49 = vld [vmem:[#allocation16_spill] sm:$0xff] }
  0xe6   :  { %512 = vst.msk [vmem:[#allocation2 + $0x158] sm:$0xff] %vm308_vm2, %v476_v56 }
  0xe7   :  { %511 = vst.msk [vmem:[#allocation2 + $0x150] sm:$0xff] %vm308_vm2, %v474_v36 }
  0xea   :  { %760 = vrot.lane.b32.xlu2 %v719_v0, %s6436_s24  ;;  %758 = vrot.lane.b32.xlu1 %v718_v43, %s6436_s24 }
  0xeb   :  { %756 = vrot.lane.b32.xlu0 %v717_v55, %s6436_s24 }
  0xec   :  { %v566_v40 = vpop.permute.xlu2 %565  ;;  %v482_v16 = vpop.permute.xlu1 %481 }
  0xed   :  { %v480_v61 = vpop.permute.xlu0 %479  ;;  %605 = vst.msk [vmem:[#allocation2 + $0x1c0] sm:$0xff] %vm308_vm2, %v566_v40  ;;  %v903_v40 = vld [vmem:[%s12120_s0 + $0x189] sm:$0xff] }
  0xee   :  { %515 = vst.msk [vmem:[#allocation2 + $0x170] sm:$0xff] %vm308_vm2, %v482_v16 }
  0xef   :  { %514 = vst.msk [vmem:[#allocation2 + $0x168] sm:$0xff] %vm308_vm2, %v480_v61  ;;  %v906_v61 = vld [vmem:[%s12120_s0 + $0x1a1] sm:$0xff] }
  0xf2   :  { %766 = vrot.lane.b32.xlu2 %v722_v18, %s6436_s24  ;;  %764 = vrot.lane.b32.xlu1 %v721_v4, %s6436_s24  ;;  %v905_v18 = vld [vmem:[%s12120_s0 + $0x199] sm:$0xff] }
  0xf3   :  { %762 = vrot.lane.b32.xlu0 %v720_v44, %s6436_s24 }
  0xf4   :  { %v572_v13 = vpop.permute.xlu2 %571  ;;  %v552_v19 = vpop.permute.xlu1 %551 }
  0xf5   :  { %608 = vst.msk [vmem:[#allocation2 + $0x1d8] sm:$0xff] %vm308_vm2, %v572_v13  ;;  %v550_v1 = vpop.permute.xlu0 %549 }
  0xf6   :  { %598 = vst.msk [vmem:[#allocation2 + $0x188] sm:$0xff] %vm308_vm2, %v552_v19  ;;  %v909_v19 = vld [vmem:[%s12120_s0 + $0x1b9] sm:$0xff] }
  0xf7   :  { %597 = vst.msk [vmem:[#allocation2 + $0x180] sm:$0xff] %vm308_vm2, %v550_v1  ;;  %v908_v1 = vld [vmem:[%s12120_s0 + $0x1b1] sm:$0xff] }
  0xfa   :  { %772 = vrot.lane.b32.xlu2 %v725_v8, %s6436_s24  ;;  %770 = vrot.lane.b32.xlu1 %v724_v21, %s6436_s24  ;;  %v907_v8 = vld [vmem:[%s12120_s0 + $0x1a9] sm:$0xff] }
  0xfb   :  { %768 = vrot.lane.b32.xlu0 %v723_v48, %s6436_s24 }
  0xfc   :  { %v578_v37 = vpop.permute.xlu2 %577  ;;  %v558_v32 = vpop.permute.xlu1 %557 }
  0xfd   :  { %611 = vst.msk [vmem:[#allocation2 + $0x1f0] sm:$0xff] %vm308_vm2, %v578_v37  ;;  %v556_v6 = vpop.permute.xlu0 %555 }
  0xfe   :  { %601 = vst.msk [vmem:[#allocation2 + $0x1a0] sm:$0xff] %vm308_vm2, %v558_v32  ;;  %v912_v32 = vld [vmem:[%s12120_s0 + $0x1d1] sm:$0xff] }
  0xff   :  { %600 = vst.msk [vmem:[#allocation2 + $0x198] sm:$0xff] %vm308_vm2, %v556_v6  ;;  %v911_v6 = vld [vmem:[%s12120_s0 + $0x1c9] sm:$0xff] }
 0x102   :  { %842 = vrot.lane.b32.xlu2 %v6997_v59, %s6436_s24  ;;  %840 = vrot.lane.b32.xlu1 %v12307_v41, %s6436_s24  ;;  %v12312_v59 = vld [vmem:[#allocation5_spill] sm:$0xff]  ;;  %v910_v41 = vld [vmem:[%s12120_s0 + $0x1c1] sm:$0xff] }
 0x103   :  { %838 = vrot.lane.b32.xlu0 %v12309_v54, %s6436_s24  ;;  %224 = vst.msk [vmem:[#allocation2 + $0x1e0] sm:$0xff] %vm115_vm1, %v12312_v59  ;;  %vm4999_vm1 = vcmask 195713  }
 0x104   :  { %v648_v45 = vpop.permute.xlu2 %647  ;;  %v564_v23 = vpop.permute.xlu1 %563 }
 0x105   :  { %695 = vst.msk [vmem:[#allocation2 + $0x8] sm:$0xff] %vm693_vm3, %v648_v45  ;;  %v562_v39 = vpop.permute.xlu0 %561  ;;  %v915_v45 = vld [vmem:[%s12120_s0 + $0x1e9] sm:$0xff] }
 0x106   :  { %604 = vst.msk [vmem:[#allocation2 + $0x1b8] sm:$0xff] %vm308_vm2, %v564_v23  ;;  %v914_v23 = vld [vmem:[%s12120_s0 + $0x1e1] sm:$0xff] }
 0x107   :  { %603 = vst.msk [vmem:[#allocation2 + $0x1b0] sm:$0xff] %vm308_vm2, %v562_v39 }
 0x10a   :  { %848 = vrot.lane.b32.xlu2 %v12314_v17, %s6436_s24  ;;  %846 = vrot.lane.b32.xlu1 %v12315_v28, %s6436_s24  ;;  %v917_v17 = vld [vmem:[%s12120_s0 + $0x1f9] sm:$0xff]  ;;  %v916_v28 = vld [vmem:[%s12120_s0 + $0x1f1] sm:$0xff] }
 0x10b   :  { %844 = vrot.lane.b32.xlu0 %v12316_v12, %s6436_s24 }
 0x10c   :  { %v654_v30 = vpop.permute.xlu2 %653  ;;  %v570_v31 = vpop.permute.xlu1 %569 }
 0x10d   :  { %698 = vst.msk [vmem:[#allocation2 + $0x20] sm:$0xff] %vm693_vm3, %v654_v30  ;;  %v568_v24 = vpop.permute.xlu0 %567 }
 0x10e   :  { %607 = vst.msk [vmem:[#allocation2 + $0x1d0] sm:$0xff] %vm308_vm2, %v570_v31 }
 0x10f   :  { %606 = vst.msk [vmem:[#allocation2 + $0x1c8] sm:$0xff] %vm308_vm2, %v568_v24 }
 0x112   :  { %854 = vrot.lane.b32.xlu2 %v7073_v53, %s6436_s24  ;;  %852 = vrot.lane.b32.xlu1 %v12317_v42, %s6436_s24  ;;  %v12320_v53 = vld [vmem:[#allocation17_spill] sm:$0xff] }
 0x113   :  { %850 = vrot.lane.b32.xlu0 %v12318_v46, %s6436_s24  ;;  %v7721_v46 = vld [vmem:[%s12120_s0 + $0x190] sm:$0xff] }
 0x114   :  { %v660_v52 = vpop.permute.xlu2 %659  ;;  %v576_v60 = vpop.permute.xlu1 %575 }
 0x115   :  { %701 = vst.msk [vmem:[#allocation2 + $0x38] sm:$0xff] %vm693_vm3, %v660_v52  ;;  %v574_v58 = vpop.permute.xlu0 %573 }
 0x116   :  { %610 = vst.msk [vmem:[#allocation2 + $0x1e8] sm:$0xff] %vm308_vm2, %v576_v60 }
 0x117   :  { %609 = vst.msk [vmem:[#allocation2 + $0x1e0] sm:$0xff] %vm308_vm2, %v574_v58  ;;  %v7745_v58 = vld [vmem:[%s12120_s0 + $0x1a8] sm:$0xff] }
 0x11a   :  { %860 = vrot.lane.b32.xlu2 %v12319_v49, %s6436_s24  ;;  %858 = vrot.lane.b32.xlu1 %v7127_v50, %s6436_s24  ;;  %v7750_v49 = vld [vmem:[%s12120_s0 + $0x1a0] sm:$0xff] }
 0x11b   :  { %856 = vrot.lane.b32.xlu0 %v12320_v53, %s6436_s24  ;;  %v7755_v53 = vld [vmem:[%s12120_s0 + $0x198] sm:$0xff] }
 0x11c   :  { %v666_v56 = vpop.permute.xlu2 %665  ;;  %v646_v36 = vpop.permute.xlu1 %645 }
 0x11d   :  { %704 = vst.msk [vmem:[#allocation2 + $0x50] sm:$0xff] %vm693_vm3, %v666_v56  ;;  %v580_v0 = vpop.permute.xlu0 %579 }
 0x11e   :  { %694 = vst.msk [vmem:[#allocation2] sm:$0xff] %vm693_vm3, %v646_v36 }
 0x11f   :  { %612 = vst.msk [vmem:[#allocation2 + $0x1f8] sm:$0xff] %vm308_vm2, %v580_v0  ;;  %vm5017_vm2 = vcmask 188544  }
 0x122   :  { %866 = vrot.lane.b32.xlu2 %v7164_v51, %s6436_s24  ;;  %864 = vrot.lane.b32.xlu1 %v7169_v38, %s6436_s24  ;;  %v902_v51 = vld [vmem:[%s12120_s0 + $0x181] sm:$0xff] }
 0x123   :  { %862 = vrot.lane.b32.xlu0 %v7176_v57, %s6436_s24 }
 0x124   :  { %v672_v50 = vpop.permute.xlu2 %671  ;;  %v652_v43 = vpop.permute.xlu1 %651 }
 0x125   :  { %707 = vst.msk [vmem:[#allocation2 + $0x68] sm:$0xff] %vm693_vm3, %v672_v50  ;;  %v650_v55 = vpop.permute.xlu0 %649  ;;  %v7769_v50 = vld [vmem:[%s12120_s0 + $0x1c0] sm:$0xff] }
 0x126   :  { %697 = vst.msk [vmem:[#allocation2 + $0x18] sm:$0xff] %vm693_vm3, %v652_v43  ;;  %v7774_v43 = vld [vmem:[%s12120_s0 + $0x1b8] sm:$0xff] }
 0x127   :  { %696 = vst.msk [vmem:[#allocation2 + $0x10] sm:$0xff] %vm693_vm3, %v650_v55  ;;  %v7779_v55 = vld [vmem:[%s12120_s0 + $0x1b0] sm:$0xff] }
 0x12a   :  { %936 = vrot.lane.b32.xlu2 %v903_v40, %s6436_s24  ;;  %934 = vrot.lane.b32.xlu1 %v902_v51, %s6436_s24 }
 0x12b   :  { %868 = vrot.lane.b32.xlu0 %v7209_v25, %s6436_s24  ;;  %v904_v25 = vld [vmem:[%s12120_s0 + $0x191] sm:$0xff] }
 0x12c   :  { %v743_v38 = vpop.permute.xlu2 %742  ;;  %v658_v57 = vpop.permute.xlu1 %657 }
 0x12d   :  { %790 = vst.msk [vmem:[#allocation2 + $0x80] sm:$0xff] %vm693_vm3, %v743_v38  ;;  %v656_v16 = vpop.permute.xlu0 %655 }
 0x12e   :  { %700 = vst.msk [vmem:[#allocation2 + $0x30] sm:$0xff] %vm693_vm3, %v658_v57  ;;  %v7793_v57 = vld [vmem:[%s12120_s0 + $0x1d8] sm:$0xff] }
 0x12f   :  { %699 = vst.msk [vmem:[#allocation2 + $0x28] sm:$0xff] %vm693_vm3, %v656_v16  ;;  %v7798_v16 = vld [vmem:[%s12120_s0 + $0x1d0] sm:$0xff] }
 0x132   :  { %942 = vrot.lane.b32.xlu2 %v906_v61, %s6436_s24  ;;  %940 = vrot.lane.b32.xlu1 %v905_v18, %s6436_s24  ;;  %v7803_v61 = vld [vmem:[%s12120_s0 + $0x1c8] sm:$0xff] }
 0x133   :  { %938 = vrot.lane.b32.xlu0 %v904_v25, %s6436_s24 }
 0x134   :  { %v749_v4 = vpop.permute.xlu2 %748  ;;  %v664_v44 = vpop.permute.xlu1 %663 }
 0x135   :  { %793 = vst.msk [vmem:[#allocation2 + $0x98] sm:$0xff] %vm693_vm3, %v749_v4  ;;  %v662_v13 = vpop.permute.xlu0 %661 }
 0x136   :  { %703 = vst.msk [vmem:[#allocation2 + $0x48] sm:$0xff] %vm693_vm3, %v664_v44  ;;  %v7817_v44 = vld [vmem:[%s12120_s0 + $0x1f0] sm:$0xff] }
 0x137   :  { %702 = vst.msk [vmem:[#allocation2 + $0x40] sm:$0xff] %vm693_vm3, %v662_v13  ;;  %v7822_v13 = vld [vmem:[%s12120_s0 + $0x1e8] sm:$0xff] }
 0x13a   :  { %948 = vrot.lane.b32.xlu2 %v909_v19, %s6436_s24  ;;  %946 = vrot.lane.b32.xlu1 %v908_v1, %s6436_s24  ;;  %v7827_v19 = vld [vmem:[%s12120_s0 + $0x1e0] sm:$0xff] }
 0x13b   :  { %944 = vrot.lane.b32.xlu0 %v907_v8, %s6436_s24 }
 0x13c   :  { %v755_v21 = vpop.permute.xlu2 %754  ;;  %v670_v48 = vpop.permute.xlu1 %669 }
 0x13d   :  { %796 = vst.msk [vmem:[#allocation2 + $0xb0] sm:$0xff] %vm693_vm3, %v755_v21  ;;  %v668_v37 = vpop.permute.xlu0 %667 }
 0x13e   :  { %706 = vst.msk [vmem:[#allocation2 + $0x60] sm:$0xff] %vm693_vm3, %v670_v48  ;;  %v1192_v48 = vld [vmem:[%s12120_s0 + $0x10] sm:$0xff] }
 0x13f   :  { %705 = vst.msk [vmem:[#allocation2 + $0x58] sm:$0xff] %vm693_vm3, %v668_v37  ;;  %v1191_v37 = vld [vmem:[%s12120_s0 + $0x8] sm:$0xff] }
 0x142   :  { %954 = vrot.lane.b32.xlu2 %v912_v32, %s6436_s24  ;;  %952 = vrot.lane.b32.xlu1 %v911_v6, %s6436_s24  ;;  %v7847_v32 = vld [vmem:[%s12120_s0 + $0x1f8] sm:$0xff] }
 0x143   :  { %950 = vrot.lane.b32.xlu0 %v910_v41, %s6436_s24 }
 0x144   :  { %v761_v35 = vpop.permute.xlu2 %760  ;;  %v676_v54 = vpop.permute.xlu1 %675 }
 0x145   :  { %799 = vst.msk [vmem:[#allocation2 + $0xc8] sm:$0xff] %vm693_vm3, %v761_v35  ;;  %v674_v11 = vpop.permute.xlu0 %673 }
 0x146   :  { %709 = vst.msk [vmem:[#allocation2 + $0x78] sm:$0xff] %vm693_vm3, %v676_v54  ;;  %v1195_v54 = vld [vmem:[%s12120_s0 + $0x28] sm:$0xff] }
 0x147   :  { %708 = vst.msk [vmem:[#allocation2 + $0x70] sm:$0xff] %vm693_vm3, %v674_v11  ;;  %v1194_v11 = vld [vmem:[%s12120_s0 + $0x20] sm:$0xff] }
 0x14a   :  { %960 = vrot.lane.b32.xlu2 %v915_v45, %s6436_s24  ;;  %958 = vrot.lane.b32.xlu1 %v914_v23, %s6436_s24  ;;  %v1193_v45 = vld [vmem:[%s12120_s0 + $0x18] sm:$0xff] }
 0x14b   :  { %956 = vrot.lane.b32.xlu0 %v913_v26, %s6436_s24 }
 0x14c   :  { %v767_v39 = vpop.permute.xlu2 %766  ;;  %v747_v59 = vpop.permute.xlu1 %746 }
 0x14d   :  { %802 = vst.msk [vmem:[#allocation2 + $0xe0] sm:$0xff] %vm693_vm3, %v767_v39  ;;  %v745_v14 = vpop.permute.xlu0 %744 }
 0x14e   :  { %792 = vst.msk [vmem:[#allocation2 + $0x90] sm:$0xff] %vm693_vm3, %v747_v59  ;;  %v1198_v59 = vld [vmem:[%s12120_s0 + $0x40] sm:$0xff] }
 0x14f   :  { %791 = vst.msk [vmem:[#allocation2 + $0x88] sm:$0xff] %vm693_vm3, %v745_v14  ;;  %v1197_v14 = vld [vmem:[%s12120_s0 + $0x38] sm:$0xff] }
 0x152   :  { %1030 = vrot.lane.b32.xlu2 %v7267_v2, %s6437_s27  ;;  %964 = vrot.lane.b32.xlu1 %v917_v17, %s6436_s24  ;;  %v1196_v17 = vld [vmem:[%s12120_s0 + $0x30] sm:$0xff] }
 0x153   :  { %962 = vrot.lane.b32.xlu0 %v916_v28, %s6436_s24 }
 0x154   :  { %v773_v12 = vpop.permute.xlu2 %772  ;;  %v753_v30 = vpop.permute.xlu1 %752 }
 0x155   :  { %805 = vst.msk [vmem:[#allocation2 + $0xf8] sm:$0xff] %vm693_vm3, %v773_v12  ;;  %v751_v31 = vpop.permute.xlu0 %750 }
 0x156   :  { %795 = vst.msk [vmem:[#allocation2 + $0xa8] sm:$0xff] %vm693_vm3, %v753_v30 }
 0x157   :  { %794 = vst.msk [vmem:[#allocation2 + $0xa0] sm:$0xff] %vm693_vm3, %v751_v31  ;;  %v1201_v31 = vld [vmem:[%s12120_s0 + $0x58] sm:$0xff] }
 0x15a   :  { %1036 = vrot.lane.b32.xlu2 %v7283_v20, %s6437_s27  ;;  %1034 = vrot.lane.b32.xlu1 %v7353_v27, %s6437_s27 }
 0x15b   :  { %1032 = vrot.lane.b32.xlu0 %v7361_v29, %s6437_s27 }
 0x15c   :  { %v843_v2 = vpop.permute.xlu2 %842  ;;  %v759_v24 = vpop.permute.xlu1 %758 }
 0x15d   :  { %888 = vst.msk [vmem:[#allocation2 + $0x110] sm:$0xff] %vm693_vm3, %v843_v2  ;;  %v757_v42 = vpop.permute.xlu0 %756  ;;  %v1200_v2 = vld [vmem:[%s12120_s0 + $0x50] sm:$0xff] }
 0x15e   :  { %798 = vst.msk [vmem:[#allocation2 + $0xc0] sm:$0xff] %vm693_vm3, %v759_v24  ;;  %v1199_v24 = vld [vmem:[%s12120_s0 + $0x48] sm:$0xff] }
 0x15f   :  { %797 = vst.msk [vmem:[#allocation2 + $0xb8] sm:$0xff] %vm693_vm3, %v757_v42 }
 0x162   :  { %1042 = vrot.lane.b32.xlu2 %v7303_v3, %s6437_s27  ;;  %1040 = vrot.lane.b32.xlu1 %v7388_v34, %s6437_s27 }
 0x163   :  { %1038 = vrot.lane.b32.xlu0 %v7397_v47, %s6437_s27 }
 0x164   :  { %v849_v20 = vpop.permute.xlu2 %848  ;;  %v765_v27 = vpop.permute.xlu1 %764 }
 0x165   :  { %891 = vst.msk [vmem:[#allocation2 + $0x128] sm:$0xff] %vm693_vm3, %v849_v20  ;;  %v763_v29 = vpop.permute.xlu0 %762 }
 0x166   :  { %801 = vst.msk [vmem:[#allocation2 + $0xd8] sm:$0xff] %vm693_vm3, %v765_v27 }
 0x167   :  { %800 = vst.msk [vmem:[#allocation2 + $0xd0] sm:$0xff] %vm693_vm3, %v763_v29  ;;  %v1204_v29 = vld [vmem:[%s12120_s0 + $0x70] sm:$0xff] }
 0x16a   :  { %1048 = vrot.lane.b32.xlu2 %v7323_v22, %s6437_s27  ;;  %1046 = vrot.lane.b32.xlu1 %v7417_v5, %s6437_s27 }
 0x16b   :  { %1044 = vrot.lane.b32.xlu0 %v7427_v62, %s6437_s27 }
 0x16c   :  { %v855_v3 = vpop.permute.xlu2 %854  ;;  %v771_v34 = vpop.permute.xlu1 %770 }
 0x16d   :  { %894 = vst.msk [vmem:[#allocation2 + $0x140] sm:$0xff] %vm693_vm3, %v855_v3  ;;  %v769_v47 = vpop.permute.xlu0 %768  ;;  %v1203_v3 = vld [vmem:[%s12120_s0 + $0x68] sm:$0xff] }
 0x16e   :  { %804 = vst.msk [vmem:[#allocation2 + $0xf0] sm:$0xff] %vm693_vm3, %v771_v34  ;;  %v1202_v34 = vld [vmem:[%s12120_s0 + $0x60] sm:$0xff] }
 0x16f   :  { %803 = vst.msk [vmem:[#allocation2 + $0xe8] sm:$0xff] %vm693_vm3, %v769_v47 }
 0x172   :  { %1054 = vrot.lane.b32.xlu2 %v7343_v9, %s6437_s27  ;;  %1052 = vrot.lane.b32.xlu1 %v7439_v63, %s6437_s27 }
 0x173   :  { %1050 = vrot.lane.b32.xlu0 %v7456_v15, %s6437_s27 }
 0x174   :  { %v861_v22 = vpop.permute.xlu2 %860  ;;  %v841_v5 = vpop.permute.xlu1 %840 }
 0x175   :  { %897 = vst.msk [vmem:[#allocation2 + $0x158] sm:$0xff] %vm693_vm3, %v861_v22  ;;  %v839_v62 = vpop.permute.xlu0 %838 }
 0x176   :  { %887 = vst.msk [vmem:[#allocation2 + $0x108] sm:$0xff] %vm693_vm3, %v841_v5 }
 0x177   :  { %886 = vst.msk [vmem:[#allocation2 + $0x100] sm:$0xff] %vm693_vm3, %v839_v62  ;;  %v7919_v62 = vld [vmem:[%s12120_s0 + $0x88] sm:$0xff] }
 0x17a   :  { %1060 = vrot.lane.b32.xlu2 %v7378_v33, %s6437_s27  ;;  %1058 = vrot.lane.b32.xlu1 %v7470_v7, %s6437_s27  ;;  %v7726_v33 = vld [vmem:[%s12120_s0 + $0x188] sm:$0xff]  ;;  %v7731_v7 = vld [vmem:[%s12120_s0 + $0x180] sm:$0xff] }
 0x17b   :  { %1056 = vrot.lane.b32.xlu0 %v7478_v10, %s6437_s27 }
 0x17c   :  { %v867_v9 = vpop.permute.xlu2 %866  ;;  %v847_v63 = vpop.permute.xlu1 %846 }
 0x17d   :  { %900 = vst.msk [vmem:[#allocation2 + $0x170] sm:$0xff] %vm693_vm3, %v867_v9  ;;  %v845_v15 = vpop.permute.xlu0 %844  ;;  %v1206_v9 = vld [vmem:[%s12120_s0 + $0x80] sm:$0xff] }
 0x17e   :  { %890 = vst.msk [vmem:[#allocation2 + $0x120] sm:$0xff] %vm693_vm3, %v847_v63  ;;  %v1205_v63 = vld [vmem:[%s12120_s0 + $0x78] sm:$0xff] }
 0x17f   :  { %889 = vst.msk [vmem:[#allocation2 + $0x118] sm:$0xff] %vm693_vm3, %v845_v15 }
 0x182   :  { %1131 = vrot.lane.b32.xlu2 %v7721_v46, %s6437_s27  ;;  %1129 = vrot.lane.b32.xlu1 %v7726_v33, %s6437_s27 }
 0x183   :  { %1127 = vrot.lane.b32.xlu0 %v7731_v7, %s6437_s27 }
 0x184   :  { %v937_v10 = vpop.permute.xlu2 %936  ;;  %v853_v52 = vpop.permute.xlu1 %852 }
 0x185   :  { %983 = vst.msk [vmem:[#allocation2 + $0x188] sm:$0xff] %vm693_vm3, %v937_v10  ;;  %v851_v60 = vpop.permute.xlu0 %850 }
 0x186   :  { %893 = vst.msk [vmem:[#allocation2 + $0x138] sm:$0xff] %vm693_vm3, %v853_v52 }
 0x187   :  { %892 = vst.msk [vmem:[#allocation2 + $0x130] sm:$0xff] %vm693_vm3, %v851_v60  ;;  %v7937_v60 = vld [vmem:[%s12120_s0 + $0xa0] sm:$0xff] }
 0x18a   :  { %1137 = vrot.lane.b32.xlu2 %v7745_v58, %s6437_s27  ;;  %1135 = vrot.lane.b32.xlu1 %v7750_v49, %s6437_s27 }
 0x18b   :  { %1133 = vrot.lane.b32.xlu0 %v7755_v53, %s6437_s27 }
 0x18c   :  { %v943_v56 = vpop.permute.xlu2 %942  ;;  %v859_v36 = vpop.permute.xlu1 %858 }
 0x18d   :  { %986 = vst.msk [vmem:[#allocation2 + $0x1a0] sm:$0xff] %vm693_vm3, %v943_v56  ;;  %v857_v0 = vpop.permute.xlu0 %856  ;;  %v7942_v56 = vld [vmem:[%s12120_s0 + $0x98] sm:$0xff] }
 0x18e   :  { %896 = vst.msk [vmem:[#allocation2 + $0x150] sm:$0xff] %vm693_vm3, %v859_v36  ;;  %v7947_v36 = vld [vmem:[%s12120_s0 + $0x90] sm:$0xff] }
 0x18f   :  { %895 = vst.msk [vmem:[#allocation2 + $0x148] sm:$0xff] %vm693_vm3, %v857_v0 }
 0x192   :  { %1143 = vrot.lane.b32.xlu2 %v7769_v50, %s6437_s27  ;;  %1141 = vrot.lane.b32.xlu1 %v7774_v43, %s6437_s27 }
 0x193   :  { %1139 = vrot.lane.b32.xlu0 %v7779_v55, %s6437_s27 }
 0x194   :  { %v949_v40 = vpop.permute.xlu2 %948  ;;  %v865_v51 = vpop.permute.xlu1 %864 }
 0x195   :  { %989 = vst.msk [vmem:[#allocation2 + $0x1b8] sm:$0xff] %vm693_vm3, %v949_v40  ;;  %v863_v38 = vpop.permute.xlu0 %862 }
 0x196   :  { %899 = vst.msk [vmem:[#allocation2 + $0x168] sm:$0xff] %vm693_vm3, %v865_v51 }
 0x197   :  { %898 = vst.msk [vmem:[#allocation2 + $0x160] sm:$0xff] %vm693_vm3, %v863_v38  ;;  %v7961_v38 = vld [vmem:[%s12120_s0 + $0xb8] sm:$0xff] }
 0x19a   :  { %1149 = vrot.lane.b32.xlu2 %v7793_v57, %s6437_s27  ;;  %1147 = vrot.lane.b32.xlu1 %v7798_v16, %s6437_s27 }
 0x19b   :  { %1145 = vrot.lane.b32.xlu0 %v7803_v61, %s6437_s27 }
 0x19c   :  { %v955_v18 = vpop.permute.xlu2 %954  ;;  %v935_v25 = vpop.permute.xlu1 %934 }
 0x19d   :  { %992 = vst.msk [vmem:[#allocation2 + $0x1d0] sm:$0xff] %vm693_vm3, %v955_v18  ;;  %v869_v4 = vpop.permute.xlu0 %868  ;;  %v7966_v18 = vld [vmem:[%s12120_s0 + $0xb0] sm:$0xff] }
 0x19e   :  { %982 = vst.msk [vmem:[#allocation2 + $0x180] sm:$0xff] %vm693_vm3, %v935_v25  ;;  %v7971_v25 = vld [vmem:[%s12120_s0 + $0xa8] sm:$0xff] }
 0x19f   :  { %901 = vst.msk [vmem:[#allocation2 + $0x178] sm:$0xff] %vm693_vm3, %v869_v4 }
 0x1a2   :  { %1155 = vrot.lane.b32.xlu2 %v7817_v44, %s6437_s27  ;;  %1153 = vrot.lane.b32.xlu1 %v7822_v13, %s6437_s27 }
 0x1a3   :  { %1151 = vrot.lane.b32.xlu0 %v7827_v19, %s6437_s27 }
 0x1a4   :  { %v961_v1 = vpop.permute.xlu2 %960  ;;  %v941_v8 = vpop.permute.xlu1 %940 }
 0x1a5   :  { %995 = vst.msk [vmem:[#allocation2 + $0x1e8] sm:$0xff] %vm693_vm3, %v961_v1  ;;  %v939_v21 = vpop.permute.xlu0 %938 }
 0x1a6   :  { %985 = vst.msk [vmem:[#allocation2 + $0x198] sm:$0xff] %vm693_vm3, %v941_v8 }
 0x1a7   :  { %984 = vst.msk [vmem:[#allocation2 + $0x190] sm:$0xff] %vm693_vm3, %v939_v21  ;;  %v7985_v21 = vld [vmem:[%s12120_s0 + $0xd0] sm:$0xff] }
 0x1aa   :  { %1225 = vrot.lane.b32.xlu2 %v1192_v48, %s6437_s27  ;;  %1223 = vrot.lane.b32.xlu1 %v1191_v37, %s6437_s27  ;;  %v7990_v48 = vld [vmem:[%s12120_s0 + $0xc8] sm:$0xff]  ;;  %v7995_v37 = vld [vmem:[%s12120_s0 + $0xc0] sm:$0xff] }
 0x1ab   :  { %1157 = vrot.lane.b32.xlu0 %v7847_v32, %s6437_s27 }
 0x1ac   :  { %v1031_v6 = vpop.permute.xlu2 %1030  ;;  %v947_v41 = vpop.permute.xlu1 %946 }
 0x1ad   :  { %1079 = vst.msk [vmem:[#allocation2] sm:$0xff] %vm1078_vm4, %v1031_v6  ;;  %v945_v35 = vpop.permute.xlu0 %944 }
 0x1ae   :  { %988 = vst.msk [vmem:[#allocation2 + $0x1b0] sm:$0xff] %vm693_vm3, %v947_v41 }
 0x1af   :  { %987 = vst.msk [vmem:[#allocation2 + $0x1a8] sm:$0xff] %vm693_vm3, %v945_v35 }
 0x1b2   :  { %1231 = vrot.lane.b32.xlu2 %v1195_v54, %s6437_s27  ;;  %1229 = vrot.lane.b32.xlu1 %v1194_v11, %s6437_s27  ;;  %v8009_v54 = vld [vmem:[%s12120_s0 + $0xe8] sm:$0xff]  ;;  %v8014_v11 = vld [vmem:[%s12120_s0 + $0xe0] sm:$0xff] }
 0x1b3   :  { %1227 = vrot.lane.b32.xlu0 %v1193_v45, %s6437_s27  ;;  %v8019_v45 = vld [vmem:[%s12120_s0 + $0xd8] sm:$0xff] }
 0x1b4   :  { %v1037_v23 = vpop.permute.xlu2 %1036  ;;  %v953_v26 = vpop.permute.xlu1 %952 }
 0x1b5   :  { %1082 = vst.msk [vmem:[#allocation2 + $0x18] sm:$0xff] %vm1078_vm4, %v1037_v23  ;;  %v951_v39 = vpop.permute.xlu0 %950 }
 0x1b6   :  { %991 = vst.msk [vmem:[#allocation2 + $0x1c8] sm:$0xff] %vm693_vm3, %v953_v26 }
 0x1b7   :  { %990 = vst.msk [vmem:[#allocation2 + $0x1c0] sm:$0xff] %vm693_vm3, %v951_v39 }
 0x1ba   :  { %1237 = vrot.lane.b32.xlu2 %v1198_v59, %s6437_s27  ;;  %1235 = vrot.lane.b32.xlu1 %v1197_v14, %s6437_s27  ;;  %v8033_v59 = vld [vmem:[%s12120_s0 + $0x100] sm:$0xff]  ;;  %v8038_v14 = vld [vmem:[%s12120_s0 + $0xf8] sm:$0xff] }
 0x1bb   :  { %1233 = vrot.lane.b32.xlu0 %v1196_v17, %s6437_s27  ;;  %v8043_v17 = vld [vmem:[%s12120_s0 + $0xf0] sm:$0xff] }
 0x1bc   :  { %v1043_v28 = vpop.permute.xlu2 %1042  ;;  %v959_v12 = vpop.permute.xlu1 %958 }
 0x1bd   :  { %1085 = vst.msk [vmem:[#allocation2 + $0x30] sm:$0xff] %vm1078_vm4, %v1043_v28  ;;  %v957_v30 = vpop.permute.xlu0 %956 }
 0x1be   :  { %994 = vst.msk [vmem:[#allocation2 + $0x1e0] sm:$0xff] %vm693_vm3, %v959_v12 }
 0x1bf   :  { %993 = vst.msk [vmem:[#allocation2 + $0x1d8] sm:$0xff] %vm693_vm3, %v957_v30 }
 0x1c2   :  { %1243 = vrot.lane.b32.xlu2 %v1201_v31, %s6437_s27  ;;  %1241 = vrot.lane.b32.xlu1 %v1200_v2, %s6437_s27 }
 0x1c3   :  { %1239 = vrot.lane.b32.xlu0 %v1199_v24, %s6437_s27 }
 0x1c4   :  { %v1049_v42 = vpop.permute.xlu2 %1048  ;;  %v965_v20 = vpop.permute.xlu1 %964 }
 0x1c5   :  { %1088 = vst.msk [vmem:[#allocation2 + $0x48] sm:$0xff] %vm1078_vm4, %v1049_v42  ;;  %v963_v27 = vpop.permute.xlu0 %962  ;;  %v8102_v42 = vld [vmem:[%s12120_s0 + $0x109] sm:$0xff] }
 0x1c6   :  { %997 = vst.msk [vmem:[#allocation2 + $0x1f8] sm:$0xff] %vm693_vm3, %v965_v20 }
 0x1c7   :  { %996 = vst.msk [vmem:[#allocation2 + $0x1f0] sm:$0xff] %vm693_vm3, %v963_v27  ;;  %v8121_v27 = vld [vmem:[%s12120_s0 + $0x121] sm:$0xff]  ;;  %vm5073_vm3 = vcmask 261312  }
 0x1ca   :  { %1249 = vrot.lane.b32.xlu2 %v1204_v29, %s6437_s27  ;;  %1247 = vrot.lane.b32.xlu1 %v1203_v3, %s6437_s27  ;;  %v8126_v29 = vld [vmem:[%s12120_s0 + $0x119] sm:$0xff] }
 0x1cb   :  { %1245 = vrot.lane.b32.xlu0 %v1202_v34, %s6437_s27 }
 0x1cc   :  { %v1055_v47 = vpop.permute.xlu2 %1054  ;;  %v1035_v22 = vpop.permute.xlu1 %1034 }
 0x1cd   :  { %1091 = vst.msk [vmem:[#allocation2 + $0x60] sm:$0xff] %vm1078_vm4, %v1055_v47  ;;  %v1033_v5 = vpop.permute.xlu0 %1032 }
 0x1ce   :  { %1081 = vst.msk [vmem:[#allocation2 + $0x10] sm:$0xff] %vm1078_vm4, %v1035_v22  ;;  %v8145_v22 = vld [vmem:[%s12120_s0 + $0x139] sm:$0xff] }
 0x1cf   :  { %1080 = vst.msk [vmem:[#allocation2 + $0x8] sm:$0xff] %vm1078_vm4, %v1033_v5  ;;  %v8150_v5 = vld [vmem:[%s12120_s0 + $0x131] sm:$0xff] }
 0x1d2   :  { %1319 = vrot.lane.b32.xlu2 %v7919_v62, %s6437_s27  ;;  %1253 = vrot.lane.b32.xlu1 %v1206_v9, %s6437_s27  ;;  %v8155_v9 = vld [vmem:[%s12120_s0 + $0x129] sm:$0xff] }
 0x1d3   :  { %1251 = vrot.lane.b32.xlu0 %v1205_v63, %s6437_s27 }
 0x1d4   :  { %v1061_v15 = vpop.permute.xlu2 %1060  ;;  %v1041_v10 = vpop.permute.xlu1 %1040 }
 0x1d5   :  { %1094 = vst.msk [vmem:[#allocation2 + $0x78] sm:$0xff] %vm1078_vm4, %v1061_v15  ;;  %v1039_v52 = vpop.permute.xlu0 %1038 }
 0x1d6   :  { %1084 = vst.msk [vmem:[#allocation2 + $0x28] sm:$0xff] %vm1078_vm4, %v1041_v10 }
 0x1d7   :  { %1083 = vst.msk [vmem:[#allocation2 + $0x20] sm:$0xff] %vm1078_vm4, %v1039_v52  ;;  %v8169_v52 = vld [vmem:[%s12120_s0 + $0x151] sm:$0xff] }
 0x1da   :  { %1325 = vrot.lane.b32.xlu2 %v7937_v60, %s6437_s27  ;;  %1323 = vrot.lane.b32.xlu1 %v7942_v56, %s6437_s27 }
 0x1db   :  { %1321 = vrot.lane.b32.xlu0 %v7947_v36, %s6437_s27 }
 0x1dc   :  { %v1132_v0 = vpop.permute.xlu2 %1131  ;;  %v1047_v40 = vpop.permute.xlu1 %1046 }
 0x1dd   :  { %1177 = vst.msk [vmem:[#allocation2 + $0x90] sm:$0xff] %vm1078_vm4, %v1132_v0  ;;  %v1045_v51 = vpop.permute.xlu0 %1044  ;;  %v8174_v0 = vld [vmem:[%s12120_s0 + $0x149] sm:$0xff] }
 0x1de   :  { %1087 = vst.msk [vmem:[#allocation2 + $0x40] sm:$0xff] %vm1078_vm4, %v1047_v40  ;;  %v8179_v40 = vld [vmem:[%s12120_s0 + $0x141] sm:$0xff] }
 0x1df   :  { %1086 = vst.msk [vmem:[#allocation2 + $0x38] sm:$0xff] %vm1078_vm4, %v1045_v51 }
 0x1e2   :  { %1331 = vrot.lane.b32.xlu2 %v7961_v38, %s6437_s27  ;;  %1329 = vrot.lane.b32.xlu1 %v7966_v18, %s6437_s27 }
 0x1e3   :  { %1327 = vrot.lane.b32.xlu0 %v7971_v25, %s6437_s27 }
 0x1e4   :  { %v1138_v4 = vpop.permute.xlu2 %1137  ;;  %v1053_v1 = vpop.permute.xlu1 %1052 }
 0x1e5   :  { %1180 = vst.msk [vmem:[#allocation2 + $0xa8] sm:$0xff] %vm1078_vm4, %v1138_v4  ;;  %v1051_v8 = vpop.permute.xlu0 %1050 }
 0x1e6   :  { %1090 = vst.msk [vmem:[#allocation2 + $0x58] sm:$0xff] %vm1078_vm4, %v1053_v1 }
 0x1e7   :  { %1089 = vst.msk [vmem:[#allocation2 + $0x50] sm:$0xff] %vm1078_vm4, %v1051_v8  ;;  %v8193_v8 = vld [vmem:[%s12120_s0 + $0x169] sm:$0xff] }
 0x1ea   :  { %1337 = vrot.lane.b32.xlu2 %v7985_v21, %s6437_s27  ;;  %1335 = vrot.lane.b32.xlu1 %v7990_v48, %s6437_s27 }
 0x1eb   :  { %1333 = vrot.lane.b32.xlu0 %v7995_v37, %s6437_s27 }
 0x1ec   :  { %v1144_v6 = vpop.permute.xlu2 %1143  ;;  %v1059_v41 = vpop.permute.xlu1 %1058 }
 0x1ed   :  { %1183 = vst.msk [vmem:[#allocation2 + $0xc0] sm:$0xff] %vm1078_vm4, %v1144_v6  ;;  %v1057_v35 = vpop.permute.xlu0 %1056  ;;  %v8198_v6 = vld [vmem:[%s12120_s0 + $0x161] sm:$0xff] }
 0x1ee   :  { %1093 = vst.msk [vmem:[#allocation2 + $0x70] sm:$0xff] %vm1078_vm4, %v1059_v41  ;;  %v8203_v41 = vld [vmem:[%s12120_s0 + $0x159] sm:$0xff] }
 0x1ef   :  { %1092 = vst.msk [vmem:[#allocation2 + $0x68] sm:$0xff] %vm1078_vm4, %v1057_v35 }
 0x1f2   :  { %1343 = vrot.lane.b32.xlu2 %v8009_v54, %s6437_s27  ;;  %1341 = vrot.lane.b32.xlu1 %v8014_v11, %s6437_s27 }
 0x1f3   :  { %1339 = vrot.lane.b32.xlu0 %v8019_v45, %s6437_s27 }
 0x1f4   :  { %v1150_v23 = vpop.permute.xlu2 %1149  ;;  %v1130_v26 = vpop.permute.xlu1 %1129 }
 0x1f5   :  { %1186 = vst.msk [vmem:[#allocation2 + $0xd8] sm:$0xff] %vm1078_vm4, %v1150_v23  ;;  %v1128_v39 = vpop.permute.xlu0 %1127 }
 0x1f6   :  { %1176 = vst.msk [vmem:[#allocation2 + $0x88] sm:$0xff] %vm1078_vm4, %v1130_v26 }
 0x1f7   :  { %1175 = vst.msk [vmem:[#allocation2 + $0x80] sm:$0xff] %vm1078_vm4, %v1128_v39  ;;  %v8217_v39 = vld [vmem:[%s12120_s0 + $0x179] sm:$0xff] }
 0x1fa   :  { %1349 = vrot.lane.b32.xlu2 %v8033_v59, %s6437_s27  ;;  %1347 = vrot.lane.b32.xlu1 %v8038_v14, %s6437_s27 }
 0x1fb   :  { %1345 = vrot.lane.b32.xlu0 %v8043_v17, %s6437_s27  ;;  %s6441_s27 = smov 28  }
 0x1fc   :  { %v1156_v28 = vpop.permute.xlu2 %1155  ;;  %v1136_v12 = vpop.permute.xlu1 %1135 }
 0x1fd   :  { %1189 = vst.msk [vmem:[#allocation2 + $0xf0] sm:$0xff] %vm1078_vm4, %v1156_v28  ;;  %v1134_v30 = vpop.permute.xlu0 %1133  ;;  %v8222_v28 = vld [vmem:[%s12120_s0 + $0x171] sm:$0xff] }
 0x1fe   :  { %1179 = vst.msk [vmem:[#allocation2 + $0xa0] sm:$0xff] %vm1078_vm4, %v1136_v12 }
 0x1ff   :  { %1178 = vst.msk [vmem:[#allocation2 + $0x98] sm:$0xff] %vm1078_vm4, %v1134_v30 }
 0x202   :  { %1419 = vrot.lane.b32.xlu2 %v7721_v46, %s6438_s15  ;;  %1417 = vrot.lane.b32.xlu1 %v7726_v33, %s6438_s15 }
 0x203   :  { %1415 = vrot.lane.b32.xlu0 %v7731_v7, %s6438_s15 }
 0x204   :  { %v1226_v31 = vpop.permute.xlu2 %1225  ;;  %v1142_v2 = vpop.permute.xlu1 %1141 }
 0x205   :  { %1272 = vst.msk [vmem:[#allocation2 + $0x108] sm:$0xff] %vm1078_vm4, %v1226_v31  ;;  %v1140_v24 = vpop.permute.xlu0 %1139 }
 0x206   :  { %1182 = vst.msk [vmem:[#allocation2 + $0xb8] sm:$0xff] %vm1078_vm4, %v1142_v2 }
 0x207   :  { %1181 = vst.msk [vmem:[#allocation2 + $0xb0] sm:$0xff] %vm1078_vm4, %v1140_v24 }
 0x20a   :  { %1425 = vrot.lane.b32.xlu2 %v7745_v58, %s6438_s15  ;;  %1423 = vrot.lane.b32.xlu1 %v7750_v49, %s6438_s15 }
 0x20b   :  { %1421 = vrot.lane.b32.xlu0 %v7755_v53, %s6438_s15 }
 0x20c   :  { %v1232_v46 = vpop.permute.xlu2 %1231  ;;  %v1148_v33 = vpop.permute.xlu1 %1147 }
 0x20d   :  { %1275 = vst.msk [vmem:[#allocation2 + $0x120] sm:$0xff] %vm1078_vm4, %v1232_v46  ;;  %v1146_v7 = vpop.permute.xlu0 %1145  ;;  %v8281_v46 = vld [vmem:[%s12120_s0 + $0x19] sm:$0xff] }
 0x20e   :  { %1185 = vst.msk [vmem:[#allocation2 + $0xd0] sm:$0xff] %vm1078_vm4, %v1148_v33 }
 0x20f   :  { %1184 = vst.msk [vmem:[#allocation2 + $0xc8] sm:$0xff] %vm1078_vm4, %v1146_v7 }
 0x212   :  { %1431 = vrot.lane.b32.xlu2 %v7769_v50, %s6438_s15  ;;  %1429 = vrot.lane.b32.xlu1 %v7774_v43, %s6438_s15 }
 0x213   :  { %1427 = vrot.lane.b32.xlu0 %v7779_v55, %s6438_s15 }
 0x214   :  { %v1238_v58 = vpop.permute.xlu2 %1237  ;;  %v1154_v49 = vpop.permute.xlu1 %1153 }
 0x215   :  { %1278 = vst.msk [vmem:[#allocation2 + $0x138] sm:$0xff] %vm1078_vm4, %v1238_v58  ;;  %v1152_v53 = vpop.permute.xlu0 %1151  ;;  %v8305_v58 = vld [vmem:[%s12120_s0 + $0x31] sm:$0xff] }
 0x216   :  { %1188 = vst.msk [vmem:[#allocation2 + $0xe8] sm:$0xff] %vm1078_vm4, %v1154_v49  ;;  %v8310_v49 = vld [vmem:[%s12120_s0 + $0x29] sm:$0xff] }
 0x217   :  { %1187 = vst.msk [vmem:[#allocation2 + $0xe0] sm:$0xff] %vm1078_vm4, %v1152_v53  ;;  %v8315_v53 = vld [vmem:[%s12120_s0 + $0x21] sm:$0xff] }
 0x21a   :  { %1437 = vrot.lane.b32.xlu2 %v7793_v57, %s6438_s15  ;;  %1435 = vrot.lane.b32.xlu1 %v7798_v16, %s6438_s15 }
 0x21b   :  { %1433 = vrot.lane.b32.xlu0 %v7803_v61, %s6438_s15 }
 0x21c   :  { %v1244_v50 = vpop.permute.xlu2 %1243  ;;  %v1224_v43 = vpop.permute.xlu1 %1223 }
 0x21d   :  { %1281 = vst.msk [vmem:[#allocation2 + $0x150] sm:$0xff] %vm1078_vm4, %v1244_v50  ;;  %v1158_v55 = vpop.permute.xlu0 %1157 }
 0x21e   :  { %1271 = vst.msk [vmem:[#allocation2 + $0x100] sm:$0xff] %vm1078_vm4, %v1224_v43 }
 0x21f   :  { %1190 = vst.msk [vmem:[#allocation2 + $0xf8] sm:$0xff] %vm1078_vm4, %v1158_v55 }
 0x222   :  { %1443 = vrot.lane.b32.xlu2 %v7817_v44, %s6438_s15  ;;  %1441 = vrot.lane.b32.xlu1 %v7822_v13, %s6438_s15  ;;  %v8107_v44 = vld [vmem:[%s12120_s0 + $0x101] sm:$0xff] }
 0x223   :  { %1439 = vrot.lane.b32.xlu0 %v7827_v19, %s6438_s15 }
 0x224   :  { %v1250_v57 = vpop.permute.xlu2 %1249  ;;  %v1230_v16 = vpop.permute.xlu1 %1229 }
 0x225   :  { %1284 = vst.msk [vmem:[#allocation2 + $0x168] sm:$0xff] %vm1078_vm4, %v1250_v57  ;;  %v1228_v61 = vpop.permute.xlu0 %1227  ;;  %v8329_v57 = vld [vmem:[%s12120_s0 + $0x49] sm:$0xff] }
 0x226   :  { %1274 = vst.msk [vmem:[#allocation2 + $0x118] sm:$0xff] %vm1078_vm4, %v1230_v16  ;;  %v8334_v16 = vld [vmem:[%s12120_s0 + $0x41] sm:$0xff] }
 0x227   :  { %1273 = vst.msk [vmem:[#allocation2 + $0x110] sm:$0xff] %vm1078_vm4, %v1228_v61  ;;  %v8339_v61 = vld [vmem:[%s12120_s0 + $0x39] sm:$0xff] }
 0x22a   :  { %1514 = vrot.lane.b32.xlu2 %v8102_v42, %s6438_s15  ;;  %1512 = vrot.lane.b32.xlu1 %v8107_v44, %s6438_s15 }
 0x22b   :  { %1445 = vrot.lane.b32.xlu0 %v7847_v32, %s6438_s15  ;;  %v8131_v32 = vld [vmem:[%s12120_s0 + $0x111] sm:$0xff] }
 0x22c   :  { %v1320_v13 = vpop.permute.xlu2 %1319  ;;  %v1236_v19 = vpop.permute.xlu1 %1235 }
 0x22d   :  { %1367 = vst.msk [vmem:[#allocation2 + $0x180] sm:$0xff] %vm1078_vm4, %v1320_v13  ;;  %v1234_v20 = vpop.permute.xlu0 %1233 }
 0x22e   :  { %1277 = vst.msk [vmem:[#allocation2 + $0x130] sm:$0xff] %vm1078_vm4, %v1236_v19 }
 0x22f   :  { %1276 = vst.msk [vmem:[#allocation2 + $0x128] sm:$0xff] %vm1078_vm4, %v1234_v20 }
 0x232   :  { %1520 = vrot.lane.b32.xlu2 %v8121_v27, %s6438_s15  ;;  %1518 = vrot.lane.b32.xlu1 %v8126_v29, %s6438_s15 }
 0x233   :  { %1516 = vrot.lane.b32.xlu0 %v8131_v32, %s6438_s15 }
 0x234   :  { %v1326_v3 = vpop.permute.xlu2 %1325  ;;  %v1242_v34 = vpop.permute.xlu1 %1241 }
 0x235   :  { %1370 = vst.msk [vmem:[#allocation2 + $0x198] sm:$0xff] %vm1078_vm4, %v1326_v3  ;;  %v1240_v47 = vpop.permute.xlu0 %1239  ;;  %v8353_v3 = vld [vmem:[%s12120_s0 + $0x61] sm:$0xff] }
 0x236   :  { %1280 = vst.msk [vmem:[#allocation2 + $0x148] sm:$0xff] %vm1078_vm4, %v1242_v34  ;;  %v8358_v34 = vld [vmem:[%s12120_s0 + $0x59] sm:$0xff] }
 0x237   :  { %1279 = vst.msk [vmem:[#allocation2 + $0x140] sm:$0xff] %vm1078_vm4, %v1240_v47  ;;  %v8363_v47 = vld [vmem:[%s12120_s0 + $0x51] sm:$0xff] }
 0x23a   :  { %1526 = vrot.lane.b32.xlu2 %v8145_v22, %s6438_s15  ;;  %1524 = vrot.lane.b32.xlu1 %v8150_v5, %s6438_s15 }
 0x23b   :  { %1522 = vrot.lane.b32.xlu0 %v8155_v9, %s6438_s15 }
 0x23c   :  { %v1332_v63 = vpop.permute.xlu2 %1331  ;;  %v1248_v15 = vpop.permute.xlu1 %1247 }
 0x23d   :  { %1373 = vst.msk [vmem:[#allocation2 + $0x1b0] sm:$0xff] %vm1078_vm4, %v1332_v63  ;;  %v1246_v10 = vpop.permute.xlu0 %1245 }
 0x23e   :  { %1283 = vst.msk [vmem:[#allocation2 + $0x160] sm:$0xff] %vm1078_vm4, %v1248_v15 }
 0x23f   :  { %1282 = vst.msk [vmem:[#allocation2 + $0x158] sm:$0xff] %vm1078_vm4, %v1246_v10 }
 0x242   :  { %1532 = vrot.lane.b32.xlu2 %v8169_v52, %s6438_s15  ;;  %1530 = vrot.lane.b32.xlu1 %v8174_v0, %s6438_s15 }
 0x243   :  { %1528 = vrot.lane.b32.xlu0 %v8179_v40, %s6438_s15 }
 0x244   :  { %v1338_v51 = vpop.permute.xlu2 %1337  ;;  %v1254_v4 = vpop.permute.xlu1 %1253 }
 0x245   :  { %1376 = vst.msk [vmem:[#allocation2 + $0x1c8] sm:$0xff] %vm1078_vm4, %v1338_v51  ;;  %v1252_v1 = vpop.permute.xlu0 %1251  ;;  %v8377_v51 = vld [vmem:[%s12120_s0 + $0x79] sm:$0xff] }
 0x246   :  { %1286 = vst.msk [vmem:[#allocation2 + $0x178] sm:$0xff] %vm1078_vm4, %v1254_v4  ;;  %v8382_v4 = vld [vmem:[%s12120_s0 + $0x71] sm:$0xff] }
 0x247   :  { %1285 = vst.msk [vmem:[#allocation2 + $0x170] sm:$0xff] %vm1078_vm4, %v1252_v1  ;;  %v8387_v1 = vld [vmem:[%s12120_s0 + $0x69] sm:$0xff] }
 0x24a   :  { %1538 = vrot.lane.b32.xlu2 %v8193_v8, %s6438_s15  ;;  %1536 = vrot.lane.b32.xlu1 %v8198_v6, %s6438_s15 }
 0x24b   :  { %1534 = vrot.lane.b32.xlu0 %v8203_v41, %s6438_s15 }
 0x24c   :  { %v1344_v35 = vpop.permute.xlu2 %1343  ;;  %v1324_v23 = vpop.permute.xlu1 %1323 }
 0x24d   :  { %1379 = vst.msk [vmem:[#allocation2 + $0x1e0] sm:$0xff] %vm1078_vm4, %v1344_v35  ;;  %v1322_v26 = vpop.permute.xlu0 %1321 }
 0x24e   :  { %1369 = vst.msk [vmem:[#allocation2 + $0x190] sm:$0xff] %vm1078_vm4, %v1324_v23 }
 0x24f   :  { %1368 = vst.msk [vmem:[#allocation2 + $0x188] sm:$0xff] %vm1078_vm4, %v1322_v26 }
 0x252   :  { %1608 = vrot.lane.b32.xlu2 %v7919_v62, %s6438_s15  ;;  %1542 = vrot.lane.b32.xlu1 %v8217_v39, %s6438_s15 }
 0x253   :  { %1540 = vrot.lane.b32.xlu0 %v8222_v28, %s6438_s15 }
 0x254   :  { %v1350_v12 = vpop.permute.xlu2 %1349  ;;  %v1330_v30 = vpop.permute.xlu1 %1329 }
 0x255   :  { %1382 = vst.msk [vmem:[#allocation2 + $0x1f8] sm:$0xff] %vm1078_vm4, %v1350_v12  ;;  %v1328_v31 = vpop.permute.xlu0 %1327  ;;  %v8401_v12 = vld [vmem:[%s12120_s0 + $0x81] sm:$0xff] }
 0x256   :  { %1372 = vst.msk [vmem:[#allocation2 + $0x1a8] sm:$0xff] %vm1078_vm4, %v1330_v30 }
 0x257   :  { %1371 = vst.msk [vmem:[#allocation2 + $0x1a0] sm:$0xff] %vm1078_vm4, %v1328_v31 }
 0x25a   :  { %1614 = vrot.lane.b32.xlu2 %v7937_v60, %s6438_s15  ;;  %1612 = vrot.lane.b32.xlu1 %v7942_v56, %s6438_s15 }
 0x25b   :  { %1610 = vrot.lane.b32.xlu0 %v7947_v36, %s6438_s15 }
 0x25c   :  { %v1420_v62 = vpop.permute.xlu2 %1419  ;;  %v1336_v2 = vpop.permute.xlu1 %1335 }
 0x25d   :  { %1466 = vst.msk [vmem:[#allocation2 + $0x10] sm:$0xff] %vm1463_vm5, %v1420_v62  ;;  %v1334_v24 = vpop.permute.xlu0 %1333 }
 0x25e   :  { %1375 = vst.msk [vmem:[#allocation2 + $0x1c0] sm:$0xff] %vm1078_vm4, %v1336_v2 }
 0x25f   :  { %1374 = vst.msk [vmem:[#allocation2 + $0x1b8] sm:$0xff] %vm1078_vm4, %v1334_v24 }
 0x262   :  { %1620 = vrot.lane.b32.xlu2 %v7961_v38, %s6438_s15  ;;  %1618 = vrot.lane.b32.xlu1 %v7966_v18, %s6438_s15 }
 0x263   :  { %1616 = vrot.lane.b32.xlu0 %v7971_v25, %s6438_s15 }
 0x264   :  { %v1426_v60 = vpop.permute.xlu2 %1425  ;;  %v1342_v56 = vpop.permute.xlu1 %1341 }
 0x265   :  { %1469 = vst.msk [vmem:[#allocation2 + $0x28] sm:$0xff] %vm1463_vm5, %v1426_v60  ;;  %v1340_v36 = vpop.permute.xlu0 %1339  ;;  %v1865_v60 = vld [vmem:[%s12120_s0 + $0x181] sm:$0xff] }
 0x266   :  { %1378 = vst.msk [vmem:[#allocation2 + $0x1d8] sm:$0xff] %vm1078_vm4, %v1342_v56  ;;  %v1868_v56 = vld [vmem:[%s12120_s0 + $0x199] sm:$0xff] }
 0x267   :  { %1377 = vst.msk [vmem:[#allocation2 + $0x1d0] sm:$0xff] %vm1078_vm4, %v1340_v36 }
 0x26a   :  { %1626 = vrot.lane.b32.xlu2 %v7985_v21, %s6438_s15  ;;  %1624 = vrot.lane.b32.xlu1 %v7990_v48, %s6438_s15 }
 0x26b   :  { %1622 = vrot.lane.b32.xlu0 %v7995_v37, %s6438_s15 }
 0x26c   :  { %v1432_v38 = vpop.permute.xlu2 %1431  ;;  %v1348_v18 = vpop.permute.xlu1 %1347 }
 0x26d   :  { %1472 = vst.msk [vmem:[#allocation2 + $0x40] sm:$0xff] %vm1463_vm5, %v1432_v38  ;;  %v1346_v25 = vpop.permute.xlu0 %1345 }
 0x26e   :  { %1381 = vst.msk [vmem:[#allocation2 + $0x1f0] sm:$0xff] %vm1078_vm4, %v1348_v18 }
 0x26f   :  { %1380 = vst.msk [vmem:[#allocation2 + $0x1e8] sm:$0xff] %vm1078_vm4, %v1346_v25  ;;  %v1871_v25 = vld [vmem:[%s12120_s0 + $0x1b1] sm:$0xff]  ;;  %vm5071_vm4 = vcmask 261313  }
 0x272   :  { %1632 = vrot.lane.b32.xlu2 %v8009_v54, %s6438_s15  ;;  %1630 = vrot.lane.b32.xlu1 %v8014_v11, %s6438_s15 }
 0x273   :  { %1628 = vrot.lane.b32.xlu0 %v8019_v45, %s6438_s15 }
 0x274   :  { %v1438_v21 = vpop.permute.xlu2 %1437  ;;  %v1418_v48 = vpop.permute.xlu1 %1417 }
 0x275   :  { %1475 = vst.msk [vmem:[#allocation2 + $0x58] sm:$0xff] %vm1463_vm5, %v1438_v21  ;;  %v1416_v37 = vpop.permute.xlu0 %1415  ;;  %v1870_v21 = vld [vmem:[%s12120_s0 + $0x1a9] sm:$0xff] }
 0x276   :  { %1465 = vst.msk [vmem:[#allocation2 + $0x8] sm:$0xff] %vm1463_vm5, %v1418_v48  ;;  %v1869_v48 = vld [vmem:[%s12120_s0 + $0x1a1] sm:$0xff] }
 0x277   :  { %1464 = vst.msk [vmem:[#allocation2] sm:$0xff] %vm1463_vm5, %v1416_v37 }
 0x27a   :  { %1638 = vrot.lane.b32.xlu2 %v8033_v59, %s6438_s15  ;;  %1636 = vrot.lane.b32.xlu1 %v8038_v14, %s6438_s15  ;;  %v8286_v59 = vld [vmem:[%s12120_s0 + $0x11] sm:$0xff]  ;;  %v8291_v14 = vld [vmem:[%s12120_s0 + $0x9] sm:$0xff] }
 0x27b   :  { %1634 = vrot.lane.b32.xlu0 %v8043_v17, %s6438_s15 }
 0x27c   :  { %v1444_v54 = vpop.permute.xlu2 %1443  ;;  %v1424_v11 = vpop.permute.xlu1 %1423 }
 0x27d   :  { %1478 = vst.msk [vmem:[#allocation2 + $0x70] sm:$0xff] %vm1463_vm5, %v1444_v54  ;;  %v1422_v45 = vpop.permute.xlu0 %1421 }
 0x27e   :  { %1468 = vst.msk [vmem:[#allocation2 + $0x20] sm:$0xff] %vm1463_vm5, %v1424_v11 }
 0x27f   :  { %1467 = vst.msk [vmem:[#allocation2 + $0x18] sm:$0xff] %vm1463_vm5, %v1422_v45  ;;  %v1874_v45 = vld [vmem:[%s12120_s0 + $0x1c9] sm:$0xff] }
 0x282   :  { %1708 = vrot.lane.b32.xlu2 %v8281_v46, %s6438_s15  ;;  %1706 = vrot.lane.b32.xlu1 %v8286_v59, %s6438_s15 }
 0x283   :  { %1704 = vrot.lane.b32.xlu0 %v8291_v14, %s6438_s15 }
 0x284   :  { %v1515_v17 = vpop.permute.xlu2 %1514  ;;  %v1430_v33 = vpop.permute.xlu1 %1429 }
 0x285   :  { %1561 = vst.msk [vmem:[#allocation2 + $0x88] sm:$0xff] %vm1463_vm5, %v1515_v17  ;;  %v1428_v7 = vpop.permute.xlu0 %1427  ;;  %v1873_v17 = vld [vmem:[%s12120_s0 + $0x1c1] sm:$0xff] }
 0x286   :  { %1471 = vst.msk [vmem:[#allocation2 + $0x38] sm:$0xff] %vm1463_vm5, %v1430_v33  ;;  %v1872_v33 = vld [vmem:[%s12120_s0 + $0x1b9] sm:$0xff] }
 0x287   :  { %1470 = vst.msk [vmem:[#allocation2 + $0x30] sm:$0xff] %vm1463_vm5, %v1428_v7 }
 0x28a   :  { %1714 = vrot.lane.b32.xlu2 %v8305_v58, %s6438_s15  ;;  %1712 = vrot.lane.b32.xlu1 %v8310_v49, %s6438_s15 }
 0x28b   :  { %1710 = vrot.lane.b32.xlu0 %v8315_v53, %s6438_s15 }
 0x28c   :  { %v1521_v50 = vpop.permute.xlu2 %1520  ;;  %v1436_v43 = vpop.permute.xlu1 %1435 }
 0x28d   :  { %1564 = vst.msk [vmem:[#allocation2 + $0xa0] sm:$0xff] %vm1463_vm5, %v1521_v50  ;;  %v1434_v55 = vpop.permute.xlu0 %1433 }
 0x28e   :  { %1474 = vst.msk [vmem:[#allocation2 + $0x50] sm:$0xff] %vm1463_vm5, %v1436_v43 }
 0x28f   :  { %1473 = vst.msk [vmem:[#allocation2 + $0x48] sm:$0xff] %vm1463_vm5, %v1434_v55  ;;  %v1877_v55 = vld [vmem:[%s12120_s0 + $0x1e1] sm:$0xff] }
 0x292   :  { %1720 = vrot.lane.b32.xlu2 %v8329_v57, %s6438_s15  ;;  %1718 = vrot.lane.b32.xlu1 %v8334_v16, %s6438_s15 }
 0x293   :  { %1716 = vrot.lane.b32.xlu0 %v8339_v61, %s6438_s15 }
 0x294   :  { %v1527_v13 = vpop.permute.xlu2 %1526  ;;  %v1442_v19 = vpop.permute.xlu1 %1441 }
 0x295   :  { %1567 = vst.msk [vmem:[#allocation2 + $0xb8] sm:$0xff] %vm1463_vm5, %v1527_v13  ;;  %v1440_v20 = vpop.permute.xlu0 %1439  ;;  %v1876_v13 = vld [vmem:[%s12120_s0 + $0x1d9] sm:$0xff] }
 0x296   :  { %1477 = vst.msk [vmem:[#allocation2 + $0x68] sm:$0xff] %vm1463_vm5, %v1442_v19  ;;  %v1875_v19 = vld [vmem:[%s12120_s0 + $0x1d1] sm:$0xff] }
 0x297   :  { %1476 = vst.msk [vmem:[#allocation2 + $0x60] sm:$0xff] %vm1463_vm5, %v1440_v20 }
 0x29a   :  { %1726 = vrot.lane.b32.xlu2 %v8353_v3, %s6438_s15  ;;  %1724 = vrot.lane.b32.xlu1 %v8358_v34, %s6438_s15 }
 0x29b   :  { %1722 = vrot.lane.b32.xlu0 %v8363_v47, %s6438_s15 }
 0x29c   :  { %v1533_v63 = vpop.permute.xlu2 %1532  ;;  %v1513_v15 = vpop.permute.xlu1 %1512 }
 0x29d   :  { %1570 = vst.msk [vmem:[#allocation2 + $0xd0] sm:$0xff] %vm1463_vm5, %v1533_v63  ;;  %v1446_v10 = vpop.permute.xlu0 %1445 }
 0x29e   :  { %1560 = vst.msk [vmem:[#allocation2 + $0x80] sm:$0xff] %vm1463_vm5, %v1513_v15 }
 0x29f   :  { %1479 = vst.msk [vmem:[#allocation2 + $0x78] sm:$0xff] %vm1463_vm5, %v1446_v10  ;;  %v1880_v10 = vld [vmem:[%s12120_s0 + $0x1f9] sm:$0xff] }
 0x2a2   :  { %1732 = vrot.lane.b32.xlu2 %v8377_v51, %s6438_s15  ;;  %1730 = vrot.lane.b32.xlu1 %v8382_v4, %s6438_s15 }
 0x2a3   :  { %1728 = vrot.lane.b32.xlu0 %v8387_v1, %s6438_s15 }
 0x2a4   :  { %v1539_v35 = vpop.permute.xlu2 %1538  ;;  %v1519_v23 = vpop.permute.xlu1 %1518 }
 0x2a5   :  { %1573 = vst.msk [vmem:[#allocation2 + $0xe8] sm:$0xff] %vm1463_vm5, %v1539_v35  ;;  %v1517_v26 = vpop.permute.xlu0 %1516  ;;  %v1879_v35 = vld [vmem:[%s12120_s0 + $0x1f1] sm:$0xff] }
 0x2a6   :  { %1563 = vst.msk [vmem:[#allocation2 + $0x98] sm:$0xff] %vm1463_vm5, %v1519_v23  ;;  %v1878_v23 = vld [vmem:[%s12120_s0 + $0x1e9] sm:$0xff] }
 0x2a7   :  { %1562 = vst.msk [vmem:[#allocation2 + $0x90] sm:$0xff] %vm1463_vm5, %v1517_v26 }
 0x2aa   :  { %1802 = vrot.lane.b32.xlu2 %v8102_v42, %s6439_s14  ;;  %1800 = vrot.lane.b32.xlu1 %v8107_v44, %s6439_s14 }
 0x2ab   :  { %1734 = vrot.lane.b32.xlu0 %v8401_v12, %s6438_s15 }
 0x2ac   :  { %v1609_v30 = vpop.permute.xlu2 %1608  ;;  %v1525_v31 = vpop.permute.xlu1 %1524 }
 0x2ad   :  { %1656 = vst.msk [vmem:[#allocation2 + $0x100] sm:$0xff] %vm1463_vm5, %v1609_v30  ;;  %v1523_v62 = vpop.permute.xlu0 %1522 }
 0x2ae   :  { %1566 = vst.msk [vmem:[#allocation2 + $0xb0] sm:$0xff] %vm1463_vm5, %v1525_v31 }
 0x2af   :  { %1565 = vst.msk [vmem:[#allocation2 + $0xa8] sm:$0xff] %vm1463_vm5, %v1523_v62 }
 0x2b2   :  { %1808 = vrot.lane.b32.xlu2 %v8121_v27, %s6439_s14  ;;  %1806 = vrot.lane.b32.xlu1 %v8126_v29, %s6439_s14 }
 0x2b3   :  { %1804 = vrot.lane.b32.xlu0 %v8131_v32, %s6439_s14 }
 0x2b4   :  { %v1615_v42 = vpop.permute.xlu2 %1614  ;;  %v1531_v2 = vpop.permute.xlu1 %1530 }
 0x2b5   :  { %1659 = vst.msk [vmem:[#allocation2 + $0x118] sm:$0xff] %vm1463_vm5, %v1615_v42  ;;  %v1529_v24 = vpop.permute.xlu0 %1528 }
 0x2b6   :  { %1569 = vst.msk [vmem:[#allocation2 + $0xc8] sm:$0xff] %vm1463_vm5, %v1531_v2 }
 0x2b7   :  { %1568 = vst.msk [vmem:[#allocation2 + $0xc0] sm:$0xff] %vm1463_vm5, %v1529_v24  ;;  %v2058_v24 = vld [vmem:[%s12120_s0 + $0x91] sm:$0xff] }
 0x2ba   :  { %1814 = vrot.lane.b32.xlu2 %v8145_v22, %s6439_s14  ;;  %1812 = vrot.lane.b32.xlu1 %v8150_v5, %s6439_s14 }
 0x2bb   :  { %1810 = vrot.lane.b32.xlu0 %v8155_v9, %s6439_s14 }
 0x2bc   :  { %v1621_v27 = vpop.permute.xlu2 %1620  ;;  %v1537_v29 = vpop.permute.xlu1 %1536 }
 0x2bd   :  { %1662 = vst.msk [vmem:[#allocation2 + $0x130] sm:$0xff] %vm1463_vm5, %v1621_v27  ;;  %v1535_v32 = vpop.permute.xlu0 %1534 }
 0x2be   :  { %1572 = vst.msk [vmem:[#allocation2 + $0xe0] sm:$0xff] %vm1463_vm5, %v1537_v29  ;;  %v2061_v29 = vld [vmem:[%s12120_s0 + $0xa9] sm:$0xff] }
 0x2bf   :  { %1571 = vst.msk [vmem:[#allocation2 + $0xd8] sm:$0xff] %vm1463_vm5, %v1535_v32  ;;  %v2060_v32 = vld [vmem:[%s12120_s0 + $0xa1] sm:$0xff] }
 0x2c2   :  { %1820 = vrot.lane.b32.xlu2 %v8169_v52, %s6439_s14  ;;  %1818 = vrot.lane.b32.xlu1 %v8174_v0, %s6439_s14 }
 0x2c3   :  { %1816 = vrot.lane.b32.xlu0 %v8179_v40, %s6439_s14 }
 0x2c4   :  { %v1627_v22 = vpop.permute.xlu2 %1626  ;;  %v1543_v5 = vpop.permute.xlu1 %1542 }
 0x2c5   :  { %1665 = vst.msk [vmem:[#allocation2 + $0x148] sm:$0xff] %vm1463_vm5, %v1627_v22  ;;  %v1541_v9 = vpop.permute.xlu0 %1540 }
 0x2c6   :  { %1575 = vst.msk [vmem:[#allocation2 + $0xf8] sm:$0xff] %vm1463_vm5, %v1543_v5 }
 0x2c7   :  { %1574 = vst.msk [vmem:[#allocation2 + $0xf0] sm:$0xff] %vm1463_vm5, %v1541_v9 }
 0x2ca   :  { %1826 = vrot.lane.b32.xlu2 %v8193_v8, %s6439_s14  ;;  %1824 = vrot.lane.b32.xlu1 %v8198_v6, %s6439_s14 }
 0x2cb   :  { %1822 = vrot.lane.b32.xlu0 %v8203_v41, %s6439_s14 }
 0x2cc   :  { %v1633_v52 = vpop.permute.xlu2 %1632  ;;  %v1613_v0 = vpop.permute.xlu1 %1612 }
 0x2cd   :  { %1668 = vst.msk [vmem:[#allocation2 + $0x160] sm:$0xff] %vm1463_vm5, %v1633_v52  ;;  %v1611_v40 = vpop.permute.xlu0 %1610  ;;  %v2064_v52 = vld [vmem:[%s12120_s0 + $0xc1] sm:$0xff] }
 0x2ce   :  { %1658 = vst.msk [vmem:[#allocation2 + $0x110] sm:$0xff] %vm1463_vm5, %v1613_v0  ;;  %v2063_v0 = vld [vmem:[%s12120_s0 + $0xb9] sm:$0xff] }
 0x2cf   :  { %1657 = vst.msk [vmem:[#allocation2 + $0x108] sm:$0xff] %vm1463_vm5, %v1611_v40  ;;  %v2062_v40 = vld [vmem:[%s12120_s0 + $0xb1] sm:$0xff] }
 0x2d2   :  { %1897 = vrot.lane.b32.xlu2 %v1865_v60, %s6439_s14  ;;  %1830 = vrot.lane.b32.xlu1 %v8217_v39, %s6439_s14  ;;  %v1867_v39 = vld [vmem:[%s12120_s0 + $0x191] sm:$0xff] }
 0x2d3   :  { %1828 = vrot.lane.b32.xlu0 %v8222_v28, %s6439_s14  ;;  %v1866_v28 = vld [vmem:[%s12120_s0 + $0x189] sm:$0xff] }
 0x2d4   :  { %v1639_v8 = vpop.permute.xlu2 %1638  ;;  %v1619_v6 = vpop.permute.xlu1 %1618 }
 0x2d5   :  { %1671 = vst.msk [vmem:[#allocation2 + $0x178] sm:$0xff] %vm1463_vm5, %v1639_v8  ;;  %v1617_v41 = vpop.permute.xlu0 %1616 }
 0x2d6   :  { %1661 = vst.msk [vmem:[#allocation2 + $0x128] sm:$0xff] %vm1463_vm5, %v1619_v6 }
 0x2d7   :  { %1660 = vst.msk [vmem:[#allocation2 + $0x120] sm:$0xff] %vm1463_vm5, %v1617_v41  ;;  %v2067_v41 = vld [vmem:[%s12120_s0 + $0xd9] sm:$0xff] }
 0x2da   :  { %1903 = vrot.lane.b32.xlu2 %v1868_v56, %s6439_s14  ;;  %1901 = vrot.lane.b32.xlu1 %v1867_v39, %s6439_s14  ;;  %v2066_v56 = vld [vmem:[%s12120_s0 + $0xd1] sm:$0xff]  ;;  %v2065_v39 = vld [vmem:[%s12120_s0 + $0xc9] sm:$0xff] }
 0x2db   :  { %1899 = vrot.lane.b32.xlu0 %v1866_v28, %s6439_s14 }
 0x2dc   :  { %v1709_v36 = vpop.permute.xlu2 %1708  ;;  %v1625_v38 = vpop.permute.xlu1 %1624 }
 0x2dd   :  { %1754 = vst.msk [vmem:[#allocation2 + $0x190] sm:$0xff] %vm1463_vm5, %v1709_v36  ;;  %v1623_v18 = vpop.permute.xlu0 %1622 }
 0x2de   :  { %1664 = vst.msk [vmem:[#allocation2 + $0x140] sm:$0xff] %vm1463_vm5, %v1625_v38 }
 0x2df   :  { %1663 = vst.msk [vmem:[#allocation2 + $0x138] sm:$0xff] %vm1463_vm5, %v1623_v18  ;;  %v2070_v18 = vld [vmem:[%s12120_s0 + $0xf1] sm:$0xff] }
 0x2e2   :  { %1909 = vrot.lane.b32.xlu2 %v1871_v25, %s6439_s14  ;;  %1907 = vrot.lane.b32.xlu1 %v1870_v21, %s6439_s14  ;;  %v2069_v25 = vld [vmem:[%s12120_s0 + $0xe9] sm:$0xff]  ;;  %v2068_v21 = vld [vmem:[%s12120_s0 + $0xe1] sm:$0xff] }
 0x2e3   :  { %1905 = vrot.lane.b32.xlu0 %v1869_v48, %s6439_s14 }
 0x2e4   :  { %v1715_v37 = vpop.permute.xlu2 %1714  ;;  %v1631_v54 = vpop.permute.xlu1 %1630 }
 0x2e5   :  { %1757 = vst.msk [vmem:[#allocation2 + $0x1a8] sm:$0xff] %vm1463_vm5, %v1715_v37  ;;  %v1629_v11 = vpop.permute.xlu0 %1628 }
 0x2e6   :  { %1667 = vst.msk [vmem:[#allocation2 + $0x158] sm:$0xff] %vm1463_vm5, %v1631_v54 }
 0x2e7   :  { %1666 = vst.msk [vmem:[#allocation2 + $0x150] sm:$0xff] %vm1463_vm5, %v1629_v11  ;;  %v2153_v11 = vld [vmem:[%s12120_s0 + $0x8] sm:$0xff] }
 0x2ea   :  { %1915 = vrot.lane.b32.xlu2 %v1874_v45, %s6439_s14  ;;  %1913 = vrot.lane.b32.xlu1 %v1873_v17, %s6439_s14  ;;  %v2071_v45 = vld [vmem:[%s12120_s0 + $0xf9] sm:$0xff] }
 0x2eb   :  { %1911 = vrot.lane.b32.xlu0 %v1872_v33, %s6439_s14 }
 0x2ec   :  { %v1721_v7 = vpop.permute.xlu2 %1720  ;;  %v1637_v50 = vpop.permute.xlu1 %1636 }
 0x2ed   :  { %1760 = vst.msk [vmem:[#allocation2 + $0x1c0] sm:$0xff] %vm1463_vm5, %v1721_v7  ;;  %v1635_v43 = vpop.permute.xlu0 %1634 }
 0x2ee   :  { %1670 = vst.msk [vmem:[#allocation2 + $0x170] sm:$0xff] %vm1463_vm5, %v1637_v50  ;;  %v2156_v50 = vld [vmem:[%s12120_s0 + $0x20] sm:$0xff] }
 0x2ef   :  { %1669 = vst.msk [vmem:[#allocation2 + $0x168] sm:$0xff] %vm1463_vm5, %v1635_v43  ;;  %v2155_v43 = vld [vmem:[%s12120_s0 + $0x18] sm:$0xff] }
 0x2f2   :  { %1921 = vrot.lane.b32.xlu2 %v1877_v55, %s6439_s14  ;;  %1919 = vrot.lane.b32.xlu1 %v1876_v13, %s6439_s14 }
 0x2f3   :  { %1917 = vrot.lane.b32.xlu0 %v1875_v19, %s6439_s14 }
 0x2f4   :  { %v1727_v20 = vpop.permute.xlu2 %1726  ;;  %v1707_v63 = vpop.permute.xlu1 %1706 }
 0x2f5   :  { %1763 = vst.msk [vmem:[#allocation2 + $0x1d8] sm:$0xff] %vm1463_vm5, %v1727_v20  ;;  %v1705_v15 = vpop.permute.xlu0 %1704  ;;  %v2159_v20 = vld [vmem:[%s12120_s0 + $0x38] sm:$0xff] }
 0x2f6   :  { %1753 = vst.msk [vmem:[#allocation2 + $0x188] sm:$0xff] %vm1463_vm5, %v1707_v63  ;;  %v2158_v63 = vld [vmem:[%s12120_s0 + $0x30] sm:$0xff] }
 0x2f7   :  { %1752 = vst.msk [vmem:[#allocation2 + $0x180] sm:$0xff] %vm1463_vm5, %v1705_v15  ;;  %v2157_v15 = vld [vmem:[%s12120_s0 + $0x28] sm:$0xff] }
 0x2fa   :  { %1927 = vrot.lane.b32.xlu2 %v1880_v10, %s6439_s14  ;;  %1925 = vrot.lane.b32.xlu1 %v1879_v35, %s6439_s14 }
 0x2fb   :  { %1923 = vrot.lane.b32.xlu0 %v1878_v23, %s6439_s14 }
 0x2fc   :  { %v1733_v26 = vpop.permute.xlu2 %1732  ;;  %v1713_v30 = vpop.permute.xlu1 %1712 }
 0x2fd   :  { %1766 = vst.msk [vmem:[#allocation2 + $0x1f0] sm:$0xff] %vm1463_vm5, %v1733_v26  ;;  %v1711_v31 = vpop.permute.xlu0 %1710  ;;  %v2162_v26 = vld [vmem:[%s12120_s0 + $0x50] sm:$0xff] }
 0x2fe   :  { %1756 = vst.msk [vmem:[#allocation2 + $0x1a0] sm:$0xff] %vm1463_vm5, %v1713_v30  ;;  %v2161_v30 = vld [vmem:[%s12120_s0 + $0x48] sm:$0xff] }
 0x2ff   :  { %1755 = vst.msk [vmem:[#allocation2 + $0x198] sm:$0xff] %vm1463_vm5, %v1711_v31  ;;  %v2160_v31 = vld [vmem:[%s12120_s0 + $0x40] sm:$0xff] }
 0x302   :  { %1997 = vrot.lane.b32.xlu2 %v8281_v46, %s6439_s14  ;;  %1995 = vrot.lane.b32.xlu1 %v8286_v59, %s6439_s14 }
 0x303   :  { %1993 = vrot.lane.b32.xlu0 %v8291_v14, %s6439_s14 }
 0x304   :  { %v1803_v62 = vpop.permute.xlu2 %1802  ;;  %v1719_v42 = vpop.permute.xlu1 %1718 }
 0x305   :  { %1850 = vst.msk [vmem:[#allocation2 + $0x8] sm:$0xff] %vm1848_vm6, %v1803_v62  ;;  %v1717_v2 = vpop.permute.xlu0 %1716 }
 0x306   :  { %1759 = vst.msk [vmem:[#allocation2 + $0x1b8] sm:$0xff] %vm1463_vm5, %v1719_v42 }
 0x307   :  { %1758 = vst.msk [vmem:[#allocation2 + $0x1b0] sm:$0xff] %vm1463_vm5, %v1717_v2 }
 0x30a   :  { %2003 = vrot.lane.b32.xlu2 %v8305_v58, %s6439_s14  ;;  %2001 = vrot.lane.b32.xlu1 %v8310_v49, %s6439_s14 }
 0x30b   :  { %1999 = vrot.lane.b32.xlu0 %v8315_v53, %s6439_s14 }
 0x30c   :  { %v1809_v46 = vpop.permute.xlu2 %1808  ;;  %v1725_v59 = vpop.permute.xlu1 %1724 }
 0x30d   :  { %1853 = vst.msk [vmem:[#allocation2 + $0x20] sm:$0xff] %vm1848_vm6, %v1809_v46  ;;  %v1723_v14 = vpop.permute.xlu0 %1722  ;;  %v2165_v46 = vld [vmem:[%s12120_s0 + $0x68] sm:$0xff] }
 0x30e   :  { %1762 = vst.msk [vmem:[#allocation2 + $0x1d0] sm:$0xff] %vm1463_vm5, %v1725_v59  ;;  %v2164_v59 = vld [vmem:[%s12120_s0 + $0x60] sm:$0xff] }
 0x30f   :  { %1761 = vst.msk [vmem:[#allocation2 + $0x1c8] sm:$0xff] %vm1463_vm5, %v1723_v14  ;;  %v2163_v14 = vld [vmem:[%s12120_s0 + $0x58] sm:$0xff] }
 0x312   :  { %2009 = vrot.lane.b32.xlu2 %v8329_v57, %s6439_s14  ;;  %2007 = vrot.lane.b32.xlu1 %v8334_v16, %s6439_s14 }
 0x313   :  { %2005 = vrot.lane.b32.xlu0 %v8339_v61, %s6439_s14 }
 0x314   :  { %v1815_v58 = vpop.permute.xlu2 %1814  ;;  %v1731_v49 = vpop.permute.xlu1 %1730 }
 0x315   :  { %1856 = vst.msk [vmem:[#allocation2 + $0x38] sm:$0xff] %vm1848_vm6, %v1815_v58  ;;  %v1729_v53 = vpop.permute.xlu0 %1728 }
 0x316   :  { %1765 = vst.msk [vmem:[#allocation2 + $0x1e8] sm:$0xff] %vm1463_vm5, %v1731_v49 }
 0x317   :  { %1764 = vst.msk [vmem:[#allocation2 + $0x1e0] sm:$0xff] %vm1463_vm5, %v1729_v53 }
 0x31a   :  { %2015 = vrot.lane.b32.xlu2 %v8353_v3, %s6439_s14  ;;  %2013 = vrot.lane.b32.xlu1 %v8358_v34, %s6439_s14 }
 0x31b   :  { %2011 = vrot.lane.b32.xlu0 %v8363_v47, %s6439_s14 }
 0x31c   :  { %v1821_v57 = vpop.permute.xlu2 %1820  ;;  %v1801_v16 = vpop.permute.xlu1 %1800 }
 0x31d   :  { %1859 = vst.msk [vmem:[#allocation2 + $0x50] sm:$0xff] %vm1848_vm6, %v1821_v57  ;;  %v1735_v61 = vpop.permute.xlu0 %1734  ;;  %v2168_v57 = vld [vmem:[%s12120_s0 + $0x80] sm:$0xff] }
 0x31e   :  { %1849 = vst.msk [vmem:[#allocation2] sm:$0xff] %vm1848_vm6, %v1801_v16  ;;  %v2167_v16 = vld [vmem:[%s12120_s0 + $0x78] sm:$0xff] }
 0x31f   :  { %1767 = vst.msk [vmem:[#allocation2 + $0x1f8] sm:$0xff] %vm1463_vm5, %v1735_v61  ;;  %v2166_v61 = vld [vmem:[%s12120_s0 + $0x70] sm:$0xff]  ;;  %vm5154_vm5 = vcmask 326912  }
 0x322   :  { %2021 = vrot.lane.b32.xlu2 %v8377_v51, %s6439_s14  ;;  %2019 = vrot.lane.b32.xlu1 %v8382_v4, %s6439_s14  ;;  %v2057_v51 = vld [vmem:[%s12120_s0 + $0x89] sm:$0xff] }
 0x323   :  { %2017 = vrot.lane.b32.xlu0 %v8387_v1, %s6439_s14 }
 0x324   :  { %v1827_v3 = vpop.permute.xlu2 %1826  ;;  %v1807_v34 = vpop.permute.xlu1 %1806 }
 0x325   :  { %1862 = vst.msk [vmem:[#allocation2 + $0x68] sm:$0xff] %vm1848_vm6, %v1827_v3  ;;  %v1805_v47 = vpop.permute.xlu0 %1804 }
 0x326   :  { %1852 = vst.msk [vmem:[#allocation2 + $0x18] sm:$0xff] %vm1848_vm6, %v1807_v34 }
 0x327   :  { %1851 = vst.msk [vmem:[#allocation2 + $0x10] sm:$0xff] %vm1848_vm6, %v1805_v47 }
 0x32a   :  { %2091 = vrot.lane.b32.xlu2 %v2058_v24, %s6439_s14  ;;  %2089 = vrot.lane.b32.xlu1 %v2057_v51, %s6439_s14  ;;  %v8743_v24 = vld [vmem:[%s12120_s0 + $0x98] sm:$0xff]  ;;  %v8748_v51 = vld [vmem:[%s12120_s0 + $0x90] sm:$0xff] }
 0x32b   :  { %2023 = vrot.lane.b32.xlu0 %v8401_v12, %s6439_s14  ;;  %v2059_v12 = vld [vmem:[%s12120_s0 + $0x99] sm:$0xff] }
 0x32c   :  { %v1898_v4 = vpop.permute.xlu2 %1897  ;;  %v1813_v1 = vpop.permute.xlu1 %1812 }
 0x32d   :  { %1945 = vst.msk [vmem:[#allocation2 + $0x80] sm:$0xff] %vm1848_vm6, %v1898_v4  ;;  %v1811_v27 = vpop.permute.xlu0 %1810  ;;  %v8753_v4 = vld [vmem:[%s12120_s0 + $0x88] sm:$0xff] }
 0x32e   :  { %1855 = vst.msk [vmem:[#allocation2 + $0x30] sm:$0xff] %vm1848_vm6, %v1813_v1 }
 0x32f   :  { %1854 = vst.msk [vmem:[#allocation2 + $0x28] sm:$0xff] %vm1848_vm6, %v1811_v27 }
 0x332   :  { %2097 = vrot.lane.b32.xlu2 %v2061_v29, %s6439_s14  ;;  %2095 = vrot.lane.b32.xlu1 %v2060_v32, %s6439_s14  ;;  %v8767_v32 = vld [vmem:[%s12120_s0 + $0xb0] sm:$0xff] }
 0x333   :  { %2093 = vrot.lane.b32.xlu0 %v2059_v12, %s6439_s14  ;;  %v8772_v12 = vld [vmem:[%s12120_s0 + $0xa8] sm:$0xff] }
 0x334   :  { %v1904_v22 = vpop.permute.xlu2 %1903  ;;  %v1819_v5 = vpop.permute.xlu1 %1818 }
 0x335   :  { %1948 = vst.msk [vmem:[#allocation2 + $0x98] sm:$0xff] %vm1848_vm6, %v1904_v22  ;;  %v1817_v9 = vpop.permute.xlu0 %1816  ;;  %v8777_v22 = vld [vmem:[%s12120_s0 + $0xa0] sm:$0xff] }
 0x336   :  { %1858 = vst.msk [vmem:[#allocation2 + $0x48] sm:$0xff] %vm1848_vm6, %v1819_v5 }
 0x337   :  { %1857 = vst.msk [vmem:[#allocation2 + $0x40] sm:$0xff] %vm1848_vm6, %v1817_v9 }
 0x33a   :  { %2103 = vrot.lane.b32.xlu2 %v2064_v52, %s6439_s14  ;;  %2101 = vrot.lane.b32.xlu1 %v2063_v0, %s6439_s14  ;;  %v8791_v0 = vld [vmem:[%s12120_s0 + $0xc8] sm:$0xff] }
 0x33b   :  { %2099 = vrot.lane.b32.xlu0 %v2062_v40, %s6439_s14  ;;  %v8796_v40 = vld [vmem:[%s12120_s0 + $0xc0] sm:$0xff] }
 0x33c   :  { %v1910_v60 = vpop.permute.xlu2 %1909  ;;  %v1825_v8 = vpop.permute.xlu1 %1824 }
 0x33d   :  { %1951 = vst.msk [vmem:[#allocation2 + $0xb0] sm:$0xff] %vm1848_vm6, %v1910_v60  ;;  %v1823_v6 = vpop.permute.xlu0 %1822  ;;  %v8801_v60 = vld [vmem:[%s12120_s0 + $0xb8] sm:$0xff] }
 0x33e   :  { %1861 = vst.msk [vmem:[#allocation2 + $0x60] sm:$0xff] %vm1848_vm6, %v1825_v8 }
 0x33f   :  { %1860 = vst.msk [vmem:[#allocation2 + $0x58] sm:$0xff] %vm1848_vm6, %v1823_v6 }
 0x342   :  { %2109 = vrot.lane.b32.xlu2 %v2067_v41, %s6439_s14  ;;  %2107 = vrot.lane.b32.xlu1 %v2066_v56, %s6439_s14  ;;  %v8815_v56 = vld [vmem:[%s12120_s0 + $0xe0] sm:$0xff] }
 0x343   :  { %2105 = vrot.lane.b32.xlu0 %v2065_v39, %s6439_s14  ;;  %v8820_v39 = vld [vmem:[%s12120_s0 + $0xd8] sm:$0xff] }
 0x344   :  { %v1916_v28 = vpop.permute.xlu2 %1915  ;;  %v1831_v36 = vpop.permute.xlu1 %1830 }
 0x345   :  { %1954 = vst.msk [vmem:[#allocation2 + $0xc8] sm:$0xff] %vm1848_vm6, %v1916_v28  ;;  %v1829_v38 = vpop.permute.xlu0 %1828  ;;  %v8825_v28 = vld [vmem:[%s12120_s0 + $0xd0] sm:$0xff] }
 0x346   :  { %1864 = vst.msk [vmem:[#allocation2 + $0x78] sm:$0xff] %vm1848_vm6, %v1831_v36 }
 0x347   :  { %1863 = vst.msk [vmem:[#allocation2 + $0x70] sm:$0xff] %vm1848_vm6, %v1829_v38 }
 0x34a   :  { %2115 = vrot.lane.b32.xlu2 %v2070_v18, %s6439_s14  ;;  %2113 = vrot.lane.b32.xlu1 %v2069_v25, %s6439_s14  ;;  %v8839_v25 = vld [vmem:[%s12120_s0 + $0xf8] sm:$0xff] }
 0x34b   :  { %2111 = vrot.lane.b32.xlu0 %v2068_v21, %s6439_s14  ;;  %v8844_v21 = vld [vmem:[%s12120_s0 + $0xf0] sm:$0xff] }
 0x34c   :  { %v1922_v48 = vpop.permute.xlu2 %1921  ;;  %v1902_v37 = vpop.permute.xlu1 %1901 }
 0x34d   :  { %1957 = vst.msk [vmem:[#allocation2 + $0xe0] sm:$0xff] %vm1848_vm6, %v1922_v48  ;;  %v1900_v54 = vpop.permute.xlu0 %1899  ;;  %v8849_v48 = vld [vmem:[%s12120_s0 + $0xe8] sm:$0xff] }
 0x34e   :  { %1947 = vst.msk [vmem:[#allocation2 + $0x90] sm:$0xff] %vm1848_vm6, %v1902_v37 }
 0x34f   :  { %1946 = vst.msk [vmem:[#allocation2 + $0x88] sm:$0xff] %vm1848_vm6, %v1900_v54 }
 0x352   :  { %2185 = vrot.lane.b32.xlu2 %v2153_v11, %s6440_s28  ;;  %2119 = vrot.lane.b32.xlu1 %v8107_v44, %s6439_s14  ;;  %v2154_v44 = vld [vmem:[%s12120_s0 + $0x10] sm:$0xff] }
 0x353   :  { %2117 = vrot.lane.b32.xlu0 %v2071_v45, %s6439_s14  ;;  %v2347_v45 = vld [vmem:[%s12120_s0 + $0x110] sm:$0xff] }
 0x354   :  { %v1928_v17 = vpop.permute.xlu2 %1927  ;;  %v1908_v33 = vpop.permute.xlu1 %1907 }
 0x355   :  { %1960 = vst.msk [vmem:[#allocation2 + $0xf8] sm:$0xff] %vm1848_vm6, %v1928_v17  ;;  %v1906_v7 = vpop.permute.xlu0 %1905  ;;  %v2346_v17 = vld [vmem:[%s12120_s0 + $0x108] sm:$0xff] }
 0x356   :  { %1950 = vst.msk [vmem:[#allocation2 + $0xa8] sm:$0xff] %vm1848_vm6, %v1908_v33  ;;  %v8869_v33 = vld [vmem:[%s12120_s0 + $0x100] sm:$0xff] }
 0x357   :  { %1949 = vst.msk [vmem:[#allocation2 + $0xa0] sm:$0xff] %vm1848_vm6, %v1906_v7 }
 0x35a   :  { %2191 = vrot.lane.b32.xlu2 %v2156_v50, %s6440_s28  ;;  %2189 = vrot.lane.b32.xlu1 %v2155_v43, %s6440_s28 }
 0x35b   :  { %2187 = vrot.lane.b32.xlu0 %v2154_v44, %s6440_s28  ;;  %v2350_v44 = vld [vmem:[%s12120_s0 + $0x128] sm:$0xff] }
 0x35c   :  { %v1998_v55 = vpop.permute.xlu2 %1997  ;;  %v1914_v13 = vpop.permute.xlu1 %1913 }
 0x35d   :  { %2043 = vst.msk [vmem:[#allocation2 + $0x110] sm:$0xff] %vm1848_vm6, %v1998_v55  ;;  %v1912_v19 = vpop.permute.xlu0 %1911  ;;  %v2349_v55 = vld [vmem:[%s12120_s0 + $0x120] sm:$0xff] }
 0x35e   :  { %1953 = vst.msk [vmem:[#allocation2 + $0xc0] sm:$0xff] %vm1848_vm6, %v1914_v13  ;;  %v2348_v13 = vld [vmem:[%s12120_s0 + $0x118] sm:$0xff] }
 0x35f   :  { %1952 = vst.msk [vmem:[#allocation2 + $0xb8] sm:$0xff] %vm1848_vm6, %v1912_v19 }
 0x362   :  { %2197 = vrot.lane.b32.xlu2 %v2159_v20, %s6440_s28  ;;  %2195 = vrot.lane.b32.xlu1 %v2158_v63, %s6440_s28 }
 0x363   :  { %2193 = vrot.lane.b32.xlu0 %v2157_v15, %s6440_s28  ;;  %v2353_v15 = vld [vmem:[%s12120_s0 + $0x140] sm:$0xff] }
 0x364   :  { %v2004_v10 = vpop.permute.xlu2 %2003  ;;  %v1920_v35 = vpop.permute.xlu1 %1919 }
 0x365   :  { %2046 = vst.msk [vmem:[#allocation2 + $0x128] sm:$0xff] %vm1848_vm6, %v2004_v10  ;;  %v1918_v23 = vpop.permute.xlu0 %1917  ;;  %v2352_v10 = vld [vmem:[%s12120_s0 + $0x138] sm:$0xff] }
 0x366   :  { %1956 = vst.msk [vmem:[#allocation2 + $0xd8] sm:$0xff] %vm1848_vm6, %v1920_v35  ;;  %v2351_v35 = vld [vmem:[%s12120_s0 + $0x130] sm:$0xff] }
 0x367   :  { %1955 = vst.msk [vmem:[#allocation2 + $0xd0] sm:$0xff] %vm1848_vm6, %v1918_v23 }
 0x36a   :  { %2203 = vrot.lane.b32.xlu2 %v2162_v26, %s6440_s28  ;;  %2201 = vrot.lane.b32.xlu1 %v2161_v30, %s6440_s28 }
 0x36b   :  { %2199 = vrot.lane.b32.xlu0 %v2160_v31, %s6440_s28  ;;  %v2356_v31 = vld [vmem:[%s12120_s0 + $0x158] sm:$0xff] }
 0x36c   :  { %v2010_v62 = vpop.permute.xlu2 %2009  ;;  %v1926_v42 = vpop.permute.xlu1 %1925 }
 0x36d   :  { %2049 = vst.msk [vmem:[#allocation2 + $0x140] sm:$0xff] %vm1848_vm6, %v2010_v62  ;;  %v1924_v2 = vpop.permute.xlu0 %1923  ;;  %v2355_v62 = vld [vmem:[%s12120_s0 + $0x150] sm:$0xff] }
 0x36e   :  { %1959 = vst.msk [vmem:[#allocation2 + $0xf0] sm:$0xff] %vm1848_vm6, %v1926_v42  ;;  %v2354_v42 = vld [vmem:[%s12120_s0 + $0x148] sm:$0xff] }
 0x36f   :  { %1958 = vst.msk [vmem:[#allocation2 + $0xe8] sm:$0xff] %vm1848_vm6, %v1924_v2 }
 0x372   :  { %2209 = vrot.lane.b32.xlu2 %v2165_v46, %s6440_s28  ;;  %2207 = vrot.lane.b32.xlu1 %v2164_v59, %s6440_s28 }
 0x373   :  { %2205 = vrot.lane.b32.xlu0 %v2163_v14, %s6440_s28  ;;  %v2359_v14 = vld [vmem:[%s12120_s0 + $0x170] sm:$0xff] }
 0x374   :  { %v2016_v58 = vpop.permute.xlu2 %2015  ;;  %v1996_v49 = vpop.permute.xlu1 %1995 }
 0x375   :  { %2052 = vst.msk [vmem:[#allocation2 + $0x158] sm:$0xff] %vm1848_vm6, %v2016_v58  ;;  %v1994_v53 = vpop.permute.xlu0 %1993  ;;  %v2358_v58 = vld [vmem:[%s12120_s0 + $0x168] sm:$0xff] }
 0x376   :  { %2042 = vst.msk [vmem:[#allocation2 + $0x108] sm:$0xff] %vm1848_vm6, %v1996_v49  ;;  %v2357_v49 = vld [vmem:[%s12120_s0 + $0x160] sm:$0xff] }
 0x377   :  { %2041 = vst.msk [vmem:[#allocation2 + $0x100] sm:$0xff] %vm1848_vm6, %v1994_v53 }
 0x37a   :  { %2215 = vrot.lane.b32.xlu2 %v2168_v57, %s6440_s28  ;;  %2213 = vrot.lane.b32.xlu1 %v2167_v16, %s6440_s28 }
 0x37b   :  { %2211 = vrot.lane.b32.xlu0 %v2166_v61, %s6440_s28  ;;  %v8941_v61 = vld [vmem:[%s12120_s0 + $0x188] sm:$0xff] }
 0x37c   :  { %v2022_v3 = vpop.permute.xlu2 %2021  ;;  %v2002_v34 = vpop.permute.xlu1 %2001 }
 0x37d   :  { %2055 = vst.msk [vmem:[#allocation2 + $0x170] sm:$0xff] %vm1848_vm6, %v2022_v3  ;;  %v2000_v47 = vpop.permute.xlu0 %1999  ;;  %v2361_v3 = vld [vmem:[%s12120_s0 + $0x180] sm:$0xff] }
 0x37e   :  { %2045 = vst.msk [vmem:[#allocation2 + $0x120] sm:$0xff] %vm1848_vm6, %v2002_v34  ;;  %v2360_v34 = vld [vmem:[%s12120_s0 + $0x178] sm:$0xff] }
 0x37f   :  { %2044 = vst.msk [vmem:[#allocation2 + $0x118] sm:$0xff] %vm1848_vm6, %v2000_v47 }
 0x382   :  { %2286 = vrot.lane.b32.xlu2 %v8743_v24, %s6440_s28  ;;  %2284 = vrot.lane.b32.xlu1 %v8748_v51, %s6440_s28 }
 0x383   :  { %2282 = vrot.lane.b32.xlu0 %v8753_v4, %s6440_s28 }
 0x384   :  { %v2092_v1 = vpop.permute.xlu2 %2091  ;;  %v2008_v27 = vpop.permute.xlu1 %2007 }
 0x385   :  { %2138 = vst.msk [vmem:[#allocation2 + $0x188] sm:$0xff] %vm1848_vm6, %v2092_v1  ;;  %v2006_v29 = vpop.permute.xlu0 %2005 }
 0x386   :  { %2048 = vst.msk [vmem:[#allocation2 + $0x138] sm:$0xff] %vm1848_vm6, %v2008_v27 }
 0x387   :  { %2047 = vst.msk [vmem:[#allocation2 + $0x130] sm:$0xff] %vm1848_vm6, %v2006_v29  ;;  %v8959_v29 = vld [vmem:[%s12120_s0 + $0x1a0] sm:$0xff] }
 0x38a   :  { %2292 = vrot.lane.b32.xlu2 %v8767_v32, %s6440_s28  ;;  %2290 = vrot.lane.b32.xlu1 %v8772_v12, %s6440_s28 }
 0x38b   :  { %2288 = vrot.lane.b32.xlu0 %v8777_v22, %s6440_s28 }
 0x38c   :  { %v2098_v5 = vpop.permute.xlu2 %2097  ;;  %v2014_v9 = vpop.permute.xlu1 %2013 }
 0x38d   :  { %2141 = vst.msk [vmem:[#allocation2 + $0x1a0] sm:$0xff] %vm1848_vm6, %v2098_v5  ;;  %v2012_v52 = vpop.permute.xlu0 %2011  ;;  %v8964_v5 = vld [vmem:[%s12120_s0 + $0x198] sm:$0xff] }
 0x38e   :  { %2051 = vst.msk [vmem:[#allocation2 + $0x150] sm:$0xff] %vm1848_vm6, %v2014_v9  ;;  %v8969_v9 = vld [vmem:[%s12120_s0 + $0x190] sm:$0xff] }
 0x38f   :  { %2050 = vst.msk [vmem:[#allocation2 + $0x148] sm:$0xff] %vm1848_vm6, %v2012_v52 }
 0x392   :  { %2298 = vrot.lane.b32.xlu2 %v8791_v0, %s6440_s28  ;;  %2296 = vrot.lane.b32.xlu1 %v8796_v40, %s6440_s28 }
 0x393   :  { %2294 = vrot.lane.b32.xlu0 %v8801_v60, %s6440_s28 }
 0x394   :  { %v2104_v8 = vpop.permute.xlu2 %2103  ;;  %v2020_v6 = vpop.permute.xlu1 %2019 }
 0x395   :  { %2144 = vst.msk [vmem:[#allocation2 + $0x1b8] sm:$0xff] %vm1848_vm6, %v2104_v8  ;;  %v2018_v41 = vpop.permute.xlu0 %2017 }
 0x396   :  { %2054 = vst.msk [vmem:[#allocation2 + $0x168] sm:$0xff] %vm1848_vm6, %v2020_v6 }
 0x397   :  { %2053 = vst.msk [vmem:[#allocation2 + $0x160] sm:$0xff] %vm1848_vm6, %v2018_v41  ;;  %v8983_v41 = vld [vmem:[%s12120_s0 + $0x1b8] sm:$0xff] }
 0x39a   :  { %2304 = vrot.lane.b32.xlu2 %v8815_v56, %s6440_s28  ;;  %2302 = vrot.lane.b32.xlu1 %v8820_v39, %s6440_s28 }
 0x39b   :  { %2300 = vrot.lane.b32.xlu0 %v8825_v28, %s6440_s28 }
 0x39c   :  { %v2110_v36 = vpop.permute.xlu2 %2109  ;;  %v2090_v38 = vpop.permute.xlu1 %2089 }
 0x39d   :  { %2147 = vst.msk [vmem:[#allocation2 + $0x1d0] sm:$0xff] %vm1848_vm6, %v2110_v36  ;;  %v2024_v18 = vpop.permute.xlu0 %2023  ;;  %v8988_v36 = vld [vmem:[%s12120_s0 + $0x1b0] sm:$0xff] }
 0x39e   :  { %2137 = vst.msk [vmem:[#allocation2 + $0x180] sm:$0xff] %vm1848_vm6, %v2090_v38  ;;  %v8993_v38 = vld [vmem:[%s12120_s0 + $0x1a8] sm:$0xff] }
 0x39f   :  { %2056 = vst.msk [vmem:[#allocation2 + $0x178] sm:$0xff] %vm1848_vm6, %v2024_v18 }
 0x3a2   :  { %2310 = vrot.lane.b32.xlu2 %v8839_v25, %s6440_s28  ;;  %2308 = vrot.lane.b32.xlu1 %v8844_v21, %s6440_s28 }
 0x3a3   :  { %2306 = vrot.lane.b32.xlu0 %v8849_v48, %s6440_s28 }
 0x3a4   :  { %v2116_v37 = vpop.permute.xlu2 %2115  ;;  %v2096_v54 = vpop.permute.xlu1 %2095 }
 0x3a5   :  { %2150 = vst.msk [vmem:[#allocation2 + $0x1e8] sm:$0xff] %vm1848_vm6, %v2116_v37  ;;  %v2094_v11 = vpop.permute.xlu0 %2093 }
 0x3a6   :  { %2140 = vst.msk [vmem:[#allocation2 + $0x198] sm:$0xff] %vm1848_vm6, %v2096_v54 }
 0x3a7   :  { %2139 = vst.msk [vmem:[#allocation2 + $0x190] sm:$0xff] %vm1848_vm6, %v2094_v11  ;;  %v9007_v11 = vld [vmem:[%s12120_s0 + $0x1d0] sm:$0xff] }
 0x3aa   :  { %2380 = vrot.lane.b32.xlu2 %v2347_v45, %s6440_s28  ;;  %2378 = vrot.lane.b32.xlu1 %v2346_v17, %s6440_s28  ;;  %v9012_v45 = vld [vmem:[%s12120_s0 + $0x1c8] sm:$0xff]  ;;  %v9017_v17 = vld [vmem:[%s12120_s0 + $0x1c0] sm:$0xff] }
 0x3ab   :  { %2312 = vrot.lane.b32.xlu0 %v8869_v33, %s6440_s28 }
 0x3ac   :  { %v2186_v7 = vpop.permute.xlu2 %2185  ;;  %v2102_v50 = vpop.permute.xlu1 %2101 }
 0x3ad   :  { %2234 = vst.msk [vmem:[#allocation2] sm:$0xff] %vm2233_vm7, %v2186_v7  ;;  %v2100_v43 = vpop.permute.xlu0 %2099 }
 0x3ae   :  { %2143 = vst.msk [vmem:[#allocation2 + $0x1b0] sm:$0xff] %vm1848_vm6, %v2102_v50 }
 0x3af   :  { %2142 = vst.msk [vmem:[#allocation2 + $0x1a8] sm:$0xff] %vm1848_vm6, %v2100_v43 }
 0x3b2   :  { %2386 = vrot.lane.b32.xlu2 %v2350_v44, %s6440_s28  ;;  %2384 = vrot.lane.b32.xlu1 %v2349_v55, %s6440_s28  ;;  %v9031_v44 = vld [vmem:[%s12120_s0 + $0x1e8] sm:$0xff]  ;;  %v9036_v55 = vld [vmem:[%s12120_s0 + $0x1e0] sm:$0xff] }
 0x3b3   :  { %2382 = vrot.lane.b32.xlu0 %v2348_v13, %s6440_s28  ;;  %v9041_v13 = vld [vmem:[%s12120_s0 + $0x1d8] sm:$0xff] }
 0x3b4   :  { %v2192_v19 = vpop.permute.xlu2 %2191  ;;  %v2108_v20 = vpop.permute.xlu1 %2107 }
 0x3b5   :  { %2237 = vst.msk [vmem:[#allocation2 + $0x18] sm:$0xff] %vm2233_vm7, %v2192_v19  ;;  %v2106_v63 = vpop.permute.xlu0 %2105 }
 0x3b6   :  { %2146 = vst.msk [vmem:[#allocation2 + $0x1c8] sm:$0xff] %vm1848_vm6, %v2108_v20 }
 0x3b7   :  { %2145 = vst.msk [vmem:[#allocation2 + $0x1c0] sm:$0xff] %vm1848_vm6, %v2106_v63 }
 0x3ba   :  { %2392 = vrot.lane.b32.xlu2 %v2353_v15, %s6440_s28  ;;  %2390 = vrot.lane.b32.xlu1 %v2352_v10, %s6440_s28  ;;  %v9055_v15 = vld [vmem:[%s12120_s0 + $0x200] sm:$0xff]  ;;  %v9060_v10 = vld [vmem:[%s12120_s0 + $0x1f8] sm:$0xff] }
 0x3bb   :  { %2388 = vrot.lane.b32.xlu0 %v2351_v35, %s6440_s28  ;;  %v9065_v35 = vld [vmem:[%s12120_s0 + $0x1f0] sm:$0xff] }
 0x3bc   :  { %v2198_v23 = vpop.permute.xlu2 %2197  ;;  %v2114_v26 = vpop.permute.xlu1 %2113 }
 0x3bd   :  { %2240 = vst.msk [vmem:[#allocation2 + $0x30] sm:$0xff] %vm2233_vm7, %v2198_v23  ;;  %v2112_v30 = vpop.permute.xlu0 %2111 }
 0x3be   :  { %2149 = vst.msk [vmem:[#allocation2 + $0x1e0] sm:$0xff] %vm1848_vm6, %v2114_v26 }
 0x3bf   :  { %2148 = vst.msk [vmem:[#allocation2 + $0x1d8] sm:$0xff] %vm1848_vm6, %v2112_v30 }
 0x3c2   :  { %2398 = vrot.lane.b32.xlu2 %v2356_v31, %s6440_s28  ;;  %2396 = vrot.lane.b32.xlu1 %v2355_v62, %s6440_s28 }
 0x3c3   :  { %2394 = vrot.lane.b32.xlu0 %v2354_v42, %s6440_s28 }
 0x3c4   :  { %v2204_v2 = vpop.permute.xlu2 %2203  ;;  %v2120_v46 = vpop.permute.xlu1 %2119 }
 0x3c5   :  { %2243 = vst.msk [vmem:[#allocation2 + $0x48] sm:$0xff] %vm2233_vm7, %v2204_v2  ;;  %v2118_v59 = vpop.permute.xlu0 %2117  ;;  %v9124_v2 = vld [vmem:[%s12120_s0 + $0x11] sm:$0xff] }
 0x3c6   :  { %2152 = vst.msk [vmem:[#allocation2 + $0x1f8] sm:$0xff] %vm1848_vm6, %v2120_v46 }
 0x3c7   :  { %2151 = vst.msk [vmem:[#allocation2 + $0x1f0] sm:$0xff] %vm1848_vm6, %v2118_v59  ;;  %v9143_v59 = vld [vmem:[%s12120_s0 + $0x29] sm:$0xff]  ;;  %vm5089_vm6 = vcmask 254144  }
 0x3ca   :  { %2404 = vrot.lane.b32.xlu2 %v2359_v14, %s6440_s28  ;;  %2402 = vrot.lane.b32.xlu1 %v2358_v58, %s6440_s28  ;;  %v9148_v14 = vld [vmem:[%s12120_s0 + $0x21] sm:$0xff] }
 0x3cb   :  { %2400 = vrot.lane.b32.xlu0 %v2357_v49, %s6440_s28 }
 0x3cc   :  { %v2210_v53 = vpop.permute.xlu2 %2209  ;;  %v2190_v57 = vpop.permute.xlu1 %2189 }
 0x3cd   :  { %2246 = vst.msk [vmem:[#allocation2 + $0x60] sm:$0xff] %vm2233_vm7, %v2210_v53  ;;  %v2188_v16 = vpop.permute.xlu0 %2187 }
 0x3ce   :  { %2236 = vst.msk [vmem:[#allocation2 + $0x10] sm:$0xff] %vm2233_vm7, %v2190_v57  ;;  %v9167_v57 = vld [vmem:[%s12120_s0 + $0x41] sm:$0xff] }
 0x3cf   :  { %2235 = vst.msk [vmem:[#allocation2 + $0x8] sm:$0xff] %vm2233_vm7, %v2188_v16  ;;  %v9172_v16 = vld [vmem:[%s12120_s0 + $0x39] sm:$0xff] }
 0x3d2   :  { %2474 = vrot.lane.b32.xlu2 %v8941_v61, %s6440_s28  ;;  %2408 = vrot.lane.b32.xlu1 %v2361_v3, %s6440_s28  ;;  %v9177_v3 = vld [vmem:[%s12120_s0 + $0x31] sm:$0xff] }
 0x3d3   :  { %2406 = vrot.lane.b32.xlu0 %v2360_v34, %s6440_s28 }
 0x3d4   :  { %v2216_v47 = vpop.permute.xlu2 %2215  ;;  %v2196_v1 = vpop.permute.xlu1 %2195 }
 0x3d5   :  { %2249 = vst.msk [vmem:[#allocation2 + $0x78] sm:$0xff] %vm2233_vm7, %v2216_v47  ;;  %v2194_v27 = vpop.permute.xlu0 %2193 }
 0x3d6   :  { %2239 = vst.msk [vmem:[#allocation2 + $0x28] sm:$0xff] %vm2233_vm7, %v2196_v1 }
 0x3d7   :  { %2238 = vst.msk [vmem:[#allocation2 + $0x20] sm:$0xff] %vm2233_vm7, %v2194_v27  ;;  %v9191_v27 = vld [vmem:[%s12120_s0 + $0x59] sm:$0xff] }
 0x3da   :  { %2480 = vrot.lane.b32.xlu2 %v8959_v29, %s6440_s28  ;;  %2478 = vrot.lane.b32.xlu1 %v8964_v5, %s6440_s28 }
 0x3db   :  { %2476 = vrot.lane.b32.xlu0 %v8969_v9, %s6440_s28 }
 0x3dc   :  { %v2287_v52 = vpop.permute.xlu2 %2286  ;;  %v2202_v8 = vpop.permute.xlu1 %2201 }
 0x3dd   :  { %2332 = vst.msk [vmem:[#allocation2 + $0x90] sm:$0xff] %vm2233_vm7, %v2287_v52  ;;  %v2200_v6 = vpop.permute.xlu0 %2199  ;;  %v9196_v52 = vld [vmem:[%s12120_s0 + $0x51] sm:$0xff] }
 0x3de   :  { %2242 = vst.msk [vmem:[#allocation2 + $0x40] sm:$0xff] %vm2233_vm7, %v2202_v8  ;;  %v9201_v8 = vld [vmem:[%s12120_s0 + $0x49] sm:$0xff] }
 0x3df   :  { %2241 = vst.msk [vmem:[#allocation2 + $0x38] sm:$0xff] %vm2233_vm7, %v2200_v6 }
 0x3e2   :  { %2486 = vrot.lane.b32.xlu2 %v8983_v41, %s6440_s28  ;;  %2484 = vrot.lane.b32.xlu1 %v8988_v36, %s6440_s28 }
 0x3e3   :  { %2482 = vrot.lane.b32.xlu0 %v8993_v38, %s6440_s28 }
 0x3e4   :  { %v2293_v18 = vpop.permute.xlu2 %2292  ;;  %v2208_v37 = vpop.permute.xlu1 %2207 }
 0x3e5   :  { %2335 = vst.msk [vmem:[#allocation2 + $0xa8] sm:$0xff] %vm2233_vm7, %v2293_v18  ;;  %v2206_v54 = vpop.permute.xlu0 %2205 }
 0x3e6   :  { %2245 = vst.msk [vmem:[#allocation2 + $0x58] sm:$0xff] %vm2233_vm7, %v2208_v37 }
 0x3e7   :  { %2244 = vst.msk [vmem:[#allocation2 + $0x50] sm:$0xff] %vm2233_vm7, %v2206_v54  ;;  %v9215_v54 = vld [vmem:[%s12120_s0 + $0x71] sm:$0xff] }
 0x3ea   :  { %2492 = vrot.lane.b32.xlu2 %v9007_v11, %s6440_s28  ;;  %2490 = vrot.lane.b32.xlu1 %v9012_v45, %s6440_s28 }
 0x3eb   :  { %2488 = vrot.lane.b32.xlu0 %v9017_v17, %s6440_s28 }
 0x3ec   :  { %v2299_v7 = vpop.permute.xlu2 %2298  ;;  %v2214_v50 = vpop.permute.xlu1 %2213 }
 0x3ed   :  { %2338 = vst.msk [vmem:[#allocation2 + $0xc0] sm:$0xff] %vm2233_vm7, %v2299_v7  ;;  %v2212_v43 = vpop.permute.xlu0 %2211  ;;  %v9220_v7 = vld [vmem:[%s12120_s0 + $0x69] sm:$0xff] }
 0x3ee   :  { %2248 = vst.msk [vmem:[#allocation2 + $0x70] sm:$0xff] %vm2233_vm7, %v2214_v50  ;;  %v9225_v50 = vld [vmem:[%s12120_s0 + $0x61] sm:$0xff] }
 0x3ef   :  { %2247 = vst.msk [vmem:[#allocation2 + $0x68] sm:$0xff] %vm2233_vm7, %v2212_v43 }
 0x3f2   :  { %2498 = vrot.lane.b32.xlu2 %v9031_v44, %s6440_s28  ;;  %2496 = vrot.lane.b32.xlu1 %v9036_v55, %s6440_s28 }
 0x3f3   :  { %2494 = vrot.lane.b32.xlu0 %v9041_v13, %s6440_s28 }
 0x3f4   :  { %v2305_v19 = vpop.permute.xlu2 %2304  ;;  %v2285_v20 = vpop.permute.xlu1 %2284 }
 0x3f5   :  { %2341 = vst.msk [vmem:[#allocation2 + $0xd8] sm:$0xff] %vm2233_vm7, %v2305_v19  ;;  %v2283_v63 = vpop.permute.xlu0 %2282 }
 0x3f6   :  { %2331 = vst.msk [vmem:[#allocation2 + $0x88] sm:$0xff] %vm2233_vm7, %v2285_v20 }
 0x3f7   :  { %2330 = vst.msk [vmem:[#allocation2 + $0x80] sm:$0xff] %vm2233_vm7, %v2283_v63  ;;  %v9239_v63 = vld [vmem:[%s12120_s0 + $0x81] sm:$0xff] }
 0x3fa   :  { %2504 = vrot.lane.b32.xlu2 %v9055_v15, %s6440_s28  ;;  %2502 = vrot.lane.b32.xlu1 %v9060_v10, %s6440_s28 }
 0x3fb   :  { %2500 = vrot.lane.b32.xlu0 %v9065_v35, %s6440_s28 }
 0x3fc   :  { %v2311_v23 = vpop.permute.xlu2 %2310  ;;  %v2291_v26 = vpop.permute.xlu1 %2290 }
 0x3fd   :  { %2344 = vst.msk [vmem:[#allocation2 + $0xf0] sm:$0xff] %vm2233_vm7, %v2311_v23  ;;  %v2289_v30 = vpop.permute.xlu0 %2288  ;;  %v9244_v23 = vld [vmem:[%s12120_s0 + $0x79] sm:$0xff] }
 0x3fe   :  { %2334 = vst.msk [vmem:[#allocation2 + $0xa0] sm:$0xff] %vm2233_vm7, %v2291_v26 }
 0x3ff   :  { %2333 = vst.msk [vmem:[#allocation2 + $0x98] sm:$0xff] %vm2233_vm7, %v2289_v30 }
 0x402   :  { %2574 = vrot.lane.b32.xlu2 %v8743_v24, %s6441_s27  ;;  %2572 = vrot.lane.b32.xlu1 %v8748_v51, %s6441_s27 }
 0x403   :  { %2570 = vrot.lane.b32.xlu0 %v8753_v4, %s6441_s27 }
 0x404   :  { %v2381_v31 = vpop.permute.xlu2 %2380  ;;  %v2297_v62 = vpop.permute.xlu1 %2296 }
 0x405   :  { %2427 = vst.msk [vmem:[#allocation2 + $0x108] sm:$0xff] %vm2233_vm7, %v2381_v31  ;;  %v2295_v42 = vpop.permute.xlu0 %2294 }
 0x406   :  { %2337 = vst.msk [vmem:[#allocation2 + $0xb8] sm:$0xff] %vm2233_vm7, %v2297_v62 }
 0x407   :  { %2336 = vst.msk [vmem:[#allocation2 + $0xb0] sm:$0xff] %vm2233_vm7, %v2295_v42 }
 0x40a   :  { %2580 = vrot.lane.b32.xlu2 %v8767_v32, %s6441_s27  ;;  %2578 = vrot.lane.b32.xlu1 %v8772_v12, %s6441_s27 }
 0x40b   :  { %2576 = vrot.lane.b32.xlu0 %v8777_v22, %s6441_s27 }
 0x40c   :  { %v2387_v24 = vpop.permute.xlu2 %2386  ;;  %v2303_v51 = vpop.permute.xlu1 %2302 }
 0x40d   :  { %2430 = vst.msk [vmem:[#allocation2 + $0x120] sm:$0xff] %vm2233_vm7, %v2387_v24  ;;  %v2301_v4 = vpop.permute.xlu0 %2300  ;;  %v9303_v24 = vld [vmem:[%s12120_s0 + $0x119] sm:$0xff] }
 0x40e   :  { %2340 = vst.msk [vmem:[#allocation2 + $0xd0] sm:$0xff] %vm2233_vm7, %v2303_v51 }
 0x40f   :  { %2339 = vst.msk [vmem:[#allocation2 + $0xc8] sm:$0xff] %vm2233_vm7, %v2301_v4 }
 0x412   :  { %2586 = vrot.lane.b32.xlu2 %v8791_v0, %s6441_s27  ;;  %2584 = vrot.lane.b32.xlu1 %v8796_v40, %s6441_s27 }
 0x413   :  { %2582 = vrot.lane.b32.xlu0 %v8801_v60, %s6441_s27 }
 0x414   :  { %v2393_v32 = vpop.permute.xlu2 %2392  ;;  %v2309_v12 = vpop.permute.xlu1 %2308 }
 0x415   :  { %2433 = vst.msk [vmem:[#allocation2 + $0x138] sm:$0xff] %vm2233_vm7, %v2393_v32  ;;  %v2307_v22 = vpop.permute.xlu0 %2306  ;;  %v9327_v32 = vld [vmem:[%s12120_s0 + $0x131] sm:$0xff] }
 0x416   :  { %2343 = vst.msk [vmem:[#allocation2 + $0xe8] sm:$0xff] %vm2233_vm7, %v2309_v12  ;;  %v9332_v12 = vld [vmem:[%s12120_s0 + $0x129] sm:$0xff] }
 0x417   :  { %2342 = vst.msk [vmem:[#allocation2 + $0xe0] sm:$0xff] %vm2233_vm7, %v2307_v22  ;;  %v9337_v22 = vld [vmem:[%s12120_s0 + $0x121] sm:$0xff] }
 0x41a   :  { %2592 = vrot.lane.b32.xlu2 %v8815_v56, %s6441_s27  ;;  %2590 = vrot.lane.b32.xlu1 %v8820_v39, %s6441_s27 }
 0x41b   :  { %2588 = vrot.lane.b32.xlu0 %v8825_v28, %s6441_s27 }
 0x41c   :  { %v2399_v0 = vpop.permute.xlu2 %2398  ;;  %v2379_v40 = vpop.permute.xlu1 %2378 }
 0x41d   :  { %2436 = vst.msk [vmem:[#allocation2 + $0x150] sm:$0xff] %vm2233_vm7, %v2399_v0  ;;  %v2313_v60 = vpop.permute.xlu0 %2312 }
 0x41e   :  { %2426 = vst.msk [vmem:[#allocation2 + $0x100] sm:$0xff] %vm2233_vm7, %v2379_v40 }
 0x41f   :  { %2345 = vst.msk [vmem:[#allocation2 + $0xf8] sm:$0xff] %vm2233_vm7, %v2313_v60 }
 0x422   :  { %2598 = vrot.lane.b32.xlu2 %v8839_v25, %s6441_s27  ;;  %2596 = vrot.lane.b32.xlu1 %v8844_v21, %s6441_s27  ;;  %v9129_v25 = vld [vmem:[%s12120_s0 + $0x9] sm:$0xff] }
 0x423   :  { %2594 = vrot.lane.b32.xlu0 %v8849_v48, %s6441_s27 }
 0x424   :  { %v2405_v56 = vpop.permute.xlu2 %2404  ;;  %v2385_v39 = vpop.permute.xlu1 %2384 }
 0x425   :  { %2439 = vst.msk [vmem:[#allocation2 + $0x168] sm:$0xff] %vm2233_vm7, %v2405_v56  ;;  %v2383_v28 = vpop.permute.xlu0 %2382  ;;  %v9351_v56 = vld [vmem:[%s12120_s0 + $0x149] sm:$0xff] }
 0x426   :  { %2429 = vst.msk [vmem:[#allocation2 + $0x118] sm:$0xff] %vm2233_vm7, %v2385_v39  ;;  %v9356_v39 = vld [vmem:[%s12120_s0 + $0x141] sm:$0xff] }
 0x427   :  { %2428 = vst.msk [vmem:[#allocation2 + $0x110] sm:$0xff] %vm2233_vm7, %v2383_v28  ;;  %v9361_v28 = vld [vmem:[%s12120_s0 + $0x139] sm:$0xff] }
 0x42a   :  { %2669 = vrot.lane.b32.xlu2 %v9124_v2, %s6441_s27  ;;  %2667 = vrot.lane.b32.xlu1 %v9129_v25, %s6441_s27 }
 0x42b   :  { %2600 = vrot.lane.b32.xlu0 %v8869_v33, %s6441_s27  ;;  %v9153_v33 = vld [vmem:[%s12120_s0 + $0x19] sm:$0xff] }
 0x42c   :  { %v2475_v21 = vpop.permute.xlu2 %2474  ;;  %v2391_v48 = vpop.permute.xlu1 %2390 }
 0x42d   :  { %2522 = vst.msk [vmem:[#allocation2 + $0x180] sm:$0xff] %vm2233_vm7, %v2475_v21  ;;  %v2389_v46 = vpop.permute.xlu0 %2388 }
 0x42e   :  { %2432 = vst.msk [vmem:[#allocation2 + $0x130] sm:$0xff] %vm2233_vm7, %v2391_v48 }
 0x42f   :  { %2431 = vst.msk [vmem:[#allocation2 + $0x128] sm:$0xff] %vm2233_vm7, %v2389_v46 }
 0x432   :  { %2675 = vrot.lane.b32.xlu2 %v9143_v59, %s6441_s27  ;;  %2673 = vrot.lane.b32.xlu1 %v9148_v14, %s6441_s27 }
 0x433   :  { %2671 = vrot.lane.b32.xlu0 %v9153_v33, %s6441_s27 }
 0x434   :  { %v2481_v58 = vpop.permute.xlu2 %2480  ;;  %v2397_v49 = vpop.permute.xlu1 %2396 }
 0x435   :  { %2525 = vst.msk [vmem:[#allocation2 + $0x198] sm:$0xff] %vm2233_vm7, %v2481_v58  ;;  %v2395_v53 = vpop.permute.xlu0 %2394  ;;  %v9375_v58 = vld [vmem:[%s12120_s0 + $0x161] sm:$0xff] }
 0x436   :  { %2435 = vst.msk [vmem:[#allocation2 + $0x148] sm:$0xff] %vm2233_vm7, %v2397_v49  ;;  %v9380_v49 = vld [vmem:[%s12120_s0 + $0x159] sm:$0xff] }
 0x437   :  { %2434 = vst.msk [vmem:[#allocation2 + $0x140] sm:$0xff] %vm2233_vm7, %v2395_v53  ;;  %v9385_v53 = vld [vmem:[%s12120_s0 + $0x151] sm:$0xff] }
 0x43a   :  { %2681 = vrot.lane.b32.xlu2 %v9167_v57, %s6441_s27  ;;  %2679 = vrot.lane.b32.xlu1 %v9172_v16, %s6441_s27 }
 0x43b   :  { %2677 = vrot.lane.b32.xlu0 %v9177_v3, %s6441_s27 }
 0x43c   :  { %v2487_v34 = vpop.permute.xlu2 %2486  ;;  %v2403_v47 = vpop.permute.xlu1 %2402 }
 0x43d   :  { %2528 = vst.msk [vmem:[#allocation2 + $0x1b0] sm:$0xff] %vm2233_vm7, %v2487_v34  ;;  %v2401_v1 = vpop.permute.xlu0 %2400 }
 0x43e   :  { %2438 = vst.msk [vmem:[#allocation2 + $0x160] sm:$0xff] %vm2233_vm7, %v2403_v47 }
 0x43f   :  { %2437 = vst.msk [vmem:[#allocation2 + $0x158] sm:$0xff] %vm2233_vm7, %v2401_v1 }
 0x442   :  { %2687 = vrot.lane.b32.xlu2 %v9191_v27, %s6441_s27  ;;  %2685 = vrot.lane.b32.xlu1 %v9196_v52, %s6441_s27 }
 0x443   :  { %2683 = vrot.lane.b32.xlu0 %v9201_v8, %s6441_s27 }
 0x444   :  { %v2493_v6 = vpop.permute.xlu2 %2492  ;;  %v2409_v18 = vpop.permute.xlu1 %2408 }
 0x445   :  { %2531 = vst.msk [vmem:[#allocation2 + $0x1c8] sm:$0xff] %vm2233_vm7, %v2493_v6  ;;  %v2407_v37 = vpop.permute.xlu0 %2406  ;;  %v9399_v6 = vld [vmem:[%s12120_s0 + $0x179] sm:$0xff] }
 0x446   :  { %2441 = vst.msk [vmem:[#allocation2 + $0x178] sm:$0xff] %vm2233_vm7, %v2409_v18  ;;  %v9404_v18 = vld [vmem:[%s12120_s0 + $0x171] sm:$0xff] }
 0x447   :  { %2440 = vst.msk [vmem:[#allocation2 + $0x170] sm:$0xff] %vm2233_vm7, %v2407_v37  ;;  %v9409_v37 = vld [vmem:[%s12120_s0 + $0x169] sm:$0xff] }
 0x44a   :  { %2693 = vrot.lane.b32.xlu2 %v9215_v54, %s6441_s27  ;;  %2691 = vrot.lane.b32.xlu1 %v9220_v7, %s6441_s27 }
 0x44b   :  { %2689 = vrot.lane.b32.xlu0 %v9225_v50, %s6441_s27 }
 0x44c   :  { %v2499_v43 = vpop.permute.xlu2 %2498  ;;  %v2479_v19 = vpop.permute.xlu1 %2478 }
 0x44d   :  { %2534 = vst.msk [vmem:[#allocation2 + $0x1e0] sm:$0xff] %vm2233_vm7, %v2499_v43  ;;  %v2477_v20 = vpop.permute.xlu0 %2476 }
 0x44e   :  { %2524 = vst.msk [vmem:[#allocation2 + $0x190] sm:$0xff] %vm2233_vm7, %v2479_v19 }
 0x44f   :  { %2523 = vst.msk [vmem:[#allocation2 + $0x188] sm:$0xff] %vm2233_vm7, %v2477_v20 }
 0x452   :  { %2763 = vrot.lane.b32.xlu2 %v8941_v61, %s6441_s27  ;;  %2697 = vrot.lane.b32.xlu1 %v9239_v63, %s6441_s27 }
 0x453   :  { %2695 = vrot.lane.b32.xlu0 %v9244_v23, %s6441_s27 }
 0x454   :  { %v2505_v26 = vpop.permute.xlu2 %2504  ;;  %v2485_v30 = vpop.permute.xlu1 %2484 }
 0x455   :  { %2537 = vst.msk [vmem:[#allocation2 + $0x1f8] sm:$0xff] %vm2233_vm7, %v2505_v26  ;;  %v2483_v31 = vpop.permute.xlu0 %2482  ;;  %v9423_v26 = vld [vmem:[%s12120_s0 + $0x181] sm:$0xff] }
 0x456   :  { %2527 = vst.msk [vmem:[#allocation2 + $0x1a8] sm:$0xff] %vm2233_vm7, %v2485_v30 }
 0x457   :  { %2526 = vst.msk [vmem:[#allocation2 + $0x1a0] sm:$0xff] %vm2233_vm7, %v2483_v31 }
 0x45a   :  { %2769 = vrot.lane.b32.xlu2 %v8959_v29, %s6441_s27  ;;  %2767 = vrot.lane.b32.xlu1 %v8964_v5, %s6441_s27 }
 0x45b   :  { %2765 = vrot.lane.b32.xlu0 %v8969_v9, %s6441_s27 }
 0x45c   :  { %v2575_v61 = vpop.permute.xlu2 %2574  ;;  %v2491_v62 = vpop.permute.xlu1 %2490 }
 0x45d   :  { %2621 = vst.msk [vmem:[#allocation2 + $0x10] sm:$0xff] %vm2618_vm8, %v2575_v61  ;;  %v2489_v42 = vpop.permute.xlu0 %2488 }
 0x45e   :  { %2530 = vst.msk [vmem:[#allocation2 + $0x1c0] sm:$0xff] %vm2233_vm7, %v2491_v62 }
 0x45f   :  { %2529 = vst.msk [vmem:[#allocation2 + $0x1b8] sm:$0xff] %vm2233_vm7, %v2489_v42  ;;  %v3020_v42 = vld [vmem:[%s12120_s0 + $0x89] sm:$0xff] }
 0x462   :  { %2775 = vrot.lane.b32.xlu2 %v8983_v41, %s6441_s27  ;;  %2773 = vrot.lane.b32.xlu1 %v8988_v36, %s6441_s27 }
 0x463   :  { %2771 = vrot.lane.b32.xlu0 %v8993_v38, %s6441_s27 }
 0x464   :  { %v2581_v29 = vpop.permute.xlu2 %2580  ;;  %v2497_v5 = vpop.permute.xlu1 %2496 }
 0x465   :  { %2624 = vst.msk [vmem:[#allocation2 + $0x28] sm:$0xff] %vm2618_vm8, %v2581_v29  ;;  %v2495_v9 = vpop.permute.xlu0 %2494  ;;  %v3023_v29 = vld [vmem:[%s12120_s0 + $0xa1] sm:$0xff] }
 0x466   :  { %2533 = vst.msk [vmem:[#allocation2 + $0x1d8] sm:$0xff] %vm2233_vm7, %v2497_v5 }
 0x467   :  { %2532 = vst.msk [vmem:[#allocation2 + $0x1d0] sm:$0xff] %vm2233_vm7, %v2495_v9 }
 0x46a   :  { %2781 = vrot.lane.b32.xlu2 %v9007_v11, %s6441_s27  ;;  %2779 = vrot.lane.b32.xlu1 %v9012_v45, %s6441_s27 }
 0x46b   :  { %2777 = vrot.lane.b32.xlu0 %v9017_v17, %s6441_s27 }
 0x46c   :  { %v2587_v41 = vpop.permute.xlu2 %2586  ;;  %v2503_v36 = vpop.permute.xlu1 %2502 }
 0x46d   :  { %2627 = vst.msk [vmem:[#allocation2 + $0x40] sm:$0xff] %vm2618_vm8, %v2587_v41  ;;  %v2501_v38 = vpop.permute.xlu0 %2500 }
 0x46e   :  { %2536 = vst.msk [vmem:[#allocation2 + $0x1f0] sm:$0xff] %vm2233_vm7, %v2503_v36  ;;  %v3026_v36 = vld [vmem:[%s12120_s0 + $0xb9] sm:$0xff] }
 0x46f   :  { %2535 = vst.msk [vmem:[#allocation2 + $0x1e8] sm:$0xff] %vm2233_vm7, %v2501_v38  ;;  %v3025_v38 = vld [vmem:[%s12120_s0 + $0xb1] sm:$0xff]  ;;  %vm5235_vm7 = vcmask 392512  }
 0x472   :  { %2787 = vrot.lane.b32.xlu2 %v9031_v44, %s6441_s27  ;;  %2785 = vrot.lane.b32.xlu1 %v9036_v55, %s6441_s27 }
 0x473   :  { %2783 = vrot.lane.b32.xlu0 %v9041_v13, %s6441_s27 }
 0x474   :  { %v2593_v11 = vpop.permute.xlu2 %2592  ;;  %v2573_v45 = vpop.permute.xlu1 %2572 }
 0x475   :  { %2630 = vst.msk [vmem:[#allocation2 + $0x58] sm:$0xff] %vm2618_vm8, %v2593_v11  ;;  %v2571_v17 = vpop.permute.xlu0 %2570  ;;  %v3024_v11 = vld [vmem:[%s12120_s0 + $0xa9] sm:$0xff] }
 0x476   :  { %2620 = vst.msk [vmem:[#allocation2 + $0x8] sm:$0xff] %vm2618_vm8, %v2573_v45 }
 0x477   :  { %2619 = vst.msk [vmem:[#allocation2] sm:$0xff] %vm2618_vm8, %v2571_v17 }
 0x47a   :  { %2793 = vrot.lane.b32.xlu2 %v9055_v15, %s6441_s27  ;;  %2791 = vrot.lane.b32.xlu1 %v9060_v10, %s6441_s27  ;;  %v9308_v15 = vld [vmem:[%s12120_s0 + $0x111] sm:$0xff]  ;;  %v9313_v10 = vld [vmem:[%s12120_s0 + $0x109] sm:$0xff] }
 0x47b   :  { %2789 = vrot.lane.b32.xlu0 %v9065_v35, %s6441_s27 }
 0x47c   :  { %v2599_v44 = vpop.permute.xlu2 %2598  ;;  %v2579_v55 = vpop.permute.xlu1 %2578 }
 0x47d   :  { %2633 = vst.msk [vmem:[#allocation2 + $0x70] sm:$0xff] %vm2618_vm8, %v2599_v44  ;;  %v2577_v13 = vpop.permute.xlu0 %2576 }
 0x47e   :  { %2623 = vst.msk [vmem:[#allocation2 + $0x20] sm:$0xff] %vm2618_vm8, %v2579_v55  ;;  %v3029_v55 = vld [vmem:[%s12120_s0 + $0xd1] sm:$0xff] }
 0x47f   :  { %2622 = vst.msk [vmem:[#allocation2 + $0x18] sm:$0xff] %vm2618_vm8, %v2577_v13  ;;  %v3028_v13 = vld [vmem:[%s12120_s0 + $0xc9] sm:$0xff] }
 0x482   :  { %2863 = vrot.lane.b32.xlu2 %v9303_v24, %s6441_s27  ;;  %2861 = vrot.lane.b32.xlu1 %v9308_v15, %s6441_s27 }
 0x483   :  { %2859 = vrot.lane.b32.xlu0 %v9313_v10, %s6441_s27 }
 0x484   :  { %v2670_v35 = vpop.permute.xlu2 %2669  ;;  %v2585_v51 = vpop.permute.xlu1 %2584 }
 0x485   :  { %2716 = vst.msk [vmem:[#allocation2 + $0x88] sm:$0xff] %vm2618_vm8, %v2670_v35  ;;  %v2583_v4 = vpop.permute.xlu0 %2582  ;;  %v3027_v35 = vld [vmem:[%s12120_s0 + $0xc1] sm:$0xff] }
 0x486   :  { %2626 = vst.msk [vmem:[#allocation2 + $0x38] sm:$0xff] %vm2618_vm8, %v2585_v51 }
 0x487   :  { %2625 = vst.msk [vmem:[#allocation2 + $0x30] sm:$0xff] %vm2618_vm8, %v2583_v4 }
 0x48a   :  { %2869 = vrot.lane.b32.xlu2 %v9327_v32, %s6441_s27  ;;  %2867 = vrot.lane.b32.xlu1 %v9332_v12, %s6441_s27 }
 0x48b   :  { %2865 = vrot.lane.b32.xlu0 %v9337_v22, %s6441_s27 }
 0x48c   :  { %v2676_v0 = vpop.permute.xlu2 %2675  ;;  %v2591_v40 = vpop.permute.xlu1 %2590 }
 0x48d   :  { %2719 = vst.msk [vmem:[#allocation2 + $0xa0] sm:$0xff] %vm2618_vm8, %v2676_v0  ;;  %v2589_v60 = vpop.permute.xlu0 %2588 }
 0x48e   :  { %2629 = vst.msk [vmem:[#allocation2 + $0x50] sm:$0xff] %vm2618_vm8, %v2591_v40  ;;  %v3032_v40 = vld [vmem:[%s12120_s0 + $0xe9] sm:$0xff] }
 0x48f   :  { %2628 = vst.msk [vmem:[#allocation2 + $0x48] sm:$0xff] %vm2618_vm8, %v2589_v60  ;;  %v3031_v60 = vld [vmem:[%s12120_s0 + $0xe1] sm:$0xff] }
 0x492   :  { %2875 = vrot.lane.b32.xlu2 %v9351_v56, %s6441_s27  ;;  %2873 = vrot.lane.b32.xlu1 %v9356_v39, %s6441_s27 }
 0x493   :  { %2871 = vrot.lane.b32.xlu0 %v9361_v28, %s6441_s27 }
 0x494   :  { %v2682_v21 = vpop.permute.xlu2 %2681  ;;  %v2597_v48 = vpop.permute.xlu1 %2596 }
 0x495   :  { %2722 = vst.msk [vmem:[#allocation2 + $0xb8] sm:$0xff] %vm2618_vm8, %v2682_v21  ;;  %v2595_v46 = vpop.permute.xlu0 %2594  ;;  %v3030_v21 = vld [vmem:[%s12120_s0 + $0xd9] sm:$0xff] }
 0x496   :  { %2632 = vst.msk [vmem:[#allocation2 + $0x68] sm:$0xff] %vm2618_vm8, %v2597_v48 }
 0x497   :  { %2631 = vst.msk [vmem:[#allocation2 + $0x60] sm:$0xff] %vm2618_vm8, %v2595_v46 }
 0x49a   :  { %2881 = vrot.lane.b32.xlu2 %v9375_v58, %s6441_s27  ;;  %2879 = vrot.lane.b32.xlu1 %v9380_v49, %s6441_s27 }
 0x49b   :  { %2877 = vrot.lane.b32.xlu0 %v9385_v53, %s6441_s27 }
 0x49c   :  { %v2688_v34 = vpop.permute.xlu2 %2687  ;;  %v2668_v47 = vpop.permute.xlu1 %2667 }
 0x49d   :  { %2725 = vst.msk [vmem:[#allocation2 + $0xd0] sm:$0xff] %vm2618_vm8, %v2688_v34  ;;  %v2601_v1 = vpop.permute.xlu0 %2600 }
 0x49e   :  { %2715 = vst.msk [vmem:[#allocation2 + $0x80] sm:$0xff] %vm2618_vm8, %v2668_v47  ;;  %v3035_v47 = vld [vmem:[%s12120_s0 + $0x101] sm:$0xff] }
 0x49f   :  { %2634 = vst.msk [vmem:[#allocation2 + $0x78] sm:$0xff] %vm2618_vm8, %v2601_v1  ;;  %v3034_v1 = vld [vmem:[%s12120_s0 + $0xf9] sm:$0xff] }
 0x4a2   :  { %2887 = vrot.lane.b32.xlu2 %v9399_v6, %s6441_s27  ;;  %2885 = vrot.lane.b32.xlu1 %v9404_v18, %s6441_s27 }
 0x4a3   :  { %2883 = vrot.lane.b32.xlu0 %v9409_v37, %s6441_s27 }
 0x4a4   :  { %v2694_v43 = vpop.permute.xlu2 %2693  ;;  %v2674_v19 = vpop.permute.xlu1 %2673 }
 0x4a5   :  { %2728 = vst.msk [vmem:[#allocation2 + $0xe8] sm:$0xff] %vm2618_vm8, %v2694_v43  ;;  %v2672_v20 = vpop.permute.xlu0 %2671  ;;  %v3033_v43 = vld [vmem:[%s12120_s0 + $0xf1] sm:$0xff] }
 0x4a6   :  { %2718 = vst.msk [vmem:[#allocation2 + $0x98] sm:$0xff] %vm2618_vm8, %v2674_v19  ;;  %v3378_v19 = vld [vmem:[%s12121_s1 + $0x20] sm:$0xf] }
 0x4a7   :  { %2717 = vst.msk [vmem:[#allocation2 + $0x90] sm:$0xff] %vm2618_vm8, %v2672_v20  ;;  %6329 = vmatpush.msk.msra.mxu0 %vm3577_vm9, %v3378_v19  ;;  %6396 = vmatpush.msk.msra.mxu2 %vm3577_vm9, %v3378_v19 }
 0x4a8   :  { %6397 = vmatpush.msk.msra.mxu3 %vm3577_vm9, %v3378_v19  ;;  %vm5303_vm9 = vcmask 458113  }
 0x4aa   :  { %2957 = vrot.lane.b32.xlu2 %v9124_v2, %s6442_s22  ;;  %2955 = vrot.lane.b32.xlu1 %v9129_v25, %s6442_s22 }
 0x4ab   :  { %2889 = vrot.lane.b32.xlu0 %v9423_v26, %s6441_s27 }
 0x4ac   :  { %v2764_v30 = vpop.permute.xlu2 %2763  ;;  %v2680_v31 = vpop.permute.xlu1 %2679 }
 0x4ad   :  { %2811 = vst.msk [vmem:[#allocation2 + $0x100] sm:$0xff] %vm2618_vm8, %v2764_v30  ;;  %v2678_v61 = vpop.permute.xlu0 %2677 }
 0x4ae   :  { %2721 = vst.msk [vmem:[#allocation2 + $0xb0] sm:$0xff] %vm2618_vm8, %v2680_v31 }
 0x4af   :  { %2720 = vst.msk [vmem:[#allocation2 + $0xa8] sm:$0xff] %vm2618_vm8, %v2678_v61  ;;  %v3377_v61 = vld [vmem:[%s12121_s1 + $0x18] sm:$0xff] }
 0x4b0   :  { %3593 = vmatpush.msra.mxu0 %v3377_v61  ;;  %6398 = vmatpush.msra.mxu2 %v3377_v61 }
 0x4b1   :  { %6399 = vmatpush.msra.mxu3 %v3377_v61  ;;  %v3797_v61 = vld [vmem:[%s12122_s4 + $0x8] sm:$0xff] }
 0x4b2   :  { %2963 = vrot.lane.b32.xlu2 %v9143_v59, %s6442_s22  ;;  %2961 = vrot.lane.b32.xlu1 %v9148_v14, %s6442_s22 }
 0x4b3   :  { %2959 = vrot.lane.b32.xlu0 %v9153_v33, %s6442_s22 }
 0x4b4   :  { %v2770_v2 = vpop.permute.xlu2 %2769  ;;  %v2686_v25 = vpop.permute.xlu1 %2685 }
 0x4b5   :  { %2814 = vst.msk [vmem:[#allocation2 + $0x118] sm:$0xff] %vm2618_vm8, %v2770_v2  ;;  %v2684_v62 = vpop.permute.xlu0 %2683  ;;  %v3376_v2 = vld [vmem:[%s12121_s1 + $0x10] sm:$0xff] }
 0x4b6   :  { %2724 = vst.msk [vmem:[#allocation2 + $0xc8] sm:$0xff] %vm2618_vm8, %v2686_v25  ;;  %v3375_v25 = vld [vmem:[%s12121_s1 + $0x8] sm:$0xff]  ;;  %3594 = vmatpush.msra.mxu0 %v3376_v2  ;;  %6400 = vmatpush.msra.mxu2 %v3376_v2 }
 0x4b7   :  { %2723 = vst.msk [vmem:[#allocation2 + $0xc0] sm:$0xff] %vm2618_vm8, %v2684_v62  ;;  %6401 = vmatpush.msra.mxu3 %v3376_v2 }
 0x4b8   :  { %3595 = vmatpush.msra.mxu0 %v3375_v25  ;;  %6402 = vmatpush.msra.mxu2 %v3375_v25 }
 0x4b9   :  { %6403 = vmatpush.msra.mxu3 %v3375_v25 }
 0x4ba   :  { %2969 = vrot.lane.b32.xlu2 %v9167_v57, %s6442_s22  ;;  %2967 = vrot.lane.b32.xlu1 %v9172_v16, %s6442_s22 }
 0x4bb   :  { %2965 = vrot.lane.b32.xlu0 %v9177_v3, %s6442_s22 }
 0x4bc   :  { %v2776_v59 = vpop.permute.xlu2 %2775  ;;  %v2692_v14 = vpop.permute.xlu1 %2691 }
 0x4bd   :  { %2817 = vst.msk [vmem:[#allocation2 + $0x130] sm:$0xff] %vm2618_vm8, %v2776_v59  ;;  %v2690_v33 = vpop.permute.xlu0 %2689 }
 0x4be   :  { %2727 = vst.msk [vmem:[#allocation2 + $0xe0] sm:$0xff] %vm2618_vm8, %v2692_v14  ;;  %v3374_v14 = vld [vmem:[%s12121_s1] sm:$0xff]  ;;  %s6453_s1 = smov 104  }
 0x4bf   :  { %2726 = vst.msk [vmem:[#allocation2 + $0xd8] sm:$0xff] %vm2618_vm8, %v2690_v33  ;;  %3596 = vmatpush.msra.mxu0 %v3374_v14  ;;  %6404 = vmatpush.msra.mxu2 %v3374_v14 }
 0x4c0   :  { %6405 = vmatpush.msra.mxu3 %v3374_v14 }
 0x4c2   :  { %2975 = vrot.lane.b32.xlu2 %v9191_v27, %s6442_s22  ;;  %2973 = vrot.lane.b32.xlu1 %v9196_v52, %s6442_s22 }
 0x4c3   :  { %2971 = vrot.lane.b32.xlu0 %v9201_v8, %s6442_s22 }
 0x4c4   :  { %v2782_v57 = vpop.permute.xlu2 %2781  ;;  %v2698_v16 = vpop.permute.xlu1 %2697 }
 0x4c5   :  { %2820 = vst.msk [vmem:[#allocation2 + $0x148] sm:$0xff] %vm2618_vm8, %v2782_v57  ;;  %v2696_v3 = vpop.permute.xlu0 %2695 }
 0x4c6   :  { %2730 = vst.msk [vmem:[#allocation2 + $0xf8] sm:$0xff] %vm2618_vm8, %v2698_v16 }
 0x4c7   :  { %2729 = vst.msk [vmem:[#allocation2 + $0xf0] sm:$0xff] %vm2618_vm8, %v2696_v3 }
 0x4ca   :  { %2981 = vrot.lane.b32.xlu2 %v9215_v54, %s6442_s22  ;;  %2979 = vrot.lane.b32.xlu1 %v9220_v7, %s6442_s22 }
 0x4cb   :  { %2977 = vrot.lane.b32.xlu0 %v9225_v50, %s6442_s22 }
 0x4cc   :  { %v2788_v27 = vpop.permute.xlu2 %2787  ;;  %v2768_v52 = vpop.permute.xlu1 %2767 }
 0x4cd   :  { %2823 = vst.msk [vmem:[#allocation2 + $0x160] sm:$0xff] %vm2618_vm8, %v2788_v27  ;;  %v2766_v8 = vpop.permute.xlu0 %2765 }
 0x4ce   :  { %2813 = vst.msk [vmem:[#allocation2 + $0x110] sm:$0xff] %vm2618_vm8, %v2768_v52  ;;  %v3216_v52 = vld [vmem:[%s12120_s0 + $0x1a9] sm:$0xff] }
 0x4cf   :  { %2812 = vst.msk [vmem:[#allocation2 + $0x108] sm:$0xff] %vm2618_vm8, %v2766_v8  ;;  %v3214_v8 = vld [vmem:[%s12120_s0 + $0x199] sm:$0xff] }
 0x4d2   :  { %3052 = vrot.lane.b32.xlu2 %v3020_v42, %s6442_s22  ;;  %2985 = vrot.lane.b32.xlu1 %v9239_v63, %s6442_s22  ;;  %v3022_v63 = vld [vmem:[%s12120_s0 + $0x99] sm:$0xff]  ;;  %v6443_v42 = vmov 0  }
 0x4d3   :  { %2983 = vrot.lane.b32.xlu0 %v9244_v23, %s6442_s22  ;;  %v3021_v23 = vld [vmem:[%s12120_s0 + $0x91] sm:$0xff]  ;;  %6427 = vset.pattern.permute.xlu2 %v6443_v42 }
 0x4d4   :  { %v2794_v54 = vpop.permute.xlu2 %2793  ;;  %v2774_v7 = vpop.permute.xlu1 %2773  ;;  %6429 = vset.pattern.permute.xlu1 %v6443_v42  ;;  %6428 = vset.pattern.permute.xlu0 %v6443_v42 }
 0x4d5   :  { %2826 = vst.msk [vmem:[#allocation2 + $0x178] sm:$0xff] %vm2618_vm8, %v2794_v54  ;;  %v2772_v50 = vpop.permute.xlu0 %2771 }
 0x4d6   :  { %2816 = vst.msk [vmem:[#allocation2 + $0x128] sm:$0xff] %vm2618_vm8, %v2774_v7 }
 0x4d7   :  { %2815 = vst.msk [vmem:[#allocation2 + $0x120] sm:$0xff] %vm2618_vm8, %v2772_v50 }
 0x4da   :  { %3058 = vrot.lane.b32.xlu2 %v3023_v29, %s6442_s22  ;;  %3056 = vrot.lane.b32.xlu1 %v3022_v63, %s6442_s22  ;;  %v3219_v63 = vld [vmem:[%s12120_s0 + $0x1c1] sm:$0xff] }
 0x4db   :  { %3054 = vrot.lane.b32.xlu0 %v3021_v23, %s6442_s22  ;;  %v3218_v23 = vld [vmem:[%s12120_s0 + $0x1b9] sm:$0xff] }
 0x4dc   :  { %v2864_v5 = vpop.permute.xlu2 %2863  ;;  %v2780_v9 = vpop.permute.xlu1 %2779 }
 0x4dd   :  { %2909 = vst.msk [vmem:[#allocation2 + $0x190] sm:$0xff] %vm2618_vm8, %v2864_v5  ;;  %v2778_v41 = vpop.permute.xlu0 %2777  ;;  %v3217_v5 = vld [vmem:[%s12120_s0 + $0x1b1] sm:$0xff] }
 0x4de   :  { %2819 = vst.msk [vmem:[#allocation2 + $0x140] sm:$0xff] %vm2618_vm8, %v2780_v9 }
 0x4df   :  { %2818 = vst.msk [vmem:[#allocation2 + $0x138] sm:$0xff] %vm2618_vm8, %v2778_v41 }
 0x4e2   :  { %3064 = vrot.lane.b32.xlu2 %v3026_v36, %s6442_s22  ;;  %3062 = vrot.lane.b32.xlu1 %v3025_v38, %s6442_s22 }
 0x4e3   :  { %3060 = vrot.lane.b32.xlu0 %v3024_v11, %s6442_s22  ;;  %v3222_v11 = vld [vmem:[%s12120_s0 + $0x1d9] sm:$0xff] }
 0x4e4   :  { %v2870_v45 = vpop.permute.xlu2 %2869  ;;  %v2786_v17 = vpop.permute.xlu1 %2785 }
 0x4e5   :  { %2912 = vst.msk [vmem:[#allocation2 + $0x1a8] sm:$0xff] %vm2618_vm8, %v2870_v45  ;;  %v2784_v44 = vpop.permute.xlu0 %2783  ;;  %v3221_v45 = vld [vmem:[%s12120_s0 + $0x1d1] sm:$0xff] }
 0x4e6   :  { %2822 = vst.msk [vmem:[#allocation2 + $0x158] sm:$0xff] %vm2618_vm8, %v2786_v17  ;;  %v3220_v17 = vld [vmem:[%s12120_s0 + $0x1c9] sm:$0xff] }
 0x4e7   :  { %2821 = vst.msk [vmem:[#allocation2 + $0x150] sm:$0xff] %vm2618_vm8, %v2784_v44 }
 0x4ea   :  { %3070 = vrot.lane.b32.xlu2 %v3029_v55, %s6442_s22  ;;  %3068 = vrot.lane.b32.xlu1 %v3028_v13, %s6442_s22 }
 0x4eb   :  { %3066 = vrot.lane.b32.xlu0 %v3027_v35, %s6442_s22 }
 0x4ec   :  { %v2876_v51 = vpop.permute.xlu2 %2875  ;;  %v2792_v4 = vpop.permute.xlu1 %2791 }
 0x4ed   :  { %2915 = vst.msk [vmem:[#allocation2 + $0x1c0] sm:$0xff] %vm2618_vm8, %v2876_v51  ;;  %v2790_v0 = vpop.permute.xlu0 %2789  ;;  %v3225_v51 = vld [vmem:[%s12120_s0 + $0x1f1] sm:$0xff] }
 0x4ee   :  { %2825 = vst.msk [vmem:[#allocation2 + $0x170] sm:$0xff] %vm2618_vm8, %v2792_v4  ;;  %v3224_v4 = vld [vmem:[%s12120_s0 + $0x1e9] sm:$0xff] }
 0x4ef   :  { %2824 = vst.msk [vmem:[#allocation2 + $0x168] sm:$0xff] %vm2618_vm8, %v2790_v0  ;;  %v3223_v0 = vld [vmem:[%s12120_s0 + $0x1e1] sm:$0xff] }
 0x4f2   :  { %3076 = vrot.lane.b32.xlu2 %v3032_v40, %s6442_s22  ;;  %3074 = vrot.lane.b32.xlu1 %v3031_v60, %s6442_s22 }
 0x4f3   :  { %3072 = vrot.lane.b32.xlu0 %v3030_v21, %s6442_s22 }
 0x4f4   :  { %v2882_v48 = vpop.permute.xlu2 %2881  ;;  %v2862_v46 = vpop.permute.xlu1 %2861 }
 0x4f5   :  { %2918 = vst.msk [vmem:[#allocation2 + $0x1d8] sm:$0xff] %vm2618_vm8, %v2882_v48  ;;  %v2860_v34 = vpop.permute.xlu0 %2859 }
 0x4f6   :  { %2908 = vst.msk [vmem:[#allocation2 + $0x188] sm:$0xff] %vm2618_vm8, %v2862_v46  ;;  %v3796_v46 = vld [vmem:[%s12122_s4] sm:$0xff] }
 0x4f7   :  { %2907 = vst.msk [vmem:[#allocation2 + $0x180] sm:$0xff] %vm2618_vm8, %v2860_v34  ;;  %v3227_v34 = vld [vmem:[%s12120_s0 + $0x201] sm:$0xff] }
 0x4fa   :  { %3082 = vrot.lane.b32.xlu2 %v3035_v47, %s6442_s22  ;;  %3080 = vrot.lane.b32.xlu1 %v3034_v1, %s6442_s22  ;;  %v3226_v47 = vld [vmem:[%s12120_s0 + $0x1f9] sm:$0xff] }
 0x4fb   :  { %3078 = vrot.lane.b32.xlu0 %v3033_v43, %s6442_s22 }
 0x4fc   :  { %v2888_v20 = vpop.permute.xlu2 %2887  ;;  %v2868_v30 = vpop.permute.xlu1 %2867 }
 0x4fd   :  { %2921 = vst.msk [vmem:[#allocation2 + $0x1f0] sm:$0xff] %vm2618_vm8, %v2888_v20  ;;  %v2866_v31 = vpop.permute.xlu0 %2865 }
 0x4fe   :  { %2911 = vst.msk [vmem:[#allocation2 + $0x1a0] sm:$0xff] %vm2618_vm8, %v2868_v30  ;;  %v3799_v30 = vld [vmem:[%s12122_s4 + $0x18] sm:$0xff] }
 0x4ff   :  { %2910 = vst.msk [vmem:[#allocation2 + $0x198] sm:$0xff] %vm2618_vm8, %v2866_v31  ;;  %v3798_v31 = vld [vmem:[%s12122_s4 + $0x10] sm:$0xff] }
 0x502   :  { %3152 = vrot.lane.b32.xlu2 %v9303_v24, %s6442_s22  ;;  %3150 = vrot.lane.b32.xlu1 %v9308_v15, %s6442_s22 }
 0x503   :  { %3148 = vrot.lane.b32.xlu0 %v9313_v10, %s6442_s22 }
 0x504   :  { %v2958_v62 = vpop.permute.xlu2 %2957  ;;  %v2874_v59 = vpop.permute.xlu1 %2873 }
 0x505   :  { %3005 = vst.msk [vmem:[#allocation2 + $0x8] sm:$0xff] %vm3003_vm10, %v2958_v62  ;;  %v2872_v24 = vpop.permute.xlu0 %2871 }
 0x506   :  { %2914 = vst.msk [vmem:[#allocation2 + $0x1b8] sm:$0xff] %vm2618_vm8, %v2874_v59 }
 0x507   :  { %2913 = vst.msk [vmem:[#allocation2 + $0x1b0] sm:$0xff] %vm2618_vm8, %v2872_v24  ;;  %v3801_v24 = vld [vmem:[%s12122_s4 + $0x28] sm:$0xff] }
 0x50a   :  { %3158 = vrot.lane.b32.xlu2 %v9327_v32, %s6442_s22  ;;  %3156 = vrot.lane.b32.xlu1 %v9332_v12, %s6442_s22 }
 0x50b   :  { %3154 = vrot.lane.b32.xlu0 %v9337_v22, %s6442_s22 }
 0x50c   :  { %v2964_v15 = vpop.permute.xlu2 %2963  ;;  %v2880_v10 = vpop.permute.xlu1 %2879  ;;  %v3309_v27 = vld [vmem:[#allocation2 + $0x8] sm:$0xff] }
 0x50d   :  { %3008 = vst.msk [vmem:[#allocation2 + $0x20] sm:$0xff] %vm3003_vm10, %v2964_v15  ;;  %v2878_v33 = vpop.permute.xlu0 %2877  ;;  %v3800_v15 = vld [vmem:[%s12122_s4 + $0x20] sm:$0xff] }
 0x50e   :  { %2917 = vst.msk [vmem:[#allocation2 + $0x1d0] sm:$0xff] %vm2618_vm8, %v2880_v10  ;;  %v3802_v10 = vld [vmem:[%s12122_s4 + $0x30] sm:$0xff] }
 0x50f   :  { %2916 = vst.msk [vmem:[#allocation2 + $0x1c8] sm:$0xff] %vm2618_vm8, %v2878_v33 }
 0x512   :  { %3164 = vrot.lane.b32.xlu2 %v9351_v56, %s6442_s22  ;;  %3162 = vrot.lane.b32.xlu1 %v9356_v39, %s6442_s22 }
 0x513   :  { %3160 = vrot.lane.b32.xlu0 %v9361_v28, %s6442_s22 }
 0x514   :  { %v2970_v32 = vpop.permute.xlu2 %2969  ;;  %v2886_v12 = vpop.permute.xlu1 %2885  ;;  %v3312_v35 = vld [vmem:[#allocation2 + $0x20] sm:$0xff] }
 0x515   :  { %3011 = vst.msk [vmem:[#allocation2 + $0x38] sm:$0xff] %vm3003_vm10, %v2970_v32  ;;  %v2884_v22 = vpop.permute.xlu0 %2883 }
 0x516   :  { %2920 = vst.msk [vmem:[#allocation2 + $0x1e8] sm:$0xff] %vm2618_vm8, %v2886_v12 }
 0x517   :  { %2919 = vst.msk [vmem:[#allocation2 + $0x1e0] sm:$0xff] %vm2618_vm8, %v2884_v22 }
 0x51a   :  { %3170 = vrot.lane.b32.xlu2 %v9375_v58, %s6442_s22  ;;  %3168 = vrot.lane.b32.xlu1 %v9380_v49, %s6442_s22 }
 0x51b   :  { %3166 = vrot.lane.b32.xlu0 %v9385_v53, %s6442_s22 }
 0x51c   :  { %v2976_v56 = vpop.permute.xlu2 %2975  ;;  %v2956_v39 = vpop.permute.xlu1 %2955  ;;  %v3315_v59 = vld [vmem:[#allocation2 + $0x38] sm:$0xff] }
 0x51d   :  { %3014 = vst.msk [vmem:[#allocation2 + $0x50] sm:$0xff] %vm3003_vm10, %v2976_v56  ;;  %v2890_v28 = vpop.permute.xlu0 %2889 }
 0x51e   :  { %3004 = vst.msk [vmem:[#allocation2] sm:$0xff] %vm3003_vm10, %v2956_v39  ;;  %v3804_v39 = vld [vmem:[%s12122_s4 + $0x40] sm:$0xff] }
 0x51f   :  { %2922 = vst.msk [vmem:[#allocation2 + $0x1f8] sm:$0xff] %vm2618_vm8, %v2890_v28  ;;  %v3803_v28 = vld [vmem:[%s12122_s4 + $0x38] sm:$0xff]  ;;  %vm5305_vm8 = vcmask 458112  }
 0x522   :  { %3176 = vrot.lane.b32.xlu2 %v9399_v6, %s6442_s22  ;;  %3174 = vrot.lane.b32.xlu1 %v9404_v18, %s6442_s22  ;;  %v3213_v6 = vld [vmem:[%s12120_s0 + $0x191] sm:$0xff]  ;;  %v3212_v18 = vld [vmem:[%s12120_s0 + $0x189] sm:$0xff] }
 0x523   :  { %3172 = vrot.lane.b32.xlu0 %v9409_v37, %s6442_s22 }
 0x524   :  { %v2982_v58 = vpop.permute.xlu2 %2981  ;;  %v2962_v49 = vpop.permute.xlu1 %2961 }
 0x525   :  { %3017 = vst.msk [vmem:[#allocation2 + $0x68] sm:$0xff] %vm3003_vm10, %v2982_v58  ;;  %v2960_v53 = vpop.permute.xlu0 %2959  ;;  %v3308_v57 = vld [vmem:[#allocation2] sm:$0xff]  ;;  %v3805_v58 = vld [vmem:[%s12122_s4 + $0x48] sm:$0xff] }
 0x526   :  { %3007 = vst.msk [vmem:[#allocation2 + $0x18] sm:$0xff] %vm3003_vm10, %v2962_v49  ;;  %6330 = vmatmul.msk.f32.vlgmr.msra.gmra.mxu0 %vm32_vm0, %v3308_v57 }
 0x527   :  { %3006 = vst.msk [vmem:[#allocation2 + $0x10] sm:$0xff] %vm3003_vm10, %v2960_v53 }
 0x52a   :  { %3246 = vrot.lane.b32.xlu2 %v3213_v6, %s6442_s22  ;;  %3244 = vrot.lane.b32.xlu1 %v3212_v18, %s6442_s22 }
 0x52b   :  { %3178 = vrot.lane.b32.xlu0 %v9423_v26, %s6442_s22  ;;  %v3215_v26 = vld [vmem:[%s12120_s0 + $0x1a1] sm:$0xff]  ;;  %s6452_s0 = smov 112  }
 0x52c   :  { %v3053_v37 = vpop.permute.xlu2 %3052  ;;  %v2968_v16 = vpop.permute.xlu1 %2967 }
 0x52d   :  { %3100 = vst.msk [vmem:[#allocation2 + $0x80] sm:$0xff] %vm3003_vm10, %v3053_v37  ;;  %v2966_v3 = vpop.permute.xlu0 %2965  ;;  %v3311_v38 = vld [vmem:[#allocation2 + $0x18] sm:$0xff] }
 0x52e   :  { %3010 = vst.msk [vmem:[#allocation2 + $0x30] sm:$0xff] %vm3003_vm10, %v2968_v16  ;;  %6331 = vmatmul.msk.f32.gmra.mxu0 %vm32_vm0, %v3309_v27  ;;  %v3310_v29 = vld [vmem:[#allocation2 + $0x10] sm:$0xff]  ;;  %v3807_v37 = vld [vmem:[%s12122_s4 + $0x58] sm:$0xff] }
 0x52f   :  { %3009 = vst.msk [vmem:[#allocation2 + $0x28] sm:$0xff] %vm3003_vm10, %v2966_v3  ;;  %v3806_v16 = vld [vmem:[%s12122_s4 + $0x50] sm:$0xff]  ;;  %v3808_v3 = vld [vmem:[%s12122_s4 + $0x60] sm:$0xff] }
 0x532   :  { %3252 = vrot.lane.b32.xlu2 %v3216_v52, %s6442_s22  ;;  %3250 = vrot.lane.b32.xlu1 %v3215_v26, %s6442_s22 }
 0x533   :  { %3248 = vrot.lane.b32.xlu0 %v3214_v8, %s6442_s22  ;;  %v3318_v8 = vld [vmem:[#allocation2 + $0x50] sm:$0xff] }
 0x534   :  { %v3059_v54 = vpop.permute.xlu2 %3058  ;;  %v2974_v7 = vpop.permute.xlu1 %2973 }
 0x535   :  { %3103 = vst.msk [vmem:[#allocation2 + $0x98] sm:$0xff] %vm3003_vm10, %v3059_v54  ;;  %v2972_v50 = vpop.permute.xlu0 %2971  ;;  %v3314_v20 = vld [vmem:[#allocation2 + $0x30] sm:$0xff] }
 0x536   :  { %3013 = vst.msk [vmem:[#allocation2 + $0x48] sm:$0xff] %vm3003_vm10, %v2974_v7  ;;  %6332 = vmatmul.msk.f32.gmra.mxu0 %vm32_vm0, %v3310_v29  ;;  %v3313_v48 = vld [vmem:[#allocation2 + $0x28] sm:$0xff]  ;;  %v3810_v54 = vld [vmem:[%s12122_s4 + $0x70] sm:$0xff] }
 0x537   :  { %3012 = vst.msk [vmem:[#allocation2 + $0x40] sm:$0xff] %vm3003_vm10, %v2972_v50  ;;  %v3809_v7 = vld [vmem:[%s12122_s4 + $0x68] sm:$0xff]  ;;  %v3811_v50 = vld [vmem:[%s12122_s4 + $0x78] sm:$0xff] }
 0x53a   :  { %3258 = vrot.lane.b32.xlu2 %v3219_v63, %s6442_s22  ;;  %3256 = vrot.lane.b32.xlu1 %v3218_v23, %s6442_s22 }
 0x53b   :  { %3254 = vrot.lane.b32.xlu0 %v3217_v5, %s6442_s22 }
 0x53c   :  { %v3065_v9 = vpop.permute.xlu2 %3064  ;;  %v2980_v41 = vpop.permute.xlu1 %2979 }
 0x53d   :  { %3106 = vst.msk [vmem:[#allocation2 + $0xb0] sm:$0xff] %vm3003_vm10, %v3065_v9  ;;  %v2978_v36 = vpop.permute.xlu0 %2977  ;;  %v3317_v6 = vld [vmem:[#allocation2 + $0x48] sm:$0xff] }
 0x53e   :  { %3016 = vst.msk [vmem:[#allocation2 + $0x60] sm:$0xff] %vm3003_vm10, %v2980_v41  ;;  %6333 = vmatmul.msk.f32.gmra.mxu0 %vm32_vm0, %v3311_v38  ;;  %v3316_v22 = vld [vmem:[#allocation2 + $0x40] sm:$0xff] }
 0x53f   :  { %3015 = vst.msk [vmem:[#allocation2 + $0x58] sm:$0xff] %vm3003_vm10, %v2978_v36  ;;  %v3813_v36 = vld [vmem:[%s12122_s4 + $0x88] sm:$0xff]  ;;  %v3812_v38 = vld [vmem:[%s12122_s4 + $0x80] sm:$0xff] }
 0x542   :  { %3264 = vrot.lane.b32.xlu2 %v3222_v11, %s6442_s22  ;;  %3262 = vrot.lane.b32.xlu1 %v3221_v45, %s6442_s22  ;;  %v3814_v11 = vld [vmem:[%s12122_s4 + $0x90] sm:$0xff] }
 0x543   :  { %3260 = vrot.lane.b32.xlu0 %v3220_v17, %s6442_s22 }
 0x544   :  { %v3071_v44 = vpop.permute.xlu2 %3070  ;;  %v2986_v55 = vpop.permute.xlu1 %2985  ;;  %v3330_v56 = vld [vmem:[#allocation2 + $0xb0] sm:$0xff] }
 0x545   :  { %3109 = vst.msk [vmem:[#allocation2 + $0xc8] sm:$0xff] %vm3003_vm10, %v3071_v44  ;;  %v2984_v13 = vpop.permute.xlu0 %2983 }
 0x546   :  { %3019 = vst.msk [vmem:[#allocation2 + $0x78] sm:$0xff] %vm3003_vm10, %v2986_v55  ;;  %6334 = vmatmul.msk.f32.gmra.mxu0 %vm32_vm0, %v3312_v35  ;;  %v3319_v9 = vld [vmem:[#allocation2 + $0x58] sm:$0xff]  ;;  %v3320_v55 = vld [vmem:[#allocation2 + $0x60] sm:$0xff] }
 0x547   :  { %3018 = vst.msk [vmem:[#allocation2 + $0x70] sm:$0xff] %vm3003_vm10, %v2984_v13  ;;  %v3816_v35 = vld [vmem:[%s12122_s4 + $0xa0] sm:$0xff] }
 0x54a   :  { %3270 = vrot.lane.b32.xlu2 %v3225_v51, %s6442_s22  ;;  %3268 = vrot.lane.b32.xlu1 %v3224_v4, %s6442_s22  ;;  %v3815_v51 = vld [vmem:[%s12122_s4 + $0x98] sm:$0xff]  ;;  %v3817_v4 = vld [vmem:[%s12122_s4 + $0xa8] sm:$0xff] }
 0x54b   :  { %3266 = vrot.lane.b32.xlu0 %v3223_v0, %s6442_s22 }
 0x54c   :  { %v3077_v40 = vpop.permute.xlu2 %3076  ;;  %v3057_v60 = vpop.permute.xlu1 %3056  ;;  %v3333_v41 = vld [vmem:[#allocation2 + $0xc8] sm:$0xff] }
 0x54d   :  { %3112 = vst.msk [vmem:[#allocation2 + $0xe0] sm:$0xff] %vm3003_vm10, %v3077_v40  ;;  %v3055_v21 = vpop.permute.xlu0 %3054 }
 0x54e   :  { %3102 = vst.msk [vmem:[#allocation2 + $0x90] sm:$0xff] %vm3003_vm10, %v3057_v60  ;;  %6335 = vmatmul.msk.f32.gmra.mxu0 %vm32_vm0, %v3313_v48 }
 0x54f   :  { %3101 = vst.msk [vmem:[#allocation2 + $0x88] sm:$0xff] %vm3003_vm10, %v3055_v21  ;;  %v3321_v21 = vld [vmem:[#allocation2 + $0x68] sm:$0xff] }
 0x552   :  { %3864 = vperm.xlu2 %6427, %v3796_v46   ;;  %3274 = vrot.lane.b32.xlu1 %v3227_v34, %s6442_s22  ;;  %v3819_v46 = vld [vmem:[%s12122_s4 + $0xb8] sm:$0xff]  ;;  %v3818_v34 = vld [vmem:[%s12122_s4 + $0xb0] sm:$0xff] }
 0x553   :  { %3272 = vrot.lane.b32.xlu0 %v3226_v47, %s6442_s22  ;;  %v3820_v47 = vld [vmem:[%s12122_s4 + $0xc0] sm:$0xff] }
 0x554   :  { %v3083_v1 = vpop.permute.xlu2 %3082  ;;  %v3063_v43 = vpop.permute.xlu1 %3062 }
 0x555   :  { %3115 = vst.msk [vmem:[#allocation2 + $0xf8] sm:$0xff] %vm3003_vm10, %v3083_v1  ;;  %v3061_v19 = vpop.permute.xlu0 %3060 }
 0x556   :  { %3105 = vst.msk [vmem:[#allocation2 + $0xa8] sm:$0xff] %vm3003_vm10, %v3063_v43  ;;  %6336 = vmatmul.msk.f32.gmra.mxu0 %vm32_vm0, %v3314_v20  ;;  %v3322_v20 = vld [vmem:[#allocation2 + $0x70] sm:$0xff] }
 0x557   :  { %3104 = vst.msk [vmem:[#allocation2 + $0xa0] sm:$0xff] %vm3003_vm10, %v3061_v19 }
 0x55a   :  { %3879 = vperm.xlu2 %6427, %v3799_v30   ;;  %3874 = vperm.xlu1 %6429, %v3798_v31   ;;  %v3336_v30 = vld [vmem:[#allocation2 + $0xe0] sm:$0xff]  ;;  %v3822_v31 = vld [vmem:[%s12122_s4 + $0xd0] sm:$0xff] }
 0x55b   :  { %3869 = vperm.xlu0 %6428, %v3797_v61   ;;  %v3821_v61 = vld [vmem:[%s12122_s4 + $0xc8] sm:$0xff] }
 0x55c   :  { %v3153_v2 = vpop.permute.xlu2 %3152  ;;  %v3069_v25 = vpop.permute.xlu1 %3068 }
 0x55d   :  { %3198 = vst.msk [vmem:[#allocation2 + $0x110] sm:$0xff] %vm3003_vm10, %v3153_v2  ;;  %v3067_v62 = vpop.permute.xlu0 %3066  ;;  %v3329_v14 = vld [vmem:[#allocation2 + $0xa8] sm:$0xff]  ;;  %v3823_v2 = vld [vmem:[%s12122_s4 + $0xd8] sm:$0xff] }
 0x55e   :  { %3108 = vst.msk [vmem:[#allocation2 + $0xc0] sm:$0xff] %vm3003_vm10, %v3069_v25  ;;  %6337 = vmatmul.msk.f32.gmra.mxu0 %vm32_vm0, %v3315_v59  ;;  %6351 = vmatmul.msk.f32.vlgmr.msra.gmra.mxu2 %vm32_vm0, %v3329_v14  ;;  %v3323_v14 = vld [vmem:[#allocation2 + $0x78] sm:$0xff] }
 0x55f   :  { %3107 = vst.msk [vmem:[#allocation2 + $0xb8] sm:$0xff] %vm3003_vm10, %v3067_v62 }
 0x562   :  { %3889 = vperm.xlu2 %6427, %v3801_v24   ;;  %3884 = vperm.xlu1 %6429, %v3800_v15  }
 0x563   :  { %3894 = vperm.xlu0 %6428, %v3802_v10   ;;  %v3825_v10 = vld [vmem:[%s12122_s4 + $0xe8] sm:$0xff] }
 0x564   :  { %v3159_v33 = vpop.permute.xlu2 %3158  ;;  %v3075_v32 = vpop.permute.xlu1 %3074 }
 0x565   :  { %3201 = vst.msk [vmem:[#allocation2 + $0x128] sm:$0xff] %vm3003_vm10, %v3159_v33  ;;  %v3073_v12 = vpop.permute.xlu0 %3072  ;;  %v3332_v42 = vld [vmem:[#allocation2 + $0xc0] sm:$0xff] }
 0x566   :  { %3111 = vst.msk [vmem:[#allocation2 + $0xd8] sm:$0xff] %vm3003_vm10, %v3075_v32  ;;  %6338 = vmatmul.msk.f32.gmra.mxu0 %vm32_vm0, %v3316_v22  ;;  %6352 = vmatmul.msk.f32.gmra.mxu2 %vm32_vm0, %v3330_v56  ;;  %v3331_v18 = vld [vmem:[#allocation2 + $0xb8] sm:$0xff]  ;;  %v3824_v33 = vld [vmem:[%s12122_s4 + $0xe0] sm:$0xff]  ;;  %v3826_v32 = vld [vmem:[%s12122_s4 + $0xf0] sm:$0xff] }
 0x567   :  { %3110 = vst.msk [vmem:[#allocation2 + $0xd0] sm:$0xff] %vm3003_vm10, %v3073_v12 }
 0x56a   :  { %3904 = vperm.xlu2 %6427, %v3804_v39   ;;  %3899 = vperm.xlu1 %6429, %v3803_v28  }
 0x56b   :  { %3909 = vperm.xlu0 %6428, %v3805_v58   ;;  %v3324_v58 = vld [vmem:[#allocation2 + $0x80] sm:$0xff] }
 0x56c   :  { %v3165_v49 = vpop.permute.xlu2 %3164  ;;  %v3081_v53 = vpop.permute.xlu1 %3080 }
 0x56d   :  { %3204 = vst.msk [vmem:[#allocation2 + $0x140] sm:$0xff] %vm3003_vm10, %v3165_v49  ;;  %v3079_v57 = vpop.permute.xlu0 %3078  ;;  %v3335_v48 = vld [vmem:[#allocation2 + $0xd8] sm:$0xff] }
 0x56e   :  { %3114 = vst.msk [vmem:[#allocation2 + $0xf0] sm:$0xff] %vm3003_vm10, %v3081_v53  ;;  %6339 = vmatmul.msk.f32.gmra.mxu0 %vm32_vm0, %v3317_v6  ;;  %6353 = vmatmul.msk.f32.gmra.mxu2 %vm32_vm0, %v3331_v18  ;;  %v3334_v13 = vld [vmem:[#allocation2 + $0xd0] sm:$0xff]  ;;  %v3828_v53 = vld [vmem:[%s12122_s4 + $0x100] sm:$0xff]  ;;  %v3829_v6 = vld [vmem:[%s12122_s4 + $0x108] sm:$0xff] }
 0x56f   :  { %3113 = vst.msk [vmem:[#allocation2 + $0xe8] sm:$0xff] %vm3003_vm10, %v3079_v57  ;;  %v3827_v57 = vld [vmem:[%s12122_s4 + $0xf8] sm:$0xff] }
 0x572   :  { %3919 = vperm.xlu2 %6427, %v3807_v37   ;;  %3914 = vperm.xlu1 %6429, %v3806_v16  }
 0x573   :  { %3924 = vperm.xlu0 %6428, %v3808_v3  }
 0x574   :  { %v3171_v27 = vpop.permute.xlu2 %3170  ;;  %v3151_v52 = vpop.permute.xlu1 %3150 }
 0x575   :  { %3207 = vst.msk [vmem:[#allocation2 + $0x158] sm:$0xff] %vm3003_vm10, %v3171_v27  ;;  %v3149_v26 = vpop.permute.xlu0 %3148  ;;  %v3338_v49 = vld [vmem:[#allocation2 + $0xf0] sm:$0xff]  ;;  %v3325_v27 = vld [vmem:[#allocation2 + $0x88] sm:$0xff] }
 0x576   :  { %3197 = vst.msk [vmem:[#allocation2 + $0x108] sm:$0xff] %vm3003_vm10, %v3151_v52  ;;  %6340 = vmatmul.msk.f32.gmra.mxu0 %vm32_vm0, %v3318_v8  ;;  %6354 = vmatmul.msk.f32.gmra.mxu2 %vm32_vm0, %v3332_v42  ;;  %v3337_v24 = vld [vmem:[#allocation2 + $0xe8] sm:$0xff]  ;;  %v3339_v52 = vld [vmem:[#allocation2 + $0xf8] sm:$0xff]  ;;  %v3830_v8 = vld [vmem:[%s12122_s4 + $0x110] sm:$0xff] }
 0x577   :  { %3196 = vst.msk [vmem:[#allocation2 + $0x100] sm:$0xff] %vm3003_vm10, %v3149_v26  ;;  %v3831_v26 = vld [vmem:[%s12122_s4 + $0x118] sm:$0xff]  ;;  %v3832_v42 = vld [vmem:[%s12122_s4 + $0x120] sm:$0xff] }
 0x57a   :  { %3934 = vperm.xlu2 %6427, %v3810_v54   ;;  %3929 = vperm.xlu1 %6429, %v3809_v7  }
 0x57b   :  { %3939 = vperm.xlu0 %6428, %v3811_v50  }
 0x57c   :  { %v3177_v29 = vpop.permute.xlu2 %3176  ;;  %v3157_v63 = vpop.permute.xlu1 %3156  ;;  %v3351_v23 = vld [vmem:[#allocation2 + $0x158] sm:$0xff] }
 0x57d   :  { %3210 = vst.msk [vmem:[#allocation2 + $0x170] sm:$0xff] %vm3003_vm10, %v3177_v29  ;;  %v3155_v5 = vpop.permute.xlu0 %3154  ;;  %6373 = vmatmul.msk.f32.vlgmr.msra.gmra.mxu3 %vm32_vm0, %v3351_v23 }
 0x57e   :  { %3200 = vst.msk [vmem:[#allocation2 + $0x120] sm:$0xff] %vm3003_vm10, %v3157_v63  ;;  %6341 = vmatmul.msk.f32.gmra.mxu0 %vm32_vm0, %v3319_v9  ;;  %6355 = vmatmul.msk.f32.gmra.mxu2 %vm32_vm0, %v3333_v41  ;;  %v3326_v63 = vld [vmem:[#allocation2 + $0x90] sm:$0xff]  ;;  %v3340_v23 = vld [vmem:[#allocation2 + $0x100] sm:$0xff]  ;;  %v3833_v9 = vld [vmem:[%s12122_s4 + $0x128] sm:$0xff] }
 0x57f   :  { %3199 = vst.msk [vmem:[#allocation2 + $0x118] sm:$0xff] %vm3003_vm10, %v3155_v5  ;;  %v3834_v5 = vld [vmem:[%s12122_s4 + $0x130] sm:$0xff]  ;;  %v3835_v41 = vld [vmem:[%s12122_s4 + $0x138] sm:$0xff] }
 0x582   :  { %3949 = vperm.xlu2 %6427, %v3813_v36   ;;  %3944 = vperm.xlu1 %6429, %v3812_v38  }
 0x583   :  { %3954 = vperm.xlu0 %6428, %v3814_v11  }
 0x584   :  { %v3247_v45 = vpop.permute.xlu2 %3246  ;;  %v3163_v17 = vpop.permute.xlu1 %3162  ;;  %v3354_v16 = vld [vmem:[#allocation2 + $0x170] sm:$0xff] }
 0x585   :  { %3293 = vst.msk [vmem:[#allocation2 + $0x188] sm:$0xff] %vm3003_vm10, %v3247_v45  ;;  %v3161_v44 = vpop.permute.xlu0 %3160 }
 0x586   :  { %3203 = vst.msk [vmem:[#allocation2 + $0x138] sm:$0xff] %vm3003_vm10, %v3163_v17  ;;  %6342 = vmatmul.msk.f32.gmra.mxu0 %vm32_vm0, %v3320_v55  ;;  %6356 = vmatmul.msk.f32.gmra.mxu2 %vm32_vm0, %v3334_v13  ;;  %v3327_v17 = vld [vmem:[#allocation2 + $0x98] sm:$0xff]  ;;  %v3837_v55 = vld [vmem:[%s12122_s4 + $0x148] sm:$0xff]  ;;  %v3836_v13 = vld [vmem:[%s12122_s4 + $0x140] sm:$0xff] }
 0x587   :  { %3202 = vst.msk [vmem:[#allocation2 + $0x130] sm:$0xff] %vm3003_vm10, %v3161_v44  ;;  %v3341_v44 = vld [vmem:[#allocation2 + $0x108] sm:$0xff] }
 0x58a   :  { %3964 = vperm.xlu2 %6427, %v3816_v35   ;;  %3959 = vperm.xlu1 %6429, %v3815_v51   ;;  %v3838_v35 = vld [vmem:[%s12122_s4 + $0x150] sm:$0xff] }
 0x58b   :  { %3969 = vperm.xlu0 %6428, %v3817_v4  }
 0x58c   :  { %v3253_v0 = vpop.permute.xlu2 %3252  ;;  %v3169_v40 = vpop.permute.xlu1 %3168 }
 0x58d   :  { %3296 = vst.msk [vmem:[#allocation2 + $0x1a0] sm:$0xff] %vm3003_vm10, %v3253_v0  ;;  %v3167_v60 = vpop.permute.xlu0 %3166  ;;  %v3357_v0 = vld [vmem:[#allocation2 + $0x188] sm:$0xff] }
 0x58e   :  { %3206 = vst.msk [vmem:[#allocation2 + $0x150] sm:$0xff] %vm3003_vm10, %v3169_v40  ;;  %6343 = vmatmul.msk.f32.gmra.mxu0 %vm32_vm0, %v3321_v21  ;;  %6357 = vmatmul.msk.f32.gmra.mxu2 %vm32_vm0, %v3335_v48  ;;  %v3342_v21 = vld [vmem:[#allocation2 + $0x110] sm:$0xff]  ;;  %v3840_v48 = vld [vmem:[%s12122_s4 + $0x160] sm:$0xff] }
 0x58f   :  { %3205 = vst.msk [vmem:[#allocation2 + $0x148] sm:$0xff] %vm3003_vm10, %v3167_v60  ;;  %v3328_v60 = vld [vmem:[#allocation2 + $0xa0] sm:$0xff] }
 0x592   :  { %3979 = vperm.xlu2 %6427, %v3819_v46   ;;  %3974 = vperm.xlu1 %6429, %v3818_v34   ;;  %v3839_v46 = vld [vmem:[%s12122_s4 + $0x158] sm:$0xff]  ;;  %v3841_v34 = vld [vmem:[%s12122_s4 + $0x168] sm:$0xff] }
 0x593   :  { %3984 = vperm.xlu0 %6428, %v3820_v47  }
 0x594   :  { %v3259_v1 = vpop.permute.xlu2 %3258  ;;  %v3175_v43 = vpop.permute.xlu1 %3174 }
 0x595   :  { %3299 = vst.msk [vmem:[#allocation2 + $0x1b8] sm:$0xff] %vm3003_vm10, %v3259_v1  ;;  %v3173_v19 = vpop.permute.xlu0 %3172 }
 0x596   :  { %3209 = vst.msk [vmem:[#allocation2 + $0x168] sm:$0xff] %vm3003_vm10, %v3175_v43  ;;  %6344 = vmatmul.msk.f32.gmra.mxu0 %vm32_vm0, %v3322_v20  ;;  %6358 = vmatmul.msk.f32.gmra.mxu2 %vm32_vm0, %v3336_v30  ;;  %v3343_v43 = vld [vmem:[#allocation2 + $0x118] sm:$0xff]  ;;  %v3842_v20 = vld [vmem:[%s12122_s4 + $0x170] sm:$0xff]  ;;  %v3844_v30 = vld [vmem:[%s12122_s4 + $0x180] sm:$0xff] }
 0x597   :  { %3208 = vst.msk [vmem:[#allocation2 + $0x160] sm:$0xff] %vm3003_vm10, %v3173_v19  ;;  %v3843_v19 = vld [vmem:[%s12122_s4 + $0x178] sm:$0xff] }
 0x59a   :  { %3994 = vperm.xlu2 %6427, %v3822_v31   ;;  %3989 = vperm.xlu1 %6429, %v3821_v61  }
 0x59b   :  { %3999 = vperm.xlu0 %6428, %v3823_v2   ;;  %v3344_v2 = vld [vmem:[#allocation2 + $0x120] sm:$0xff] }
 0x59c   :  { %v3265_v25 = vpop.permute.xlu2 %3264  ;;  %v3245_v62 = vpop.permute.xlu1 %3244 }
 0x59d   :  { %3302 = vst.msk [vmem:[#allocation2 + $0x1d0] sm:$0xff] %vm3003_vm10, %v3265_v25  ;;  %v3179_v59 = vpop.permute.xlu0 %3178  ;;  %v3353_v39 = vld [vmem:[#allocation2 + $0x168] sm:$0xff]  ;;  %v3846_v25 = vld [vmem:[%s12122_s4 + $0x190] sm:$0xff] }
 0x59e   :  { %3292 = vst.msk [vmem:[#allocation2 + $0x180] sm:$0xff] %vm3003_vm10, %v3245_v62  ;;  %6345 = vmatmul.msk.f32.gmra.mxu0 %vm32_vm0, %v3323_v14  ;;  %6359 = vmatmul.msk.f32.gmra.mxu2 %vm32_vm0, %v3337_v24  ;;  %v3352_v15 = vld [vmem:[#allocation2 + $0x160] sm:$0xff]  ;;  %v3845_v62 = vld [vmem:[%s12122_s4 + $0x188] sm:$0xff] }
 0x59f   :  { %3211 = vst.msk [vmem:[#allocation2 + $0x178] sm:$0xff] %vm3003_vm10, %v3179_v59  ;;  %6374 = vmatmul.msk.f32.gmra.mxu3 %vm32_vm0, %v3352_v15  ;;  %v3847_v59 = vld [vmem:[%s12122_s4 + $0x198] sm:$0xff]  ;;  %v3360_v24 = vld [vmem:[#allocation2 + $0x1a0] sm:$0xff]  ;;  %v3345_v15 = vld [vmem:[#allocation2 + $0x128] sm:$0xff] }
 0x5a2   :  { %4009 = vperm.xlu2 %6427, %v3825_v10   ;;  %4004 = vperm.xlu1 %6429, %v3824_v33   ;;  %v3849_v10 = vld [vmem:[%s12122_s4 + $0x1a8] sm:$0xff]  ;;  %v3848_v33 = vld [vmem:[%s12122_s4 + $0x1a0] sm:$0xff] }
 0x5a3   :  { %4014 = vperm.xlu0 %6428, %v3826_v32   ;;  %v9847_v12 = vpop.f32.mrf.mxu0  ;;  %v3850_v32 = vld [vmem:[%s12122_s4 + $0x1b0] sm:$0xff] }
 0x5a4   :  { %12321 = vst [vmem:[#allocation9_spill] sm:$0xff] %v9847_v12  ;;  %v3271_v22 = vpop.permute.xlu2 %3270  ;;  %v3251_v56 = vpop.permute.xlu1 %3250 }
 0x5a5   :  { %3305 = vst.msk [vmem:[#allocation2 + $0x1e8] sm:$0xff] %vm3003_vm10, %v3271_v22  ;;  %v3249_v28 = vpop.permute.xlu0 %3248  ;;  %v3356_v11 = vld [vmem:[#allocation2 + $0x180] sm:$0xff] }
 0x5a6   :  { %3295 = vst.msk [vmem:[#allocation2 + $0x198] sm:$0xff] %vm3003_vm10, %v3251_v56  ;;  %6346 = vmatmul.msk.f32.gmra.mxu0 %vm32_vm0, %v3324_v58  ;;  %6360 = vmatmul.msk.f32.gmra.mxu2 %vm32_vm0, %v3338_v49  ;;  %v3355_v50 = vld [vmem:[#allocation2 + $0x178] sm:$0xff]  ;;  %v3852_v58 = vld [vmem:[%s12122_s4 + $0x1c0] sm:$0xff] }
 0x5a7   :  { %3294 = vst.msk [vmem:[#allocation2 + $0x190] sm:$0xff] %vm3003_vm10, %v3249_v28  ;;  %6375 = vmatmul.msk.f32.gmra.mxu3 %vm32_vm0, %v3353_v39  ;;  %v3346_v28 = vld [vmem:[#allocation2 + $0x130] sm:$0xff]  ;;  %v3851_v49 = vld [vmem:[%s12122_s4 + $0x1b8] sm:$0xff] }
 0x5aa   :  { %4024 = vperm.xlu2 %6427, %v3828_v53   ;;  %4019 = vperm.xlu1 %6429, %v3827_v57   ;;  %v3853_v53 = vld [vmem:[%s12122_s4 + $0x1c8] sm:$0xff] }
 0x5ab   :  { %4029 = vperm.xlu0 %6428, %v3829_v6   ;;  %v9864_v18 = vpop.f32.mrf.mxu0 }
 0x5ac   :  { %12322 = vst [vmem:[#allocation6_spill] sm:$0xff] %v9864_v18  ;;  %v3257_v37 = vpop.permute.xlu1 %3256 }
 0x5ad   :  { %3298 = vst.msk [vmem:[#allocation2 + $0x1b0] sm:$0xff] %vm3003_vm10, %v3257_v37  ;;  %v3255_v3 = vpop.permute.xlu0 %3254  ;;  %v3359_v61 = vld [vmem:[#allocation2 + $0x198] sm:$0xff] }
 0x5ae   :  { %3297 = vst.msk [vmem:[#allocation2 + $0x1a8] sm:$0xff] %vm3003_vm10, %v3255_v3  ;;  %6347 = vmatmul.msk.f32.gmra.mxu0 %vm32_vm0, %v3325_v27  ;;  %6361 = vmatmul.msk.f32.gmra.mxu2 %vm32_vm0, %v3339_v52  ;;  %v3358_v1 = vld [vmem:[#allocation2 + $0x190] sm:$0xff]  ;;  %v3855_v3 = vld [vmem:[%s12122_s4 + $0x1d8] sm:$0xff]  ;;  %v3856_v52 = vld [vmem:[%s12122_s4 + $0x1e0] sm:$0xff] }
 0x5af   :  { %6376 = vmatmul.msk.f32.gmra.mxu3 %vm32_vm0, %v3354_v16  ;;  %v3347_v16 = vld [vmem:[#allocation2 + $0x138] sm:$0xff]  ;;  %v3854_v27 = vld [vmem:[%s12122_s4 + $0x1d0] sm:$0xff] }
 0x5b2   :  { %4039 = vperm.xlu2 %6427, %v3831_v26   ;;  %4034 = vperm.xlu1 %6429, %v3830_v8  }
 0x5b3   :  { %4044 = vperm.xlu0 %6428, %v3832_v42   ;;  %v9880_v54 = vpop.f32.mrf.mxu0  ;;  %v3363_v42 = vld [vmem:[#allocation2 + $0x1b8] sm:$0xff] }
 0x5b4   :  { %12323 = vst [vmem:[#allocation10_spill] sm:$0xff] %v9880_v54  ;;  %v3263_v7 = vpop.permute.xlu1 %3262  ;;  %v3362_v37 = vld [vmem:[#allocation2 + $0x1b0] sm:$0xff] }
 0x5b5   :  { %3301 = vst.msk [vmem:[#allocation2 + $0x1c8] sm:$0xff] %vm3003_vm10, %v3263_v7  ;;  %v3261_v29 = vpop.permute.xlu0 %3260  ;;  %v3361_v39 = vld [vmem:[#allocation2 + $0x1a8] sm:$0xff]  ;;  %v3348_v7 = vld [vmem:[#allocation2 + $0x140] sm:$0xff] }
 0x5b6   :  { %3300 = vst.msk [vmem:[#allocation2 + $0x1c0] sm:$0xff] %vm3003_vm10, %v3261_v29  ;;  %6348 = vmatmul.msk.f32.gmra.mxu0 %vm32_vm0, %v3326_v63  ;;  %6362 = vmatmul.msk.f32.gmra.mxu2 %vm32_vm0, %v3340_v23  ;;  %v3857_v29 = vld [vmem:[%s12122_s4 + $0x1e8] sm:$0xff]  ;;  %v10009_v63 = vpop.permute.xlu2 %3864  ;;  %v3859_v23 = vld [vmem:[%s12122_s4 + $0x1f8] sm:$0xff] }
 0x5b7   :  { %6377 = vmatmul.msk.f32.gmra.mxu3 %vm32_vm0, %v3355_v50  ;;  %v3858_v50 = vld [vmem:[%s12122_s4 + $0x1f0] sm:$0xff] }
 0x5ba   :  { %4054 = vperm.xlu2 %6427, %v3834_v5   ;;  %4049 = vperm.xlu1 %6429, %v3833_v9  }
 0x5bb   :  { %4059 = vperm.xlu0 %6428, %v3835_v41   ;;  %v9896_v36 = vpop.f32.mrf.mxu0 }
 0x5bc   :  { %12324 = vst [vmem:[#allocation4_spill] sm:$0xff] %v9896_v36  ;;  %v3269_v38 = vpop.permute.xlu1 %3268 }
 0x5bd   :  { %3304 = vst.msk [vmem:[#allocation2 + $0x1e0] sm:$0xff] %vm3003_vm10, %v3269_v38  ;;  %v3267_v45 = vpop.permute.xlu0 %3266  ;;  %v3364_v41 = vld [vmem:[#allocation2 + $0x1c0] sm:$0xff] }
 0x5be   :  { %3303 = vst.msk [vmem:[#allocation2 + $0x1d8] sm:$0xff] %vm3003_vm10, %v3267_v45  ;;  %6349 = vmatmul.msk.f32.gmra.mxu0 %vm32_vm0, %v3327_v17  ;;  %6363 = vmatmul.msk.f32.gmra.mxu2 %vm32_vm0, %v3341_v44  ;;  %v3861_v45 = vld [vmem:[%s12122_s4 + $0x208] sm:$0xff]  ;;  %v3860_v17 = vld [vmem:[%s12122_s4 + $0x200] sm:$0xff] }
 0x5bf   :  { %6378 = vmatmul.msk.f32.gmra.mxu3 %vm32_vm0, %v3356_v11  ;;  %v3349_v11 = vld [vmem:[#allocation2 + $0x148] sm:$0xff] }
 0x5c2   :  { %4069 = vperm.xlu2 %6427, %v3837_v55   ;;  %4064 = vperm.xlu1 %6429, %v3836_v13   ;;  %v10030_v55 = vpop.permute.xlu2 %3879 }
 0x5c3   :  { %4074 = vperm.xlu0 %6428, %v3838_v35   ;;  %v9912_v51 = vpop.f32.mrf.mxu0 }
 0x5c4   :  { %12325 = vst [vmem:[#allocation8_spill] sm:$0xff] %v9912_v51  ;;  %v3275_v4 = vpop.permute.xlu1 %3274 }
 0x5c5   :  { %3307 = vst.msk [vmem:[#allocation2 + $0x1f8] sm:$0xff] %vm3003_vm10, %v3275_v4  ;;  %v3273_v40 = vpop.permute.xlu0 %3272  ;;  %v3365_v4 = vld [vmem:[#allocation2 + $0x1c8] sm:$0xff] }
 0x5c6   :  { %3306 = vst.msk [vmem:[#allocation2 + $0x1f0] sm:$0xff] %vm3003_vm10, %v3273_v40  ;;  %6350 = vmatmul.msk.f32.gmra.mxu0 %vm32_vm0, %v3328_v60  ;;  %6364 = vmatmul.msk.f32.gmra.mxu2 %vm32_vm0, %v3342_v21  ;;  %vm5321_vm10 = vcmask 450944  }
 0x5c7   :  { %6379 = vmatmul.msk.f32.gmra.mxu3 %vm32_vm0, %v3357_v0  ;;  %v3350_v0 = vld [vmem:[#allocation2 + $0x150] sm:$0xff] }
 0x5ca   :  { %4084 = vperm.xlu2 %6427, %v3840_v48   ;;  %4079 = vperm.xlu1 %6429, %v3839_v46   ;;  %v10044_v48 = vpop.permute.xlu2 %3889  ;;  %v3366_v46 = vld [vmem:[#allocation2 + $0x1d0] sm:$0xff] }
 0x5cb   :  { %4089 = vperm.xlu0 %6428, %v3841_v34   ;;  %v9928_v47 = vpop.f32.mrf.mxu0 }
 0x5cc   :  { %12326 = vst [vmem:[#allocation5_spill] sm:$0xff] %v9928_v47  ;;  %v10018_v38 = vpop.permute.xlu1 %3874 }
 0x5cd   :  { %v10032_v13 = vpop.permute.xlu0 %3869 }
 0x5ce   :  { %6365 = vmatmul.msk.f32.gmra.mxu2 %vm32_vm0, %v3343_v43 }
 0x5cf   :  { %6380 = vmatmul.msk.f32.gmra.mxu3 %vm32_vm0, %v3358_v1 }
 0x5d2   :  { %4099 = vperm.xlu2 %6427, %v3843_v19   ;;  %4094 = vperm.xlu1 %6429, %v3842_v20   ;;  %v4193_v20 = vmul.f32 %v10032_v13, %v9864_v18 }
 0x5d3   :  { %4104 = vperm.xlu0 %6428, %v3844_v30   ;;  %v9941_v31 = vpop.f32.mrf.mxu0  ;;  %v3367_v30 = vld [vmem:[#allocation2 + $0x1d8] sm:$0xff] }
 0x5d4   :  { %12327 = vst [vmem:[#allocation7_spill] sm:$0xff] %v9941_v31  ;;  %v10037_v40 = vpop.permute.xlu1 %3884 }
 0x5d5   :  { %v10046_v34 = vpop.permute.xlu0 %3894 }
 0x5d6   :  { %6366 = vmatmul.msk.f32.gmra.mxu2 %vm32_vm0, %v3344_v2  ;;  %v10059_v2 = vpop.permute.xlu2 %3904 }
 0x5d7   :  { %6381 = vmatmul.msk.f32.gmra.mxu3 %vm32_vm0, %v3359_v61  ;;  %v4192_v61 = vmul.f32 %v10009_v63, %v9847_v12 }
 0x5da   :  { %4114 = vperm.xlu2 %6427, %v3846_v25   ;;  %4109 = vperm.xlu1 %6429, %v3845_v62   ;;  %v4258_v62 = vadd.f32 %v4193_v20, %v4192_v61 }
 0x5db   :  { %4119 = vperm.xlu0 %6428, %v3847_v59   ;;  %v9954_v14 = vpop.f32.mrf.mxu0 }
 0x5dc   :  { %12328 = vst [vmem:[#allocation11_spill] sm:$0xff] %v9954_v14  ;;  %v10049_v1 = vpop.permute.xlu1 %3899 }
 0x5dd   :  { %v10061_v25 = vpop.permute.xlu0 %3909 }
 0x5de   :  { %6367 = vmatmul.msk.f32.gmra.mxu2 %vm32_vm0, %v3345_v15  ;;  %v4194_v15 = vmul.f32 %v10018_v38, %v9880_v54 }
 0x5df   :  { %6382 = vmatmul.msk.f32.gmra.mxu3 %vm32_vm0, %v3360_v24 }
 0x5e1   :  { %v9967_v22 = vpop.f32.mrf.mxu2 }
 0x5e2   :  { %12329 = vst [vmem:[#allocation12_spill] sm:$0xff] %v9967_v22  ;;  %4129 = vperm.xlu2 %6427, %v3849_v10   ;;  %4124 = vperm.xlu1 %6429, %v3848_v33  }
 0x5e3   :  { %4134 = vperm.xlu0 %6428, %v3850_v32   ;;  %v9969_v56 = vpop.f32.mrf.mxu0  ;;  %v4259_v32 = vadd.f32 %v4258_v62, %v4194_v15 }
 0x5e4   :  { %12330 = vst [vmem:[#allocation13_spill] sm:$0xff] %v9969_v56  ;;  %v10070_v10 = vpop.permute.xlu1 %3914 }
 0x5e6   :  { %6368 = vmatmul.msk.f32.gmra.mxu2 %vm32_vm0, %v3346_v28  ;;  %v4196_v28 = vmul.f32 %v10037_v40, %v9912_v51 }
 0x5e7   :  { %6383 = vmatmul.msk.f32.gmra.mxu3 %vm32_vm0, %v3361_v39  ;;  %v4195_v39 = vmul.f32 %v10030_v55, %v9896_v36 }
 0x5e9   :  { %v9982_v57 = vpop.f32.mrf.mxu2 }
 0x5ea   :  { %12331 = vst [vmem:[#allocation14_spill] sm:$0xff] %v9982_v57  ;;  %4144 = vperm.xlu2 %6427, %v3852_v58   ;;  %4139 = vperm.xlu1 %6429, %v3851_v49   ;;  %v3368_v58 = vld [vmem:[#allocation2 + $0x1e0] sm:$0xff]  ;;  %v10079_v49 = vpop.permute.xlu2 %3919 }
 0x5eb   :  { %4149 = vperm.xlu0 %6428, %v3853_v53   ;;  %v9984_v6 = vpop.f32.mrf.mxu0  ;;  %v4260_v53 = vadd.f32 %v4259_v32, %v4195_v39  ;;  %v3370_v32 = vld [vmem:[#allocation2 + $0x1f0] sm:$0xff] }
 0x5ec   :  { %12332 = vst [vmem:[#allocation15_spill] sm:$0xff] %v9984_v6  ;;  %v4201_v61 = vmul.f32 %v10061_v25, %v9984_v6 }
 0x5ee   :  { %6369 = vmatmul.msk.f32.gmra.mxu2 %vm32_vm0, %v3347_v16 }
 0x5ef   :  { %6384 = vmatmul.msk.f32.gmra.mxu3 %vm32_vm0, %v3362_v37  ;;  %v10081_v37 = vpop.permute.xlu0 %3924 }
 0x5f0   :  { %12346 = vst [vmem:[#allocation29_spill] sm:$0xff] %v10081_v37 }
 0x5f1   :  { %v9997_v26 = vpop.f32.mrf.mxu2 }
 0x5f2   :  { %12333 = vst [vmem:[#allocation16_spill] sm:$0xff] %v9997_v26  ;;  %4159 = vperm.xlu2 %6427, %v3855_v3   ;;  %4154 = vperm.xlu1 %6429, %v3854_v27   ;;  %v4261_v3 = vadd.f32 %v4260_v53, %v4196_v28 }
 0x5f3   :  { %4164 = vperm.xlu0 %6428, %v3856_v52   ;;  %v9999_v8 = vpop.f32.mrf.mxu0 }
 0x5f4   :  { %12334 = vst [vmem:[#allocation17_spill] sm:$0xff] %v9999_v8  ;;  %v4202_v15 = vmul.f32 %v10070_v10, %v9999_v8 }
 0x5f6   :  { %6370 = vmatmul.msk.f32.gmra.mxu2 %vm32_vm0, %v3348_v7  ;;  %v10091_v7 = vpop.permute.xlu1 %3929 }
 0x5f7   :  { %6385 = vmatmul.msk.f32.gmra.mxu3 %vm32_vm0, %v3363_v42  ;;  %v4197_v42 = vmul.f32 %v10044_v48, %v9928_v47  ;;  %12348 = vst [vmem:[#allocation31_spill] sm:$0xff] %v10091_v7 }
 0x5f9   :  { %v10014_v5 = vpop.f32.mrf.mxu2 }
 0x5fa   :  { %12335 = vst [vmem:[#allocation18_spill] sm:$0xff] %v10014_v5  ;;  %4174 = vperm.xlu2 %6427, %v3858_v50   ;;  %4169 = vperm.xlu1 %6429, %v3857_v29   ;;  %v4262_v50 = vadd.f32 %v4261_v3, %v4197_v42  ;;  %v3369_v29 = vld [vmem:[#allocation2 + $0x1e8] sm:$0xff] }
 0x5fb   :  { %4179 = vperm.xlu0 %6428, %v3859_v23   ;;  %v10016_v9 = vpop.f32.mrf.mxu0  ;;  %v4198_v23 = vmul.f32 %v10046_v34, %v9941_v31 }
 0x5fc   :  { %12336 = vst [vmem:[#allocation19_spill] sm:$0xff] %v10016_v9 }
 0x5fe   :  { %6371 = vmatmul.msk.f32.gmra.mxu2 %vm32_vm0, %v3349_v11  ;;  %v10114_v39 = vpop.permute.xlu1 %3944 }
 0x5ff   :  { %6386 = vmatmul.msk.f32.gmra.mxu3 %vm32_vm0, %v3364_v41  ;;  %v4199_v41 = vmul.f32 %v10049_v1, %v9954_v14  ;;  %12353 = vst [vmem:[#allocation36_spill] sm:$0xff] %v10114_v39 }
 0x600   :  { %v10064_v59 = vpop.f32.mrf.mxu3 }
 0x601   :  { %v10028_v44 = vpop.f32.mrf.mxu2  ;;  %12343 = vst [vmem:[#allocation26_spill] sm:$0xff] %v10064_v59 }
 0x602   :  { %12337 = vst [vmem:[#allocation20_spill] sm:$0xff] %v10028_v44  ;;  %4189 = vperm.xlu2 %6427, %v3861_v45   ;;  %4184 = vperm.xlu1 %6429, %v3860_v17   ;;  %v10100_v45 = vpop.permute.xlu2 %3934  ;;  %v4263_v17 = vadd.f32 %v4262_v50, %v4198_v23 }
 0x603   :  { %v10034_v35 = vpop.f32.mrf.mxu0  ;;  %12350 = vst [vmem:[#allocation33_spill] sm:$0xff] %v10100_v45 }
 0x604   :  { %12338 = vst [vmem:[#allocation21_spill] sm:$0xff] %v10034_v35  ;;  %v4204_v42 = vmul.f32 %v10081_v37, %v10034_v35 }
 0x606   :  { %6372 = vmatmul.msk.f32.gmra.mxu2 %vm32_vm0, %v3350_v0 }
 0x607   :  { %6387 = vmatmul.msk.f32.gmra.mxu3 %vm32_vm0, %v3365_v4  ;;  %v4200_v4 = vmul.f32 %v10059_v2, %v9969_v56 }
 0x609   :  { %v10040_v60 = vpop.f32.mrf.mxu2 }
 0x60a   :  { %12339 = vst [vmem:[#allocation22_spill] sm:$0xff] %v10040_v60  ;;  %v10127_v23 = vpop.permute.xlu2 %3949 }
 0x60b   :  { %v10042_v21 = vpop.f32.mrf.mxu0  ;;  %12356 = vst [vmem:[#allocation39_spill] sm:$0xff] %v10127_v23 }
 0x60c   :  { %12340 = vst [vmem:[#allocation23_spill] sm:$0xff] %v10042_v21 }
 0x60f   :  { %6388 = vmatmul.msk.f32.gmra.mxu3 %vm32_vm0, %v3366_v46  ;;  %v10106_v46 = vpop.permute.xlu0 %3939 }
 0x610   :  { %12351 = vst [vmem:[#allocation34_spill] sm:$0xff] %v10106_v46 }
 0x611   :  { %v10051_v43 = vpop.f32.mrf.mxu2 }
 0x612   :  { %12341 = vst [vmem:[#allocation24_spill] sm:$0xff] %v10051_v43 }
 0x613   :  { %v10053_v19 = vpop.f32.mrf.mxu0 }
 0x614   :  { %12342 = vst [vmem:[#allocation25_spill] sm:$0xff] %v10053_v19 }
 0x617   :  { %6389 = vmatmul.msk.f32.gmra.mxu3 %vm32_vm0, %v3367_v30  ;;  %v4264_v30 = vadd.f32 %v4263_v17, %v4199_v41  ;;  %v4205_v17 = vmul.f32 %v10091_v7, %v10042_v21 }
 0x619   :  { %v10066_v24 = vpop.f32.mrf.mxu2  ;;  %v4265_v62 = vadd.f32 %v4264_v30, %v4200_v4  ;;  %v10131_v4 = vpop.permute.xlu0 %3954 }
 0x61a   :  { %12344 = vst [vmem:[#allocation27_spill] sm:$0xff] %v10066_v24 }
 0x61b   :  { %v10072_v33 = vpop.f32.mrf.mxu0  ;;  %v4266_v28 = vadd.f32 %v4265_v62, %v4201_v61  ;;  %12357 = vst [vmem:[#allocation40_spill] sm:$0xff] %v10131_v4  ;;  %v4206_v61 = vmul.f32 %v10100_v45, %v10053_v19  ;;  %v3371_v62 = vld [vmem:[#allocation2 + $0x1f8] sm:$0xff] }
 0x61c   :  { %12345 = vst [vmem:[#allocation28_spill] sm:$0xff] %v10072_v33 }
 0x61d   :  { %v4267_v3 = vadd.f32 %v4266_v28, %v4202_v15  ;;  %v10138_v28 = vpop.permute.xlu1 %3959 }
 0x61e   :  { %12358 = vst [vmem:[#allocation41_spill] sm:$0xff] %v10138_v28 }
 0x61f   :  { %6390 = vmatmul.msk.f32.gmra.mxu3 %vm32_vm0, %v3368_v58  ;;  %v4203_v58 = vmul.f32 %v10079_v49, %v10016_v9 }
 0x621   :  { %v10083_v16 = vpop.f32.mrf.mxu2  ;;  %v4268_v41 = vadd.f32 %v4267_v3, %v4203_v58 }
 0x622   :  { %12347 = vst [vmem:[#allocation30_spill] sm:$0xff] %v10083_v16  ;;  %v10085_v27 = vpop.f32.mrf.mxu3 }
 0x623   :  { %v10087_v52 = vpop.f32.mrf.mxu0  ;;  %v4269_v30 = vadd.f32 %v4268_v41, %v4204_v42 }
 0x624   :  { %v4208_v3 = vmul.f32 %v10114_v39, %v10087_v52 }
 0x625   :  { %v4270_v15 = vadd.f32 %v4269_v30, %v4205_v17  ;;  %v3372_v17 = vld [vmem:[#allocation2 + $0x200] sm:$0xff]  ;;  %v10150_v30 = vpop.permute.xlu2 %3964 }
 0x626   :  { %12362 = vst [vmem:[#allocation45_spill] sm:$0xff] %v10150_v30 }
 0x627   :  { %6391 = vmatmul.msk.f32.gmra.mxu3 %vm32_vm0, %v3369_v29  ;;  %v4271_v58 = vadd.f32 %v4270_v15, %v4206_v61 }
 0x629   :  { %v10098_v11 = vpop.f32.mrf.mxu2 }
 0x62a   :  { %12349 = vst [vmem:[#allocation32_spill] sm:$0xff] %v10098_v11  ;;  %v10104_v0 = vpop.f32.mrf.mxu3 }
 0x62b   :  { %v10108_v20 = vpop.f32.mrf.mxu0 }
 0x62c   :  { %12352 = vst [vmem:[#allocation35_spill] sm:$0xff] %v10108_v20 }
 0x62f   :  { %6392 = vmatmul.msk.f32.gmra.mxu3 %vm32_vm0, %v3370_v32  ;;  %v4207_v32 = vmul.f32 %v10106_v46, %v10072_v33  ;;  %v10154_v33 = vpop.permute.xlu0 %3969 }
 0x630   :  { %12363 = vst [vmem:[#allocation46_spill] sm:$0xff] %v10154_v33 }
 0x631   :  { %v10119_v53 = vpop.f32.mrf.mxu2  ;;  %v4272_v41 = vadd.f32 %v4271_v58, %v4207_v32 }
 0x632   :  { %12354 = vst [vmem:[#allocation37_spill] sm:$0xff] %v10119_v53  ;;  %v10123_v50 = vpop.f32.mrf.mxu3 }
 0x633   :  { %12355 = vst [vmem:[#allocation38_spill] sm:$0xff] %v10123_v50  ;;  %v10125_v29 = vpop.f32.mrf.mxu0  ;;  %v4273_v46 = vadd.f32 %v4272_v41, %v4208_v3 }
 0x634   :  { %v4210_v45 = vmul.f32 %v10131_v4, %v10125_v29  ;;  %v3373_v4 = vld [vmem:[#allocation2 + $0x208] sm:$0xff] }
 0x637   :  { %6393 = vmatmul.msk.f32.gmra.mxu3 %vm32_vm0, %v3371_v62  ;;  %v4209_v62 = vmul.f32 %v10127_v23, %v10108_v20  ;;  %v10163_v23 = vpop.permute.xlu1 %3974 }
 0x638   :  { %12365 = vst [vmem:[#allocation48_spill] sm:$0xff] %v10163_v23 }
 0x639   :  { %v10140_v37 = vpop.f32.mrf.mxu2  ;;  %v4274_v61 = vadd.f32 %v4273_v46, %v4209_v62  ;;  %v4213_v46 = vmul.f32 %v10154_v33, %v9967_v22 }
 0x63a   :  { %12359 = vst [vmem:[#allocation42_spill] sm:$0xff] %v10140_v37  ;;  %v10144_v7 = vpop.f32.mrf.mxu3 }
 0x63b   :  { %12360 = vst [vmem:[#allocation43_spill] sm:$0xff] %v10144_v7  ;;  %v10146_v42 = vpop.f32.mrf.mxu0  ;;  %v4275_v32 = vadd.f32 %v4274_v61, %v4210_v45  ;;  %v4214_v45 = vmul.f32 %v10163_v23, %v9982_v57 }
 0x63c   :  { %12361 = vst [vmem:[#allocation44_spill] sm:$0xff] %v10146_v42  ;;  %v4211_v15 = vmul.f32 %v10138_v28, %v10146_v42  ;;  %v10176_v28 = vpop.permute.xlu0 %3984 }
 0x63d   :  { %12368 = vst [vmem:[#allocation51_spill] sm:$0xff] %v10176_v28 }
 0x63e   :  { %v4276_v3 = vadd.f32 %v4275_v32, %v4211_v15 }
 0x63f   :  { %6394 = vmatmul.msk.f32.gmra.mxu3 %vm32_vm0, %v3372_v17  ;;  %v10172_v17 = vpop.permute.xlu2 %3979 }
 0x640   :  { %12367 = vst [vmem:[#allocation50_spill] sm:$0xff] %v10172_v17  ;;  %v4215_v15 = vmul.f32 %v10172_v17, %v9997_v26 }
 0x641   :  { %v10159_v39 = vpop.f32.mrf.mxu2 }
 0x642   :  { %12364 = vst [vmem:[#allocation47_spill] sm:$0xff] %v10159_v39  ;;  %v10161_v58 = vpop.f32.mrf.mxu3 }
 0x643   :  { %v10165_v20 = vpop.f32.mrf.mxu0 }
 0x644   :  { %12366 = vst [vmem:[#allocation49_spill] sm:$0xff] %v10165_v20  ;;  %v4212_v41 = vmul.f32 %v10150_v30, %v10165_v20  ;;  %v10198_v17 = vpop.permute.xlu0 %3999 }
 0x645   :  { %12373 = vst [vmem:[#allocation56_spill] sm:$0xff] %v10198_v17 }
 0x646   :  { %v4277_v62 = vadd.f32 %v4276_v3, %v4212_v41  ;;  %v4216_v3 = vmul.f32 %v10176_v28, %v10014_v5  ;;  %v10186_v41 = vpop.permute.xlu1 %3989 }
 0x647   :  { %6395 = vmatmul.msk.f32.gmra.mxu3 %vm32_vm0, %v3373_v4  ;;  %12370 = vst [vmem:[#allocation53_spill] sm:$0xff] %v10186_v41  ;;  %v10194_v22 = vpop.permute.xlu2 %3994  ;;  %vm5001_vm0 = vcmask 195712  }
 0x648   :  { %v4278_v61 = vadd.f32 %v4277_v62, %v4213_v46  ;;  %v4217_v46 = vmul.f32 %v10186_v41, %v10028_v44  ;;  %12372 = vst [vmem:[#allocation55_spill] sm:$0xff] %v10194_v22 }
 0x649   :  { %v10178_v42 = vpop.f32.mrf.mxu2 }
 0x64a   :  { %12369 = vst [vmem:[#allocation52_spill] sm:$0xff] %v10178_v42  ;;  %v4279_v32 = vadd.f32 %v4278_v61, %v4214_v45  ;;  %v10182_v30 = vpop.f32.mrf.mxu3  ;;  %v4218_v45 = vmul.f32 %v10194_v22, %v10040_v60 }
 0x64c   :  { %v4280_v4 = vadd.f32 %v4279_v32, %v4215_v15  ;;  %v4219_v15 = vmul.f32 %v10198_v17, %v10051_v43 }
 0x64e   :  { %v4281_v33 = vadd.f32 %v4280_v4, %v4216_v3  ;;  %v10202_v32 = vpop.permute.xlu1 %4004 }
 0x64f   :  { %12374 = vst [vmem:[#allocation57_spill] sm:$0xff] %v10202_v32 }
 0x650   :  { %v4282_v23 = vadd.f32 %v4281_v33, %v4217_v46  ;;  %v4220_v33 = vmul.f32 %v10202_v32, %v10066_v24  ;;  %v10210_v46 = vpop.permute.xlu2 %4009 }
 0x651   :  { %v10190_v62 = vpop.f32.mrf.mxu2  ;;  %12376 = vst [vmem:[#allocation59_spill] sm:$0xff] %v10210_v46 }
 0x652   :  { %12371 = vst [vmem:[#allocation54_spill] sm:$0xff] %v10190_v62  ;;  %v10192_v57 = vpop.f32.mrf.mxu3  ;;  %v4283_v61 = vadd.f32 %v4282_v23, %v4218_v45  ;;  %v4221_v23 = vmul.f32 %v10210_v46, %v10083_v16  ;;  %v10214_v45 = vpop.permute.xlu0 %4014 }
 0x653   :  { %12377 = vst [vmem:[#allocation60_spill] sm:$0xff] %v10214_v45 }
 0x654   :  { %v4284_v4 = vadd.f32 %v4283_v61, %v4219_v15  ;;  %v4222_v61 = vmul.f32 %v10214_v45, %v10098_v11 }
 0x656   :  { %v4285_v28 = vadd.f32 %v4284_v4, %v4220_v33  ;;  %v10220_v60 = vpop.permute.xlu1 %4019 }
 0x657   :  { %12379 = vst [vmem:[#allocation62_spill] sm:$0xff] %v10220_v60  ;;  %v4223_v4 = vmul.f32 %v10220_v60, %v10119_v53 }
 0x658   :  { %v4286_v17 = vadd.f32 %v4285_v28, %v4221_v23  ;;  %v10224_v32 = vpop.permute.xlu2 %4024 }
 0x659   :  { %v10204_v3 = vpop.f32.mrf.mxu2  ;;  %12380 = vst [vmem:[#allocation63_spill] sm:$0xff] %v10224_v32  ;;  %v4224_v28 = vmul.f32 %v10224_v32, %v10140_v37 }
 0x65a   :  { %12375 = vst [vmem:[#allocation58_spill] sm:$0xff] %v10204_v3  ;;  %v10206_v41 = vpop.f32.mrf.mxu3  ;;  %v4287_v15 = vadd.f32 %v4286_v17, %v4222_v61  ;;  %v10232_v24 = vpop.permute.xlu0 %4029 }
 0x65b   :  { %12383 = vst [vmem:[#allocation66_spill] sm:$0xff] %v10232_v24  ;;  %v4225_v17 = vmul.f32 %v10232_v24, %v10159_v39 }
 0x65c   :  { %v4288_v46 = vadd.f32 %v4287_v15, %v4223_v4 }
 0x65e   :  { %v10236_v23 = vpop.permute.xlu1 %4034  ;;  %v4289_v44 = vadd.f32 %v4288_v46, %v4224_v28 }
 0x65f   :  { %12384 = vst [vmem:[#allocation67_spill] sm:$0xff] %v10236_v23  ;;  %v4226_v15 = vmul.f32 %v10236_v23, %v10178_v42 }
 0x660   :  { %v10240_v61 = vpop.permute.xlu2 %4039  ;;  %v4290_v60 = vadd.f32 %v4289_v44, %v4225_v17 }
 0x661   :  { %v10216_v22 = vpop.f32.mrf.mxu2  ;;  %12385 = vst [vmem:[#allocation68_spill] sm:$0xff] %v10240_v61  ;;  %v4227_v46 = vmul.f32 %v10240_v61, %v10190_v62 }
 0x662   :  { %12378 = vst [vmem:[#allocation61_spill] sm:$0xff] %v10216_v22  ;;  %v10218_v43 = vpop.f32.mrf.mxu3  ;;  %v10248_v4 = vpop.permute.xlu0 %4044  ;;  %v4291_v11 = vadd.f32 %v4290_v60, %v4226_v15 }
 0x663   :  { %12387 = vst [vmem:[#allocation70_spill] sm:$0xff] %v10248_v4  ;;  %v4228_v44 = vmul.f32 %v10248_v4, %v10204_v3 }
 0x664   :  { %v4292_v24 = vadd.f32 %v4291_v11, %v4227_v46 }
 0x666   :  { %v10250_v32 = vpop.permute.xlu1 %4049  ;;  %v4293_v17 = vadd.f32 %v4292_v24, %v4228_v44 }
 0x667   :  { %12388 = vst [vmem:[#allocation71_spill] sm:$0xff] %v10250_v32  ;;  %v4229_v60 = vmul.f32 %v10250_v32, %v10216_v22 }
 0x668   :  { %v10258_v37 = vpop.permute.xlu2 %4054 }
 0x669   :  { %v10228_v33 = vpop.f32.mrf.mxu2  ;;  %12389 = vst [vmem:[#allocation72_spill] sm:$0xff] %v10258_v37  ;;  %v4294_v11 = vadd.f32 %v4293_v17, %v4229_v60 }
 0x66a   :  { %12381 = vst [vmem:[#allocation64_spill] sm:$0xff] %v10228_v33  ;;  %v10230_v16 = vpop.f32.mrf.mxu3  ;;  %v10262_v23 = vpop.permute.xlu0 %4059  ;;  %v4230_v15 = vmul.f32 %v10258_v37, %v10228_v33 }
 0x66b   :  { %12382 = vst [vmem:[#allocation65_spill] sm:$0xff] %v10230_v16 }
 0x66c   :  { %12390 = vst [vmem:[#allocation73_spill] sm:$0xff] %v10262_v23  ;;  %v4295_v4 = vadd.f32 %v4294_v11, %v4230_v15 }
 0x66e   :  { %v10268_v61 = vpop.permute.xlu1 %4064 }
 0x66f   :  { %12391 = vst [vmem:[#allocation74_spill] sm:$0xff] %v10268_v61 }
 0x670   :  { %v10278_v44 = vpop.permute.xlu2 %4069 }
 0x671   :  { %v10242_v45 = vpop.f32.mrf.mxu2  ;;  %12393 = vst [vmem:[#allocation76_spill] sm:$0xff] %v10278_v44 }
 0x672   :  { %v10244_v53 = vpop.f32.mrf.mxu3  ;;  %v4231_v46 = vmul.f32 %v10262_v23, %v10242_v45  ;;  %v10282_v22 = vpop.permute.xlu0 %4074 }
 0x673   :  { %12386 = vst [vmem:[#allocation69_spill] sm:$0xff] %v10244_v53 }
 0x674   :  { %v4296_v32 = vadd.f32 %v4295_v4, %v4231_v46  ;;  %12394 = vst [vmem:[#allocation77_spill] sm:$0xff] %v10282_v22 }
 0x676   :  { %v10288_v23 = vpop.permute.xlu1 %4079 }
 0x677   :  { %12395 = vst [vmem:[#allocation78_spill] sm:$0xff] %v10288_v23  ;;  %v4235_v4 = vmul.f32 %v10288_v23, %v10064_v59 }
 0x678   :  { %v10294_v46 = vpop.permute.xlu2 %4084 }
 0x679   :  { %v10254_v28 = vpop.f32.mrf.mxu2  ;;  %12397 = vst [vmem:[#allocation80_spill] sm:$0xff] %v10294_v46 }
 0x67a   :  { %v10256_v39 = vpop.f32.mrf.mxu3  ;;  %v4232_v24 = vmul.f32 %v10268_v61, %v10254_v28 }
 0x67c   :  { %v4297_v33 = vadd.f32 %v4296_v32, %v4232_v24  ;;  %v4236_v32 = vmul.f32 %v10294_v46, %v10085_v27  ;;  %v10298_v24 = vpop.permute.xlu0 %4089 }
 0x67d   :  { %12398 = vst [vmem:[#allocation81_spill] sm:$0xff] %v10298_v24 }
 0x67e   :  { %v10304_v61 = vpop.permute.xlu1 %4094 }
 0x67f   :  { %12400 = vst [vmem:[#allocation83_spill] sm:$0xff] %v10304_v61 }
 0x680   :  { %v10308_v59 = vpop.permute.xlu2 %4099 }
 0x681   :  { %v10270_v62 = vpop.f32.mrf.mxu2  ;;  %12401 = vst [vmem:[#allocation84_spill] sm:$0xff] %v10308_v59 }
 0x682   :  { %v10274_v42 = vpop.f32.mrf.mxu3  ;;  %v4233_v37 = vmul.f32 %v10278_v44, %v10270_v62 }
 0x683   :  { %12392 = vst [vmem:[#allocation75_spill] sm:$0xff] %v10274_v42 }
 0x684   :  { %v4298_v17 = vadd.f32 %v4297_v33, %v4233_v37 }
 0x686   :  { %v10318_v46 = vpop.permute.xlu1 %4109 }
 0x687   :  { %12404 = vst [vmem:[#allocation87_spill] sm:$0xff] %v10318_v46 }
 0x689   :  { %v10284_v3 = vpop.f32.mrf.mxu2 }
 0x68a   :  { %v4234_v60 = vmul.f32 %v10282_v22, %v10284_v3  ;;  %v10290_v15 = vpop.f32.mrf.mxu3  ;;  %v4237_v22 = vmul.f32 %v10298_v24, %v10104_v0 }
 0x68b   :  { %12396 = vst [vmem:[#allocation79_spill] sm:$0xff] %v10290_v15 }
 0x68c   :  { %v4299_v11 = vadd.f32 %v4298_v17, %v4234_v60  ;;  %v4238_v60 = vmul.f32 %v10304_v61, %v10123_v50 }
 0x68e   :  { %v4300_v44 = vadd.f32 %v4299_v11, %v4235_v4  ;;  %v4239_v11 = vmul.f32 %v10308_v59, %v10144_v7  ;;  %v10312_v4 = vpop.permute.xlu0 %4104 }
 0x68f   :  { %12402 = vst [vmem:[#allocation85_spill] sm:$0xff] %v10312_v4  ;;  %v4240_v24 = vmul.f32 %v10312_v4, %v10161_v58  ;;  %v10332_v4 = vpop.permute.xlu1 %4124 }
 0x690   :  { %v4301_v37 = vadd.f32 %v4300_v44, %v4236_v32  ;;  %12408 = vst [vmem:[#allocation91_spill] sm:$0xff] %v10332_v4 }
 0x692   :  { %v10300_v33 = vpop.f32.mrf.mxu3  ;;  %v4302_v17 = vadd.f32 %v4301_v37, %v4237_v22  ;;  %v4241_v37 = vmul.f32 %v10318_v46, %v10182_v30 }
 0x693   :  { %12399 = vst [vmem:[#allocation82_spill] sm:$0xff] %v10300_v33 }
 0x694   :  { %v4303_v23 = vadd.f32 %v4302_v17, %v4238_v60  ;;  %v10322_v60 = vpop.permute.xlu2 %4114 }
 0x695   :  { %12405 = vst [vmem:[#allocation88_spill] sm:$0xff] %v10322_v60  ;;  %v4242_v59 = vmul.f32 %v10322_v60, %v10192_v57 }
 0x696   :  { %v4304_v32 = vadd.f32 %v4303_v23, %v4239_v11  ;;  %v10328_v50 = vpop.permute.xlu0 %4119 }
 0x697   :  { %12407 = vst [vmem:[#allocation90_spill] sm:$0xff] %v10328_v50  ;;  %v4243_v23 = vmul.f32 %v10328_v50, %v10206_v41 }
 0x698   :  { %v4305_v22 = vadd.f32 %v4304_v32, %v4240_v24  ;;  %v4244_v24 = vmul.f32 %v10332_v4, %v10218_v43 }
 0x69a   :  { %v10314_v44 = vpop.f32.mrf.mxu3  ;;  %v4306_v17 = vadd.f32 %v4305_v22, %v4241_v37 }
 0x69b   :  { %12403 = vst [vmem:[#allocation86_spill] sm:$0xff] %v10314_v44 }
 0x69c   :  { %v4307_v7 = vadd.f32 %v4306_v17, %v4242_v59  ;;  %v10338_v37 = vpop.permute.xlu2 %4129 }
 0x69d   :  { %12410 = vst [vmem:[#allocation93_spill] sm:$0xff] %v10338_v37  ;;  %v4245_v60 = vmul.f32 %v10338_v37, %v10230_v16 }
 0x69e   :  { %v4308_v11 = vadd.f32 %v4307_v7, %v4243_v23  ;;  %v10342_v17 = vpop.permute.xlu0 %4134  ;;  %v10346_v23 = vpop.permute.xlu1 %4139 }
 0x69f   :  { %12411 = vst [vmem:[#allocation94_spill] sm:$0xff] %v10342_v17  ;;  %v4246_v50 = vmul.f32 %v10342_v17, %v10244_v53  ;;  %v4247_v4 = vmul.f32 %v10346_v23, %v10256_v39 }
 0x6a0   :  { %v4309_v22 = vadd.f32 %v4308_v11, %v4244_v24  ;;  %12412 = vst [vmem:[#allocation95_spill] sm:$0xff] %v10346_v23 }
 0x6a2   :  { %v10324_v61 = vpop.f32.mrf.mxu3  ;;  %v4310_v59 = vadd.f32 %v4309_v22, %v4245_v60 }
 0x6a3   :  { %12406 = vst [vmem:[#allocation89_spill] sm:$0xff] %v10324_v61 }
 0x6a4   :  { %v4311_v7 = vadd.f32 %v4310_v59, %v4246_v50  ;;  %v10352_v11 = vpop.permute.xlu2 %4144 }
 0x6a5   :  { %12414 = vst [vmem:[#allocation97_spill] sm:$0xff] %v10352_v11  ;;  %v4248_v37 = vmul.f32 %v10352_v11, %v10274_v42 }
 0x6a6   :  { %v4312_v24 = vadd.f32 %v4311_v7, %v4247_v4  ;;  %v10356_v22 = vpop.permute.xlu0 %4149  ;;  %v10360_v50 = vpop.permute.xlu1 %4154 }
 0x6a7   :  { %12415 = vst [vmem:[#allocation98_spill] sm:$0xff] %v10356_v22  ;;  %v4249_v17 = vmul.f32 %v10356_v22, %v10290_v15  ;;  %v4250_v23 = vmul.f32 %v10360_v50, %v10300_v33 }
 0x6a8   :  { %v4313_v60 = vadd.f32 %v4312_v24, %v4248_v37  ;;  %12416 = vst [vmem:[#allocation99_spill] sm:$0xff] %v10360_v50 }
 0x6aa   :  { %v10336_v32 = vpop.f32.mrf.mxu3  ;;  %v4314_v53 = vadd.f32 %v4313_v60, %v4249_v17 }
 0x6ab   :  { %12409 = vst [vmem:[#allocation92_spill] sm:$0xff] %v10336_v32 }
 0x6ac   :  { %v10364_v16 = vpop.permute.xlu2 %4159  ;;  %v4315_v4 = vadd.f32 %v4314_v53, %v4250_v23 }
 0x6ad   :  { %12418 = vst [vmem:[#allocation101_spill] sm:$0xff] %v10364_v16  ;;  %v4251_v7 = vmul.f32 %v10364_v16, %v10314_v44 }
 0x6ae   :  { %v10370_v37 = vpop.permute.xlu0 %4164  ;;  %v10372_v11 = vpop.permute.xlu1 %4169 }
 0x6af   :  { %12419 = vst [vmem:[#allocation102_spill] sm:$0xff] %v10370_v37  ;;  %v4316_v24 = vadd.f32 %v4315_v4, %v4251_v7  ;;  %v4252_v15 = vmul.f32 %v10370_v37, %v10324_v61  ;;  %v4253_v50 = vmul.f32 %v10372_v11, %v10336_v32 }
 0x6b0   :  { %12420 = vst [vmem:[#allocation103_spill] sm:$0xff] %v10372_v11 }
 0x6b1   :  { %v4317_v60 = vadd.f32 %v4316_v24, %v4252_v15 }
 0x6b2   :  { %v10348_v46 = vpop.f32.mrf.mxu3 }
 0x6b3   :  { %12413 = vst [vmem:[#allocation96_spill] sm:$0xff] %v10348_v46  ;;  %v4318_v53 = vadd.f32 %v4317_v60, %v4253_v50 }
 0x6b4   :  { %v10378_v17 = vpop.permute.xlu2 %4174 }
 0x6b5   :  { %12422 = vst [vmem:[#allocation105_spill] sm:$0xff] %v10378_v17  ;;  %v4254_v23 = vmul.f32 %v10378_v17, %v10348_v46 }
 0x6b6   :  { %v10384_v16 = vpop.permute.xlu0 %4179  ;;  %v10388_v7 = vpop.permute.xlu1 %4184 }
 0x6b7   :  { %12423 = vst [vmem:[#allocation106_spill] sm:$0xff] %v10384_v16  ;;  %v4319_v37 = vadd.f32 %v4318_v53, %v4254_v23 }
 0x6ba   :  { %v10362_v59 = vpop.f32.mrf.mxu3 }
 0x6bb   :  { %12417 = vst [vmem:[#allocation100_spill] sm:$0xff] %v10362_v59  ;;  %v4255_v4 = vmul.f32 %v10384_v16, %v10362_v59 }
 0x6bc   :  { %v10394_v24 = vpop.permute.xlu2 %4189 }
 0x6bd   :  { %v4320_v11 = vadd.f32 %v4319_v37, %v4255_v4 }
 0x6c2   :  { %v10374_v22 = vpop.f32.mrf.mxu3 }
 0x6c3   :  { %12421 = vst [vmem:[#allocation104_spill] sm:$0xff] %v10374_v22  ;;  %v4256_v15 = vmul.f32 %v10388_v7, %v10374_v22 }
 0x6c5   :  { %v4321_v60 = vadd.f32 %v4320_v11, %v4256_v15 }
 0x6ca   :  { %v10390_v44 = vpop.f32.mrf.mxu3 }
 0x6cb   :  { %v4257_v50 = vmul.f32 %v10394_v24, %v10390_v44 }
 0x6cd   :  { %v4322_v17 = vadd.f32 %v4321_v60, %v4257_v50 }
 0x6cf   :  { %v4323_v46 = vrot.slane %v4322_v17, 4 }
 0x6d1   :  { %v4324_v32 = vadd.f32 %v4323_v46, %v4322_v17 }
 0x6d3   :  { %v4325_v61 = vrot.slane %v4324_v32, 2 }
 0x6d5   :  { %v4326_v16 = vadd.f32 %v4325_v61, %v4324_v32 }
 0x6d7   :  { %v4327_v59 = vrot.slane %v4326_v16, 1 }
 0x6d9   :  { %v4328_v33 = vadd.f32 %v4327_v59, %v4326_v16 }
 0x6db   :  { %v10398_v42 = vmul.f32 0.0025510204, %v4328_v33 }
 0x6dd   :  { %v4330_v53 = vsub.f32 %v9847_v12, %v10398_v42  ;;  %v4331_v23 = vsub.f32 %v9864_v18, %v10398_v42  ;;  %v4332_v37 = vsub.f32 %v9880_v54, %v10398_v42  ;;  %v4333_v61 = vsub.f32 %v9896_v36, %v10398_v42 }
 0x6de   :  { %v4334_v16 = vsub.f32 %v9912_v51, %v10398_v42  ;;  %v4335_v59 = vsub.f32 %v9928_v47, %v10398_v42  ;;  %v4337_v60 = vsub.f32 %v9954_v14, %v10398_v42 }
 0x6df   :  { %v4396_v11 = vmul.f32 %v4330_v53, %v10009_v63  ;;  %v4397_v4 = vmul.f32 %v4331_v23, %v10032_v13  ;;  %v4398_v46 = vmul.f32 %v4332_v37, %v10018_v38  ;;  %v4399_v17 = vmul.f32 %v4333_v61, %v10030_v55 }
 0x6e0   :  { %v4336_v63 = vsub.f32 %v9941_v31, %v10398_v42  ;;  %v4400_v13 = vmul.f32 %v4334_v16, %v10037_v40  ;;  %v4401_v53 = vmul.f32 %v4335_v59, %v10044_v48  ;;  %v4338_v37 = vsub.f32 %v9969_v56, %v10398_v42 }
 0x6e1   :  { %v4462_v33 = vmul.f32 %v4396_v11, %v4396_v11  ;;  %v4463_v32 = vmul.f32 %v4397_v4, %v4397_v4  ;;  %v4464_v15 = vmul.f32 %v4398_v46, %v4398_v46  ;;  %v4465_v38 = vmul.f32 %v4399_v17, %v4399_v17 }
 0x6e2   :  { %v4402_v11 = vmul.f32 %v4336_v63, %v10046_v34  ;;  %v4466_v55 = vmul.f32 %v4400_v13, %v4400_v13  ;;  %v4339_v61 = vsub.f32 %v9984_v6, %v10398_v42  ;;  %v4403_v40 = vmul.f32 %v4337_v60, %v10049_v1 }
 0x6e3   :  { %v4528_v50 = vadd.f32 %v4463_v32, %v4462_v33  ;;  %v4467_v16 = vmul.f32 %v4401_v53, %v4401_v53  ;;  %v4340_v33 = vsub.f32 %v9999_v8, %v10398_v42  ;;  %v4404_v48 = vmul.f32 %v4338_v37, %v10059_v2 }
 0x6e4   :  { %v4468_v32 = vmul.f32 %v4402_v11, %v4402_v11  ;;  %v4341_v17 = vsub.f32 %v10016_v9, %v10398_v42  ;;  %v4405_v34 = vmul.f32 %v4339_v61, %v10061_v25  ;;  %v4469_v63 = vmul.f32 %v4403_v40, %v4403_v40  ;;  %v12424_v25 = vld [vmem:[#allocation29_spill] sm:$0xff]  ;;  %v12425_v61 = vld [vmem:[#allocation28_spill] sm:$0xff] }
 0x6e5   :  { %v4529_v23 = vadd.f32 %v4528_v50, %v4464_v15  ;;  %v4342_v15 = vsub.f32 %v10034_v35, %v10398_v42  ;;  %v4406_v1 = vmul.f32 %v4340_v33, %v10070_v10  ;;  %v4470_v50 = vmul.f32 %v4404_v48, %v4404_v48  ;;  %v12426_v10 = vld [vmem:[#allocation31_spill] sm:$0xff] }
 0x6e6   :  { %v4343_v53 = vsub.f32 %v10042_v21, %v10398_v42  ;;  %v4407_v2 = vmul.f32 %v4341_v17, %v10079_v49  ;;  %v4344_v37 = vsub.f32 %v10053_v19, %v10398_v42  ;;  %v4345_v40 = vsub.f32 %v12425_v61, %v10398_v42  ;;  %v12427_v49 = vld [vmem:[#allocation33_spill] sm:$0xff] }
 0x6e7   :  { %v4530_v4 = vadd.f32 %v4529_v23, %v4465_v38  ;;  %v4471_v38 = vmul.f32 %v4405_v34, %v4405_v34  ;;  %v4408_v11 = vmul.f32 %v4342_v15, %v12424_v25  ;;  %v4346_v48 = vsub.f32 %v10087_v52, %v10398_v42  ;;  %v12428_v34 = vld [vmem:[#allocation35_spill] sm:$0xff]  ;;  %v12431_v25 = vld [vmem:[#allocation44_spill] sm:$0xff] }
 0x6e9   :  { %v4531_v46 = vadd.f32 %v4530_v4, %v4466_v55  ;;  %v4472_v55 = vmul.f32 %v4406_v1, %v4406_v1 }
 0x6eb   :  { %v4532_v59 = vadd.f32 %v4531_v46, %v4467_v16  ;;  %v4409_v16 = vmul.f32 %v4343_v53, %v12426_v10  ;;  %v4473_v46 = vmul.f32 %v4407_v2, %v4407_v2  ;;  %v12430_v53 = vld [vmem:[#allocation36_spill] sm:$0xff] }
 0x6ec   :  { %v4412_v2 = vmul.f32 %v4346_v48, %v12430_v53  ;;  %v12435_v48 = vld [vmem:[#allocation41_spill] sm:$0xff] }
 0x6ed   :  { %v4533_v13 = vadd.f32 %v4532_v59, %v4468_v32  ;;  %v4410_v32 = vmul.f32 %v4344_v37, %v12427_v49  ;;  %v4474_v59 = vmul.f32 %v4408_v11, %v4408_v11  ;;  %v4475_v1 = vmul.f32 %v4409_v16, %v4409_v16  ;;  %v12432_v37 = vld [vmem:[#allocation39_spill] sm:$0xff] }
 0x6ef   :  { %v4534_v60 = vadd.f32 %v4533_v13, %v4469_v63  ;;  %v4347_v63 = vsub.f32 %v12428_v34, %v10398_v42  ;;  %v12429_v13 = vld [vmem:[#allocation34_spill] sm:$0xff] }
 0x6f0   :  { %v4411_v15 = vmul.f32 %v4345_v40, %v12429_v13  ;;  %v12433_v40 = vld [vmem:[#allocation40_spill] sm:$0xff] }
 0x6f1   :  { %v4535_v23 = vadd.f32 %v4534_v60, %v4470_v50  ;;  %v4348_v60 = vsub.f32 %v10125_v29, %v10398_v42  ;;  %v4413_v11 = vmul.f32 %v4347_v63, %v12432_v37  ;;  %v12437_v63 = vld [vmem:[#allocation45_spill] sm:$0xff]  ;;  %v4353_v37 = vsub.f32 %v9997_v26, %v10398_v42 }
 0x6f3   :  { %v4536_v4 = vadd.f32 %v4535_v23, %v4471_v38  ;;  %v4476_v38 = vmul.f32 %v4410_v32, %v4410_v32  ;;  %v4414_v16 = vmul.f32 %v4348_v60, %v12433_v40  ;;  %v4479_v13 = vmul.f32 %v4413_v11, %v4413_v11  ;;  %v12438_v60 = vld [vmem:[#allocation46_spill] sm:$0xff] }
 0x6f4   :  { %v4354_v40 = vsub.f32 %v10014_v5, %v10398_v42 }
 0x6f5   :  { %v4537_v33 = vadd.f32 %v4536_v4, %v4472_v55  ;;  %v4349_v55 = vsub.f32 %v12431_v25, %v10398_v42  ;;  %v4477_v4 = vmul.f32 %v4411_v15, %v4411_v15 }
 0x6f7   :  { %v4538_v17 = vadd.f32 %v4537_v33, %v4473_v46  ;;  %v4350_v46 = vsub.f32 %v10165_v20, %v10398_v42  ;;  %v4478_v33 = vmul.f32 %v4412_v2, %v4412_v2  ;;  %v4415_v32 = vmul.f32 %v4349_v55, %v12435_v48  ;;  %v12439_v55 = vld [vmem:[#allocation48_spill] sm:$0xff] }
 0x6f8   :  { %v12440_v48 = vld [vmem:[#allocation20_spill] sm:$0xff] }
 0x6f9   :  { %v4539_v50 = vadd.f32 %v4538_v17, %v4474_v59  ;;  %v12434_v59 = vld [vmem:[#allocation12_spill] sm:$0xff]  ;;  %v4416_v15 = vmul.f32 %v4350_v46, %v12437_v63  ;;  %v4355_v61 = vsub.f32 %v12440_v48, %v10398_v42  ;;  %v12441_v46 = vld [vmem:[#allocation50_spill] sm:$0xff] }
 0x6fa   :  { %v4351_v17 = vsub.f32 %v12434_v59, %v10398_v42  ;;  %v12442_v63 = vld [vmem:[#allocation22_spill] sm:$0xff] }
 0x6fb   :  { %v4540_v23 = vadd.f32 %v4539_v50, %v4475_v1  ;;  %v12436_v50 = vld [vmem:[#allocation14_spill] sm:$0xff]  ;;  %v4356_v19 = vsub.f32 %v12442_v63, %v10398_v42 }
 0x6fc   :  { %v4352_v53 = vsub.f32 %v12436_v50, %v10398_v42  ;;  %v4417_v2 = vmul.f32 %v4351_v17, %v12438_v60  ;;  %v12443_v17 = vld [vmem:[#allocation51_spill] sm:$0xff]  ;;  %v12444_v60 = vld [vmem:[#allocation24_spill] sm:$0xff] }
 0x6fd   :  { %v4541_v10 = vadd.f32 %v4540_v23, %v4476_v38  ;;  %v4480_v38 = vmul.f32 %v4414_v16, %v4414_v16  ;;  %v4419_v16 = vmul.f32 %v4353_v37, %v12441_v46  ;;  %v4357_v21 = vsub.f32 %v12444_v60, %v10398_v42  ;;  %v12447_v37 = vld [vmem:[#allocation55_spill] sm:$0xff]  ;;  %v12448_v46 = vld [vmem:[#allocation30_spill] sm:$0xff] }
 0x6fe   :  { %v4418_v11 = vmul.f32 %v4352_v53, %v12439_v55  ;;  %v12445_v53 = vld [vmem:[#allocation53_spill] sm:$0xff]  ;;  %v12446_v55 = vld [vmem:[#allocation27_spill] sm:$0xff]  ;;  %v4359_v35 = vsub.f32 %v12448_v46, %v10398_v42 }
 0x6ff   :  { %v4542_v49 = vadd.f32 %v4541_v10, %v4477_v4  ;;  %v4481_v4 = vmul.f32 %v4415_v32, %v4415_v32  ;;  %v4420_v32 = vmul.f32 %v4354_v40, %v12443_v17  ;;  %v4358_v48 = vsub.f32 %v12446_v55, %v10398_v42  ;;  %v12449_v40 = vld [vmem:[#allocation56_spill] sm:$0xff] }
 0x700   :  { %v12450_v17 = vld [vmem:[#allocation32_spill] sm:$0xff] }
 0x701   :  { %v4543_v1 = vadd.f32 %v4542_v49, %v4478_v33  ;;  %v4482_v33 = vmul.f32 %v4416_v15, %v4416_v15  ;;  %v4421_v15 = vmul.f32 %v4355_v61, %v12445_v53  ;;  %v4360_v63 = vsub.f32 %v12450_v17, %v10398_v42  ;;  %v12451_v61 = vld [vmem:[#allocation57_spill] sm:$0xff] }
 0x702   :  { %v12452_v53 = vld [vmem:[#allocation37_spill] sm:$0xff] }
 0x703   :  { %v4544_v23 = vadd.f32 %v4543_v1, %v4479_v13  ;;  %v4483_v13 = vmul.f32 %v4417_v2, %v4417_v2  ;;  %v4422_v2 = vmul.f32 %v4356_v19, %v12447_v37  ;;  %v4361_v55 = vsub.f32 %v12452_v53, %v10398_v42  ;;  %v12453_v19 = vld [vmem:[#allocation59_spill] sm:$0xff]  ;;  %v12454_v37 = vld [vmem:[#allocation42_spill] sm:$0xff] }
 0x704   :  { %v4362_v46 = vsub.f32 %v12454_v37, %v10398_v42 }
 0x705   :  { %v4545_v10 = vadd.f32 %v4544_v23, %v4480_v38  ;;  %v4484_v38 = vmul.f32 %v4418_v11, %v4418_v11  ;;  %v4423_v11 = vmul.f32 %v4357_v21, %v12449_v40  ;;  %v12455_v21 = vld [vmem:[#allocation60_spill] sm:$0xff]  ;;  %v12456_v40 = vld [vmem:[#allocation47_spill] sm:$0xff] }
 0x706   :  { %v4363_v17 = vsub.f32 %v12456_v40, %v10398_v42 }
 0x707   :  { %v4546_v49 = vadd.f32 %v4545_v10, %v4481_v4  ;;  %v4485_v4 = vmul.f32 %v4419_v16, %v4419_v16  ;;  %v4424_v16 = vmul.f32 %v4358_v48, %v12451_v61  ;;  %v12457_v48 = vld [vmem:[#allocation62_spill] sm:$0xff]  ;;  %v12458_v61 = vld [vmem:[#allocation52_spill] sm:$0xff] }
 0x708   :  { %v4364_v53 = vsub.f32 %v12458_v61, %v10398_v42 }
 0x709   :  { %v4547_v1 = vadd.f32 %v4546_v49, %v4482_v33  ;;  %v4486_v33 = vmul.f32 %v4420_v32, %v4420_v32  ;;  %v4425_v32 = vmul.f32 %v4359_v35, %v12453_v19  ;;  %v12459_v35 = vld [vmem:[#allocation63_spill] sm:$0xff]  ;;  %v12460_v19 = vld [vmem:[#allocation54_spill] sm:$0xff] }
 0x70a   :  { %v4365_v9 = vsub.f32 %v12460_v19, %v10398_v42 }
 0x70b   :  { %v4548_v23 = vadd.f32 %v4547_v1, %v4483_v13  ;;  %v4487_v13 = vmul.f32 %v4421_v15, %v4421_v15  ;;  %v4426_v15 = vmul.f32 %v4360_v63, %v12455_v21  ;;  %v12461_v63 = vld [vmem:[#allocation66_spill] sm:$0xff] }
 0x70c   :  { %v12462_v21 = vld [vmem:[#allocation58_spill] sm:$0xff] }
 0x70d   :  { %v4549_v10 = vadd.f32 %v4548_v23, %v4484_v38  ;;  %v4488_v38 = vmul.f32 %v4422_v2, %v4422_v2  ;;  %v4427_v2 = vmul.f32 %v4361_v55, %v12457_v48  ;;  %v4366_v8 = vsub.f32 %v12462_v21, %v10398_v42  ;;  %v12463_v55 = vld [vmem:[#allocation67_spill] sm:$0xff]  ;;  %v12464_v48 = vld [vmem:[#allocation61_spill] sm:$0xff] }
 0x70e   :  { %v4367_v60 = vsub.f32 %v12464_v48, %v10398_v42 }
 0x70f   :  { %v4550_v49 = vadd.f32 %v4549_v10, %v4485_v4  ;;  %v4489_v4 = vmul.f32 %v4423_v11, %v4423_v11  ;;  %v4428_v11 = vmul.f32 %v4362_v46, %v12459_v35  ;;  %v12465_v46 = vld [vmem:[#allocation68_spill] sm:$0xff] }
 0x710   :  { %v12466_v35 = vld [vmem:[#allocation64_spill] sm:$0xff] }
 0x711   :  { %v4551_v1 = vadd.f32 %v4550_v49, %v4486_v33  ;;  %v4490_v33 = vmul.f32 %v4424_v16, %v4424_v16  ;;  %v4429_v16 = vmul.f32 %v4363_v17, %v12461_v63  ;;  %v4368_v50 = vsub.f32 %v12466_v35, %v10398_v42  ;;  %v12467_v17 = vld [vmem:[#allocation70_spill] sm:$0xff] }
 0x712   :  { %v4369_v63 = vsub.f32 %v10242_v45, %v10398_v42 }
 0x713   :  { %v4552_v23 = vadd.f32 %v4551_v1, %v4487_v13  ;;  %v4491_v13 = vmul.f32 %v4425_v32, %v4425_v32  ;;  %v4430_v32 = vmul.f32 %v4364_v53, %v12463_v55  ;;  %v12468_v53 = vld [vmem:[#allocation71_spill] sm:$0xff]  ;;  %v4370_v55 = vsub.f32 %v10254_v28, %v10398_v42 }
 0x715   :  { %v4553_v10 = vadd.f32 %v4552_v23, %v4488_v38  ;;  %v4492_v38 = vmul.f32 %v4426_v15, %v4426_v15  ;;  %v4431_v15 = vmul.f32 %v4365_v9, %v12465_v46  ;;  %v12469_v9 = vld [vmem:[#allocation72_spill] sm:$0xff]  ;;  %v4371_v46 = vsub.f32 %v10270_v62, %v10398_v42 }
 0x717   :  { %v4554_v49 = vadd.f32 %v4553_v10, %v4489_v4  ;;  %v4493_v4 = vmul.f32 %v4427_v2, %v4427_v2  ;;  %v4432_v2 = vmul.f32 %v4366_v8, %v12467_v17  ;;  %v12470_v8 = vld [vmem:[#allocation73_spill] sm:$0xff]  ;;  %v4372_v17 = vsub.f32 %v10284_v3, %v10398_v42 }
 0x719   :  { %v4555_v1 = vadd.f32 %v4554_v49, %v4490_v33  ;;  %v4494_v33 = vmul.f32 %v4428_v11, %v4428_v11  ;;  %v4433_v11 = vmul.f32 %v4367_v60, %v12468_v53  ;;  %v12471_v60 = vld [vmem:[#allocation74_spill] sm:$0xff] }
 0x71a   :  { %v12472_v53 = vld [vmem:[#allocation26_spill] sm:$0xff] }
 0x71b   :  { %v4556_v23 = vadd.f32 %v4555_v1, %v4491_v13  ;;  %v4495_v13 = vmul.f32 %v4429_v16, %v4429_v16  ;;  %v4434_v16 = vmul.f32 %v4368_v50, %v12469_v9  ;;  %v4373_v6 = vsub.f32 %v12472_v53, %v10398_v42  ;;  %v12473_v50 = vld [vmem:[#allocation76_spill] sm:$0xff] }
 0x71c   :  { %v4374_v9 = vsub.f32 %v10085_v27, %v10398_v42 }
 0x71d   :  { %v4557_v10 = vadd.f32 %v4556_v23, %v4492_v38  ;;  %v4496_v38 = vmul.f32 %v4430_v32, %v4430_v32  ;;  %v4435_v32 = vmul.f32 %v4369_v63, %v12470_v8  ;;  %v12474_v63 = vld [vmem:[#allocation77_spill] sm:$0xff]  ;;  %v4375_v8 = vsub.f32 %v10104_v0, %v10398_v42 }
 0x71f   :  { %v4558_v49 = vadd.f32 %v4557_v10, %v4493_v4  ;;  %v4497_v4 = vmul.f32 %v4431_v15, %v4431_v15  ;;  %v4436_v15 = vmul.f32 %v4370_v55, %v12471_v60  ;;  %v12475_v55 = vld [vmem:[#allocation78_spill] sm:$0xff] }
 0x720   :  { %v12476_v60 = vld [vmem:[#allocation38_spill] sm:$0xff] }
 0x721   :  { %v4559_v1 = vadd.f32 %v4558_v49, %v4494_v33  ;;  %v4498_v33 = vmul.f32 %v4432_v2, %v4432_v2  ;;  %v4437_v2 = vmul.f32 %v4371_v46, %v12473_v50  ;;  %v4376_v56 = vsub.f32 %v12476_v60, %v10398_v42  ;;  %v12477_v46 = vld [vmem:[#allocation80_spill] sm:$0xff]  ;;  %v12478_v50 = vld [vmem:[#allocation43_spill] sm:$0xff] }
 0x722   :  { %v4377_v14 = vsub.f32 %v12478_v50, %v10398_v42 }
 0x723   :  { %v4560_v23 = vadd.f32 %v4559_v1, %v4495_v13  ;;  %v4499_v13 = vmul.f32 %v4433_v11, %v4433_v11  ;;  %v4438_v11 = vmul.f32 %v4372_v17, %v12474_v63  ;;  %v12479_v17 = vld [vmem:[#allocation81_spill] sm:$0xff]  ;;  %v4378_v63 = vsub.f32 %v10161_v58, %v10398_v42 }
 0x725   :  { %v4561_v10 = vadd.f32 %v4560_v23, %v4496_v38  ;;  %v4500_v38 = vmul.f32 %v4434_v16, %v4434_v16  ;;  %v4439_v16 = vmul.f32 %v4373_v6, %v12475_v55  ;;  %v12480_v6 = vld [vmem:[#allocation83_spill] sm:$0xff]  ;;  %v4379_v55 = vsub.f32 %v10182_v30, %v10398_v42 }
 0x727   :  { %v4562_v49 = vadd.f32 %v4561_v10, %v4497_v4  ;;  %v4501_v4 = vmul.f32 %v4435_v32, %v4435_v32  ;;  %v4440_v32 = vmul.f32 %v4374_v9, %v12477_v46  ;;  %v12481_v9 = vld [vmem:[#allocation84_spill] sm:$0xff]  ;;  %v4380_v46 = vsub.f32 %v10192_v57, %v10398_v42 }
 0x729   :  { %v4563_v1 = vadd.f32 %v4562_v49, %v4498_v33  ;;  %v4502_v33 = vmul.f32 %v4436_v15, %v4436_v15  ;;  %v4441_v15 = vmul.f32 %v4375_v8, %v12479_v17  ;;  %v12482_v8 = vld [vmem:[#allocation85_spill] sm:$0xff]  ;;  %v4381_v17 = vsub.f32 %v10206_v41, %v10398_v42 }
 0x72b   :  { %v4564_v23 = vadd.f32 %v4563_v1, %v4499_v13  ;;  %v4503_v13 = vmul.f32 %v4437_v2, %v4437_v2  ;;  %v4442_v2 = vmul.f32 %v4376_v56, %v12480_v6  ;;  %v12483_v56 = vld [vmem:[#allocation87_spill] sm:$0xff]  ;;  %v4382_v6 = vsub.f32 %v10218_v43, %v10398_v42 }
 0x72d   :  { %v4565_v10 = vadd.f32 %v4564_v23, %v4500_v38  ;;  %v4504_v38 = vmul.f32 %v4438_v11, %v4438_v11  ;;  %v4443_v11 = vmul.f32 %v4377_v14, %v12481_v9  ;;  %v12484_v14 = vld [vmem:[#allocation88_spill] sm:$0xff]  ;;  %v12485_v9 = vld [vmem:[#allocation65_spill] sm:$0xff] }
 0x72e   :  { %v4383_v31 = vsub.f32 %v12485_v9, %v10398_v42 }
 0x72f   :  { %v4566_v49 = vadd.f32 %v4565_v10, %v4501_v4  ;;  %v4505_v4 = vmul.f32 %v4439_v16, %v4439_v16  ;;  %v4444_v16 = vmul.f32 %v4378_v63, %v12482_v8  ;;  %v12486_v63 = vld [vmem:[#allocation90_spill] sm:$0xff]  ;;  %v12487_v8 = vld [vmem:[#allocation69_spill] sm:$0xff] }
 0x730   :  { %v4384_v47 = vsub.f32 %v12487_v8, %v10398_v42 }
 0x731   :  { %v4567_v1 = vadd.f32 %v4566_v49, %v4502_v33  ;;  %v4506_v33 = vmul.f32 %v4440_v32, %v4440_v32  ;;  %v4445_v32 = vmul.f32 %v4379_v55, %v12483_v56  ;;  %v12488_v55 = vld [vmem:[#allocation91_spill] sm:$0xff]  ;;  %v4385_v56 = vsub.f32 %v10256_v39, %v10398_v42 }
 0x733   :  { %v4568_v23 = vadd.f32 %v4567_v1, %v4503_v13  ;;  %v4507_v13 = vmul.f32 %v4441_v15, %v4441_v15  ;;  %v4446_v15 = vmul.f32 %v4380_v46, %v12484_v14  ;;  %v12489_v46 = vld [vmem:[#allocation93_spill] sm:$0xff]  ;;  %v12490_v14 = vld [vmem:[#allocation75_spill] sm:$0xff] }
 0x734   :  { %v4386_v51 = vsub.f32 %v12490_v14, %v10398_v42 }
 0x735   :  { %v4569_v10 = vadd.f32 %v4568_v23, %v4504_v38  ;;  %v4508_v38 = vmul.f32 %v4442_v2, %v4442_v2  ;;  %v4447_v2 = vmul.f32 %v4381_v17, %v12486_v63  ;;  %v12491_v17 = vld [vmem:[#allocation94_spill] sm:$0xff]  ;;  %v12492_v63 = vld [vmem:[#allocation79_spill] sm:$0xff] }
 0x736   :  { %v4387_v26 = vsub.f32 %v12492_v63, %v10398_v42 }
 0x737   :  { %v4570_v49 = vadd.f32 %v4569_v10, %v4505_v4  ;;  %v4509_v4 = vmul.f32 %v4443_v11, %v4443_v11  ;;  %v4448_v11 = vmul.f32 %v4382_v6, %v12488_v55  ;;  %v12493_v6 = vld [vmem:[#allocation95_spill] sm:$0xff]  ;;  %v12494_v55 = vld [vmem:[#allocation82_spill] sm:$0xff] }
 0x738   :  { %v4388_v36 = vsub.f32 %v12494_v55, %v10398_v42 }
 0x739   :  { %v4571_v1 = vadd.f32 %v4570_v49, %v4506_v33  ;;  %v4510_v33 = vmul.f32 %v4444_v16, %v4444_v16  ;;  %v4449_v16 = vmul.f32 %v4383_v31, %v12489_v46  ;;  %v12495_v31 = vld [vmem:[#allocation97_spill] sm:$0xff]  ;;  %v12496_v46 = vld [vmem:[#allocation86_spill] sm:$0xff] }
 0x73a   :  { %v4389_v18 = vsub.f32 %v12496_v46, %v10398_v42 }
 0x73b   :  { %v4572_v23 = vadd.f32 %v4571_v1, %v4507_v13  ;;  %v4511_v13 = vmul.f32 %v4445_v32, %v4445_v32  ;;  %v4450_v32 = vmul.f32 %v4384_v47, %v12491_v17  ;;  %v12497_v47 = vld [vmem:[#allocation98_spill] sm:$0xff]  ;;  %v12498_v17 = vld [vmem:[#allocation89_spill] sm:$0xff] }
 0x73c   :  { %v4390_v12 = vsub.f32 %v12498_v17, %v10398_v42 }
 0x73d   :  { %v4573_v10 = vadd.f32 %v4572_v23, %v4508_v38  ;;  %v4512_v38 = vmul.f32 %v4446_v15, %v4446_v15  ;;  %v4451_v15 = vmul.f32 %v4385_v56, %v12493_v6  ;;  %v12499_v56 = vld [vmem:[#allocation99_spill] sm:$0xff]  ;;  %v12500_v6 = vld [vmem:[#allocation92_spill] sm:$0xff] }
 0x73e   :  { %v4391_v5 = vsub.f32 %v12500_v6, %v10398_v42 }
 0x73f   :  { %v4574_v49 = vadd.f32 %v4573_v10, %v4509_v4  ;;  %v4513_v4 = vmul.f32 %v4447_v2, %v4447_v2  ;;  %v4452_v2 = vmul.f32 %v4386_v51, %v12495_v31  ;;  %v12501_v51 = vld [vmem:[#allocation101_spill] sm:$0xff]  ;;  %v12502_v31 = vld [vmem:[#allocation96_spill] sm:$0xff] }
 0x740   :  { %v4392_v54 = vsub.f32 %v12502_v31, %v10398_v42 }
 0x741   :  { %v4575_v1 = vadd.f32 %v4574_v49, %v4510_v33  ;;  %v4514_v33 = vmul.f32 %v4448_v11, %v4448_v11  ;;  %v4453_v11 = vmul.f32 %v4387_v26, %v12497_v47  ;;  %v12503_v26 = vld [vmem:[#allocation102_spill] sm:$0xff]  ;;  %v12504_v47 = vld [vmem:[#allocation100_spill] sm:$0xff] }
 0x742   :  { %v4393_v25 = vsub.f32 %v12504_v47, %v10398_v42 }
 0x743   :  { %v4576_v23 = vadd.f32 %v4575_v1, %v4511_v13  ;;  %v4515_v13 = vmul.f32 %v4449_v16, %v4449_v16  ;;  %v4454_v16 = vmul.f32 %v4388_v36, %v12499_v56  ;;  %v12505_v36 = vld [vmem:[#allocation103_spill] sm:$0xff]  ;;  %v4394_v56 = vsub.f32 %v10374_v22, %v10398_v42 }
 0x745   :  { %v4577_v10 = vadd.f32 %v4576_v23, %v4512_v38  ;;  %v4516_v38 = vmul.f32 %v4450_v32, %v4450_v32  ;;  %v4455_v32 = vmul.f32 %v4389_v18, %v12501_v51  ;;  %v12506_v18 = vld [vmem:[#allocation105_spill] sm:$0xff]  ;;  %v4395_v51 = vsub.f32 %v10390_v44, %v10398_v42 }
 0x747   :  { %v4578_v49 = vadd.f32 %v4577_v10, %v4513_v4  ;;  %v4517_v4 = vmul.f32 %v4451_v15, %v4451_v15  ;;  %v4456_v15 = vmul.f32 %v4390_v12, %v12503_v26  ;;  %v12507_v12 = vld [vmem:[#allocation106_spill] sm:$0xff]  ;;  %v4460_v26 = vmul.f32 %v4394_v56, %v10388_v7 }
 0x749   :  { %v4579_v1 = vadd.f32 %v4578_v49, %v4514_v33  ;;  %v4518_v33 = vmul.f32 %v4452_v2, %v4452_v2  ;;  %v4457_v2 = vmul.f32 %v4391_v5, %v12505_v36  ;;  %v4526_v36 = vmul.f32 %v4460_v26, %v4460_v26 }
 0x74b   :  { %v4580_v23 = vadd.f32 %v4579_v1, %v4515_v13  ;;  %v4519_v13 = vmul.f32 %v4453_v11, %v4453_v11  ;;  %v4458_v11 = vmul.f32 %v4392_v54, %v12506_v18 }
 0x74d   :  { %v4581_v10 = vadd.f32 %v4580_v23, %v4516_v38  ;;  %v4520_v38 = vmul.f32 %v4454_v16, %v4454_v16  ;;  %v4459_v16 = vmul.f32 %v4393_v25, %v12507_v12  ;;  %v4524_v20 = vmul.f32 %v4458_v11, %v4458_v11 }
 0x74f   :  { %v4582_v49 = vadd.f32 %v4581_v10, %v4517_v4  ;;  %v4521_v4 = vmul.f32 %v4455_v32, %v4455_v32  ;;  %v4461_v32 = vmul.f32 %v4395_v51, %v10394_v24 }
 0x751   :  { %v4583_v1 = vadd.f32 %v4582_v49, %v4518_v33  ;;  %v4522_v33 = vmul.f32 %v4456_v15, %v4456_v15  ;;  %v4527_v54 = vmul.f32 %v4461_v32, %v4461_v32 }
 0x753   :  { %v4584_v23 = vadd.f32 %v4583_v1, %v4519_v13  ;;  %v4523_v13 = vmul.f32 %v4457_v2, %v4457_v2 }
 0x755   :  { %v4585_v10 = vadd.f32 %v4584_v23, %v4520_v38  ;;  %v4525_v38 = vmul.f32 %v4459_v16, %v4459_v16 }
 0x757   :  { %v4586_v49 = vadd.f32 %v4585_v10, %v4521_v4 }
 0x759   :  { %v4587_v1 = vadd.f32 %v4586_v49, %v4522_v33 }
 0x75b   :  { %v4588_v5 = vadd.f32 %v4587_v1, %v4523_v13 }
 0x75d   :  { %v4589_v23 = vadd.f32 %v4588_v5, %v4524_v20 }
 0x75f   :  { %v4590_v22 = vadd.f32 %v4589_v23, %v4525_v38 }
 0x761   :  { %v4591_v15 = vadd.f32 %v4590_v22, %v4526_v36  ;;  %v4611_v22 = vld [vmem:[%s12123_s2] sm:$0x1]  ;;  %s6444_s2 = smov 40  }
 0x763   :  { %v4592_v4 = vadd.f32 %v4591_v15, %v4527_v54 }
 0x765   :  { %v4593_v10 = vrot.slane %v4592_v4, 4 }
 0x767   :  { %v4594_v18 = vadd.f32 %v4593_v10, %v4592_v4 }
 0x769   :  { %v4595_v47 = vrot.slane %v4594_v18, 2 }
 0x76b   :  { %v4596_v31 = vadd.f32 %v4595_v47, %v4594_v18  ;;  %v12509_v18 = vld [vmem:[#allocation96_spill] sm:$0xff] }
 0x76d   :  { %v4597_v25 = vrot.slane %v4596_v31, 1 }
 0x76f   :  { %v4598_v2 = vadd.f32 %v4597_v25, %v4596_v31  ;;  %v4613_v31 = vld [vmem:[%s12124_s3] sm:$0x1]  ;;  %v12510_v25 = vld [vmem:[#allocation100_spill] sm:$0xff]  ;;  %s6445_s3 = smov 48  }
 0x771   :  { %v4599_v33 = vmul.f32 0.0025510204, %v4598_v2  ;;  %v12511_v2 = vld [vmem:[#allocation104_spill] sm:$0xff] }
 0x773   :  { %v4600_v49 = vadd.f32 1e-05, %v4599_v33 }
 0x775   :  { %6430 = vrsqrt.f32 %v4600_v49  ;;  %vm4607_vm12 = vweird.f32 %v4600_v49 }
 0x77b   :  { %v6431_v7 = vpop.eup %6430 }
 0x77c   :  { %v4602_v56 = vmul.f32 %v6431_v7, %v4600_v49  ;;  %vm4608_vm11 = vweird.f32 %v6431_v7 }
 0x77d   :  { %vm4609_vm13 = vmor %vm4607_vm12, %vm4608_vm11  ;;  %vm5377_vm11 = vcmask 523712   ;;  %vm5375_vm12 = vcmask 523713  }
 0x77e   :  { %v4603_v11 = vmul.f32 %v6431_v7, %v4602_v56 }
 0x780   :  { %v4604_v24 = vmul.f32 0.5, %v4603_v11 }
 0x782   :  { %v4605_v51 = vsub.f32 1.5, %v4604_v24 }
 0x784   :  { %v4606_v20 = vmul.f32 %v6431_v7, %v4605_v51 }
 0x786   :  { %v4610_v12 = vsel %vm4609_vm13, %v6431_v7, %v4606_v20  ;;  %vm5443_vm13 = vcmask 589312  }
 0x787   :  { %v4612_v47 = vmul.f32 %v4611_v22, %v4610_v12 }
 0x789   :  { %v4614_v16 = vmul.f32 %v4612_v47, %v10398_v42  ;;  %v10605_v13 = vperm.slane %v4612_v47, 0 }
 0x78b   :  { %v4615_v1 = vsub.f32 %v4613_v31, %v4614_v16  ;;  %v4682_v26 = vmul.f32 %v10605_v13, %v10390_v44  ;;  %v4635_v38 = vmul.f32 %v10605_v13, %v10125_v29  ;;  %v10618_v23 = vmul.f32 %v10605_v13, %v10087_v52 }
 0x78c   :  { %v4634_v42 = vmul.f32 %v10605_v13, %v12428_v34  ;;  %v10624_v36 = vmul.f32 %v10605_v13, %v12434_v59  ;;  %v4649_v44 = vmul.f32 %v10605_v13, %v12454_v37  ;;  %v4650_v54 = vmul.f32 %v10605_v13, %v12456_v40 }
 0x78d   :  { %v10609_v5 = vperm.slane %v4615_v1, 0  ;;  %v4651_v29 = vmul.f32 %v10605_v13, %v12458_v61  ;;  %v4652_v52 = vmul.f32 %v10605_v13, %v12460_v19  ;;  %v4653_v34 = vmul.f32 %v10605_v13, %v12462_v21 }
 0x78e   :  { %v4654_v59 = vmul.f32 %v10605_v13, %v12464_v48  ;;  %v4655_v37 = vmul.f32 %v10605_v13, %v12466_v35  ;;  %v4656_v40 = vmul.f32 %v10605_v13, %v10242_v45  ;;  %v4657_v61 = vmul.f32 %v10605_v13, %v10254_v28 }
 0x78f   :  { %v10612_v32 = vadd.f32 %v10609_v5, %v4682_v26  ;;  %v4704_v15 = vadd.f32 %v10609_v5, %v4635_v38  ;;  %v4658_v19 = vmul.f32 %v10605_v13, %v10270_v62  ;;  %v4659_v4 = vmul.f32 %v10605_v13, %v10284_v3 }
 0x790   :  { %v4660_v21 = vmul.f32 %v10605_v13, %v12472_v53  ;;  %v4661_v48 = vmul.f32 %v10605_v13, %v10085_v27  ;;  %v4662_v45 = vmul.f32 %v10605_v13, %v10104_v0  ;;  %v4663_v28 = vmul.f32 %v10605_v13, %v12476_v60 }
 0x791   :  { %12508 = vst [vmem:[#allocation29_spill] sm:$0xff] %v10612_v32  ;;  %v10649_v10 = vmax.f32 %v4704_v15, 0.0  ;;  %v4664_v62 = vmul.f32 %v10605_v13, %v12478_v50  ;;  %v4665_v3 = vmul.f32 %v10605_v13, %v10161_v58  ;;  %v4666_v35 = vmul.f32 %v10605_v13, %v10182_v30 }
 0x792   :  { %v4667_v53 = vmul.f32 %v10605_v13, %v10192_v57  ;;  %v4668_v27 = vmul.f32 %v10605_v13, %v10206_v41  ;;  %v4669_v0 = vmul.f32 %v10605_v13, %v10218_v43  ;;  %v4670_v60 = vmul.f32 %v10605_v13, %v12485_v9 }
 0x793   :  { %4871 = vrot.lane.b32.xlu2 %v10649_v10, %s6436_s24  ;;  %v4671_v58 = vmul.f32 %v10605_v13, %v12487_v8  ;;  %v4672_v30 = vmul.f32 %v10605_v13, %v10256_v39  ;;  %v4673_v57 = vmul.f32 %v10605_v13, %v12490_v14  ;;  %v4674_v50 = vmul.f32 %v10605_v13, %v12492_v63 }
 0x794   :  { %v4675_v41 = vmul.f32 %v10605_v13, %v12494_v55  ;;  %v4676_v43 = vmul.f32 %v10605_v13, %v12496_v46  ;;  %v4677_v9 = vmul.f32 %v10605_v13, %v12498_v17  ;;  %v4678_v8 = vmul.f32 %v10605_v13, %v12500_v6 }
 0x795   :  { %v4679_v39 = vmul.f32 %v10605_v13, %v12509_v18  ;;  %v4680_v14 = vmul.f32 %v10605_v13, %v12510_v25  ;;  %v4681_v63 = vmul.f32 %v10605_v13, %v12511_v2  ;;  %v4703_v55 = vadd.f32 %v10609_v5, %v4634_v42  ;;  %v12526_v25 = vld [vmem:[#allocation4_spill] sm:$0xff] }
 0x796   :  { %v10699_v33 = vadd.f32 %v10609_v5, %v4649_v44  ;;  %v10702_v46 = vadd.f32 %v10609_v5, %v4650_v54  ;;  %v10705_v17 = vadd.f32 %v10609_v5, %v4651_v29  ;;  %v10708_v6 = vadd.f32 %v10609_v5, %v4652_v52  ;;  %v12527_v2 = vld [vmem:[#allocation16_spill] sm:$0xff] }
 0x797   :  { %v10711_v49 = vadd.f32 %v10609_v5, %v4653_v34  ;;  %v10714_v7 = vadd.f32 %v10609_v5, %v4654_v59  ;;  %v10717_v56 = vadd.f32 %v10609_v5, %v4655_v37  ;;  %v10720_v11 = vadd.f32 %v10609_v5, %v4656_v40 }
 0x798   :  { %v10723_v24 = vadd.f32 %v10609_v5, %v4657_v61  ;;  %v10726_v51 = vadd.f32 %v10609_v5, %v4658_v19  ;;  %v10729_v20 = vadd.f32 %v10609_v5, %v4659_v4  ;;  %v10732_v22 = vadd.f32 %v10609_v5, %v4660_v21 }
 0x799   :  { %v10735_v12 = vadd.f32 %v10609_v5, %v4661_v48  ;;  %v10738_v47 = vadd.f32 %v10609_v5, %v4662_v45  ;;  %v10741_v31 = vadd.f32 %v10609_v5, %v4663_v28  ;;  %v10744_v16 = vadd.f32 %v10609_v5, %v4664_v62  ;;  %v12520_v62 = vld [vmem:[#allocation49_spill] sm:$0xff] }
 0x79a   :  { %v10747_v1 = vadd.f32 %v10609_v5, %v4665_v3  ;;  %v10750_v26 = vadd.f32 %v10609_v5, %v4666_v35  ;;  %v10753_v38 = vadd.f32 %v10609_v5, %v4667_v53  ;;  %v10756_v42 = vadd.f32 %v10609_v5, %v4668_v27 }
 0x79b   :  { %v10759_v44 = vadd.f32 %v10609_v5, %v4669_v0  ;;  %v10762_v54 = vadd.f32 %v10609_v5, %v4670_v60  ;;  %v10765_v29 = vadd.f32 %v10609_v5, %v4671_v58  ;;  %v10768_v52 = vadd.f32 %v10609_v5, %v4672_v30  ;;  %v12521_v0 = vld [vmem:[#allocation44_spill] sm:$0xff]  ;;  %v12522_v60 = vld [vmem:[#allocation10_spill] sm:$0xff] }
 0x79c   :  { %v10771_v15 = vadd.f32 %v10609_v5, %v4673_v57  ;;  %v10774_v34 = vadd.f32 %v10609_v5, %v4674_v50  ;;  %v10777_v59 = vadd.f32 %v10609_v5, %v4675_v41  ;;  %v10780_v37 = vadd.f32 %v10609_v5, %v4676_v43  ;;  %v12523_v58 = vld [vmem:[#allocation18_spill] sm:$0xff]  ;;  %v12524_v57 = vld [vmem:[#allocation9_spill] sm:$0xff] }
 0x79d   :  { %v10783_v40 = vadd.f32 %v10609_v5, %v4677_v9  ;;  %v10786_v61 = vadd.f32 %v10609_v5, %v4678_v8  ;;  %v10789_v19 = vadd.f32 %v10609_v5, %v4679_v39  ;;  %v10792_v4 = vadd.f32 %v10609_v5, %v4680_v14  ;;  %v12525_v9 = vld [vmem:[#allocation6_spill] sm:$0xff] }
 0x79e   :  { %12512 = vst [vmem:[#allocation31_spill] sm:$0xff] %v10774_v34  ;;  %v10795_v21 = vadd.f32 %v10609_v5, %v4681_v63  ;;  %v4702_v48 = vadd.f32 %v10609_v5, %v10618_v23  ;;  %v10799_v45 = vmax.f32 %v4703_v55, 0.0  ;;  %v4707_v28 = vadd.f32 %v10609_v5, %v10624_v36 }
 0x79f   :  { %12513 = vst [vmem:[#allocation33_spill] sm:$0xff] %v10777_v59  ;;  %v4637_v3 = vmul.f32 %v10605_v13, %v12520_v62  ;;  %v4636_v23 = vmul.f32 %v10605_v13, %v12521_v0  ;;  %v4619_v36 = vmul.f32 %v10605_v13, %v12522_v60  ;;  %v4641_v30 = vmul.f32 %v10605_v13, %v12523_v58  ;;  %v12529_v62 = vld [vmem:[#allocation5_spill] sm:$0xff]  ;;  %v12531_v60 = vld [vmem:[#allocation11_spill] sm:$0xff] }
 0x7a0   :  { %12514 = vst [vmem:[#allocation35_spill] sm:$0xff] %v10780_v37  ;;  %4869 = vrot.lane.b32.xlu1 %v10799_v45, %s6436_s24  ;;  %v10808_v53 = vmax.f32 %v4702_v48, 0.0  ;;  %v10810_v27 = vmax.f32 %v4707_v28, 0.0  ;;  %v4617_v50 = vmul.f32 %v10605_v13, %v12524_v57  ;;  %v4618_v8 = vmul.f32 %v10605_v13, %v12525_v9  ;;  %v12528_v48 = vld [vmem:[#allocation8_spill] sm:$0xff] }
 0x7a1   :  { %12515 = vst [vmem:[#allocation34_spill] sm:$0xff] %v10783_v40  ;;  %v4706_v35 = vadd.f32 %v10609_v5, %v4637_v3  ;;  %v4705_v41 = vadd.f32 %v10609_v5, %v4636_v23  ;;  %v4688_v18 = vadd.f32 %v10609_v5, %v4619_v36  ;;  %v4710_v39 = vadd.f32 %v10609_v5, %v4641_v30 }
 0x7a2   :  { %12516 = vst [vmem:[#allocation36_spill] sm:$0xff] %v10786_v61  ;;  %4867 = vrot.lane.b32.xlu0 %v10808_v53, %s6436_s24  ;;  %4877 = vrot.lane.b32.xlu2 %v10810_v27, %s6436_s24  ;;  %v4620_v14 = vmul.f32 %v10605_v13, %v12526_v25  ;;  %v4640_v63 = vmul.f32 %v10605_v13, %v12527_v2 }
 0x7a3   :  { %12517 = vst [vmem:[#allocation39_spill] sm:$0xff] %v10789_v19  ;;  %v10825_v43 = vmax.f32 %v4706_v35, 0.0  ;;  %v10836_v55 = vadd.f32 %v10609_v5, %v4617_v50  ;;  %v4621_v28 = vmul.f32 %v10605_v13, %v12528_v48  ;;  %v4622_v3 = vmul.f32 %v10605_v13, %v12529_v62  ;;  %v12530_v35 = vld [vmem:[#allocation7_spill] sm:$0xff]  ;;  %v12532_v50 = vld [vmem:[#allocation13_spill] sm:$0xff] }
 0x7a4   :  { %12518 = vst [vmem:[#allocation40_spill] sm:$0xff] %v10792_v4  ;;  %v4623_v0 = vmul.f32 %v10605_v13, %v12530_v35  ;;  %v4687_v23 = vadd.f32 %v10609_v5, %v4618_v8  ;;  %v4624_v36 = vmul.f32 %v10605_v13, %v12531_v60  ;;  %v4689_v58 = vadd.f32 %v10609_v5, %v4620_v14  ;;  %v12533_v62 = vld [vmem:[#allocation15_spill] sm:$0xff]  ;;  %v12534_v35 = vld [vmem:[#allocation14_spill] sm:$0xff] }
 0x7a5   :  { %12519 = vst [vmem:[#allocation12_spill] sm:$0xff] %v10795_v21  ;;  %v4709_v30 = vadd.f32 %v10609_v5, %v4640_v63  ;;  %v10851_v57 = vmax.f32 %v4705_v41, 0.0  ;;  %v4625_v9 = vmul.f32 %v10605_v13, %v12532_v50  ;;  %v4690_v25 = vadd.f32 %v10609_v5, %v4621_v28  ;;  %v12535_v63 = vld [vmem:[#allocation24_spill] sm:$0xff]  ;;  %v12536_v41 = vld [vmem:[#allocation17_spill] sm:$0xff] }
 0x7a6   :  { %v10856_v2 = vmax.f32 %v4688_v18, 0.0  ;;  %v10858_v48 = vmax.f32 %v4710_v39, 0.0  ;;  %v4626_v8 = vmul.f32 %v10605_v13, %v12533_v62  ;;  %v4639_v60 = vmul.f32 %v10605_v13, %v12534_v35 }
 0x7a7   :  { %v4691_v14 = vadd.f32 %v10609_v5, %v4622_v3  ;;  %v4644_v28 = vmul.f32 %v10605_v13, %v12535_v63  ;;  %v4692_v18 = vadd.f32 %v10609_v5, %v4623_v0  ;;  %v4693_v39 = vadd.f32 %v10609_v5, %v4624_v36 }
 0x7a8   :  { %4875 = vrot.lane.b32.xlu1 %v10825_v43, %s6436_s24  ;;  %v10872_v50 = vmax.f32 %v4687_v23, 0.0  ;;  %v4708_v62 = vadd.f32 %v10609_v5, %v4639_v60  ;;  %v10877_v3 = vmax.f32 %v4689_v58, 0.0  ;;  %v10879_v35 = vmax.f32 %v4709_v30, 0.0  ;;  %4837 = vst.msk [vmem:[#allocation3 + $0x10] sm:$0xff] %vm4834_vm14, %v10856_v2  ;;  %v12537_v23 = vld [vmem:[#allocation19_spill] sm:$0xff]  ;;  %v12538_v58 = vld [vmem:[#allocation22_spill] sm:$0xff] }
 0x7a9   :  { %v4627_v32 = vmul.f32 %v10605_v13, %v12536_v41  ;;  %v4694_v63 = vadd.f32 %v10609_v5, %v4625_v9  ;;  %v4713_v0 = vadd.f32 %v10609_v5, %v4644_v28  ;;  %v10885_v36 = vmax.f32 %v4690_v25, 0.0  ;;  %v12540_v25 = vld [vmem:[#allocation21_spill] sm:$0xff]  ;;  %v12541_v28 = vld [vmem:[#allocation23_spill] sm:$0xff] }
 0x7aa   :  { %4873 = vrot.lane.b32.xlu0 %v10851_v57, %s6436_s24  ;;  %4883 = vrot.lane.b32.xlu2 %v10858_v48, %s6436_s24  ;;  %v4628_v60 = vmul.f32 %v10605_v13, %v12537_v23  ;;  %v4643_v30 = vmul.f32 %v10605_v13, %v12538_v58  ;;  %v4695_v21 = vadd.f32 %v10609_v5, %v4626_v8  ;;  %v10894_v4 = vmax.f32 %v4691_v14, 0.0 }
 0x7ab   :  { %v12539_v9 = vmax.f32 %v10836_v55, 0.0  ;;  %v4629_v41 = vmul.f32 %v10605_v13, %v12540_v25  ;;  %v4630_v23 = vmul.f32 %v10605_v13, %v12541_v28  ;;  %v4696_v40 = vadd.f32 %v10609_v5, %v4627_v32  ;;  %4836 = vst.msk [vmem:[#allocation3 + $0x8] sm:$0xff] %vm4834_vm14, %v10872_v50  ;;  %v12542_v25 = vld [vmem:[#allocation25_spill] sm:$0xff] }
 0x7ac   :  { %v10906_v58 = vmax.f32 %v4692_v18, 0.0  ;;  %v4697_v8 = vadd.f32 %v10609_v5, %v4628_v60  ;;  %v4712_v14 = vadd.f32 %v10609_v5, %v4643_v30  ;;  %v10912_v61 = vmax.f32 %v4693_v39, 0.0  ;;  %4838 = vst.msk [vmem:[#allocation3 + $0x18] sm:$0xff] %vm4834_vm14, %v10877_v3  ;;  %v12543_v60 = vld [vmem:[#allocation28_spill] sm:$0xff] }
 0x7ad   :  { %4835 = vst.msk [vmem:[#allocation3] sm:$0xff] %vm4834_vm14, %v12539_v9  ;;  %v10914_v9 = vmax.f32 %v4708_v62, 0.0  ;;  %v4631_v28 = vmul.f32 %v10605_v13, %v12542_v25  ;;  %v4698_v32 = vadd.f32 %v10609_v5, %v4629_v41  ;;  %v10921_v18 = vmax.f32 %v4694_v63, 0.0  ;;  %v12544_v62 = vld [vmem:[#allocation20_spill] sm:$0xff] }
 0x7ae   :  { %v10923_v19 = vmax.f32 %v4713_v0, 0.0  ;;  %4839 = vst.msk [vmem:[#allocation3 + $0x20] sm:$0xff] %vm4834_vm14, %v10885_v36  ;;  %v4632_v39 = vmul.f32 %v10605_v13, %v12543_v60  ;;  %v4642_v30 = vmul.f32 %v10605_v13, %v12544_v62  ;;  %v4699_v34 = vadd.f32 %v10609_v5, %v4630_v23  ;;  %v12545_v63 = vld [vmem:[#allocation32_spill] sm:$0xff] }
 0x7af   :  { %v10932_v59 = vmax.f32 %v4695_v21, 0.0  ;;  %4840 = vst.msk [vmem:[#allocation3 + $0x28] sm:$0xff] %vm4834_vm14, %v10894_v4  ;;  %v4647_v0 = vmul.f32 %v10605_v13, %v12545_v63  ;;  %v4700_v41 = vadd.f32 %v10609_v5, %v4631_v28  ;;  %v10941_v25 = vmax.f32 %v4696_v40, 0.0  ;;  %v12546_v63 = vld [vmem:[#allocation30_spill] sm:$0xff] }
 0x7b0   :  { %4881 = vrot.lane.b32.xlu1 %v10879_v35, %s6436_s24  ;;  %4841 = vst.msk [vmem:[#allocation3 + $0x30] sm:$0xff] %vm4834_vm14, %v10906_v58  ;;  %v4701_v21 = vadd.f32 %v10609_v5, %v4632_v39  ;;  %v4711_v23 = vadd.f32 %v10609_v5, %v4642_v30  ;;  %v10949_v60 = vmax.f32 %v4697_v8, 0.0  ;;  %v10951_v62 = vmax.f32 %v4712_v14, 0.0 }
 0x7b1   :  { %4842 = vst.msk [vmem:[#allocation3 + $0x38] sm:$0xff] %vm4834_vm14, %v10912_v61  ;;  %v4716_v40 = vadd.f32 %v10609_v5, %v4647_v0  ;;  %v10956_v28 = vmax.f32 %v4698_v32, 0.0  ;;  %v4646_v37 = vmul.f32 %v10605_v13, %v12546_v63  ;;  %v10962_v39 = vmax.f32 %v4699_v34, 0.0  ;;  %v12548_v0 = vld [vmem:[#allocation27_spill] sm:$0xff] }
 0x7b2   :  { %4879 = vrot.lane.b32.xlu0 %v10914_v9, %s6436_s24  ;;  %4889 = vrot.lane.b32.xlu2 %v10923_v19, %s6436_s24  ;;  %4843 = vst.msk [vmem:[#allocation3 + $0x40] sm:$0xff] %vm4834_vm14, %v10921_v18  ;;  %v10968_v8 = vmax.f32 %v4700_v41, 0.0  ;;  %v10973_v32 = vmax.f32 %v4701_v21, 0.0  ;;  %v10975_v30 = vmax.f32 %v4711_v23, 0.0  ;;  %v4645_v41 = vmul.f32 %v10605_v13, %v12548_v0 }
 0x7b3   :  { %4844 = vst.msk [vmem:[#allocation3 + $0x48] sm:$0xff] %vm4834_vm14, %v10932_v59  ;;  %v4715_v14 = vadd.f32 %v10609_v5, %v4646_v37  ;;  %v10979_v34 = vmax.f32 %v4716_v40, 0.0  ;;  %v12550_v40 = vld [vmem:[#allocation37_spill] sm:$0xff]  ;;  %v12551_v0 = vmax.f32 %v10836_v55, 0.0 }
 0x7b4   :  { %4845 = vst.msk [vmem:[#allocation3 + $0x50] sm:$0xff] %vm4834_vm14, %v10941_v25  ;;  %v4714_v37 = vadd.f32 %v10609_v5, %v4645_v41  ;;  %v4648_v63 = vmul.f32 %v10605_v13, %v12550_v40 }
 0x7b5   :  { %4846 = vst.msk [vmem:[#allocation3 + $0x58] sm:$0xff] %vm4834_vm14, %v10949_v60  ;;  %v10994_v21 = vmax.f32 %v4715_v14, 0.0 }
 0x7b6   :  { %12547 = vst [vmem:[#allocation41_spill] sm:$0xff] %v10979_v34  ;;  %v11000_v23 = vmax.f32 %v4714_v37, 0.0  ;;  %v4717_v14 = vadd.f32 %v10609_v5, %v4648_v63 }
 0x7b7   :  { %4847 = vst.msk [vmem:[#allocation3 + $0x60] sm:$0xff] %vm4834_vm14, %v10956_v28 }
 0x7b8   :  { %4887 = vrot.lane.b32.xlu1 %v10951_v62, %s6436_s24  ;;  %4848 = vst.msk [vmem:[#allocation3 + $0x68] sm:$0xff] %vm4834_vm14, %v10962_v39  ;;  %v11012_v41 = vmax.f32 %v4717_v14, 0.0 }
 0x7b9   :  { %4849 = vst.msk [vmem:[#allocation3 + $0x70] sm:$0xff] %vm4834_vm14, %v10968_v8 }
 0x7ba   :  { %4885 = vrot.lane.b32.xlu0 %v10975_v30, %s6436_s24  ;;  %4895 = vrot.lane.b32.xlu2 %v10979_v34, %s6436_s24  ;;  %12549 = vst [vmem:[#allocation45_spill] sm:$0xff] %v10994_v21 }
 0x7bb   :  { %4850 = vst.msk [vmem:[#allocation3 + $0x78] sm:$0xff] %vm4834_vm14, %v10973_v32  ;;  %vm5393_vm14 = vcmask 516544  }
 0x7bc   :  { %12552 = vst [vmem:[#allocation46_spill] sm:$0xff] %v11012_v41 }
 0x7c0   :  { %4893 = vrot.lane.b32.xlu1 %v10994_v21, %s6436_s24 }
 0x7c2   :  { %4891 = vrot.lane.b32.xlu0 %v11000_v23, %s6436_s24  ;;  %4950 = vrot.lane.b32.xlu2 %v10872_v50, %s6438_s15 }
 0x7c8   :  { %4948 = vrot.lane.b32.xlu1 %v12551_v0, %s6438_s15 }
 0x7ca   :  { %4897 = vrot.lane.b32.xlu0 %v11012_v41, %s6436_s24  ;;  %4956 = vrot.lane.b32.xlu2 %v10885_v36, %s6438_s15  ;;  %s6446_s24 = smov 56  }
 0x7d0   :  { %4954 = vrot.lane.b32.xlu1 %v10877_v3, %s6438_s15 }
 0x7d2   :  { %4952 = vrot.lane.b32.xlu0 %v10856_v2, %s6438_s15  ;;  %4962 = vrot.lane.b32.xlu2 %v10912_v61, %s6438_s15 }
 0x7d8   :  { %4960 = vrot.lane.b32.xlu1 %v10906_v58, %s6438_s15 }
 0x7da   :  { %4958 = vrot.lane.b32.xlu0 %v10894_v4, %s6438_s15  ;;  %4968 = vrot.lane.b32.xlu2 %v10941_v25, %s6438_s15 }
 0x7e0   :  { %4966 = vrot.lane.b32.xlu1 %v10932_v59, %s6438_s15 }
 0x7e2   :  { %4964 = vrot.lane.b32.xlu0 %v10921_v18, %s6438_s15  ;;  %4974 = vrot.lane.b32.xlu2 %v10962_v39, %s6438_s15 }
 0x7e8   :  { %4972 = vrot.lane.b32.xlu1 %v10956_v28, %s6438_s15 }
 0x7ea   :  { %4970 = vrot.lane.b32.xlu0 %v10949_v60, %s6438_s15  ;;  %4980 = vrot.lane.b32.xlu2 %v10808_v53, %s6438_s15 }
 0x7ed   :  { %v4872_v13 = vpop.permute.xlu2 %4871 }
 0x7ee   :  { %4918 = vst.msk [vmem:[#allocation3 + $0x10] sm:$0xff] %vm4915_vm15, %v4872_v13  ;;  %v11082_v13 = vmax.f32 %v10699_v33, 0.0 }
 0x7f0   :  { %4978 = vrot.lane.b32.xlu1 %v10973_v32, %s6438_s15 }
 0x7f2   :  { %4976 = vrot.lane.b32.xlu0 %v10968_v8, %s6438_s15  ;;  %5024 = vrot.lane.b32.xlu2 %v10649_v10, %s6440_s28  ;;  %s6447_s15 = smov 64  }
 0x7f8   :  { %5022 = vrot.lane.b32.xlu1 %v10799_v45, %s6440_s28 }
 0x7fa   :  { %5020 = vrot.lane.b32.xlu0 %v10808_v53, %s6440_s28  ;;  %5030 = vrot.lane.b32.xlu2 %v10810_v27, %s6440_s28 }
 0x7fc   :  { %v4878_v5 = vpop.permute.xlu2 %4877 }
 0x7fd   :  { %4921 = vst.msk [vmem:[#allocation3 + $0x28] sm:$0xff] %vm4915_vm15, %v4878_v5 }
 0x800   :  { %5028 = vrot.lane.b32.xlu1 %v10825_v43, %s6440_s28 }
 0x802   :  { %5026 = vrot.lane.b32.xlu0 %v10851_v57, %s6440_s28  ;;  %5036 = vrot.lane.b32.xlu2 %v10858_v48, %s6440_s28 }
 0x804   :  { %v4884_v55 = vpop.permute.xlu2 %4883 }
 0x805   :  { %4924 = vst.msk [vmem:[#allocation3 + $0x40] sm:$0xff] %vm4915_vm15, %v4884_v55 }
 0x808   :  { %5034 = vrot.lane.b32.xlu1 %v10879_v35, %s6440_s28 }
 0x80a   :  { %5032 = vrot.lane.b32.xlu0 %v10914_v9, %s6440_s28  ;;  %5042 = vrot.lane.b32.xlu2 %v10923_v19, %s6440_s28 }
 0x80c   :  { %v4890_v37 = vpop.permute.xlu2 %4889 }
 0x80d   :  { %4927 = vst.msk [vmem:[#allocation3 + $0x58] sm:$0xff] %vm4915_vm15, %v4890_v37  ;;  %v11094_v37 = vmax.f32 %v10708_v6, 0.0  ;;  %v11109_v6 = vmax.f32 %v10702_v46, 0.0 }
 0x80f   :  { %12553 = vst [vmem:[#allocation48_spill] sm:$0xff] %v11109_v6 }
 0x810   :  { %5040 = vrot.lane.b32.xlu1 %v10951_v62, %s6440_s28 }
 0x812   :  { %v4870_v40 = vpop.permute.xlu1 %4869  ;;  %5038 = vrot.lane.b32.xlu0 %v10975_v30, %s6440_s28  ;;  %5048 = vrot.lane.b32.xlu2 %v10979_v34, %s6440_s28 }
 0x813   :  { %4917 = vst.msk [vmem:[#allocation3 + $0x8] sm:$0xff] %vm4915_vm15, %v4870_v40  ;;  %v11102_v40 = vmax.f32 %v10705_v17, 0.0  ;;  %v11120_v17 = vmax.f32 %v10714_v7, 0.0  ;;  %v11138_v7 = vmax.f32 %v10723_v24, 0.0  ;;  %v11155_v24 = vmax.f32 %v10732_v22, 0.0 }
 0x814   :  { %v4868_v63 = vpop.permute.xlu0 %4867  ;;  %v4896_v14 = vpop.permute.xlu2 %4895  ;;  %v11173_v22 = vmax.f32 %v10741_v31, 0.0  ;;  %v11190_v31 = vmax.f32 %v10750_v26, 0.0  ;;  %v11208_v26 = vmax.f32 %v10759_v44, 0.0  ;;  %v11226_v44 = vmax.f32 %v10768_v52, 0.0  ;;  %v12556_v52 = vld [vmem:[#allocation33_spill] sm:$0xff] }
 0x815   :  { %4916 = vst.msk [vmem:[#allocation3] sm:$0xff] %vm4915_vm15, %v4868_v63 }
 0x816   :  { %4930 = vst.msk [vmem:[#allocation3 + $0x70] sm:$0xff] %vm4915_vm15, %v4896_v14 }
 0x818   :  { %5046 = vrot.lane.b32.xlu1 %v10994_v21, %s6440_s28  ;;  %v12558_v21 = vld [vmem:[#allocation39_spill] sm:$0xff] }
 0x819   :  { %v11254_v34 = vmax.f32 %v12558_v21, 0.0  ;;  %v12560_v21 = vld [vmem:[#allocation34_spill] sm:$0xff] }
 0x81a   :  { %v4876_v0 = vpop.permute.xlu1 %4875  ;;  %5044 = vrot.lane.b32.xlu0 %v11000_v23, %s6440_s28  ;;  %5106 = vrot.lane.b32.xlu2 %v11082_v13, %s6442_s22 }
 0x81b   :  { %4920 = vst.msk [vmem:[#allocation3 + $0x20] sm:$0xff] %vm4915_vm15, %v4876_v0 }
 0x81c   :  { %v4874_v5 = vpop.permute.xlu0 %4873  ;;  %v4951_v55 = vpop.permute.xlu2 %4950 }
 0x81d   :  { %4919 = vst.msk [vmem:[#allocation3 + $0x18] sm:$0xff] %vm4915_vm15, %v4874_v5  ;;  %v11112_v5 = vmax.f32 %v10717_v56, 0.0  ;;  %v11127_v56 = vmax.f32 %v10711_v49, 0.0 }
 0x81e   :  { %5002 = vst.msk [vmem:[#allocation3 + $0x7] sm:$0xff] %vm5001_vm0, %v4951_v55 }
 0x820   :  { %5052 = vrot.lane.b32.xlu1 %v11082_v13, %s6440_s28 }
 0x822   :  { %v4882_v33 = vpop.permute.xlu1 %4881  ;;  %5050 = vrot.lane.b32.xlu0 %v11012_v41, %s6440_s28  ;;  %5112 = vrot.lane.b32.xlu2 %v11094_v37, %s6442_s22  ;;  %s6448_s28 = smov 72  }
 0x823   :  { %4923 = vst.msk [vmem:[#allocation3 + $0x38] sm:$0xff] %vm4915_vm15, %v4882_v33 }
 0x824   :  { %v4880_v63 = vpop.permute.xlu0 %4879  ;;  %v4957_v14 = vpop.permute.xlu2 %4956 }
 0x825   :  { %4922 = vst.msk [vmem:[#allocation3 + $0x30] sm:$0xff] %vm4915_vm15, %v4880_v63  ;;  %v11130_v63 = vmax.f32 %v10726_v51, 0.0  ;;  %v11145_v51 = vmax.f32 %v10720_v11, 0.0  ;;  %v11162_v11 = vmax.f32 %v10729_v20, 0.0 }
 0x826   :  { %5005 = vst.msk [vmem:[#allocation3 + $0x1f] sm:$0xff] %vm5001_vm0, %v4957_v14 }
 0x828   :  { %5110 = vrot.lane.b32.xlu1 %v11102_v40, %s6442_s22 }
 0x82a   :  { %v4888_v0 = vpop.permute.xlu1 %4887  ;;  %5108 = vrot.lane.b32.xlu0 %v11109_v6, %s6442_s22  ;;  %5118 = vrot.lane.b32.xlu2 %v11112_v5, %s6442_s22 }
 0x82b   :  { %4926 = vst.msk [vmem:[#allocation3 + $0x50] sm:$0xff] %vm4915_vm15, %v4888_v0 }
 0x82c   :  { %v4886_v55 = vpop.permute.xlu0 %4885  ;;  %v4963_v46 = vpop.permute.xlu2 %4962 }
 0x82d   :  { %4925 = vst.msk [vmem:[#allocation3 + $0x48] sm:$0xff] %vm4915_vm15, %v4886_v55  ;;  %v11148_v55 = vmax.f32 %v10735_v12, 0.0 }
 0x82e   :  { %5008 = vst.msk [vmem:[#allocation3 + $0x37] sm:$0xff] %vm5001_vm0, %v4963_v46 }
 0x830   :  { %5116 = vrot.lane.b32.xlu1 %v11120_v17, %s6442_s22 }
 0x832   :  { %v4894_v33 = vpop.permute.xlu1 %4893  ;;  %5114 = vrot.lane.b32.xlu0 %v11127_v56, %s6442_s22  ;;  %5124 = vrot.lane.b32.xlu2 %v11130_v63, %s6442_s22 }
 0x833   :  { %4929 = vst.msk [vmem:[#allocation3 + $0x68] sm:$0xff] %vm4915_vm15, %v4894_v33 }
 0x834   :  { %v4892_v14 = vpop.permute.xlu0 %4891  ;;  %v4969_v49 = vpop.permute.xlu2 %4968 }
 0x835   :  { %4928 = vst.msk [vmem:[#allocation3 + $0x60] sm:$0xff] %vm4915_vm15, %v4892_v14  ;;  %v11165_v14 = vmax.f32 %v10744_v16, 0.0  ;;  %v11179_v16 = vmax.f32 %v10738_v47, 0.0 }
 0x836   :  { %5011 = vst.msk [vmem:[#allocation3 + $0x4f] sm:$0xff] %vm5001_vm0, %v4969_v49 }
 0x838   :  { %5122 = vrot.lane.b32.xlu1 %v11138_v7, %s6442_s22 }
 0x83a   :  { %v4949_v0 = vpop.permute.xlu1 %4948  ;;  %5120 = vrot.lane.b32.xlu0 %v11145_v51, %s6442_s22  ;;  %5130 = vrot.lane.b32.xlu2 %v11148_v55, %s6442_s22 }
 0x83b   :  { %5000 = vst.msk [vmem:[#allocation3 - $0x1] sm:$0xfe] %vm4999_vm1, %v4949_v0  ;;  %vm5649_vm1 = vcmask 786112  }
 0x83c   :  { %v4898_v46 = vpop.permute.xlu0 %4897  ;;  %v4975_v33 = vpop.permute.xlu2 %4974 }
 0x83d   :  { %4931 = vst.msk [vmem:[#allocation3 + $0x78] sm:$0xff] %vm4915_vm15, %v4898_v46  ;;  %v11182_v46 = vmax.f32 %v10753_v38, 0.0  ;;  %v11197_v38 = vmax.f32 %v10747_v1, 0.0  ;;  %vm5508_vm15 = vcmask 654912  }
 0x83e   :  { %5014 = vst.msk [vmem:[#allocation3 + $0x67] sm:$0xff] %vm5001_vm0, %v4975_v33 }
 0x83f   :  { %12554 = vst [vmem:[#allocation50_spill] sm:$0xff] %v11197_v38 }
 0x840   :  { %5128 = vrot.lane.b32.xlu1 %v11155_v24, %s6442_s22 }
 0x842   :  { %v4955_v12 = vpop.permute.xlu1 %4954  ;;  %5126 = vrot.lane.b32.xlu0 %v11162_v11, %s6442_s22  ;;  %5136 = vrot.lane.b32.xlu2 %v11165_v14, %s6442_s22 }
 0x843   :  { %5004 = vst.msk [vmem:[#allocation3 + $0x17] sm:$0xff] %vm5001_vm0, %v4955_v12 }
 0x844   :  { %v4953_v49 = vpop.permute.xlu0 %4952  ;;  %v4981_v20 = vpop.permute.xlu2 %4980 }
 0x845   :  { %5003 = vst.msk [vmem:[#allocation3 + $0xf] sm:$0xff] %vm5001_vm0, %v4953_v49  ;;  %v11200_v49 = vmax.f32 %v10762_v54, 0.0  ;;  %v11215_v54 = vmax.f32 %v10756_v42, 0.0 }
 0x846   :  { %5018 = vst.msk [vmem:[#allocation3 + $0x7f] sm:$0x1] %vm5017_vm2, %v4981_v20  ;;  %vm5576_vm2 = vcmask 720513  }
 0x848   :  { %5134 = vrot.lane.b32.xlu1 %v11173_v22, %s6442_s22 }
 0x84a   :  { %v4961_v0 = vpop.permute.xlu1 %4960  ;;  %5132 = vrot.lane.b32.xlu0 %v11179_v16, %s6442_s22  ;;  %5191 = vrot.lane.b32.xlu2 %v11182_v46, %s6444_s2  ;;  %s6449_s22 = smov 80  }
 0x84b   :  { %5007 = vst.msk [vmem:[#allocation3 + $0x2f] sm:$0xff] %vm5001_vm0, %v4961_v0 }
 0x84c   :  { %v4959_v33 = vpop.permute.xlu0 %4958  ;;  %v5025_v47 = vpop.permute.xlu2 %5024 }
 0x84d   :  { %5006 = vst.msk [vmem:[#allocation3 + $0x27] sm:$0xff] %vm5001_vm0, %v4959_v33  ;;  %v11218_v33 = vmax.f32 %v10771_v15, 0.0  ;;  %v11233_v15 = vmax.f32 %v10765_v29, 0.0 }
 0x84e   :  { %5075 = vst.msk [vmem:[#allocation3 + $0xf] sm:$0xff] %vm5073_vm3, %v5025_v47 }
 0x850   :  { %5189 = vrot.lane.b32.xlu1 %v11190_v31, %s6444_s2 }
 0x852   :  { %v4967_v12 = vpop.permute.xlu1 %4966  ;;  %5187 = vrot.lane.b32.xlu0 %v11197_v38, %s6444_s2  ;;  %5197 = vrot.lane.b32.xlu2 %v11200_v49, %s6444_s2 }
 0x853   :  { %5010 = vst.msk [vmem:[#allocation3 + $0x47] sm:$0xff] %vm5001_vm0, %v4967_v12 }
 0x854   :  { %v4965_v20 = vpop.permute.xlu0 %4964  ;;  %v5031_v1 = vpop.permute.xlu2 %5030 }
 0x855   :  { %5009 = vst.msk [vmem:[#allocation3 + $0x3f] sm:$0xff] %vm5001_vm0, %v4965_v20  ;;  %v12555_v20 = vld [vmem:[#allocation35_spill] sm:$0xff] }
 0x856   :  { %5078 = vst.msk [vmem:[#allocation3 + $0x27] sm:$0xff] %vm5073_vm3, %v5031_v1  ;;  %v11236_v1 = vmax.f32 %v12555_v20, 0.0 }
 0x858   :  { %5195 = vrot.lane.b32.xlu1 %v11208_v26, %s6444_s2 }
 0x85a   :  { %v4973_v0 = vpop.permute.xlu1 %4972  ;;  %5193 = vrot.lane.b32.xlu0 %v11215_v54, %s6444_s2  ;;  %5203 = vrot.lane.b32.xlu2 %v11218_v33, %s6444_s2 }
 0x85b   :  { %5013 = vst.msk [vmem:[#allocation3 + $0x5f] sm:$0xff] %vm5001_vm0, %v4973_v0  ;;  %v11244_v0 = vmax.f32 %v12556_v52, 0.0  ;;  %v12559_v52 = vld [vmem:[#allocation36_spill] sm:$0xff] }
 0x85c   :  { %v4971_v47 = vpop.permute.xlu0 %4970  ;;  %v5037_v42 = vpop.permute.xlu2 %5036 }
 0x85d   :  { %5012 = vst.msk [vmem:[#allocation3 + $0x57] sm:$0xff] %vm5001_vm0, %v4971_v47 }
 0x85e   :  { %5081 = vst.msk [vmem:[#allocation3 + $0x3f] sm:$0xff] %vm5073_vm3, %v5037_v42  ;;  %v12557_v42 = vld [vmem:[#allocation31_spill] sm:$0xff] }
 0x860   :  { %5201 = vrot.lane.b32.xlu1 %v11226_v44, %s6444_s2 }
 0x862   :  { %v4979_v12 = vpop.permute.xlu1 %4978  ;;  %5199 = vrot.lane.b32.xlu0 %v11233_v15, %s6444_s2  ;;  %5209 = vrot.lane.b32.xlu2 %v11236_v1, %s6444_s2 }
 0x863   :  { %5016 = vst.msk [vmem:[#allocation3 + $0x77] sm:$0xff] %vm5001_vm0, %v4979_v12  ;;  %v11251_v12 = vmax.f32 %v12557_v42, 0.0 }
 0x864   :  { %v4977_v47 = vpop.permute.xlu0 %4976  ;;  %v5043_v29 = vpop.permute.xlu2 %5042 }
 0x865   :  { %5015 = vst.msk [vmem:[#allocation3 + $0x6f] sm:$0xff] %vm5001_vm0, %v4977_v47  ;;  %v11262_v47 = vmax.f32 %v12559_v52, 0.0  ;;  %vm5578_vm0 = vcmask 720512  }
 0x866   :  { %5084 = vst.msk [vmem:[#allocation3 + $0x57] sm:$0xff] %vm5073_vm3, %v5043_v29 }
 0x868   :  { %5207 = vrot.lane.b32.xlu1 %v11244_v0, %s6444_s2 }
 0x86a   :  { %v5023_v20 = vpop.permute.xlu1 %5022  ;;  %5205 = vrot.lane.b32.xlu0 %v11251_v12, %s6444_s2  ;;  %5215 = vrot.lane.b32.xlu2 %v11254_v34, %s6444_s2 }
 0x86b   :  { %5074 = vst.msk [vmem:[#allocation3 + $0x7] sm:$0xff] %vm5073_vm3, %v5023_v20  ;;  %v11268_v20 = vmax.f32 %v12560_v21, 0.0 }
 0x86c   :  { %v5021_v29 = vpop.permute.xlu0 %5020  ;;  %v5049_v42 = vpop.permute.xlu2 %5048 }
 0x86d   :  { %5072 = vst.msk [vmem:[#allocation3 - $0x1] sm:$0xfe] %vm5071_vm4, %v5021_v29  ;;  %vm5715_vm4 = vcmask 851712  }
 0x86e   :  { %5087 = vst.msk [vmem:[#allocation3 + $0x6f] sm:$0xff] %vm5073_vm3, %v5049_v42  ;;  %v12561_v42 = vld [vmem:[#allocation40_spill] sm:$0xff] }
 0x86f   :  { %v11280_v21 = vmax.f32 %v12561_v42, 0.0 }
 0x870   :  { %5213 = vrot.lane.b32.xlu1 %v11262_v47, %s6444_s2 }
 0x871   :  { %12562 = vst [vmem:[#allocation51_spill] sm:$0xff] %v11280_v21 }
 0x872   :  { %v5029_v41 = vpop.permute.xlu1 %5028  ;;  %5211 = vrot.lane.b32.xlu0 %v11268_v20, %s6444_s2  ;;  %5254 = vrot.lane.b32.xlu2 %v11109_v6, %s6445_s3 }
 0x873   :  { %5077 = vst.msk [vmem:[#allocation3 + $0x1f] sm:$0xff] %vm5073_vm3, %v5029_v41 }
 0x874   :  { %v5027_v52 = vpop.permute.xlu0 %5026  ;;  %v5107_v29 = vpop.permute.xlu2 %5106 }
 0x875   :  { %5076 = vst.msk [vmem:[#allocation3 + $0x17] sm:$0xff] %vm5073_vm3, %v5027_v52 }
 0x876   :  { %5155 = vst.msk [vmem:[#allocation3] sm:$0xff] %vm5154_vm5, %v5107_v29 }
 0x878   :  { %5252 = vrot.lane.b32.xlu1 %v11082_v13, %s6445_s3 }
 0x87a   :  { %v5035_v41 = vpop.permute.xlu1 %5034  ;;  %5217 = vrot.lane.b32.xlu0 %v11280_v21, %s6444_s2  ;;  %5260 = vrot.lane.b32.xlu2 %v11127_v56, %s6445_s3 }
 0x87b   :  { %5080 = vst.msk [vmem:[#allocation3 + $0x37] sm:$0xff] %vm5073_vm3, %v5035_v41 }
 0x87c   :  { %v5033_v6 = vpop.permute.xlu0 %5032  ;;  %v5113_v52 = vpop.permute.xlu2 %5112 }
 0x87d   :  { %5079 = vst.msk [vmem:[#allocation3 + $0x2f] sm:$0xff] %vm5073_vm3, %v5033_v6 }
 0x87e   :  { %5158 = vst.msk [vmem:[#allocation3 + $0x18] sm:$0xff] %vm5154_vm5, %v5113_v52 }
 0x880   :  { %5258 = vrot.lane.b32.xlu1 %v11094_v37, %s6445_s3 }
 0x882   :  { %v5041_v29 = vpop.permute.xlu1 %5040  ;;  %5256 = vrot.lane.b32.xlu0 %v11102_v40, %s6445_s3  ;;  %5266 = vrot.lane.b32.xlu2 %v11145_v51, %s6445_s3 }
 0x883   :  { %5083 = vst.msk [vmem:[#allocation3 + $0x4f] sm:$0xff] %vm5073_vm3, %v5041_v29 }
 0x884   :  { %v5039_v42 = vpop.permute.xlu0 %5038  ;;  %v5119_v41 = vpop.permute.xlu2 %5118 }
 0x885   :  { %5082 = vst.msk [vmem:[#allocation3 + $0x47] sm:$0xff] %vm5073_vm3, %v5039_v42 }
 0x886   :  { %5161 = vst.msk [vmem:[#allocation3 + $0x30] sm:$0xff] %vm5154_vm5, %v5119_v41 }
 0x888   :  { %5264 = vrot.lane.b32.xlu1 %v11112_v5, %s6445_s3 }
 0x88a   :  { %v5047_v6 = vpop.permute.xlu1 %5046  ;;  %5262 = vrot.lane.b32.xlu0 %v11120_v17, %s6445_s3  ;;  %5272 = vrot.lane.b32.xlu2 %v11162_v11, %s6445_s3 }
 0x88b   :  { %5086 = vst.msk [vmem:[#allocation3 + $0x67] sm:$0xff] %vm5073_vm3, %v5047_v6 }
 0x88c   :  { %v5045_v52 = vpop.permute.xlu0 %5044  ;;  %v5125_v29 = vpop.permute.xlu2 %5124 }
 0x88d   :  { %5085 = vst.msk [vmem:[#allocation3 + $0x5f] sm:$0xff] %vm5073_vm3, %v5045_v52 }
 0x88e   :  { %5164 = vst.msk [vmem:[#allocation3 + $0x48] sm:$0xff] %vm5154_vm5, %v5125_v29 }
 0x890   :  { %5270 = vrot.lane.b32.xlu1 %v11130_v63, %s6445_s3 }
 0x892   :  { %v5053_v42 = vpop.permute.xlu1 %5052  ;;  %5268 = vrot.lane.b32.xlu0 %v11138_v7, %s6445_s3  ;;  %5278 = vrot.lane.b32.xlu2 %v11179_v16, %s6445_s3 }
 0x893   :  { %5090 = vst.msk [vmem:[#allocation3 + $0x7f] sm:$0x1] %vm5089_vm6, %v5053_v42  ;;  %vm5848_vm6 = vcmask 982913  }
 0x894   :  { %v5051_v41 = vpop.permute.xlu0 %5050  ;;  %v5131_v6 = vpop.permute.xlu2 %5130 }
 0x895   :  { %5088 = vst.msk [vmem:[#allocation3 + $0x77] sm:$0xff] %vm5073_vm3, %v5051_v41  ;;  %vm5647_vm3 = vcmask 786113  }
 0x896   :  { %5167 = vst.msk [vmem:[#allocation3 + $0x60] sm:$0xff] %vm5154_vm5, %v5131_v6 }
 0x898   :  { %5276 = vrot.lane.b32.xlu1 %v11148_v55, %s6445_s3 }
 0x89a   :  { %v5111_v52 = vpop.permute.xlu1 %5110  ;;  %5274 = vrot.lane.b32.xlu0 %v11155_v24, %s6445_s3  ;;  %5284 = vrot.lane.b32.xlu2 %v11197_v38, %s6445_s3 }
 0x89b   :  { %5157 = vst.msk [vmem:[#allocation3 + $0x10] sm:$0xff] %vm5154_vm5, %v5111_v52 }
 0x89c   :  { %v5109_v29 = vpop.permute.xlu0 %5108  ;;  %v5137_v42 = vpop.permute.xlu2 %5136 }
 0x89d   :  { %5156 = vst.msk [vmem:[#allocation3 + $0x8] sm:$0xff] %vm5154_vm5, %v5109_v29 }
 0x89e   :  { %5170 = vst.msk [vmem:[#allocation3 + $0x78] sm:$0xff] %vm5154_vm5, %v5137_v42 }
 0x8a0   :  { %5282 = vrot.lane.b32.xlu1 %v11165_v14, %s6445_s3 }
 0x8a2   :  { %v5117_v41 = vpop.permute.xlu1 %5116  ;;  %5280 = vrot.lane.b32.xlu0 %v11173_v22, %s6445_s3  ;;  %5328 = vrot.lane.b32.xlu2 %v11182_v46, %s6446_s24 }
 0x8a3   :  { %5160 = vst.msk [vmem:[#allocation3 + $0x28] sm:$0xff] %vm5154_vm5, %v5117_v41 }
 0x8a4   :  { %v5115_v6 = vpop.permute.xlu0 %5114  ;;  %v5192_v52 = vpop.permute.xlu2 %5191 }
 0x8a5   :  { %5159 = vst.msk [vmem:[#allocation3 + $0x20] sm:$0xff] %vm5154_vm5, %v5115_v6 }
 0x8a6   :  { %5238 = vst.msk [vmem:[#allocation3 + $0x10] sm:$0xff] %vm5235_vm7, %v5192_v52 }
 0x8a8   :  { %5326 = vrot.lane.b32.xlu1 %v11190_v31, %s6446_s24 }
 0x8aa   :  { %v5123_v29 = vpop.permute.xlu1 %5122  ;;  %5324 = vrot.lane.b32.xlu0 %v11197_v38, %s6446_s24  ;;  %5334 = vrot.lane.b32.xlu2 %v11200_v49, %s6446_s24 }
 0x8ab   :  { %5163 = vst.msk [vmem:[#allocation3 + $0x40] sm:$0xff] %vm5154_vm5, %v5123_v29 }
 0x8ac   :  { %v5121_v42 = vpop.permute.xlu0 %5120  ;;  %v5198_v41 = vpop.permute.xlu2 %5197 }
 0x8ad   :  { %5162 = vst.msk [vmem:[#allocation3 + $0x38] sm:$0xff] %vm5154_vm5, %v5121_v42 }
 0x8ae   :  { %5241 = vst.msk [vmem:[#allocation3 + $0x28] sm:$0xff] %vm5235_vm7, %v5198_v41 }
 0x8b0   :  { %5332 = vrot.lane.b32.xlu1 %v11208_v26, %s6446_s24 }
 0x8b2   :  { %v5129_v6 = vpop.permute.xlu1 %5128  ;;  %5330 = vrot.lane.b32.xlu0 %v11215_v54, %s6446_s24  ;;  %5340 = vrot.lane.b32.xlu2 %v11218_v33, %s6446_s24 }
 0x8b3   :  { %5166 = vst.msk [vmem:[#allocation3 + $0x58] sm:$0xff] %vm5154_vm5, %v5129_v6 }
 0x8b4   :  { %v5127_v52 = vpop.permute.xlu0 %5126  ;;  %v5204_v29 = vpop.permute.xlu2 %5203 }
 0x8b5   :  { %5165 = vst.msk [vmem:[#allocation3 + $0x50] sm:$0xff] %vm5154_vm5, %v5127_v52 }
 0x8b6   :  { %5244 = vst.msk [vmem:[#allocation3 + $0x40] sm:$0xff] %vm5235_vm7, %v5204_v29 }
 0x8b8   :  { %5338 = vrot.lane.b32.xlu1 %v11226_v44, %s6446_s24 }
 0x8ba   :  { %v5135_v42 = vpop.permute.xlu1 %5134  ;;  %5336 = vrot.lane.b32.xlu0 %v11233_v15, %s6446_s24  ;;  %5346 = vrot.lane.b32.xlu2 %v11236_v1, %s6446_s24 }
 0x8bb   :  { %5169 = vst.msk [vmem:[#allocation3 + $0x70] sm:$0xff] %vm5154_vm5, %v5135_v42 }
 0x8bc   :  { %v5133_v41 = vpop.permute.xlu0 %5132  ;;  %v5210_v6 = vpop.permute.xlu2 %5209 }
 0x8bd   :  { %5168 = vst.msk [vmem:[#allocation3 + $0x68] sm:$0xff] %vm5154_vm5, %v5133_v41  ;;  %vm5780_vm5 = vcmask 917312  }
 0x8be   :  { %5247 = vst.msk [vmem:[#allocation3 + $0x58] sm:$0xff] %vm5235_vm7, %v5210_v6  ;;  %v12563_v6 = vld [vmem:[#allocation12_spill] sm:$0xff] }
 0x8c0   :  { %5344 = vrot.lane.b32.xlu1 %v11244_v0, %s6446_s24 }
 0x8c2   :  { %v5190_v52 = vpop.permute.xlu1 %5189  ;;  %5342 = vrot.lane.b32.xlu0 %v11251_v12, %s6446_s24  ;;  %5352 = vrot.lane.b32.xlu2 %v11254_v34, %s6446_s24 }
 0x8c3   :  { %5237 = vst.msk [vmem:[#allocation3 + $0x8] sm:$0xff] %vm5235_vm7, %v5190_v52  ;;  %v11377_v52 = vmax.f32 %v12563_v6, 0.0 }
 0x8c4   :  { %v5188_v29 = vpop.permute.xlu0 %5187  ;;  %v5216_v42 = vpop.permute.xlu2 %5215 }
 0x8c5   :  { %5236 = vst.msk [vmem:[#allocation3] sm:$0xff] %vm5235_vm7, %v5188_v29 }
 0x8c6   :  { %5250 = vst.msk [vmem:[#allocation3 + $0x70] sm:$0xff] %vm5235_vm7, %v5216_v42 }
 0x8c7   :  { %12564 = vst [vmem:[#allocation53_spill] sm:$0xff] %v11377_v52 }
 0x8c8   :  { %5350 = vrot.lane.b32.xlu1 %v11262_v47, %s6446_s24 }
 0x8ca   :  { %v5196_v41 = vpop.permute.xlu1 %5195  ;;  %5348 = vrot.lane.b32.xlu0 %v11268_v20, %s6446_s24  ;;  %5395 = vrot.lane.b32.xlu2 %v10872_v50, %s6447_s15 }
 0x8cb   :  { %5240 = vst.msk [vmem:[#allocation3 + $0x20] sm:$0xff] %vm5235_vm7, %v5196_v41 }
 0x8cc   :  { %v5194_v29 = vpop.permute.xlu0 %5193  ;;  %v5255_v38 = vpop.permute.xlu2 %5254 }
 0x8cd   :  { %5239 = vst.msk [vmem:[#allocation3 + $0x18] sm:$0xff] %vm5235_vm7, %v5194_v29 }
 0x8ce   :  { %5306 = vst.msk [vmem:[#allocation3 + $0x7] sm:$0xff] %vm5305_vm8, %v5255_v38 }
 0x8d0   :  { %5356 = vrot.lane.b32.xlu1 %v11377_v52, %s6446_s24 }
 0x8d2   :  { %v5202_v42 = vpop.permute.xlu1 %5201  ;;  %5354 = vrot.lane.b32.xlu0 %v11280_v21, %s6446_s24  ;;  %5401 = vrot.lane.b32.xlu2 %v10885_v36, %s6447_s15 }
 0x8d3   :  { %5243 = vst.msk [vmem:[#allocation3 + $0x38] sm:$0xff] %vm5235_vm7, %v5202_v42 }
 0x8d4   :  { %v5200_v41 = vpop.permute.xlu0 %5199  ;;  %v5261_v6 = vpop.permute.xlu2 %5260 }
 0x8d5   :  { %5242 = vst.msk [vmem:[#allocation3 + $0x30] sm:$0xff] %vm5235_vm7, %v5200_v41 }
 0x8d6   :  { %5309 = vst.msk [vmem:[#allocation3 + $0x1f] sm:$0xff] %vm5305_vm8, %v5261_v6 }
 0x8d8   :  { %5399 = vrot.lane.b32.xlu1 %v10877_v3, %s6447_s15 }
 0x8da   :  { %v5208_v29 = vpop.permute.xlu1 %5207  ;;  %5397 = vrot.lane.b32.xlu0 %v10856_v2, %s6447_s15  ;;  %5407 = vrot.lane.b32.xlu2 %v10912_v61, %s6447_s15 }
 0x8db   :  { %5246 = vst.msk [vmem:[#allocation3 + $0x50] sm:$0xff] %vm5235_vm7, %v5208_v29 }
 0x8dc   :  { %v5206_v38 = vpop.permute.xlu0 %5205  ;;  %v5267_v42 = vpop.permute.xlu2 %5266 }
 0x8dd   :  { %5245 = vst.msk [vmem:[#allocation3 + $0x48] sm:$0xff] %vm5235_vm7, %v5206_v38 }
 0x8de   :  { %5312 = vst.msk [vmem:[#allocation3 + $0x37] sm:$0xff] %vm5305_vm8, %v5267_v42 }
 0x8e0   :  { %5405 = vrot.lane.b32.xlu1 %v10906_v58, %s6447_s15 }
 0x8e2   :  { %v5214_v41 = vpop.permute.xlu1 %5213  ;;  %5403 = vrot.lane.b32.xlu0 %v10894_v4, %s6447_s15  ;;  %5413 = vrot.lane.b32.xlu2 %v10941_v25, %s6447_s15 }
 0x8e3   :  { %5249 = vst.msk [vmem:[#allocation3 + $0x68] sm:$0xff] %vm5235_vm7, %v5214_v41 }
 0x8e4   :  { %v5212_v6 = vpop.permute.xlu0 %5211  ;;  %v5273_v29 = vpop.permute.xlu2 %5272 }
 0x8e5   :  { %5248 = vst.msk [vmem:[#allocation3 + $0x60] sm:$0xff] %vm5235_vm7, %v5212_v6 }
 0x8e6   :  { %5315 = vst.msk [vmem:[#allocation3 + $0x4f] sm:$0xff] %vm5305_vm8, %v5273_v29 }
 0x8e8   :  { %5411 = vrot.lane.b32.xlu1 %v10932_v59, %s6447_s15 }
 0x8ea   :  { %v5253_v38 = vpop.permute.xlu1 %5252  ;;  %5409 = vrot.lane.b32.xlu0 %v10921_v18, %s6447_s15  ;;  %5419 = vrot.lane.b32.xlu2 %v10962_v39, %s6447_s15 }
 0x8eb   :  { %5304 = vst.msk [vmem:[#allocation3 - $0x1] sm:$0xfe] %vm5303_vm9, %v5253_v38  ;;  %vm5922_vm9 = vcmask 1048512  }
 0x8ec   :  { %v5218_v42 = vpop.permute.xlu0 %5217  ;;  %v5279_v41 = vpop.permute.xlu2 %5278 }
 0x8ed   :  { %5251 = vst.msk [vmem:[#allocation3 + $0x78] sm:$0xff] %vm5235_vm7, %v5218_v42  ;;  %vm5920_vm7 = vcmask 1048513  }
 0x8ee   :  { %5318 = vst.msk [vmem:[#allocation3 + $0x67] sm:$0xff] %vm5305_vm8, %v5279_v41 }
 0x8f0   :  { %5417 = vrot.lane.b32.xlu1 %v10956_v28, %s6447_s15 }
 0x8f2   :  { %v5259_v6 = vpop.permute.xlu1 %5258  ;;  %5415 = vrot.lane.b32.xlu0 %v10949_v60, %s6447_s15  ;;  %5425 = vrot.lane.b32.xlu2 %v10808_v53, %s6447_s15 }
 0x8f3   :  { %5308 = vst.msk [vmem:[#allocation3 + $0x17] sm:$0xff] %vm5305_vm8, %v5259_v6 }
 0x8f4   :  { %v5257_v29 = vpop.permute.xlu0 %5256  ;;  %v5285_v38 = vpop.permute.xlu2 %5284 }
 0x8f5   :  { %5307 = vst.msk [vmem:[#allocation3 + $0xf] sm:$0xff] %vm5305_vm8, %v5257_v29 }
 0x8f6   :  { %5322 = vst.msk [vmem:[#allocation3 + $0x7f] sm:$0x1] %vm5321_vm10, %v5285_v38  ;;  %vm5594_vm10 = vcmask 713344  }
 0x8f8   :  { %5423 = vrot.lane.b32.xlu1 %v10973_v32, %s6447_s15 }
 0x8fa   :  { %v5265_v42 = vpop.permute.xlu1 %5264  ;;  %5421 = vrot.lane.b32.xlu0 %v10968_v8, %s6447_s15  ;;  %5464 = vrot.lane.b32.xlu2 %v10851_v57, %s6448_s28 }
 0x8fb   :  { %5311 = vst.msk [vmem:[#allocation3 + $0x2f] sm:$0xff] %vm5305_vm8, %v5265_v42 }
 0x8fc   :  { %v5263_v41 = vpop.permute.xlu0 %5262  ;;  %v5329_v6 = vpop.permute.xlu2 %5328 }
 0x8fd   :  { %5310 = vst.msk [vmem:[#allocation3 + $0x27] sm:$0xff] %vm5305_vm8, %v5263_v41 }
 0x8fe   :  { %5379 = vst.msk [vmem:[#allocation3 + $0xf] sm:$0xff] %vm5377_vm11, %v5329_v6 }
 0x900   :  { %5462 = vrot.lane.b32.xlu1 %v10649_v10, %s6448_s28 }
 0x902   :  { %v5271_v29 = vpop.permute.xlu1 %5270  ;;  %5460 = vrot.lane.b32.xlu0 %v10799_v45, %s6448_s28  ;;  %5470 = vrot.lane.b32.xlu2 %v10914_v9, %s6448_s28 }
 0x903   :  { %5314 = vst.msk [vmem:[#allocation3 + $0x47] sm:$0xff] %vm5305_vm8, %v5271_v29 }
 0x904   :  { %v5269_v38 = vpop.permute.xlu0 %5268  ;;  %v5335_v42 = vpop.permute.xlu2 %5334 }
 0x905   :  { %5313 = vst.msk [vmem:[#allocation3 + $0x3f] sm:$0xff] %vm5305_vm8, %v5269_v38 }
 0x906   :  { %5382 = vst.msk [vmem:[#allocation3 + $0x27] sm:$0xff] %vm5377_vm11, %v5335_v42 }
 0x908   :  { %5468 = vrot.lane.b32.xlu1 %v10810_v27, %s6448_s28 }
 0x90a   :  { %v5277_v41 = vpop.permute.xlu1 %5276  ;;  %5466 = vrot.lane.b32.xlu0 %v10825_v43, %s6448_s28  ;;  %5476 = vrot.lane.b32.xlu2 %v10975_v30, %s6448_s28 }
 0x90b   :  { %5317 = vst.msk [vmem:[#allocation3 + $0x5f] sm:$0xff] %vm5305_vm8, %v5277_v41 }
 0x90c   :  { %v5275_v6 = vpop.permute.xlu0 %5274  ;;  %v5341_v29 = vpop.permute.xlu2 %5340 }
 0x90d   :  { %5316 = vst.msk [vmem:[#allocation3 + $0x57] sm:$0xff] %vm5305_vm8, %v5275_v6 }
 0x90e   :  { %5385 = vst.msk [vmem:[#allocation3 + $0x3f] sm:$0xff] %vm5377_vm11, %v5341_v29  ;;  %v12565_v29 = vld [vmem:[#allocation46_spill] sm:$0xff] }
 0x910   :  { %5474 = vrot.lane.b32.xlu1 %v10858_v48, %s6448_s28 }
 0x912   :  { %v5283_v38 = vpop.permute.xlu1 %5282  ;;  %5472 = vrot.lane.b32.xlu0 %v10879_v35, %s6448_s28  ;;  %5482 = vrot.lane.b32.xlu2 %v11000_v23, %s6448_s28 }
 0x913   :  { %5320 = vst.msk [vmem:[#allocation3 + $0x77] sm:$0xff] %vm5305_vm8, %v5283_v38 }
 0x914   :  { %v5281_v42 = vpop.permute.xlu0 %5280  ;;  %v5347_v41 = vpop.permute.xlu2 %5346 }
 0x915   :  { %5319 = vst.msk [vmem:[#allocation3 + $0x6f] sm:$0xff] %vm5305_vm8, %v5281_v42  ;;  %v12566_v42 = vld [vmem:[#allocation41_spill] sm:$0xff]  ;;  %vm5850_vm8 = vcmask 982912  }
 0x916   :  { %5388 = vst.msk [vmem:[#allocation3 + $0x57] sm:$0xff] %vm5377_vm11, %v5347_v41  ;;  %v12567_v41 = vld [vmem:[#allocation45_spill] sm:$0xff] }
 0x918   :  { %5480 = vrot.lane.b32.xlu1 %v10923_v19, %s6448_s28 }
 0x91a   :  { %v5327_v6 = vpop.permute.xlu1 %5326  ;;  %5478 = vrot.lane.b32.xlu0 %v10951_v62, %s6448_s28  ;;  %5488 = vrot.lane.b32.xlu2 %v12565_v29, %s6448_s28 }
 0x91b   :  { %5378 = vst.msk [vmem:[#allocation3 + $0x7] sm:$0xff] %vm5377_vm11, %v5327_v6 }
 0x91c   :  { %v5325_v38 = vpop.permute.xlu0 %5324  ;;  %v5353_v52 = vpop.permute.xlu2 %5352 }
 0x91d   :  { %5376 = vst.msk [vmem:[#allocation3 - $0x1] sm:$0xfe] %vm5375_vm12, %v5325_v38  ;;  %vm5866_vm12 = vcmask 975744  }
 0x91e   :  { %5391 = vst.msk [vmem:[#allocation3 + $0x6f] sm:$0xff] %vm5377_vm11, %v5353_v52 }
 0x920   :  { %5486 = vrot.lane.b32.xlu1 %v12566_v42, %s6448_s28 }
 0x922   :  { %v5333_v21 = vpop.permute.xlu1 %5332  ;;  %5484 = vrot.lane.b32.xlu0 %v12567_v41, %s6448_s28  ;;  %5527 = vrot.lane.b32.xlu2 %v10856_v2, %s6449_s22 }
 0x923   :  { %5381 = vst.msk [vmem:[#allocation3 + $0x1f] sm:$0xff] %vm5377_vm11, %v5333_v21 }
 0x924   :  { %v5331_v6 = vpop.permute.xlu0 %5330  ;;  %v5396_v38 = vpop.permute.xlu2 %5395 }
 0x925   :  { %5380 = vst.msk [vmem:[#allocation3 + $0x17] sm:$0xff] %vm5377_vm11, %v5331_v6 }
 0x926   :  { %5444 = vst.msk [vmem:[#allocation3] sm:$0xff] %vm5443_vm13, %v5396_v38  ;;  %v12568_v38 = vld [vmem:[#allocation48_spill] sm:$0xff] }
 0x928   :  { %5525 = vrot.lane.b32.xlu1 %v10872_v50, %s6449_s22 }
 0x92a   :  { %v5339_v52 = vpop.permute.xlu1 %5338  ;;  %5490 = vrot.lane.b32.xlu0 %v11082_v13, %s6448_s28  ;;  %5598 = vrot.lane.b32.xlu2 %v10649_v10, %s6450_s10 }
 0x92b   :  { %5384 = vst.msk [vmem:[#allocation3 + $0x37] sm:$0xff] %vm5377_vm11, %v5339_v52 }
 0x92c   :  { %v5337_v2 = vpop.permute.xlu0 %5336  ;;  %v5402_v21 = vpop.permute.xlu2 %5401 }
 0x92d   :  { %5383 = vst.msk [vmem:[#allocation3 + $0x2f] sm:$0xff] %vm5377_vm11, %v5337_v2 }
 0x92e   :  { %5447 = vst.msk [vmem:[#allocation3 + $0x18] sm:$0xff] %vm5443_vm13, %v5402_v21 }
 0x930   :  { %5596 = vrot.lane.b32.xlu1 %v10799_v45, %s6450_s10 }
 0x932   :  { %v5345_v50 = vpop.permute.xlu1 %5344  ;;  %5529 = vrot.lane.b32.xlu0 %v10877_v3, %s6449_s22  ;;  %5669 = vrot.lane.b32.xlu2 %v11102_v40, %s6451_s11 }
 0x933   :  { %5387 = vst.msk [vmem:[#allocation3 + $0x4f] sm:$0xff] %vm5377_vm11, %v5345_v50 }
 0x934   :  { %v5343_v10 = vpop.permute.xlu0 %5342  ;;  %v5408_v6 = vpop.permute.xlu2 %5407 }
 0x935   :  { %5386 = vst.msk [vmem:[#allocation3 + $0x47] sm:$0xff] %vm5377_vm11, %v5343_v10 }
 0x936   :  { %5450 = vst.msk [vmem:[#allocation3 + $0x30] sm:$0xff] %vm5443_vm13, %v5408_v6 }
 0x938   :  { %5667 = vrot.lane.b32.xlu1 %v12568_v38, %s6451_s11 }
 0x93a   :  { %v5351_v52 = vpop.permute.xlu1 %5350  ;;  %5600 = vrot.lane.b32.xlu0 %v10851_v57, %s6450_s10  ;;  %5797 = vrot.lane.b32.xlu2 %v12568_v38, %s6452_s0 }
 0x93b   :  { %5390 = vst.msk [vmem:[#allocation3 + $0x67] sm:$0xff] %vm5377_vm11, %v5351_v52 }
 0x93c   :  { %v5349_v3 = vpop.permute.xlu0 %5348  ;;  %v5414_v2 = vpop.permute.xlu2 %5413 }
 0x93d   :  { %5389 = vst.msk [vmem:[#allocation3 + $0x5f] sm:$0xff] %vm5377_vm11, %v5349_v3 }
 0x93e   :  { %5453 = vst.msk [vmem:[#allocation3 + $0x48] sm:$0xff] %vm5443_vm13, %v5414_v2 }
 0x940   :  { %5734 = vrot.lane.b32.xlu1 %v11182_v46, %s6453_s1 }
 0x942   :  { %v5357_v21 = vpop.permute.xlu1 %5356  ;;  %5732 = vrot.lane.b32.xlu0 %v11190_v31, %s6453_s1  ;;  %5871 = vrot.lane.b32.xlu2 %v11182_v46, %s6454_s12 }
 0x943   :  { %5394 = vst.msk [vmem:[#allocation3 + $0x7f] sm:$0x1] %vm5393_vm14, %v5357_v21 }
 0x944   :  { %v5355_v57 = vpop.permute.xlu0 %5354  ;;  %v5420_v50 = vpop.permute.xlu2 %5419 }
 0x945   :  { %5392 = vst.msk [vmem:[#allocation3 + $0x77] sm:$0xff] %vm5377_vm11, %v5355_v57  ;;  %vm5665_vm11 = vcmask 778944  }
 0x946   :  { %5456 = vst.msk [vmem:[#allocation3 + $0x60] sm:$0xff] %vm5443_vm13, %v5420_v50 }
 0x948   :  { %5869 = vrot.lane.b32.xlu1 %v11190_v31, %s6454_s12 }
 0x94a   :  { %v5400_v10 = vpop.permute.xlu1 %5399  ;;  %5799 = vrot.lane.b32.xlu0 %v11102_v40, %s6452_s0  ;;  %5671 = vrot.lane.b32.xlu2 %v11094_v37, %s6451_s11 }
 0x94b   :  { %5446 = vst.msk [vmem:[#allocation3 + $0x10] sm:$0xff] %vm5443_vm13, %v5400_v10 }
 0x94c   :  { %v5398_v6 = vpop.permute.xlu0 %5397  ;;  %v5426_v46 = vpop.permute.xlu2 %5425 }
 0x94d   :  { %5445 = vst.msk [vmem:[#allocation3 + $0x8] sm:$0xff] %vm5443_vm13, %v5398_v6 }
 0x94e   :  { %5459 = vst.msk [vmem:[#allocation3 + $0x78] sm:$0xff] %vm5443_vm13, %v5426_v46  ;;  %v5970_v46 = vld [vmem:[%s12125_s5 + $0x70] sm:$0xff] }
 0x950   :  { %5602 = vrot.lane.b32.xlu1 %v10825_v43, %s6450_s10 }
 0x952   :  { %v5406_v52 = vpop.permute.xlu1 %5405  ;;  %5531 = vrot.lane.b32.xlu0 %v10885_v36, %s6449_s22  ;;  %5873 = vrot.lane.b32.xlu2 %v11215_v54, %s6454_s12 }
 0x953   :  { %5449 = vst.msk [vmem:[#allocation3 + $0x28] sm:$0xff] %vm5443_vm13, %v5406_v52  ;;  %v5969_v52 = vld [vmem:[%s12125_s5 + $0x68] sm:$0xff] }
 0x954   :  { %v5404_v40 = vpop.permute.xlu0 %5403  ;;  %v5465_v3 = vpop.permute.xlu2 %5464 }
 0x955   :  { %5448 = vst.msk [vmem:[#allocation3 + $0x20] sm:$0xff] %vm5443_vm13, %v5404_v40 }
 0x956   :  { %5511 = vst.msk [vmem:[#allocation3 + $0x10] sm:$0xff] %vm5508_vm15, %v5465_v3  ;;  %v5968_v3 = vld [vmem:[%s12125_s5 + $0x60] sm:$0xff] }
 0x958   :  { %5801 = vrot.lane.b32.xlu1 %v11094_v37, %s6452_s0 }
 0x95a   :  { %v5412_v43 = vpop.permute.xlu1 %5411  ;;  %5736 = vrot.lane.b32.xlu0 %v11215_v54, %s6453_s1  ;;  %5673 = vrot.lane.b32.xlu2 %v11127_v56, %s6451_s11 }
 0x95b   :  { %5452 = vst.msk [vmem:[#allocation3 + $0x40] sm:$0xff] %vm5443_vm13, %v5412_v43 }
 0x95c   :  { %v5410_v36 = vpop.permute.xlu0 %5409  ;;  %v5471_v2 = vpop.permute.xlu2 %5470 }
 0x95d   :  { %5451 = vst.msk [vmem:[#allocation3 + $0x38] sm:$0xff] %vm5443_vm13, %v5410_v36  ;;  %v5966_v36 = vld [vmem:[%s12125_s5 + $0x50] sm:$0xff] }
 0x95e   :  { %5514 = vst.msk [vmem:[#allocation3 + $0x28] sm:$0xff] %vm5508_vm15, %v5471_v2 }
 0x960   :  { %5604 = vrot.lane.b32.xlu1 %v10810_v27, %s6450_s10 }
 0x962   :  { %v5418_v37 = vpop.permute.xlu1 %5417  ;;  %5533 = vrot.lane.b32.xlu0 %v10894_v4, %s6449_s22  ;;  %5875 = vrot.lane.b32.xlu2 %v11208_v26, %s6454_s12 }
 0x963   :  { %5455 = vst.msk [vmem:[#allocation3 + $0x58] sm:$0xff] %vm5443_vm13, %v5418_v37 }
 0x964   :  { %v5416_v54 = vpop.permute.xlu0 %5415  ;;  %v5477_v21 = vpop.permute.xlu2 %5476 }
 0x965   :  { %5454 = vst.msk [vmem:[#allocation3 + $0x50] sm:$0xff] %vm5443_vm13, %v5416_v54  ;;  %v5964_v54 = vld [vmem:[%s12125_s5 + $0x40] sm:$0xff] }
 0x966   :  { %5517 = vst.msk [vmem:[#allocation3 + $0x40] sm:$0xff] %vm5508_vm15, %v5477_v21 }
 0x968   :  { %5803 = vrot.lane.b32.xlu1 %v11127_v56, %s6452_s0 }
 0x96a   :  { %v5424_v27 = vpop.permute.xlu1 %5423  ;;  %5738 = vrot.lane.b32.xlu0 %v11208_v26, %s6453_s1  ;;  %5675 = vrot.lane.b32.xlu2 %v11120_v17, %s6451_s11 }
 0x96b   :  { %5458 = vst.msk [vmem:[#allocation3 + $0x70] sm:$0xff] %vm5443_vm13, %v5424_v27  ;;  %v5962_v27 = vld [vmem:[%s12125_s5 + $0x30] sm:$0xff] }
 0x96c   :  { %v5422_v4 = vpop.permute.xlu0 %5421  ;;  %v5483_v57 = vpop.permute.xlu2 %5482 }
 0x96d   :  { %5457 = vst.msk [vmem:[#allocation3 + $0x68] sm:$0xff] %vm5443_vm13, %v5422_v4  ;;  %vm5938_vm13 = vcmask 1041344  }
 0x96e   :  { %5520 = vst.msk [vmem:[#allocation3 + $0x58] sm:$0xff] %vm5508_vm15, %v5483_v57 }
 0x970   :  { %5606 = vrot.lane.b32.xlu1 %v10914_v9, %s6450_s10 }
 0x972   :  { %v5463_v56 = vpop.permute.xlu1 %5462  ;;  %5535 = vrot.lane.b32.xlu0 %v10906_v58, %s6449_s22  ;;  %5877 = vrot.lane.b32.xlu2 %v11200_v49, %s6454_s12 }
 0x973   :  { %5510 = vst.msk [vmem:[#allocation3 + $0x8] sm:$0xff] %vm5508_vm15, %v5463_v56  ;;  %v5959_v56 = vld [vmem:[%s12125_s5 + $0x18] sm:$0xff] }
 0x974   :  { %v5461_v26 = vpop.permute.xlu0 %5460  ;;  %v5489_v50 = vpop.permute.xlu2 %5488 }
 0x975   :  { %5509 = vst.msk [vmem:[#allocation3] sm:$0xff] %vm5508_vm15, %v5461_v26 }
 0x976   :  { %5523 = vst.msk [vmem:[#allocation3 + $0x70] sm:$0xff] %vm5508_vm15, %v5489_v50  ;;  %v5958_v50 = vld [vmem:[%s12125_s5 + $0x10] sm:$0xff] }
 0x978   :  { %5805 = vrot.lane.b32.xlu1 %v11120_v17, %s6452_s0 }
 0x97a   :  { %v5469_v9 = vpop.permute.xlu1 %5468  ;;  %5740 = vrot.lane.b32.xlu0 %v11200_v49, %s6453_s1  ;;  %5677 = vrot.lane.b32.xlu2 %v11112_v5, %s6451_s11 }
 0x97b   :  { %5513 = vst.msk [vmem:[#allocation3 + $0x20] sm:$0xff] %vm5508_vm15, %v5469_v9 }
 0x97c   :  { %v5467_v58 = vpop.permute.xlu0 %5466  ;;  %v5528_v10 = vpop.permute.xlu2 %5527 }
 0x97d   :  { %5512 = vst.msk [vmem:[#allocation3 + $0x18] sm:$0xff] %vm5508_vm15, %v5467_v58 }
 0x97e   :  { %5579 = vst.msk [vmem:[#allocation3 + $0x7] sm:$0xff] %vm5578_vm0, %v5528_v10 }
 0x980   :  { %5608 = vrot.lane.b32.xlu1 %v10879_v35, %s6450_s10  ;;  %v5971_v35 = vld [vmem:[%s12125_s5 + $0x78] sm:$0xff] }
 0x981   :  { %5972 = vmatpush.msra.mxu1 %v5971_v35 }
 0x982   :  { %v5475_v17 = vpop.permute.xlu1 %5474  ;;  %5537 = vrot.lane.b32.xlu0 %v10912_v61, %s6449_s22  ;;  %5879 = vrot.lane.b32.xlu2 %v11233_v15, %s6454_s12 }
 0x983   :  { %5516 = vst.msk [vmem:[#allocation3 + $0x38] sm:$0xff] %vm5508_vm15, %v5475_v17  ;;  %5973 = vmatpush.msra.mxu1 %v5970_v46 }
 0x984   :  { %v5473_v49 = vpop.permute.xlu0 %5472  ;;  %v5599_v6 = vpop.permute.xlu2 %5598 }
 0x985   :  { %5515 = vst.msk [vmem:[#allocation3 + $0x30] sm:$0xff] %vm5508_vm15, %v5473_v49  ;;  %5974 = vmatpush.msra.mxu1 %v5969_v52 }
 0x986   :  { %5650 = vst.msk [vmem:[#allocation3 + $0x7] sm:$0xff] %vm5649_vm1, %v5599_v6 }
 0x987   :  { %5975 = vmatpush.msra.mxu1 %v5968_v3 }
 0x988   :  { %5807 = vrot.lane.b32.xlu1 %v11112_v5, %s6452_s0 }
 0x98a   :  { %v5481_v61 = vpop.permute.xlu1 %5480  ;;  %5742 = vrot.lane.b32.xlu0 %v11233_v15, %s6453_s1  ;;  %5679 = vrot.lane.b32.xlu2 %v11145_v51, %s6451_s11  ;;  %v5967_v15 = vld [vmem:[%s12125_s5 + $0x58] sm:$0xff] }
 0x98b   :  { %5519 = vst.msk [vmem:[#allocation3 + $0x50] sm:$0xff] %vm5508_vm15, %v5481_v61  ;;  %5976 = vmatpush.msra.mxu1 %v5967_v15 }
 0x98c   :  { %v5479_v40 = vpop.permute.xlu0 %5478  ;;  %v5670_v5 = vpop.permute.xlu2 %5669 }
 0x98d   :  { %5518 = vst.msk [vmem:[#allocation3 + $0x48] sm:$0xff] %vm5508_vm15, %v5479_v40  ;;  %5977 = vmatpush.msra.mxu1 %v5966_v36 }
 0x990   :  { %5610 = vrot.lane.b32.xlu1 %v10858_v48, %s6450_s10  ;;  %v5965_v48 = vld [vmem:[%s12125_s5 + $0x48] sm:$0xff] }
 0x991   :  { %5978 = vmatpush.msra.mxu1 %v5965_v48 }
 0x992   :  { %v5487_v43 = vpop.permute.xlu1 %5486  ;;  %5539 = vrot.lane.b32.xlu0 %v10921_v18, %s6449_s22  ;;  %5881 = vrot.lane.b32.xlu2 %v11226_v44, %s6454_s12  ;;  %v5963_v18 = vld [vmem:[%s12125_s5 + $0x38] sm:$0xff] }
 0x993   :  { %5522 = vst.msk [vmem:[#allocation3 + $0x68] sm:$0xff] %vm5508_vm15, %v5487_v43  ;;  %5979 = vmatpush.msra.mxu1 %v5964_v54 }
 0x994   :  { %v5485_v2 = vpop.permute.xlu0 %5484  ;;  %v5798_v37 = vpop.permute.xlu2 %5797 }
 0x995   :  { %5521 = vst.msk [vmem:[#allocation3 + $0x60] sm:$0xff] %vm5508_vm15, %v5485_v2  ;;  %5980 = vmatpush.msra.mxu1 %v5963_v18 }
 0x997   :  { %5981 = vmatpush.msra.mxu1 %v5962_v27 }
 0x998   :  { %5809 = vrot.lane.b32.xlu1 %v11145_v51, %s6452_s0  ;;  %v5961_v51 = vld [vmem:[%s12125_s5 + $0x28] sm:$0xff] }
 0x999   :  { %5982 = vmatpush.msra.mxu1 %v5961_v51 }
 0x99a   :  { %v5526_v21 = vpop.permute.xlu1 %5525  ;;  %5744 = vrot.lane.b32.xlu0 %v11226_v44, %s6453_s1  ;;  %5681 = vrot.lane.b32.xlu2 %v11138_v7, %s6451_s11  ;;  %v5960_v44 = vld [vmem:[%s12125_s5 + $0x20] sm:$0xff] }
 0x99b   :  { %5577 = vst.msk [vmem:[#allocation3 - $0x1] sm:$0xfe] %vm5576_vm2, %v5526_v21  ;;  %5983 = vmatpush.msra.mxu1 %v5960_v44  ;;  %v12571_v44 = vld [vmem:[#allocation53_spill] sm:$0xff] }
 0x99c   :  { %v5491_v4 = vpop.permute.xlu0 %5490  ;;  %v5872_v57 = vpop.permute.xlu2 %5871 }
 0x99d   :  { %5524 = vst.msk [vmem:[#allocation3 + $0x78] sm:$0xff] %vm5508_vm15, %v5491_v4  ;;  %5984 = vmatpush.msra.mxu1 %v5959_v56 }
 0x99f   :  { %5985 = vmatpush.msra.mxu1 %v5958_v50 }
 0x9a0   :  { %5612 = vrot.lane.b32.xlu1 %v10975_v30, %s6450_s10  ;;  %v5957_v30 = vld [vmem:[%s12125_s5 + $0x8] sm:$0xff] }
 0x9a1   :  { %5986 = vmatpush.msra.mxu1 %v5957_v30  ;;  %v12572_v30 = vld [vmem:[#allocation29_spill] sm:$0xff] }
 0x9a2   :  { %v5597_v26 = vpop.permute.xlu1 %5596  ;;  %5541 = vrot.lane.b32.xlu0 %v10932_v59, %s6449_s22  ;;  %5883 = vrot.lane.b32.xlu2 %v11218_v33, %s6454_s12  ;;  %v5956_v59 = vld [vmem:[%s12125_s5] sm:$0xff] }
 0x9a3   :  { %5648 = vst.msk [vmem:[#allocation3 - $0x1] sm:$0xfe] %vm5647_vm3, %v5597_v26  ;;  %5987 = vmatpush.msra.mxu1 %v5956_v59 }
 0x9a4   :  { %v5530_v9 = vpop.permute.xlu0 %5529  ;;  %v5672_v58 = vpop.permute.xlu2 %5671 }
 0x9a5   :  { %5580 = vst.msk [vmem:[#allocation3 + $0xf] sm:$0xff] %vm5578_vm0, %v5530_v9  ;;  %v4817_v9 = vmax.f32 %v12572_v30, 0.0 }
 0x9a8   :  { %5811 = vrot.lane.b32.xlu1 %v11138_v7, %s6452_s0 }
 0x9aa   :  { %v5668_v10 = vpop.permute.xlu1 %5667  ;;  %5746 = vrot.lane.b32.xlu0 %v11218_v33, %s6453_s1  ;;  %5683 = vrot.lane.b32.xlu2 %v11130_v63, %s6451_s11 }
 0x9ab   :  { %5716 = vst.msk [vmem:[#allocation3] sm:$0xff] %vm5715_vm4, %v5668_v10 }
 0x9ac   :  { %v5601_v17 = vpop.permute.xlu0 %5600  ;;  %v5874_v49 = vpop.permute.xlu2 %5873 }
 0x9ad   :  { %5651 = vst.msk [vmem:[#allocation3 + $0xf] sm:$0xff] %vm5649_vm1, %v5601_v17  ;;  %v6040_v17 = vld [vmem:[%s12126_s8 + $0x18] sm:$0xff] }
 0x9ae   :  { %5717 = vst.msk [vmem:[#allocation3 + $0x8] sm:$0xff] %vm5715_vm4, %v5670_v5 }
 0x9b0   :  { %5614 = vrot.lane.b32.xlu1 %v10951_v62, %s6450_s10 }
 0x9b2   :  { %v5735_v7 = vpop.permute.xlu1 %5734  ;;  %5543 = vrot.lane.b32.xlu0 %v10941_v25, %s6449_s22  ;;  %5885 = vrot.lane.b32.xlu2 %v11251_v12, %s6454_s12 }
 0x9b3   :  { %5782 = vst.msk [vmem:[#allocation3 + $0x8] sm:$0xff] %vm5780_vm5, %v5735_v7 }
 0x9b4   :  { %v5733_v33 = vpop.permute.xlu0 %5732  ;;  %v5674_v6 = vpop.permute.xlu2 %5673 }
 0x9b5   :  { %5781 = vst.msk [vmem:[#allocation3] sm:$0xff] %vm5780_vm5, %v5733_v33 }
 0x9b6   :  { %5849 = vst.msk [vmem:[#allocation3 - $0x1] sm:$0xfe] %vm5848_vm6, %v5798_v37 }
 0x9b8   :  { %5813 = vrot.lane.b32.xlu1 %v11130_v63, %s6452_s0 }
 0x9ba   :  { %v5870_v62 = vpop.permute.xlu1 %5869  ;;  %5748 = vrot.lane.b32.xlu0 %v11251_v12, %s6453_s1  ;;  %5685 = vrot.lane.b32.xlu2 %v11162_v11, %s6451_s11 }
 0x9bb   :  { %5921 = vst.msk [vmem:[#allocation3 - $0x1] sm:$0xfe] %vm5920_vm7, %v5870_v62  ;;  %v6043_v62 = vld [vmem:[%s12126_s8 + $0x30] sm:$0xff] }
 0x9bc   :  { %v5800_v25 = vpop.permute.xlu0 %5799  ;;  %v5876_v35 = vpop.permute.xlu2 %5875 }
 0x9bd   :  { %5851 = vst.msk [vmem:[#allocation3 + $0x7] sm:$0xff] %vm5850_vm8, %v5800_v25 }
 0x9be   :  { %5923 = vst.msk [vmem:[#allocation3 + $0x7] sm:$0xff] %vm5922_vm9, %v5872_v57 }
 0x9c0   :  { %5616 = vrot.lane.b32.xlu1 %v10923_v19, %s6450_s10 }
 0x9c2   :  { %v5603_v63 = vpop.permute.xlu1 %5602  ;;  %5545 = vrot.lane.b32.xlu0 %v10949_v60, %s6449_s22  ;;  %5887 = vrot.lane.b32.xlu2 %v11244_v0, %s6454_s12 }
 0x9c4   :  { %v5532_v12 = vpop.permute.xlu0 %5531  ;;  %v5676_v61 = vpop.permute.xlu2 %5675 }
 0x9c5   :  { %5581 = vst.msk [vmem:[#allocation3 + $0x17] sm:$0xff] %vm5578_vm0, %v5532_v12  ;;  %v5940_v46 = vld [vmem:[#allocation3] sm:$0xff]  ;;  %v6041_v12 = vld [vmem:[%s12126_s8 + $0x20] sm:$0xff] }
 0x9c6   :  { %5652 = vst.msk [vmem:[#allocation3 + $0x17] sm:$0xff] %vm5649_vm1, %v5603_v63  ;;  %5988 = vmatmul.f32.vlgmr.msra.gmra.mxu1 %v5940_v46 }
 0x9c7   :  { %5718 = vst.msk [vmem:[#allocation3 + $0x10] sm:$0xff] %vm5715_vm4, %v5672_v58 }
 0x9c8   :  { %5815 = vrot.lane.b32.xlu1 %v11162_v11, %s6452_s0 }
 0x9ca   :  { %v5802_v19 = vpop.permute.xlu1 %5801  ;;  %5750 = vrot.lane.b32.xlu0 %v11244_v0, %s6453_s1  ;;  %5687 = vrot.lane.b32.xlu2 %v11155_v24, %s6451_s11 }
 0x9cc   :  { %v5737_v60 = vpop.permute.xlu0 %5736  ;;  %v5878_v52 = vpop.permute.xlu2 %5877 }
 0x9cd   :  { %5783 = vst.msk [vmem:[#allocation3 + $0x10] sm:$0xff] %vm5780_vm5, %v5737_v60 }
 0x9ce   :  { %5852 = vst.msk [vmem:[#allocation3 + $0xf] sm:$0xff] %vm5850_vm8, %v5802_v19  ;;  %v6045_v19 = vld [vmem:[%s12126_s8 + $0x40] sm:$0xff] }
 0x9cf   :  { %5924 = vst.msk [vmem:[#allocation3 + $0xf] sm:$0xff] %vm5922_vm9, %v5874_v49  ;;  %v6039_v49 = vld [vmem:[%s12126_s8 + $0x10] sm:$0xff] }
 0x9d0   :  { %5618 = vrot.lane.b32.xlu1 %v11000_v23, %s6450_s10 }
 0x9d2   :  { %v5605_v11 = vpop.permute.xlu1 %5604  ;;  %5547 = vrot.lane.b32.xlu0 %v10956_v28, %s6449_s22  ;;  %5889 = vrot.lane.b32.xlu2 %v11236_v1, %s6454_s12 }
 0x9d4   :  { %v5534_v0 = vpop.permute.xlu0 %5533  ;;  %v5678_v40 = vpop.permute.xlu2 %5677 }
 0x9d5   :  { %5582 = vst.msk [vmem:[#allocation3 + $0x1f] sm:$0xff] %vm5578_vm0, %v5534_v0  ;;  %v6044_v0 = vld [vmem:[%s12126_s8 + $0x38] sm:$0xff] }
 0x9d6   :  { %5653 = vst.msk [vmem:[#allocation3 + $0x1f] sm:$0xff] %vm5649_vm1, %v5605_v11  ;;  %v5941_v5 = vld [vmem:[#allocation3 + $0x8] sm:$0xff] }
 0x9d7   :  { %5719 = vst.msk [vmem:[#allocation3 + $0x18] sm:$0xff] %vm5715_vm4, %v5674_v6  ;;  %5991 = vmatmul.f32.gmra.mxu1 %v5941_v5  ;;  %v6038_v6 = vld [vmem:[%s12126_s8 + $0x8] sm:$0xff]  ;;  %v6049_v5 = vld [vmem:[%s12126_s8 + $0x60] sm:$0xff] }
 0x9d8   :  { %5817 = vrot.lane.b32.xlu1 %v11155_v24, %s6452_s0 }
 0x9da   :  { %v5804_v23 = vpop.permute.xlu1 %5803  ;;  %5752 = vrot.lane.b32.xlu0 %v11236_v1, %s6453_s1  ;;  %5689 = vrot.lane.b32.xlu2 %v11148_v55, %s6451_s11 }
 0x9dc   :  { %v5739_v28 = vpop.permute.xlu0 %5738  ;;  %v5880_v3 = vpop.permute.xlu2 %5879 }
 0x9dd   :  { %5784 = vst.msk [vmem:[#allocation3 + $0x18] sm:$0xff] %vm5780_vm5, %v5739_v28 }
 0x9de   :  { %5853 = vst.msk [vmem:[#allocation3 + $0x17] sm:$0xff] %vm5850_vm8, %v5804_v23  ;;  %v6048_v23 = vld [vmem:[%s12126_s8 + $0x58] sm:$0xff] }
 0x9df   :  { %5925 = vst.msk [vmem:[#allocation3 + $0x17] sm:$0xff] %vm5922_vm9, %v5876_v35  ;;  %v6042_v35 = vld [vmem:[%s12126_s8 + $0x28] sm:$0xff] }
 0x9e0   :  { %5620 = vrot.lane.b32.xlu1 %v12567_v41, %s6450_s10 }
 0x9e2   :  { %v5607_v24 = vpop.permute.xlu1 %5606  ;;  %5549 = vrot.lane.b32.xlu0 %v10962_v39, %s6449_s22  ;;  %5891 = vrot.lane.b32.xlu2 %v11268_v20, %s6454_s12 }
 0x9e4   :  { %v5536_v1 = vpop.permute.xlu0 %5535  ;;  %v5680_v15 = vpop.permute.xlu2 %5679 }
 0x9e5   :  { %5583 = vst.msk [vmem:[#allocation3 + $0x27] sm:$0xff] %vm5578_vm0, %v5536_v1 }
 0x9e6   :  { %5654 = vst.msk [vmem:[#allocation3 + $0x27] sm:$0xff] %vm5649_vm1, %v5607_v24  ;;  %v5942_v43 = vld [vmem:[#allocation3 + $0x10] sm:$0xff]  ;;  %v6047_v24 = vld [vmem:[%s12126_s8 + $0x50] sm:$0xff] }
 0x9e7   :  { %5720 = vst.msk [vmem:[#allocation3 + $0x20] sm:$0xff] %vm5715_vm4, %v5676_v61  ;;  %5994 = vmatmul.f32.gmra.mxu1 %v5942_v43  ;;  %v6046_v61 = vld [vmem:[%s12126_s8 + $0x48] sm:$0xff]  ;;  %v6051_v43 = vld [vmem:[%s12126_s8 + $0x70] sm:$0xff] }
 0x9e8   :  { %5819 = vrot.lane.b32.xlu1 %v11148_v55, %s6452_s0 }
 0x9ea   :  { %v5806_v41 = vpop.permute.xlu1 %5805  ;;  %5754 = vrot.lane.b32.xlu0 %v11268_v20, %s6453_s1  ;;  %5691 = vrot.lane.b32.xlu2 %v11179_v16, %s6451_s11 }
 0x9ec   :  { %v5741_v39 = vpop.permute.xlu0 %5740  ;;  %v5882_v36 = vpop.permute.xlu2 %5881 }
 0x9ed   :  { %5785 = vst.msk [vmem:[#allocation3 + $0x20] sm:$0xff] %vm5780_vm5, %v5741_v39 }
 0x9ee   :  { %5854 = vst.msk [vmem:[#allocation3 + $0x1f] sm:$0xff] %vm5850_vm8, %v5806_v41 }
 0x9ef   :  { %5926 = vst.msk [vmem:[#allocation3 + $0x1f] sm:$0xff] %vm5922_vm9, %v5878_v52 }
 0x9f0   :  { %5622 = vrot.lane.b32.xlu1 %v12566_v42, %s6450_s10 }
 0x9f2   :  { %v5609_v55 = vpop.permute.xlu1 %5608  ;;  %5551 = vrot.lane.b32.xlu0 %v10968_v8, %s6449_s22  ;;  %5893 = vrot.lane.b32.xlu2 %v11262_v47, %s6454_s12 }
 0x9f4   :  { %v5538_v20 = vpop.permute.xlu0 %5537  ;;  %v5682_v48 = vpop.permute.xlu2 %5681 }
 0x9f5   :  { %5584 = vst.msk [vmem:[#allocation3 + $0x2f] sm:$0xff] %vm5578_vm0, %v5538_v20 }
 0x9f6   :  { %5655 = vst.msk [vmem:[#allocation3 + $0x2f] sm:$0xff] %vm5649_vm1, %v5609_v55  ;;  %v5943_v2 = vld [vmem:[#allocation3 + $0x18] sm:$0xff] }
 0x9f7   :  { %5721 = vst.msk [vmem:[#allocation3 + $0x28] sm:$0xff] %vm5715_vm4, %v5678_v40  ;;  %5997 = vmatmul.f32.gmra.mxu1 %v5943_v2 }
 0x9f8   :  { %5821 = vrot.lane.b32.xlu1 %v11179_v16, %s6452_s0 }
 0x9fa   :  { %v5808_v42 = vpop.permute.xlu1 %5807  ;;  %5756 = vrot.lane.b32.xlu0 %v11262_v47, %s6453_s1  ;;  %5693 = vrot.lane.b32.xlu2 %v11173_v22, %s6451_s11 }
 0x9fc   :  { %v5743_v8 = vpop.permute.xlu0 %5742  ;;  %v5884_v37 = vpop.permute.xlu2 %5883 }
 0x9fd   :  { %5786 = vst.msk [vmem:[#allocation3 + $0x28] sm:$0xff] %vm5780_vm5, %v5743_v8 }
 0x9fe   :  { %5855 = vst.msk [vmem:[#allocation3 + $0x27] sm:$0xff] %vm5850_vm8, %v5808_v42 }
 0x9ff   :  { %5927 = vst.msk [vmem:[#allocation3 + $0x27] sm:$0xff] %vm5922_vm9, %v5880_v3 }
 0xa00   :  { %5624 = vrot.lane.b32.xlu1 %v12565_v29, %s6450_s10 }
 0xa02   :  { %v5611_v16 = vpop.permute.xlu1 %5610  ;;  %5553 = vrot.lane.b32.xlu0 %v10973_v32, %s6449_s22  ;;  %5895 = vrot.lane.b32.xlu2 %v11254_v34, %s6454_s12 }
 0xa04   :  { %v5540_v47 = vpop.permute.xlu0 %5539  ;;  %v5684_v29 = vpop.permute.xlu2 %5683 }
 0xa05   :  { %5585 = vst.msk [vmem:[#allocation3 + $0x37] sm:$0xff] %vm5578_vm0, %v5540_v47 }
 0xa06   :  { %5656 = vst.msk [vmem:[#allocation3 + $0x37] sm:$0xff] %vm5649_vm1, %v5611_v16  ;;  %v5944_v54 = vld [vmem:[#allocation3 + $0x20] sm:$0xff] }
 0xa07   :  { %5722 = vst.msk [vmem:[#allocation3 + $0x30] sm:$0xff] %vm5715_vm4, %v5680_v15  ;;  %6000 = vmatmul.f32.gmra.mxu1 %v5944_v54  ;;  %v6052_v15 = vld [vmem:[%s12126_s8 + $0x78] sm:$0xff] }
 0xa08   :  { %5823 = vrot.lane.b32.xlu1 %v11173_v22, %s6452_s0 }
 0xa0a   :  { %v5810_v18 = vpop.permute.xlu1 %5809  ;;  %5758 = vrot.lane.b32.xlu0 %v11254_v34, %s6453_s1  ;;  %5695 = vrot.lane.b32.xlu2 %v11165_v14, %s6451_s11  ;;  %v12569_v34 = vld [vmem:[#allocation51_spill] sm:$0xff] }
 0xa0c   :  { %v5745_v32 = vpop.permute.xlu0 %5744  ;;  %v5886_v21 = vpop.permute.xlu2 %5885 }
 0xa0d   :  { %5787 = vst.msk [vmem:[#allocation3 + $0x30] sm:$0xff] %vm5780_vm5, %v5745_v32 }
 0xa0e   :  { %5856 = vst.msk [vmem:[#allocation3 + $0x2f] sm:$0xff] %vm5850_vm8, %v5810_v18 }
 0xa0f   :  { %5928 = vst.msk [vmem:[#allocation3 + $0x2f] sm:$0xff] %vm5922_vm9, %v5882_v36  ;;  %v6050_v36 = vld [vmem:[%s12126_s8 + $0x68] sm:$0xff] }
 0xa10   :  { %5626 = vrot.lane.b32.xlu1 %v11082_v13, %s6450_s10 }
 0xa12   :  { %v5613_v22 = vpop.permute.xlu1 %5612  ;;  %5555 = vrot.lane.b32.xlu0 %v10808_v53, %s6449_s22  ;;  %5897 = vrot.lane.b32.xlu2 %v12569_v34, %s6454_s12  ;;  %v12570_v53 = vld [vmem:[#allocation50_spill] sm:$0xff] }
 0xa14   :  { %v5542_v27 = vpop.permute.xlu0 %5541  ;;  %v5686_v57 = vpop.permute.xlu2 %5685 }
 0xa15   :  { %5586 = vst.msk [vmem:[#allocation3 + $0x3f] sm:$0xff] %vm5578_vm0, %v5542_v27 }
 0xa16   :  { %5657 = vst.msk [vmem:[#allocation3 + $0x3f] sm:$0xff] %vm5649_vm1, %v5613_v22  ;;  %v5945_v51 = vld [vmem:[#allocation3 + $0x28] sm:$0xff] }
 0xa17   :  { %5723 = vst.msk [vmem:[#allocation3 + $0x38] sm:$0xff] %vm5715_vm4, %v5682_v48  ;;  %6003 = vmatmul.f32.gmra.mxu1 %v5945_v51 }
 0xa18   :  { %5825 = vrot.lane.b32.xlu1 %v11165_v14, %s6452_s0 }
 0xa1a   :  { %v5812_v13 = vpop.permute.xlu1 %5811  ;;  %5760 = vrot.lane.b32.xlu0 %v12569_v34, %s6453_s1  ;;  %5697 = vrot.lane.b32.xlu2 %v12570_v53, %s6451_s11 }
 0xa1c   :  { %v5747_v4 = vpop.permute.xlu0 %5746  ;;  %v5888_v26 = vpop.permute.xlu2 %5887 }
 0xa1d   :  { %5788 = vst.msk [vmem:[#allocation3 + $0x38] sm:$0xff] %vm5780_vm5, %v5747_v4 }
 0xa1e   :  { %5857 = vst.msk [vmem:[#allocation3 + $0x37] sm:$0xff] %vm5850_vm8, %v5812_v13 }
 0xa1f   :  { %5929 = vst.msk [vmem:[#allocation3 + $0x37] sm:$0xff] %vm5922_vm9, %v5884_v37 }
 0xa20   :  { %5628 = vrot.lane.b32.xlu1 %v12568_v38, %s6450_s10 }
 0xa22   :  { %v5615_v14 = vpop.permute.xlu1 %5614  ;;  %5557 = vrot.lane.b32.xlu0 %v10799_v45, %s6449_s22  ;;  %5899 = vrot.lane.b32.xlu2 %v12571_v44, %s6454_s12  ;;  %v6037_v45 = vld [vmem:[%s12126_s8] sm:$0xff] }
 0xa24   :  { %v5544_v56 = vpop.permute.xlu0 %5543  ;;  %v5688_v59 = vpop.permute.xlu2 %5687 }
 0xa25   :  { %5587 = vst.msk [vmem:[#allocation3 + $0x47] sm:$0xff] %vm5578_vm0, %v5544_v56 }
 0xa26   :  { %5658 = vst.msk [vmem:[#allocation3 + $0x47] sm:$0xff] %vm5649_vm1, %v5615_v14  ;;  %v5946_v50 = vld [vmem:[#allocation3 + $0x30] sm:$0xff] }
 0xa27   :  { %5724 = vst.msk [vmem:[#allocation3 + $0x40] sm:$0xff] %vm5715_vm4, %v5684_v29  ;;  %6006 = vmatmul.f32.gmra.mxu1 %v5946_v50 }
 0xa28   :  { %5827 = vrot.lane.b32.xlu1 %v12570_v53, %s6452_s0 }
 0xa2a   :  { %v5814_v38 = vpop.permute.xlu1 %5813  ;;  %5762 = vrot.lane.b32.xlu0 %v12571_v44, %s6453_s1  ;;  %6055 = vperm.xlu2 %6427, %v6037_v45  }
 0xa2c   :  { %v5749_v58 = vpop.permute.xlu0 %5748  ;;  %v5890_v25 = vpop.permute.xlu2 %5889 }
 0xa2d   :  { %5789 = vst.msk [vmem:[#allocation3 + $0x40] sm:$0xff] %vm5780_vm5, %v5749_v58 }
 0xa2e   :  { %5858 = vst.msk [vmem:[#allocation3 + $0x3f] sm:$0xff] %vm5850_vm8, %v5814_v38 }
 0xa2f   :  { %5930 = vst.msk [vmem:[#allocation3 + $0x3f] sm:$0xff] %vm5922_vm9, %v5886_v21 }
 0xa30   :  { %5901 = vrot.lane.b32.xlu1 %v4817_v9, %s6454_s12 }
 0xa32   :  { %v5617_v10 = vpop.permute.xlu1 %5616  ;;  %5829 = vrot.lane.b32.xlu0 %v11190_v31, %s6452_s0  ;;  %6070 = vperm.xlu2 %6427, %v6040_v17  }
 0xa34   :  { %v5546_v7 = vpop.permute.xlu0 %5545  ;;  %v5690_v60 = vpop.permute.xlu2 %5689 }
 0xa35   :  { %5588 = vst.msk [vmem:[#allocation3 + $0x4f] sm:$0xff] %vm5578_vm0, %v5546_v7 }
 0xa36   :  { %5659 = vst.msk [vmem:[#allocation3 + $0x4f] sm:$0xff] %vm5649_vm1, %v5617_v10  ;;  %v5947_v33 = vld [vmem:[#allocation3 + $0x38] sm:$0xff] }
 0xa37   :  { %5725 = vst.msk [vmem:[#allocation3 + $0x48] sm:$0xff] %vm5715_vm4, %v5686_v57  ;;  %6009 = vmatmul.f32.gmra.mxu1 %v5947_v33 }
 0xa38   :  { %6065 = vperm.xlu1 %6429, %v6039_v49  }
 0xa3a   :  { %v5816_v31 = vpop.permute.xlu1 %5815  ;;  %6060 = vperm.xlu0 %6428, %v6038_v6   ;;  %6085 = vperm.xlu2 %6427, %v6043_v62  }
 0xa3c   :  { %v5751_v63 = vpop.permute.xlu0 %5750  ;;  %v5892_v3 = vpop.permute.xlu2 %5891 }
 0xa3d   :  { %5790 = vst.msk [vmem:[#allocation3 + $0x48] sm:$0xff] %vm5780_vm5, %v5751_v63 }
 0xa3e   :  { %5859 = vst.msk [vmem:[#allocation3 + $0x47] sm:$0xff] %vm5850_vm8, %v5816_v31 }
 0xa3f   :  { %5931 = vst.msk [vmem:[#allocation3 + $0x47] sm:$0xff] %vm5922_vm9, %v5888_v26 }
 0xa40   :  { %6080 = vperm.xlu1 %6429, %v6042_v35  }
 0xa42   :  { %v5619_v46 = vpop.permute.xlu1 %5618  ;;  %6075 = vperm.xlu0 %6428, %v6041_v12   ;;  %6100 = vperm.xlu2 %6427, %v6046_v61  }
 0xa43   :  { %v11903_v17 = vpop.f32.mrf.mxu1 }
 0xa44   :  { %v5548_v52 = vpop.permute.xlu0 %5547  ;;  %v5692_v55 = vpop.permute.xlu2 %5691 }
 0xa45   :  { %5589 = vst.msk [vmem:[#allocation3 + $0x57] sm:$0xff] %vm5578_vm0, %v5548_v52 }
 0xa46   :  { %5660 = vst.msk [vmem:[#allocation3 + $0x57] sm:$0xff] %vm5649_vm1, %v5619_v46  ;;  %v5948_v11 = vld [vmem:[#allocation3 + $0x40] sm:$0xff] }
 0xa47   :  { %5726 = vst.msk [vmem:[#allocation3 + $0x50] sm:$0xff] %vm5715_vm4, %v5688_v59  ;;  %6012 = vmatmul.f32.gmra.mxu1 %v5948_v11 }
 0xa48   :  { %6095 = vperm.xlu1 %6429, %v6045_v19  }
 0xa4a   :  { %v5818_v40 = vpop.permute.xlu1 %5817  ;;  %6090 = vperm.xlu0 %6428, %v6044_v0   ;;  %6115 = vperm.xlu2 %6427, %v6049_v5  }
 0xa4c   :  { %v5753_v28 = vpop.permute.xlu0 %5752  ;;  %v5894_v42 = vpop.permute.xlu2 %5893 }
 0xa4d   :  { %5791 = vst.msk [vmem:[#allocation3 + $0x50] sm:$0xff] %vm5780_vm5, %v5753_v28 }
 0xa4e   :  { %5860 = vst.msk [vmem:[#allocation3 + $0x4f] sm:$0xff] %vm5850_vm8, %v5818_v40 }
 0xa4f   :  { %5932 = vst.msk [vmem:[#allocation3 + $0x4f] sm:$0xff] %vm5922_vm9, %v5890_v25 }
 0xa50   :  { %6110 = vperm.xlu1 %6429, %v6048_v23  }
 0xa52   :  { %v5621_v1 = vpop.permute.xlu1 %5620  ;;  %6105 = vperm.xlu0 %6428, %v6047_v24   ;;  %6130 = vperm.xlu2 %6427, %v6052_v15  }
 0xa54   :  { %v5550_v41 = vpop.permute.xlu0 %5549  ;;  %v5694_v47 = vpop.permute.xlu2 %5693 }
 0xa55   :  { %5590 = vst.msk [vmem:[#allocation3 + $0x5f] sm:$0xff] %vm5578_vm0, %v5550_v41  ;;  %v11905_v49 = vpop.f32.mrf.mxu1 }
 0xa56   :  { %5661 = vst.msk [vmem:[#allocation3 + $0x5f] sm:$0xff] %vm5649_vm1, %v5621_v1  ;;  %v5949_v39 = vld [vmem:[#allocation3 + $0x48] sm:$0xff] }
 0xa57   :  { %5727 = vst.msk [vmem:[#allocation3 + $0x58] sm:$0xff] %vm5715_vm4, %v5690_v60  ;;  %6015 = vmatmul.f32.gmra.mxu1 %v5949_v39 }
 0xa58   :  { %6125 = vperm.xlu1 %6429, %v6051_v43  }
 0xa5a   :  { %v5820_v20 = vpop.permute.xlu1 %5819  ;;  %6120 = vperm.xlu0 %6428, %v6050_v36  }
 0xa5c   :  { %v5755_v48 = vpop.permute.xlu0 %5754  ;;  %v5896_v32 = vpop.permute.xlu2 %5895 }
 0xa5d   :  { %5792 = vst.msk [vmem:[#allocation3 + $0x58] sm:$0xff] %vm5780_vm5, %v5755_v48 }
 0xa5e   :  { %5861 = vst.msk [vmem:[#allocation3 + $0x57] sm:$0xff] %vm5850_vm8, %v5820_v20 }
 0xa5f   :  { %5933 = vst.msk [vmem:[#allocation3 + $0x57] sm:$0xff] %vm5922_vm9, %v5892_v3 }
 0xa62   :  { %v5623_v2 = vpop.permute.xlu1 %5622 }
 0xa64   :  { %v5552_v8 = vpop.permute.xlu0 %5551  ;;  %v5696_v27 = vpop.permute.xlu2 %5695 }
 0xa65   :  { %5591 = vst.msk [vmem:[#allocation3 + $0x67] sm:$0xff] %vm5578_vm0, %v5552_v8  ;;  %v11907_v7 = vpop.f32.mrf.mxu1 }
 0xa66   :  { %5662 = vst.msk [vmem:[#allocation3 + $0x67] sm:$0xff] %vm5649_vm1, %v5623_v2  ;;  %v5950_v37 = vld [vmem:[#allocation3 + $0x50] sm:$0xff] }
 0xa67   :  { %5728 = vst.msk [vmem:[#allocation3 + $0x60] sm:$0xff] %vm5715_vm4, %v5692_v55  ;;  %6018 = vmatmul.f32.gmra.mxu1 %v5950_v37 }
 0xa6a   :  { %v5822_v16 = vpop.permute.xlu1 %5821 }
 0xa6c   :  { %v5757_v54 = vpop.permute.xlu0 %5756  ;;  %v5898_v57 = vpop.permute.xlu2 %5897 }
 0xa6d   :  { %5793 = vst.msk [vmem:[#allocation3 + $0x60] sm:$0xff] %vm5780_vm5, %v5757_v54 }
 0xa6e   :  { %5862 = vst.msk [vmem:[#allocation3 + $0x5f] sm:$0xff] %vm5850_vm8, %v5822_v16 }
 0xa6f   :  { %5934 = vst.msk [vmem:[#allocation3 + $0x5f] sm:$0xff] %vm5922_vm9, %v5894_v42 }
 0xa72   :  { %v5625_v29 = vpop.permute.xlu1 %5624 }
 0xa74   :  { %v5554_v18 = vpop.permute.xlu0 %5553  ;;  %v5698_v56 = vpop.permute.xlu2 %5697 }
 0xa75   :  { %5592 = vst.msk [vmem:[#allocation3 + $0x6f] sm:$0xff] %vm5578_vm0, %v5554_v18  ;;  %v11909_v33 = vpop.f32.mrf.mxu1 }
 0xa76   :  { %5663 = vst.msk [vmem:[#allocation3 + $0x6f] sm:$0xff] %vm5649_vm1, %v5625_v29  ;;  %v5951_v22 = vld [vmem:[#allocation3 + $0x58] sm:$0xff] }
 0xa77   :  { %5729 = vst.msk [vmem:[#allocation3 + $0x68] sm:$0xff] %vm5715_vm4, %v5694_v47  ;;  %6021 = vmatmul.f32.gmra.mxu1 %v5951_v22 }
 0xa7a   :  { %v5824_v21 = vpop.permute.xlu1 %5823 }
 0xa7c   :  { %v5759_v34 = vpop.permute.xlu0 %5758  ;;  %v5900_v30 = vpop.permute.xlu2 %5899 }
 0xa7d   :  { %5794 = vst.msk [vmem:[#allocation3 + $0x68] sm:$0xff] %vm5780_vm5, %v5759_v34 }
 0xa7e   :  { %5863 = vst.msk [vmem:[#allocation3 + $0x67] sm:$0xff] %vm5850_vm8, %v5824_v21 }
 0xa7f   :  { %5935 = vst.msk [vmem:[#allocation3 + $0x67] sm:$0xff] %vm5922_vm9, %v5896_v32 }
 0xa82   :  { %v5627_v51 = vpop.permute.xlu1 %5626 }
 0xa84   :  { %v5556_v13 = vpop.permute.xlu0 %5555  ;;  %v11911_v6 = vpop.f32.mrf.mxu1 }
 0xa85   :  { %5593 = vst.msk [vmem:[#allocation3 + $0x77] sm:$0xff] %vm5578_vm0, %v5556_v13  ;;  %v11921_v63 = vpop.permute.xlu2 %6055 }
 0xa86   :  { %5664 = vst.msk [vmem:[#allocation3 + $0x77] sm:$0xff] %vm5649_vm1, %v5627_v51  ;;  %v5952_v53 = vld [vmem:[#allocation3 + $0x60] sm:$0xff]  ;;  %v6133_v0 = vmul.f32 %v11921_v63, %v11903_v17 }
 0xa87   :  { %5730 = vst.msk [vmem:[#allocation3 + $0x70] sm:$0xff] %vm5715_vm4, %v5696_v27  ;;  %6024 = vmatmul.f32.gmra.mxu1 %v5952_v53 }
 0xa8a   :  { %v5826_v4 = vpop.permute.xlu1 %5825 }
 0xa8c   :  { %v5761_v14 = vpop.permute.xlu0 %5760 }
 0xa8d   :  { %5795 = vst.msk [vmem:[#allocation3 + $0x70] sm:$0xff] %vm5780_vm5, %v5761_v14  ;;  %v11929_v19 = vpop.permute.xlu2 %6070 }
 0xa8e   :  { %5864 = vst.msk [vmem:[#allocation3 + $0x6f] sm:$0xff] %vm5850_vm8, %v5826_v4  ;;  %v6136_v1 = vmul.f32 %v11929_v19, %v11909_v33 }
 0xa8f   :  { %5936 = vst.msk [vmem:[#allocation3 + $0x6f] sm:$0xff] %vm5922_vm9, %v5898_v57 }
 0xa92   :  { %v5629_v44 = vpop.permute.xlu1 %5628 }
 0xa94   :  { %v5558_v26 = vpop.permute.xlu0 %5557  ;;  %v11913_v31 = vpop.f32.mrf.mxu1 }
 0xa95   :  { %5595 = vst.msk [vmem:[#allocation3 + $0x7f] sm:$0x1] %vm5594_vm10, %v5558_v26  ;;  %v11945_v3 = vpop.permute.xlu2 %6085 }
 0xa96   :  { %5666 = vst.msk [vmem:[#allocation3 + $0x7f] sm:$0x1] %vm5665_vm11, %v5629_v44  ;;  %v5953_v50 = vld [vmem:[#allocation3 + $0x68] sm:$0xff] }
 0xa97   :  { %5731 = vst.msk [vmem:[#allocation3 + $0x78] sm:$0xff] %vm5715_vm4, %v5698_v56  ;;  %6027 = vmatmul.f32.gmra.mxu1 %v5953_v50 }
 0xa9a   :  { %v5828_v38 = vpop.permute.xlu1 %5827 }
 0xa9c   :  { %v5763_v45 = vpop.permute.xlu0 %5762 }
 0xa9d   :  { %5796 = vst.msk [vmem:[#allocation3 + $0x78] sm:$0xff] %vm5780_vm5, %v5763_v45  ;;  %v11959_v48 = vpop.permute.xlu2 %6100 }
 0xa9e   :  { %5865 = vst.msk [vmem:[#allocation3 + $0x77] sm:$0xff] %vm5850_vm8, %v5828_v38 }
 0xa9f   :  { %5937 = vst.msk [vmem:[#allocation3 + $0x77] sm:$0xff] %vm5922_vm9, %v5900_v30 }
 0xaa2   :  { %v5902_v9 = vpop.permute.xlu1 %5901 }
 0xaa4   :  { %v5830_v58 = vpop.permute.xlu0 %5829  ;;  %v11915_v62 = vpop.f32.mrf.mxu1 }
 0xaa5   :  { %5867 = vst.msk [vmem:[#allocation3 + $0x7f] sm:$0x1] %vm5866_vm12, %v5830_v58  ;;  %v6139_v42 = vmul.f32 %v11945_v3, %v11915_v62  ;;  %v11977_v34 = vpop.permute.xlu2 %6115 }
 0xaa6   :  { %5939 = vst.msk [vmem:[#allocation3 + $0x7f] sm:$0x1] %vm5938_vm13, %v5902_v9  ;;  %v5954_v59 = vld [vmem:[#allocation3 + $0x70] sm:$0xff] }
 0xaa7   :  { %6030 = vmatmul.f32.gmra.mxu1 %v5954_v59 }
 0xaaa   :  { %v11927_v61 = vpop.permute.xlu1 %6065 }
 0xaab   :  { %v6135_v28 = vmul.f32 %v11927_v61, %v11907_v7 }
 0xaac   :  { %v11925_v46 = vpop.permute.xlu0 %6060 }
 0xaad   :  { %v5955_v10 = vld [vmem:[#allocation3 + $0x78] sm:$0xff]  ;;  %v6134_v52 = vmul.f32 %v11925_v46, %v11905_v49  ;;  %v11993_v45 = vpop.permute.xlu2 %6130 }
 0xaaf   :  { %6033 = vmatmul.f32.gmra.mxu1 %v5955_v10  ;;  %v6149_v5 = vadd.f32 %v6134_v52, %v6133_v0 }
 0xab1   :  { %v6150_v24 = vadd.f32 %v6149_v5, %v6135_v28 }
 0xab2   :  { %v11939_v40 = vpop.permute.xlu1 %6080 }
 0xab3   :  { %v6151_v41 = vadd.f32 %v6150_v24, %v6136_v1  ;;  %v6138_v20 = vmul.f32 %v11939_v40, %v11913_v31 }
 0xab4   :  { %v11917_v25 = vpop.f32.mrf.mxu1  ;;  %v11935_v11 = vpop.permute.xlu0 %6075 }
 0xab5   :  { %v6137_v15 = vmul.f32 %v11935_v11, %v11911_v6 }
 0xab7   :  { %v6152_v55 = vadd.f32 %v6151_v41, %v6137_v15 }
 0xab9   :  { %v6153_v2 = vadd.f32 %v6152_v55, %v6138_v20 }
 0xaba   :  { %v11953_v39 = vpop.permute.xlu1 %6095 }
 0xabb   :  { %v6154_v47 = vadd.f32 %v6153_v2, %v6139_v42 }
 0xabc   :  { %v11951_v43 = vpop.permute.xlu0 %6090 }
 0xabd   :  { %v6140_v8 = vmul.f32 %v11951_v43, %v11917_v25 }
 0xabf   :  { %v6155_v18 = vadd.f32 %v6154_v47, %v6140_v8 }
 0xac2   :  { %v11971_v29 = vpop.permute.xlu1 %6110 }
 0xac4   :  { %v11919_v35 = vpop.f32.mrf.mxu1  ;;  %v11965_v37 = vpop.permute.xlu0 %6105 }
 0xac5   :  { %v6141_v54 = vmul.f32 %v11953_v39, %v11919_v35 }
 0xac7   :  { %v6156_v22 = vadd.f32 %v6155_v18, %v6141_v54 }
 0xaca   :  { %v11989_v56 = vpop.permute.xlu1 %6125 }
 0xacc   :  { %v11985_v57 = vpop.permute.xlu0 %6120 }
 0xad4   :  { %v11923_v12 = vpop.f32.mrf.mxu1 }
 0xad5   :  { %v6142_v32 = vmul.f32 %v11959_v48, %v11923_v12 }
 0xad7   :  { %v6157_v27 = vadd.f32 %v6156_v22, %v6142_v32 }
 0xae4   :  { %v11931_v60 = vpop.f32.mrf.mxu1 }
 0xae5   :  { %v6143_v21 = vmul.f32 %v11965_v37, %v11931_v60 }
 0xae7   :  { %v6158_v53 = vadd.f32 %v6157_v27, %v6143_v21 }
 0xaf4   :  { %v11941_v23 = vpop.f32.mrf.mxu1 }
 0xaf5   :  { %v6144_v51 = vmul.f32 %v11971_v29, %v11941_v23 }
 0xaf7   :  { %v6159_v14 = vadd.f32 %v6158_v53, %v6144_v51 }
 0xb04   :  { %v11955_v36 = vpop.f32.mrf.mxu1 }
 0xb05   :  { %v6145_v4 = vmul.f32 %v11977_v34, %v11955_v36 }
 0xb07   :  { %v6160_v26 = vadd.f32 %v6159_v14, %v6145_v4 }
 0xb14   :  { %v11967_v16 = vpop.f32.mrf.mxu1 }
 0xb15   :  { %v6146_v44 = vmul.f32 %v11985_v57, %v11967_v16 }
 0xb17   :  { %v6161_v38 = vadd.f32 %v6160_v26, %v6146_v44 }
 0xb24   :  { %v11981_v13 = vpop.f32.mrf.mxu1 }
 0xb25   :  { %v6147_v50 = vmul.f32 %v11989_v56, %v11981_v13 }
 0xb27   :  { %v6162_v9 = vadd.f32 %v6161_v38, %v6147_v50 }
 0xb2c   :  { %v11995_v30 = vpop.f32.mrf.mxu1 }
 0xb2d   :  { %v6148_v58 = vmul.f32 %v11993_v45, %v11995_v30 }
 0xb2f   :  { %v6163_v59 = vadd.f32 %v6162_v9, %v6148_v58 }
 0xb31   :  { %v6164_v10 = vrot.slane %v6163_v59, 4 }
 0xb33   :  { %v6165_v52 = vadd.f32 %v6164_v10, %v6163_v59 }
 0xb35   :  { %v6166_v0 = vrot.slane %v6165_v52, 2 }
 0xb37   :  { %v6167_v5 = vadd.f32 %v6166_v0, %v6165_v52 }
 0xb39   :  { %v6168_v28 = vrot.slane %v6167_v5, 1 }
 0xb3b   :  { %v6169_v24 = vadd.f32 %v6168_v28, %v6167_v5 }
 0xb3d   :  { %v11999_v1 = vmul.f32 0.013888889, %v6169_v24 }
 0xb3f   :  { %v6171_v15 = vsub.f32 %v11903_v17, %v11999_v1  ;;  %v6172_v41 = vsub.f32 %v11905_v49, %v11999_v1  ;;  %v6173_v55 = vsub.f32 %v11907_v7, %v11999_v1  ;;  %v6174_v42 = vsub.f32 %v11909_v33, %v11999_v1 }
 0xb40   :  { %v6175_v8 = vsub.f32 %v11911_v6, %v11999_v1  ;;  %v6176_v32 = vsub.f32 %v11913_v31, %v11999_v1  ;;  %v6178_v51 = vsub.f32 %v11917_v25, %v11999_v1  ;;  %v6179_v14 = vsub.f32 %v11919_v35, %v11999_v1 }
 0xb41   :  { %v6187_v20 = vmul.f32 %v6171_v15, %v11921_v63  ;;  %v6188_v2 = vmul.f32 %v6172_v41, %v11925_v46  ;;  %v6189_v47 = vmul.f32 %v6173_v55, %v11927_v61  ;;  %v6190_v22 = vmul.f32 %v6174_v42, %v11929_v19 }
 0xb42   :  { %v6177_v63 = vsub.f32 %v11915_v62, %v11999_v1  ;;  %v6191_v46 = vmul.f32 %v6175_v8, %v11935_v11  ;;  %v6192_v53 = vmul.f32 %v6176_v32, %v11939_v40  ;;  %v6180_v50 = vsub.f32 %v11923_v12, %v11999_v1 }
 0xb43   :  { %v6203_v54 = vmul.f32 %v6187_v20, %v6187_v20  ;;  %v6204_v18 = vmul.f32 %v6188_v2, %v6188_v2  ;;  %v6205_v21 = vmul.f32 %v6189_v47, %v6189_v47  ;;  %v6206_v61 = vmul.f32 %v6190_v22, %v6190_v22 }
 0xb44   :  { %v6193_v44 = vmul.f32 %v6177_v63, %v11945_v3  ;;  %v6207_v19 = vmul.f32 %v6191_v46, %v6191_v46  ;;  %v6194_v11 = vmul.f32 %v6178_v51, %v11951_v43  ;;  %v6208_v38 = vmul.f32 %v6192_v53, %v6192_v53 }
 0xb45   :  { %v6219_v27 = vadd.f32 %v6204_v18, %v6203_v54  ;;  %v6181_v58 = vsub.f32 %v11931_v60, %v11999_v1  ;;  %v6195_v40 = vmul.f32 %v6179_v14, %v11953_v39  ;;  %v6182_v52 = vsub.f32 %v11941_v23, %v11999_v1 }
 0xb46   :  { %v6209_v59 = vmul.f32 %v6193_v44, %v6193_v44  ;;  %v6196_v3 = vmul.f32 %v6180_v50, %v11959_v48  ;;  %v6210_v0 = vmul.f32 %v6194_v11, %v6194_v11  ;;  %v6183_v28 = vsub.f32 %v11955_v36, %v11999_v1 }
 0xb47   :  { %v6220_v4 = vadd.f32 %v6219_v27, %v6205_v21  ;;  %v6197_v43 = vmul.f32 %v6181_v58, %v11965_v37  ;;  %v6211_v24 = vmul.f32 %v6195_v40, %v6195_v40  ;;  %v6184_v41 = vsub.f32 %v11967_v16, %v11999_v1 }
 0xb48   :  { %v6198_v39 = vmul.f32 %v6182_v52, %v11971_v29  ;;  %v6212_v55 = vmul.f32 %v6196_v3, %v6196_v3  ;;  %v6185_v2 = vsub.f32 %v11981_v13, %v11999_v1  ;;  %v6199_v48 = vmul.f32 %v6183_v28, %v11977_v34  ;;  %v6254_v3 = vld [vmem:[%s12128_s7] sm:$0x1] }
 0xb49   :  { %v6221_v26 = vadd.f32 %v6220_v4, %v6206_v61  ;;  %v6213_v42 = vmul.f32 %v6197_v43, %v6197_v43  ;;  %v6186_v47 = vsub.f32 %v11995_v30, %v11999_v1  ;;  %v6200_v37 = vmul.f32 %v6184_v41, %v11985_v57 }
 0xb4a   :  { %v6214_v54 = vmul.f32 %v6198_v39, %v6198_v39  ;;  %v6201_v32 = vmul.f32 %v6185_v2, %v11989_v56  ;;  %v6215_v22 = vmul.f32 %v6199_v48, %v6199_v48 }
 0xb4b   :  { %v6222_v9 = vadd.f32 %v6221_v26, %v6207_v19  ;;  %v6202_v63 = vmul.f32 %v6186_v47, %v11993_v45  ;;  %v6216_v46 = vmul.f32 %v6200_v37, %v6200_v37 }
 0xb4c   :  { %v6217_v27 = vmul.f32 %v6201_v32, %v6201_v32 }
 0xb4d   :  { %v6223_v10 = vadd.f32 %v6222_v9, %v6208_v38  ;;  %v6218_v34 = vmul.f32 %v6202_v63, %v6202_v63 }
 0xb4f   :  { %v6224_v5 = vadd.f32 %v6223_v10, %v6209_v59  ;;  %v6252_v59 = vld [vmem:[%s12127_s6] sm:$0x1] }
 0xb51   :  { %v6225_v15 = vadd.f32 %v6224_v5, %v6210_v0 }
 0xb53   :  { %v6226_v20 = vadd.f32 %v6225_v15, %v6211_v24 }
 0xb55   :  { %v6227_v8 = vadd.f32 %v6226_v20, %v6212_v55 }
 0xb57   :  { %v6228_v18 = vadd.f32 %v6227_v8, %v6213_v42 }
 0xb59   :  { %v6229_v29 = vadd.f32 %v6228_v18, %v6214_v54 }
 0xb5b   :  { %v6230_v21 = vadd.f32 %v6229_v29, %v6215_v22 }
 0xb5d   :  { %v6231_v51 = vadd.f32 %v6230_v21, %v6216_v46 }
 0xb5f   :  { %v6232_v53 = vadd.f32 %v6231_v51, %v6217_v27 }
 0xb61   :  { %v6233_v61 = vadd.f32 %v6232_v53, %v6218_v34 }
 0xb63   :  { %v6234_v4 = vrot.slane %v6233_v61, 4 }
 0xb65   :  { %v6235_v14 = vadd.f32 %v6234_v4, %v6233_v61 }
 0xb67   :  { %v6236_v44 = vrot.slane %v6235_v14, 2 }
 0xb69   :  { %v6237_v19 = vadd.f32 %v6236_v44, %v6235_v14 }
 0xb6b   :  { %v6238_v57 = vrot.slane %v6237_v19, 1 }
 0xb6d   :  { %v6239_v26 = vadd.f32 %v6238_v57, %v6237_v19 }
 0xb6f   :  { %v6240_v50 = vmul.f32 0.013888889, %v6239_v26 }
 0xb71   :  { %v6241_v11 = vadd.f32 1e-05, %v6240_v50 }
 0xb73   :  { %6432 = vrsqrt.f32 %v6241_v11  ;;  %vm6248_vm15 = vweird.f32 %v6241_v11 }
 0xb79   :  { %v6433_v56 = vpop.eup %6432 }
 0xb7a   :  { %v6243_v38 = vmul.f32 %v6433_v56, %v6241_v11  ;;  %vm6249_vm14 = vweird.f32 %v6433_v56 }
 0xb7b   :  { %vm6250_vm0 = vmor %vm6248_vm15, %vm6249_vm14 }
 0xb7c   :  { %v6244_v9 = vmul.f32 %v6433_v56, %v6243_v38 }
 0xb7e   :  { %v6245_v45 = vmul.f32 0.5, %v6244_v9 }
 0xb80   :  { %v6246_v58 = vsub.f32 1.5, %v6245_v45 }
 0xb82   :  { %v6247_v40 = vmul.f32 %v6433_v56, %v6246_v58 }
 0xb84   :  { %v6251_v10 = vsel %vm6250_vm0, %v6433_v56, %v6247_v40 }
 0xb85   :  { %v6253_v52 = vmul.f32 %v6252_v59, %v6251_v10 }
 0xb87   :  { %v6255_v0 = vmul.f32 %v6253_v52, %v11999_v1  ;;  %v6257_v28 = vperm.slane %v6253_v52, 0 }
 0xb89   :  { %v6256_v5 = vsub.f32 %v6254_v3, %v6255_v0  ;;  %v6258_v43 = vmul.f32 %v6257_v28, %v11903_v17  ;;  %v6259_v24 = vmul.f32 %v6257_v28, %v11905_v49  ;;  %v6260_v15 = vmul.f32 %v6257_v28, %v11907_v7 }
 0xb8a   :  { %v6261_v39 = vmul.f32 %v6257_v28, %v11909_v33  ;;  %v6262_v55 = vmul.f32 %v6257_v28, %v11911_v6  ;;  %v6263_v42 = vmul.f32 %v6257_v28, %v11913_v31  ;;  %v6264_v1 = vmul.f32 %v6257_v28, %v11915_v62 }
 0xb8b   :  { %v6275_v41 = vperm.slane %v6256_v5, 0  ;;  %v6265_v17 = vmul.f32 %v6257_v28, %v11917_v25  ;;  %v6266_v49 = vmul.f32 %v6257_v28, %v11919_v35  ;;  %v6267_v6 = vmul.f32 %v6257_v28, %v11923_v12 }
 0xb8c   :  { %v6268_v29 = vmul.f32 %v6257_v28, %v11931_v60  ;;  %v6269_v62 = vmul.f32 %v6257_v28, %v11941_v23  ;;  %v6270_v12 = vmul.f32 %v6257_v28, %v11955_v36  ;;  %v6271_v60 = vmul.f32 %v6257_v28, %v11967_v16 }
 0xb8d   :  { %v6277_v20 = vadd.f32 %v6275_v41, %v6258_v43  ;;  %v6278_v2 = vadd.f32 %v6275_v41, %v6259_v24  ;;  %v6279_v48 = vadd.f32 %v6275_v41, %v6260_v15  ;;  %v6280_v8 = vadd.f32 %v6275_v41, %v6261_v39 }
 0xb8e   :  { %v6281_v47 = vadd.f32 %v6275_v41, %v6262_v55  ;;  %v6282_v37 = vadd.f32 %v6275_v41, %v6263_v42  ;;  %v6283_v7 = vadd.f32 %v6275_v41, %v6264_v1  ;;  %v6284_v32 = vadd.f32 %v6275_v41, %v6265_v17 }
 0xb8f   :  { %v6293_v54 = vmax.f32 %v6277_v20, 0.0  ;;  %v6294_v18 = vmax.f32 %v6278_v2, 0.0  ;;  %v6295_v33 = vmax.f32 %v6279_v48, 0.0  ;;  %v6296_v22 = vmax.f32 %v6280_v8, 0.0 }
 0xb90   :  { %v6285_v31 = vadd.f32 %v6275_v41, %v6266_v49  ;;  %v6297_v63 = vmax.f32 %v6281_v47, 0.0  ;;  %v6286_v25 = vadd.f32 %v6275_v41, %v6267_v6  ;;  %v6298_v35 = vmax.f32 %v6282_v37, 0.0 }
 0xb91   :  { %6309 = vst [vmem:[%s12129_s9] sm:$0xff] %v6293_v54  ;;  %v6287_v46 = vadd.f32 %v6275_v41, %v6268_v29  ;;  %v6299_v21 = vmax.f32 %v6283_v7, 0.0  ;;  %v6288_v27 = vadd.f32 %v6275_v41, %v6269_v62  ;;  %v6300_v51 = vmax.f32 %v6284_v32, 0.0 }
 0xb92   :  { %6310 = vst [vmem:[%s12129_s9 + $0x8] sm:$0xff] %v6294_v18  ;;  %v6272_v23 = vmul.f32 %v6257_v28, %v11981_v13  ;;  %v6289_v34 = vadd.f32 %v6275_v41, %v6270_v12  ;;  %v6301_v53 = vmax.f32 %v6285_v31, 0.0  ;;  %v6273_v36 = vmul.f32 %v6257_v28, %v11995_v30 }
 0xb93   :  { %6311 = vst [vmem:[%s12129_s9 + $0x10] sm:$0xff] %v6295_v33  ;;  %v6290_v61 = vadd.f32 %v6275_v41, %v6271_v60  ;;  %v6302_v4 = vmax.f32 %v6286_v25, 0.0  ;;  %v6303_v14 = vmax.f32 %v6287_v46, 0.0  ;;  %v6304_v44 = vmax.f32 %v6288_v27, 0.0 }
 0xb94   :  { %6312 = vst [vmem:[%s12129_s9 + $0x18] sm:$0xff] %v6296_v22  ;;  %v6291_v16 = vadd.f32 %v6275_v41, %v6272_v23  ;;  %v6292_v13 = vadd.f32 %v6275_v41, %v6273_v36  ;;  %v6305_v19 = vmax.f32 %v6289_v34, 0.0 }
 0xb95   :  { %6313 = vst [vmem:[%s12129_s9 + $0x20] sm:$0xff] %v6297_v63  ;;  %v6306_v30 = vmax.f32 %v6290_v61, 0.0 }
 0xb96   :  { %6314 = vst [vmem:[%s12129_s9 + $0x28] sm:$0xff] %v6298_v35  ;;  %v6307_v57 = vmax.f32 %v6291_v16, 0.0  ;;  %v6308_v26 = vmax.f32 %v6292_v13, 0.0 }
 0xb97   :  { %6315 = vst [vmem:[%s12129_s9 + $0x30] sm:$0xff] %v6299_v21 }
 0xb98   :  { %6316 = vst [vmem:[%s12129_s9 + $0x38] sm:$0xff] %v6300_v51 }
 0xb99   :  { %6317 = vst [vmem:[%s12129_s9 + $0x40] sm:$0xff] %v6301_v53 }
 0xb9a   :  { %6318 = vst [vmem:[%s12129_s9 + $0x48] sm:$0xff] %v6302_v4 }
 0xb9b   :  { %6319 = vst [vmem:[%s12129_s9 + $0x50] sm:$0xff] %v6303_v14 }
 0xb9c   :  { %6320 = vst [vmem:[%s12129_s9 + $0x58] sm:$0xff] %v6304_v44 }
 0xb9d   :  { %6321 = vst [vmem:[%s12129_s9 + $0x60] sm:$0xff] %v6305_v19 }
 0xb9e   :  { %6322 = vst [vmem:[%s12129_s9 + $0x68] sm:$0xff] %v6306_v30 }
 0xb9f   :  { %6323 = vst [vmem:[%s12129_s9 + $0x70] sm:$0xff] %v6307_v57 }
 0xba0   :  { %6324 = vst [vmem:[%s12129_s9 + $0x78] sm:$0xff] %v6308_v26 }

</bundles_post_ra>
